<compile_context>
chip_gen: v5e
topology: v5e:2x2
jax: 0.10.0
libtpu: 0.0.40
codegen_flags: <defaults>
</compile_context>

<pallas_src>
import math
import numpy as np
import jax
import jax.numpy as jnp
from jax.experimental import pallas as pl
from jax.experimental.pallas import tpu as pltpu

keep_prob = 1                  # Dropout(p = 1 - keep_prob) == Dropout(p=0) == identity
result_high = 0.9
result_low = 1.0 - result_high

C1, C2, C3 = 32, 64, 128       # conv widths from the module (1->32->64->128)


# --------------------------------------------------------------------------- #
# Fully fused network kernel:                                                  #
#   conv1+relu -> conv2+relu -> maxpool2x2 -> conv3+relu -> maxpool2x2(pad=1)  #
#   -> sigmoid head.  Only the padded input, weights and the (5,5,128) output  #
#   cross HBM; everything else stays in VMEM / vregs.                          #
# --------------------------------------------------------------------------- #
def _make_net_kernel(H, W):
    assert H % 4 == 0 and W % 4 == 0, "spatial size must be divisible by 4"
    # All-in-VMEM design: valid for small images only (scratch ~O(H*W*C*4B)).
    # For H,W beyond ~64 switch to a row-tiled grid with BlockSpec pipelining.
    assert H * W <= 64 * 64, "all-in-VMEM fused kernel assumes a small image"
    Hp, Wp = H // 2, W // 2              # after first 2x2 pool
    Ho, Wo = Hp // 2 + 1, Wp // 2 + 1    # after second 2x2 pool with pad=1

    def kernel(xpad_ref, w1_ref, b1_ref, w2_ref, b2_ref, w3_ref, b3_ref, o_ref,
               h1pad_ref, slab2_ref, p1pad_ref, slab3_ref):
        f32 = jnp.float32

        # ------------- layer1: 3x3 conv (Cin=1) + bias + ReLU ----------------
        # Input arrives zero-padded and lane-replicated to C1 (XLA wrapper), so
        # every tap is a lane-aligned VPU FMA; acc starts at the bias.
        w1v = w1_ref[...]                                       # (9, C1)
        acc1 = jnp.broadcast_to(b1_ref[...], (H, W, C1))
        for kh in range(3):
            band = xpad_ref[pl.ds(kh, H), :, :]                 # one load per kh
            for kw in range(3):
                t = kh * 3 + kw
                acc1 = acc1 + band[:, kw:kw + W, :] * w1v[t:t + 1, :]
        h1 = jnp.maximum(acc1, 0.0)                             # (H, W, C1)

        # ------------- layer2: im2col + single K=9*C1 matmul + ReLU ----------
        # halo-only zero fill (interior is fully overwritten right after)
        zr1 = jnp.zeros((1, W + 2, C1), f32)
        zc1 = jnp.zeros((H, 1, C1), f32)
        h1pad_ref[pl.ds(0, 1), :, :] = zr1
        h1pad_ref[pl.ds(H + 1, 1), :, :] = zr1
        h1pad_ref[pl.ds(1, H), pl.ds(0, 1), :] = zc1
        h1pad_ref[pl.ds(1, H), pl.ds(W + 1, 1), :] = zc1
        h1pad_ref[pl.ds(1, H), pl.ds(1, W), :] = h1

        for kh in range(3):                                     # 3 band loads,
            band = h1pad_ref[pl.ds(kh, H), :, :]                # windows by value slice
            for kw in range(3):
                t = kh * 3 + kw
                slab2_ref[:, pl.ds(t * C1, C1)] = (
                    band[:, kw:kw + W, :].reshape(H * W, C1))
        h2 = jnp.dot(slab2_ref[...], w2_ref[...],               # (H*W, 9*C1)x(9*C1, C2)
                     preferred_element_type=f32)
        h2 = jnp.maximum(h2 + b2_ref[...], 0.0)                 # (H*W, C2)

        # ------------- maxpool 2x2 stride 2 (no pad), all on values ----------
        h2r = h2.reshape(Hp, 2, W, C2)
        rmax1 = jnp.maximum(h2r[:, 0], h2r[:, 1])               # H pairing (Hp, W, C2)
        p1 = jnp.concatenate(                                   # W pairing, static slices
            [jnp.maximum(rmax1[:, 2 * j:2 * j + 1, :],
                         rmax1[:, 2 * j + 1:2 * j + 2, :]) for j in range(Wp)],
            axis=1)                                             # (Hp, Wp, C2)

        # ------------- layer3: im2col + single K=9*C2 matmul + ReLU ----------
        zr2 = jnp.zeros((1, Wp + 2, C2), f32)
        zc2 = jnp.zeros((Hp, 1, C2), f32)
        p1pad_ref[pl.ds(0, 1), :, :] = zr2
        p1pad_ref[pl.ds(Hp + 1, 1), :, :] = zr2
        p1pad_ref[pl.ds(1, Hp), pl.ds(0, 1), :] = zc2
        p1pad_ref[pl.ds(1, Hp), pl.ds(Wp + 1, 1), :] = zc2
        p1pad_ref[pl.ds(1, Hp), pl.ds(1, Wp), :] = p1

        for kh in range(3):
            band = p1pad_ref[pl.ds(kh, Hp), :, :]
            for kw in range(3):
                t = kh * 3 + kw
                slab3_ref[:, pl.ds(t * C2, C2)] = (
                    band[:, kw:kw + Wp, :].reshape(Hp * Wp, C2))
        h3 = jnp.dot(slab3_ref[...], w3_ref[...],               # (Hp*Wp, 9*C2)x(9*C2, C3)
                     preferred_element_type=f32)
        h3 = jnp.maximum(h3 + b3_ref[...], 0.0).reshape(Hp, Wp, C3)

        # ------------- maxpool 2x2 stride 2 pad=1, static slices on values ---
        # window index sets per output row/col: {0}, {1,2}, {3,4}, {5,6}, {n-1}
        # (padding cells never win, so they are simply excluded)
        def pool_pad1(v, axis, n):
            def sl(lo, hi):
                idx = [slice(None)] * 3
                idx[axis] = slice(lo, hi)
                return v[tuple(idx)]
            pieces = [sl(0, 1)]
            for j in range(1, n // 2):
                pieces.append(jnp.maximum(sl(2 * j - 1, 2 * j), sl(2 * j, 2 * j + 1)))
            pieces.append(sl(n - 1, n))
            return jnp.concatenate(pieces, axis=axis)

        rmax2 = pool_pad1(h3, 0, Hp)                            # (Ho, Wp, C3)
        p2 = pool_pad1(rmax2, 1, Wp)                            # (Ho, Wo, C3)

        # head: sigmoid(x) * (result_high - result_low) + result_low
        # lane-dense (C3=128) single output store
        o_ref[...] = jax.nn.sigmoid(p2) * (result_high - result_low) + result_low

    return kernel, (Hp, Wp, Ho, Wo)


# --------------------------------------------------------------------------- #
# One-time parameter re-layout (hoisted out of the per-call forward path):     #
# PyTorch OIHW conv weights -> im2col matrices (9*Cin, Cout); biases (1,Cout). #
# --------------------------------------------------------------------------- #
def preprocess_params(params):
    (w1, b1), (w2, b2), (w3, b3) = params

    def im2col_w(w):                              # (O, I, 3, 3) -> (9*I, O), (kh,kw,ci) major
        o, i, _, _ = w.shape
        return jnp.transpose(w, (2, 3, 1, 0)).reshape(9 * i, o).astype(jnp.float32)

    return (im2col_w(w1),  b1.reshape(1, C1).astype(jnp.float32),   # (9, 32)
            im2col_w(w2),  b2.reshape(1, C2).astype(jnp.float32),   # (288, 64)
            im2col_w(w3),  b3.reshape(1, C3).astype(jnp.float32))   # (576, 128)


# --------------------------------------------------------------------------- #
# Net.forward — fc1/fc2 exist in __init__ but are never used in forward().     #
# --------------------------------------------------------------------------- #
# TODO(synk): fc1/fc2 are declared in the PyTorch __init__ but unused by forward(); omitted.
# TODO(synk): forward() implies N=1 (torch.squeeze(x,0)); if batched, add a leading grid
#             axis with dimension_semantics=("parallel",) so v7x's 2nd TensorCore is used.
def net_forward(x_nchw, kparams):
    n, c, H, W = x_nchw.shape
    assert n == 1 and c == 1                      # torch.squeeze(x,0) / Conv2d(1, ...)
    kernel, (Hp, Wp, Ho, Wo) = _make_net_kernel(H, W)

    # layer1 prep in XLA: HWC, lane-replicate Cin=1 -> C1, zero-pad for conv1
    x_hwc = jnp.transpose(x_nchw[0], (1, 2, 0))                 # (H, W, 1)
    x_rep = jnp.broadcast_to(x_hwc, (H, W, C1)).astype(jnp.float32)
    x_pad = jnp.pad(x_rep, ((1, 1), (1, 1), (0, 0)))            # (H+2, W+2, C1)

    out_hwc = pl.pallas_call(
        kernel,
        out_shape=jax.ShapeDtypeStruct((Ho, Wo, C3), jnp.float32),
        in_specs=[pl.BlockSpec(memory_space=pltpu.MemorySpace.VMEM)] * 7,
        out_specs=pl.BlockSpec(memory_space=pltpu.MemorySpace.VMEM),
        scratch_shapes=[
            pltpu.VMEM((H + 2, W + 2, C1), jnp.float32),        # zero-padded conv2 input
            pltpu.VMEM((H * W, 9 * C1), jnp.float32),           # layer2 im2col slab (K=288)
            pltpu.VMEM((Hp + 2, Wp + 2, C2), jnp.float32),      # zero-padded conv3 input
            pltpu.VMEM((Hp * Wp, 9 * C2), jnp.float32),         # layer3 im2col slab (K=576)
        ],
    )(x_pad, *kparams)
    # keep the kernel output HWC (lane-dense C=128 store); CHW transpose stays in XLA
    return jnp.transpose(out_hwc, (2, 0, 1))      # (C3, Ho, Wo) == torch.squeeze(x, 0)


# --------------------------------------------------------------------------- #
# Pure-JAX reference for validation.                                           #
# --------------------------------------------------------------------------- #
def reference_forward(x_nchw, params):
    (w1, b1), (w2, b2), (w3, b3) = params

    def conv(x, w, b):
        y = jax.lax.conv_general_dilated(
            x, w, window_strides=(1, 1), padding=((1, 1), (1, 1)),
            dimension_numbers=("NCHW", "OIHW", "NCHW"),
            precision=jax.lax.Precision.HIGHEST)
        return y + b[None, :, None, None]

    def pool(x, pad):
        return jax.lax.reduce_window(
            x, -jnp.inf, jax.lax.max, (1, 1, 2, 2), (1, 1, 2, 2),
            padding=((0, 0), (0, 0), (pad, pad), (pad, pad)))

    x = jax.nn.relu(conv(x_nchw, w1, b1))
    x = jax.nn.relu(conv(x, w2, b2))
    x = pool(x, 0)
    x = jax.nn.relu(conv(x, w3, b3))
    x = pool(x, 1)
    x = jnp.squeeze(x, 0)
    return jax.nn.sigmoid(x) * (result_high - result_low) + result_low


def make_conv_params(key, cin, cout):
    """Deterministic init matching PyTorch Conv2d default (U[-1/sqrt(fan_in), ...])."""
    k1, k2 = jax.random.split(key)
    bound = 1.0 / math.sqrt(cin * 3 * 3)
    w = jax.random.uniform(k1, (cout, cin, 3, 3), jnp.float32, -bound, bound)
    b = jax.random.uniform(k2, (cout,), jnp.float32, -bound, bound)
    return w, b


if __name__ == "__main__":
    root = jax.random.PRNGKey(0)
    kx, k1, k2, k3 = jax.random.split(root, 4)

    params = (
        make_conv_params(k1, 1, C1),
        make_conv_params(k2, C1, C2),
        make_conv_params(k3, C2, C3),
    )
    kparams = preprocess_params(params)           # one-time weight re-layout

    # batch must be 1 (torch.squeeze(x, 0)) and channels 1 (Conv2d(1, 32, ...))
    x = jax.random.normal(kx, (1, 1, 16, 16), jnp.float32)

    out = jax.block_until_ready(jax.jit(net_forward)(x, kparams))   # (128, 5, 5) CHW
    ref = jax.block_until_ready(reference_forward(x, params))

    assert out.shape == ref.shape == (C3, 5, 5), (out.shape, ref.shape)
    np.testing.assert_allclose(np.asarray(out), np.asarray(ref), rtol=1e-3, atol=1e-3)

    print("KERNEL_OK")
</pallas_src>

<mosaic_0001>
module attributes {stable_mosaic.version = 11 : i64} {
  func.func @kernel(%arg0: memref<18x18x32xf32, #tpu.memory_space<vmem>>, %arg1: memref<9x32xf32, #tpu.memory_space<vmem>>, %arg2: memref<1x32xf32, #tpu.memory_space<vmem>>, %arg3: memref<288x64xf32, #tpu.memory_space<vmem>>, %arg4: memref<1x64xf32, #tpu.memory_space<vmem>>, %arg5: memref<576x128xf32, #tpu.memory_space<vmem>>, %arg6: memref<1x128xf32, #tpu.memory_space<vmem>>, %arg7: memref<5x5x128xf32, #tpu.memory_space<vmem>>, %arg8: memref<18x18x32xf32, #tpu.memory_space<vmem>>, %arg9: memref<256x288xf32, #tpu.memory_space<vmem>>, %arg10: memref<10x10x64xf32, #tpu.memory_space<vmem>>, %arg11: memref<64x576xf32, #tpu.memory_space<vmem>>) attributes {dimension_semantics = [], scalar_prefetch = 0 : i64, scratch_operands = 4 : i64, tpu.core_type = #tpu.core_type<tc>} {
    %c0 = arith.constant 0 : index
    %c0_0 = arith.constant 0 : index
    %0 = vector.load %arg1[%c0, %c0_0] : memref<9x32xf32, #tpu.memory_space<vmem>>, vector<9x32xf32>
    %c0_1 = arith.constant 0 : index
    %c0_2 = arith.constant 0 : index
    %1 = vector.load %arg2[%c0_1, %c0_2] : memref<1x32xf32, #tpu.memory_space<vmem>>, vector<1x32xf32>
    %2 = vector.shape_cast %1 : vector<1x32xf32> to vector<1x1x32xf32>
    %3 = vector.broadcast %2 : vector<1x1x32xf32> to vector<16x16x32xf32>
    %c0_3 = arith.constant 0 : index
    %c0_4 = arith.constant 0 : index
    %c0_5 = arith.constant 0 : index
    %4 = vector.load %arg0[%c0_3, %c0_4, %c0_5] : memref<18x18x32xf32, #tpu.memory_space<vmem>>, vector<16x18x32xf32>
    %5 = vector.extract_strided_slice %4 {offsets = [0, 0, 0], sizes = [16, 16, 32], strides = [1, 1, 1]} : vector<16x18x32xf32> to vector<16x16x32xf32>
    %6 = vector.extract_strided_slice %0 {offsets = [0, 0], sizes = [1, 32], strides = [1, 1]} : vector<9x32xf32> to vector<1x32xf32>
    %7 = vector.shape_cast %6 : vector<1x32xf32> to vector<1x1x32xf32>
    %8 = vector.broadcast %7 : vector<1x1x32xf32> to vector<16x16x32xf32>
    %9 = arith.mulf %5, %8 : vector<16x16x32xf32>
    %10 = arith.addf %3, %9 : vector<16x16x32xf32>
    %11 = vector.extract_strided_slice %4 {offsets = [0, 1, 0], sizes = [16, 16, 32], strides = [1, 1, 1]} : vector<16x18x32xf32> to vector<16x16x32xf32>
    %12 = vector.extract_strided_slice %0 {offsets = [1, 0], sizes = [1, 32], strides = [1, 1]} : vector<9x32xf32> to vector<1x32xf32>
    %13 = vector.shape_cast %12 : vector<1x32xf32> to vector<1x1x32xf32>
    %14 = vector.broadcast %13 : vector<1x1x32xf32> to vector<16x16x32xf32>
    %15 = arith.mulf %11, %14 : vector<16x16x32xf32>
    %16 = arith.addf %10, %15 : vector<16x16x32xf32>
    %17 = vector.extract_strided_slice %4 {offsets = [0, 2, 0], sizes = [16, 16, 32], strides = [1, 1, 1]} : vector<16x18x32xf32> to vector<16x16x32xf32>
    %18 = vector.extract_strided_slice %0 {offsets = [2, 0], sizes = [1, 32], strides = [1, 1]} : vector<9x32xf32> to vector<1x32xf32>
    %19 = vector.shape_cast %18 : vector<1x32xf32> to vector<1x1x32xf32>
    %20 = vector.broadcast %19 : vector<1x1x32xf32> to vector<16x16x32xf32>
    %21 = arith.mulf %17, %20 : vector<16x16x32xf32>
    %22 = arith.addf %16, %21 : vector<16x16x32xf32>
    %c1 = arith.constant 1 : index
    %c0_6 = arith.constant 0 : index
    %c0_7 = arith.constant 0 : index
    %23 = vector.load %arg0[%c1, %c0_6, %c0_7] : memref<18x18x32xf32, #tpu.memory_space<vmem>>, vector<16x18x32xf32>
    %24 = vector.extract_strided_slice %23 {offsets = [0, 0, 0], sizes = [16, 16, 32], strides = [1, 1, 1]} : vector<16x18x32xf32> to vector<16x16x32xf32>
    %25 = vector.extract_strided_slice %0 {offsets = [3, 0], sizes = [1, 32], strides = [1, 1]} : vector<9x32xf32> to vector<1x32xf32>
    %26 = vector.shape_cast %25 : vector<1x32xf32> to vector<1x1x32xf32>
    %27 = vector.broadcast %26 : vector<1x1x32xf32> to vector<16x16x32xf32>
    %28 = arith.mulf %24, %27 : vector<16x16x32xf32>
    %29 = arith.addf %22, %28 : vector<16x16x32xf32>
    %30 = vector.extract_strided_slice %23 {offsets = [0, 1, 0], sizes = [16, 16, 32], strides = [1, 1, 1]} : vector<16x18x32xf32> to vector<16x16x32xf32>
    %31 = vector.extract_strided_slice %0 {offsets = [4, 0], sizes = [1, 32], strides = [1, 1]} : vector<9x32xf32> to vector<1x32xf32>
    %32 = vector.shape_cast %31 : vector<1x32xf32> to vector<1x1x32xf32>
    %33 = vector.broadcast %32 : vector<1x1x32xf32> to vector<16x16x32xf32>
    %34 = arith.mulf %30, %33 : vector<16x16x32xf32>
    %35 = arith.addf %29, %34 : vector<16x16x32xf32>
    %36 = vector.extract_strided_slice %23 {offsets = [0, 2, 0], sizes = [16, 16, 32], strides = [1, 1, 1]} : vector<16x18x32xf32> to vector<16x16x32xf32>
    %37 = vector.extract_strided_slice %0 {offsets = [5, 0], sizes = [1, 32], strides = [1, 1]} : vector<9x32xf32> to vector<1x32xf32>
    %38 = vector.shape_cast %37 : vector<1x32xf32> to vector<1x1x32xf32>
    %39 = vector.broadcast %38 : vector<1x1x32xf32> to vector<16x16x32xf32>
    %40 = arith.mulf %36, %39 : vector<16x16x32xf32>
    %41 = arith.addf %35, %40 : vector<16x16x32xf32>
    %c2 = arith.constant 2 : index
    %c0_8 = arith.constant 0 : index
    %c0_9 = arith.constant 0 : index
    %42 = vector.load %arg0[%c2, %c0_8, %c0_9] : memref<18x18x32xf32, #tpu.memory_space<vmem>>, vector<16x18x32xf32>
    %43 = vector.extract_strided_slice %42 {offsets = [0, 0, 0], sizes = [16, 16, 32], strides = [1, 1, 1]} : vector<16x18x32xf32> to vector<16x16x32xf32>
    %44 = vector.extract_strided_slice %0 {offsets = [6, 0], sizes = [1, 32], strides = [1, 1]} : vector<9x32xf32> to vector<1x32xf32>
    %45 = vector.shape_cast %44 : vector<1x32xf32> to vector<1x1x32xf32>
    %46 = vector.broadcast %45 : vector<1x1x32xf32> to vector<16x16x32xf32>
    %47 = arith.mulf %43, %46 : vector<16x16x32xf32>
    %48 = arith.addf %41, %47 : vector<16x16x32xf32>
    %49 = vector.extract_strided_slice %42 {offsets = [0, 1, 0], sizes = [16, 16, 32], strides = [1, 1, 1]} : vector<16x18x32xf32> to vector<16x16x32xf32>
    %50 = vector.extract_strided_slice %0 {offsets = [7, 0], sizes = [1, 32], strides = [1, 1]} : vector<9x32xf32> to vector<1x32xf32>
    %51 = vector.shape_cast %50 : vector<1x32xf32> to vector<1x1x32xf32>
    %52 = vector.broadcast %51 : vector<1x1x32xf32> to vector<16x16x32xf32>
    %53 = arith.mulf %49, %52 : vector<16x16x32xf32>
    %54 = arith.addf %48, %53 : vector<16x16x32xf32>
    %55 = vector.extract_strided_slice %42 {offsets = [0, 2, 0], sizes = [16, 16, 32], strides = [1, 1, 1]} : vector<16x18x32xf32> to vector<16x16x32xf32>
    %56 = vector.extract_strided_slice %0 {offsets = [8, 0], sizes = [1, 32], strides = [1, 1]} : vector<9x32xf32> to vector<1x32xf32>
    %57 = vector.shape_cast %56 : vector<1x32xf32> to vector<1x1x32xf32>
    %58 = vector.broadcast %57 : vector<1x1x32xf32> to vector<16x16x32xf32>
    %59 = arith.mulf %55, %58 : vector<16x16x32xf32>
    %60 = arith.addf %54, %59 : vector<16x16x32xf32>
    %cst = arith.constant 0.000000e+00 : f32
    %61 = vector.broadcast %cst : f32 to vector<16x16x32xf32>
    %62 = arith.maximumf %60, %61 : vector<16x16x32xf32>
    %cst_10 = arith.constant 0.000000e+00 : f32
    %63 = vector.broadcast %cst_10 : f32 to vector<1x18x32xf32>
    %cst_11 = arith.constant 0.000000e+00 : f32
    %64 = vector.broadcast %cst_11 : f32 to vector<16x1x32xf32>
    %c0_12 = arith.constant 0 : index
    %c0_13 = arith.constant 0 : index
    %c0_14 = arith.constant 0 : index
    %65 = vector.load %arg8[%c0_12, %c0_13, %c0_14] : memref<18x18x32xf32, #tpu.memory_space<vmem>>, vector<1x18x32xf32>
    tpu.vector_store %arg8[%c0_12, %c0_13, %c0_14], %63 {strides = array<i32>} : memref<18x18x32xf32, #tpu.memory_space<vmem>>, vector<1x18x32xf32>,
    %c17 = arith.constant 17 : index
    %c0_15 = arith.constant 0 : index
    %c0_16 = arith.constant 0 : index
    %66 = vector.load %arg8[%c17, %c0_15, %c0_16] : memref<18x18x32xf32, #tpu.memory_space<vmem>>, vector<1x18x32xf32>
    tpu.vector_store %arg8[%c17, %c0_15, %c0_16], %63 {strides = array<i32>} : memref<18x18x32xf32, #tpu.memory_space<vmem>>, vector<1x18x32xf32>,
    %c1_17 = arith.constant 1 : index
    %c0_18 = arith.constant 0 : index
    %c0_19 = arith.constant 0 : index
    %67 = vector.load %arg8[%c1_17, %c0_18, %c0_19] : memref<18x18x32xf32, #tpu.memory_space<vmem>>, vector<16x1x32xf32>
    tpu.vector_store %arg8[%c1_17, %c0_18, %c0_19], %64 {strides = array<i32>} : memref<18x18x32xf32, #tpu.memory_space<vmem>>, vector<16x1x32xf32>,
    %c1_20 = arith.constant 1 : index
    %c17_21 = arith.constant 17 : index
    %c0_22 = arith.constant 0 : index
    %68 = vector.load %arg8[%c1_20, %c17_21, %c0_22] : memref<18x18x32xf32, #tpu.memory_space<vmem>>, vector<16x1x32xf32>
    tpu.vector_store %arg8[%c1_20, %c17_21, %c0_22], %64 {strides = array<i32>} : memref<18x18x32xf32, #tpu.memory_space<vmem>>, vector<16x1x32xf32>,
    %c1_23 = arith.constant 1 : index
    %c1_24 = arith.constant 1 : index
    %c0_25 = arith.constant 0 : index
    %69 = vector.load %arg8[%c1_23, %c1_24, %c0_25] : memref<18x18x32xf32, #tpu.memory_space<vmem>>, vector<16x16x32xf32>
    tpu.vector_store %arg8[%c1_23, %c1_24, %c0_25], %62 {strides = array<i32>} : memref<18x18x32xf32, #tpu.memory_space<vmem>>, vector<16x16x32xf32>,
    %c0_26 = arith.constant 0 : index
    %c0_27 = arith.constant 0 : index
    %c0_28 = arith.constant 0 : index
    %70 = vector.load %arg8[%c0_26, %c0_27, %c0_28] : memref<18x18x32xf32, #tpu.memory_space<vmem>>, vector<16x18x32xf32>
    %71 = vector.extract_strided_slice %70 {offsets = [0, 0, 0], sizes = [16, 16, 32], strides = [1, 1, 1]} : vector<16x18x32xf32> to vector<16x16x32xf32>
    %72 = vector.shape_cast %71 : vector<16x16x32xf32> to vector<256x32xf32>
    %c0_29 = arith.constant 0 : index
    %c0_30 = arith.constant 0 : index
    %73 = vector.load %arg9[%c0_29, %c0_30] : memref<256x288xf32, #tpu.memory_space<vmem>>, vector<256x32xf32>
    tpu.vector_store %arg9[%c0_29, %c0_30], %72 {strides = array<i32>} : memref<256x288xf32, #tpu.memory_space<vmem>>, vector<256x32xf32>,
    %74 = vector.extract_strided_slice %70 {offsets = [0, 1, 0], sizes = [16, 16, 32], strides = [1, 1, 1]} : vector<16x18x32xf32> to vector<16x16x32xf32>
    %75 = vector.shape_cast %74 : vector<16x16x32xf32> to vector<256x32xf32>
    %c0_31 = arith.constant 0 : index
    %c32 = arith.constant 32 : index
    %76 = vector.load %arg9[%c0_31, %c32] : memref<256x288xf32, #tpu.memory_space<vmem>>, vector<256x32xf32>
    tpu.vector_store %arg9[%c0_31, %c32], %75 {strides = array<i32>} : memref<256x288xf32, #tpu.memory_space<vmem>>, vector<256x32xf32>,
    %77 = vector.extract_strided_slice %70 {offsets = [0, 2, 0], sizes = [16, 16, 32], strides = [1, 1, 1]} : vector<16x18x32xf32> to vector<16x16x32xf32>
    %78 = vector.shape_cast %77 : vector<16x16x32xf32> to vector<256x32xf32>
    %c0_32 = arith.constant 0 : index
    %c64 = arith.constant 64 : index
    %79 = vector.load %arg9[%c0_32, %c64] : memref<256x288xf32, #tpu.memory_space<vmem>>, vector<256x32xf32>
    tpu.vector_store %arg9[%c0_32, %c64], %78 {strides = array<i32>} : memref<256x288xf32, #tpu.memory_space<vmem>>, vector<256x32xf32>,
    %c1_33 = arith.constant 1 : index
    %c0_34 = arith.constant 0 : index
    %c0_35 = arith.constant 0 : index
    %80 = vector.load %arg8[%c1_33, %c0_34, %c0_35] : memref<18x18x32xf32, #tpu.memory_space<vmem>>, vector<16x18x32xf32>
    %81 = vector.extract_strided_slice %80 {offsets = [0, 0, 0], sizes = [16, 16, 32], strides = [1, 1, 1]} : vector<16x18x32xf32> to vector<16x16x32xf32>
    %82 = vector.shape_cast %81 : vector<16x16x32xf32> to vector<256x32xf32>
    %c0_36 = arith.constant 0 : index
    %c96 = arith.constant 96 : index
    %83 = vector.load %arg9[%c0_36, %c96] : memref<256x288xf32, #tpu.memory_space<vmem>>, vector<256x32xf32>
    tpu.vector_store %arg9[%c0_36, %c96], %82 {strides = array<i32>} : memref<256x288xf32, #tpu.memory_space<vmem>>, vector<256x32xf32>,
    %84 = vector.extract_strided_slice %80 {offsets = [0, 1, 0], sizes = [16, 16, 32], strides = [1, 1, 1]} : vector<16x18x32xf32> to vector<16x16x32xf32>
    %85 = vector.shape_cast %84 : vector<16x16x32xf32> to vector<256x32xf32>
    %c0_37 = arith.constant 0 : index
    %c128 = arith.constant 128 : index
    %86 = vector.load %arg9[%c0_37, %c128] : memref<256x288xf32, #tpu.memory_space<vmem>>, vector<256x32xf32>
    tpu.vector_store %arg9[%c0_37, %c128], %85 {strides = array<i32>} : memref<256x288xf32, #tpu.memory_space<vmem>>, vector<256x32xf32>,
    %87 = vector.extract_strided_slice %80 {offsets = [0, 2, 0], sizes = [16, 16, 32], strides = [1, 1, 1]} : vector<16x18x32xf32> to vector<16x16x32xf32>
    %88 = vector.shape_cast %87 : vector<16x16x32xf32> to vector<256x32xf32>
    %c0_38 = arith.constant 0 : index
    %c160 = arith.constant 160 : index
    %89 = vector.load %arg9[%c0_38, %c160] : memref<256x288xf32, #tpu.memory_space<vmem>>, vector<256x32xf32>
    tpu.vector_store %arg9[%c0_38, %c160], %88 {strides = array<i32>} : memref<256x288xf32, #tpu.memory_space<vmem>>, vector<256x32xf32>,
    %c2_39 = arith.constant 2 : index
    %c0_40 = arith.constant 0 : index
    %c0_41 = arith.constant 0 : index
    %90 = vector.load %arg8[%c2_39, %c0_40, %c0_41] : memref<18x18x32xf32, #tpu.memory_space<vmem>>, vector<16x18x32xf32>
    %91 = vector.extract_strided_slice %90 {offsets = [0, 0, 0], sizes = [16, 16, 32], strides = [1, 1, 1]} : vector<16x18x32xf32> to vector<16x16x32xf32>
    %92 = vector.shape_cast %91 : vector<16x16x32xf32> to vector<256x32xf32>
    %c0_42 = arith.constant 0 : index
    %c192 = arith.constant 192 : index
    %93 = vector.load %arg9[%c0_42, %c192] : memref<256x288xf32, #tpu.memory_space<vmem>>, vector<256x32xf32>
    tpu.vector_store %arg9[%c0_42, %c192], %92 {strides = array<i32>} : memref<256x288xf32, #tpu.memory_space<vmem>>, vector<256x32xf32>,
    %94 = vector.extract_strided_slice %90 {offsets = [0, 1, 0], sizes = [16, 16, 32], strides = [1, 1, 1]} : vector<16x18x32xf32> to vector<16x16x32xf32>
    %95 = vector.shape_cast %94 : vector<16x16x32xf32> to vector<256x32xf32>
    %c0_43 = arith.constant 0 : index
    %c224 = arith.constant 224 : index
    %96 = vector.load %arg9[%c0_43, %c224] : memref<256x288xf32, #tpu.memory_space<vmem>>, vector<256x32xf32>
    tpu.vector_store %arg9[%c0_43, %c224], %95 {strides = array<i32>} : memref<256x288xf32, #tpu.memory_space<vmem>>, vector<256x32xf32>,
    %97 = vector.extract_strided_slice %90 {offsets = [0, 2, 0], sizes = [16, 16, 32], strides = [1, 1, 1]} : vector<16x18x32xf32> to vector<16x16x32xf32>
    %98 = vector.shape_cast %97 : vector<16x16x32xf32> to vector<256x32xf32>
    %c0_44 = arith.constant 0 : index
    %c256 = arith.constant 256 : index
    %99 = vector.load %arg9[%c0_44, %c256] : memref<256x288xf32, #tpu.memory_space<vmem>>, vector<256x32xf32>
    tpu.vector_store %arg9[%c0_44, %c256], %98 {strides = array<i32>} : memref<256x288xf32, #tpu.memory_space<vmem>>, vector<256x32xf32>,
    %c0_45 = arith.constant 0 : index
    %c0_46 = arith.constant 0 : index
    %100 = vector.load %arg9[%c0_45, %c0_46] : memref<256x288xf32, #tpu.memory_space<vmem>>, vector<256x288xf32>
    %c0_47 = arith.constant 0 : index
    %c0_48 = arith.constant 0 : index
    %101 = vector.load %arg3[%c0_47, %c0_48] : memref<288x64xf32, #tpu.memory_space<vmem>>, vector<288x64xf32>
    %cst_49 = arith.constant dense<0.000000e+00> : vector<256x64xf32>
    %102 = tpu.matmul %100, %101, %cst_49 {dimension_numbers = #tpu.dot_dimension_numbers<[1], [0], [0], [1], [0, 0, 1, 1], [], []>} : vector<256x288xf32>, vector<288x64xf32>, vector<256x64xf32> -> vector<256x64xf32>
    %c0_50 = arith.constant 0 : index
    %c0_51 = arith.constant 0 : index
    %103 = vector.load %arg4[%c0_50, %c0_51] : memref<1x64xf32, #tpu.memory_space<vmem>>, vector<1x64xf32>
    %104 = vector.broadcast %103 : vector<1x64xf32> to vector<256x64xf32>
    %105 = arith.addf %102, %104 : vector<256x64xf32>
    %cst_52 = arith.constant 0.000000e+00 : f32
    %106 = vector.broadcast %cst_52 : f32 to vector<256x64xf32>
    %107 = arith.maximumf %105, %106 : vector<256x64xf32>
    %108 = vector.shape_cast %107 : vector<256x64xf32> to vector<8x2x16x64xf32>
    %109 = vector.extract_strided_slice %108 {offsets = [0, 0, 0, 0], sizes = [8, 1, 16, 64], strides = [1, 1, 1, 1]} : vector<8x2x16x64xf32> to vector<8x1x16x64xf32>
    %110 = vector.shape_cast %109 : vector<8x1x16x64xf32> to vector<8x16x64xf32>
    %111 = vector.extract_strided_slice %108 {offsets = [0, 1, 0, 0], sizes = [8, 1, 16, 64], strides = [1, 1, 1, 1]} : vector<8x2x16x64xf32> to vector<8x1x16x64xf32>
    %112 = vector.shape_cast %111 : vector<8x1x16x64xf32> to vector<8x16x64xf32>
    %113 = arith.maximumf %110, %112 : vector<8x16x64xf32>
    %114 = vector.extract_strided_slice %113 {offsets = [0, 0, 0], sizes = [8, 1, 64], strides = [1, 1, 1]} : vector<8x16x64xf32> to vector<8x1x64xf32>
    %115 = vector.extract_strided_slice %113 {offsets = [0, 1, 0], sizes = [8, 1, 64], strides = [1, 1, 1]} : vector<8x16x64xf32> to vector<8x1x64xf32>
    %116 = arith.maximumf %114, %115 : vector<8x1x64xf32>
    %117 = vector.extract_strided_slice %113 {offsets = [0, 2, 0], sizes = [8, 1, 64], strides = [1, 1, 1]} : vector<8x16x64xf32> to vector<8x1x64xf32>
    %118 = vector.extract_strided_slice %113 {offsets = [0, 3, 0], sizes = [8, 1, 64], strides = [1, 1, 1]} : vector<8x16x64xf32> to vector<8x1x64xf32>
    %119 = arith.maximumf %117, %118 : vector<8x1x64xf32>
    %120 = vector.extract_strided_slice %113 {offsets = [0, 4, 0], sizes = [8, 1, 64], strides = [1, 1, 1]} : vector<8x16x64xf32> to vector<8x1x64xf32>
    %121 = vector.extract_strided_slice %113 {offsets = [0, 5, 0], sizes = [8, 1, 64], strides = [1, 1, 1]} : vector<8x16x64xf32> to vector<8x1x64xf32>
    %122 = arith.maximumf %120, %121 : vector<8x1x64xf32>
    %123 = vector.extract_strided_slice %113 {offsets = [0, 6, 0], sizes = [8, 1, 64], strides = [1, 1, 1]} : vector<8x16x64xf32> to vector<8x1x64xf32>
    %124 = vector.extract_strided_slice %113 {offsets = [0, 7, 0], sizes = [8, 1, 64], strides = [1, 1, 1]} : vector<8x16x64xf32> to vector<8x1x64xf32>
    %125 = arith.maximumf %123, %124 : vector<8x1x64xf32>
    %126 = vector.extract_strided_slice %113 {offsets = [0, 8, 0], sizes = [8, 1, 64], strides = [1, 1, 1]} : vector<8x16x64xf32> to vector<8x1x64xf32>
    %127 = vector.extract_strided_slice %113 {offsets = [0, 9, 0], sizes = [8, 1, 64], strides = [1, 1, 1]} : vector<8x16x64xf32> to vector<8x1x64xf32>
    %128 = arith.maximumf %126, %127 : vector<8x1x64xf32>
    %129 = vector.extract_strided_slice %113 {offsets = [0, 10, 0], sizes = [8, 1, 64], strides = [1, 1, 1]} : vector<8x16x64xf32> to vector<8x1x64xf32>
    %130 = vector.extract_strided_slice %113 {offsets = [0, 11, 0], sizes = [8, 1, 64], strides = [1, 1, 1]} : vector<8x16x64xf32> to vector<8x1x64xf32>
    %131 = arith.maximumf %129, %130 : vector<8x1x64xf32>
    %132 = vector.extract_strided_slice %113 {offsets = [0, 12, 0], sizes = [8, 1, 64], strides = [1, 1, 1]} : vector<8x16x64xf32> to vector<8x1x64xf32>
    %133 = vector.extract_strided_slice %113 {offsets = [0, 13, 0], sizes = [8, 1, 64], strides = [1, 1, 1]} : vector<8x16x64xf32> to vector<8x1x64xf32>
    %134 = arith.maximumf %132, %133 : vector<8x1x64xf32>
    %135 = vector.extract_strided_slice %113 {offsets = [0, 14, 0], sizes = [8, 1, 64], strides = [1, 1, 1]} : vector<8x16x64xf32> to vector<8x1x64xf32>
    %136 = vector.extract_strided_slice %113 {offsets = [0, 15, 0], sizes = [8, 1, 64], strides = [1, 1, 1]} : vector<8x16x64xf32> to vector<8x1x64xf32>
    %137 = arith.maximumf %135, %136 : vector<8x1x64xf32>
    %138 = tpu.concatenate %116, %119, %122, %125, %128, %131, %134, %137 in 1 : vector<8x1x64xf32>, vector<8x1x64xf32>, vector<8x1x64xf32>, vector<8x1x64xf32>, vector<8x1x64xf32>, vector<8x1x64xf32>, vector<8x1x64xf32>, vector<8x1x64xf32> -> vector<8x8x64xf32>
    %cst_53 = arith.constant 0.000000e+00 : f32
    %139 = vector.broadcast %cst_53 : f32 to vector<1x10x64xf32>
    %cst_54 = arith.constant 0.000000e+00 : f32
    %140 = vector.broadcast %cst_54 : f32 to vector<8x1x64xf32>
    %c0_55 = arith.constant 0 : index
    %c0_56 = arith.constant 0 : index
    %c0_57 = arith.constant 0 : index
    %141 = vector.load %arg10[%c0_55, %c0_56, %c0_57] : memref<10x10x64xf32, #tpu.memory_space<vmem>>, vector<1x10x64xf32>
    tpu.vector_store %arg10[%c0_55, %c0_56, %c0_57], %139 {strides = array<i32>} : memref<10x10x64xf32, #tpu.memory_space<vmem>>, vector<1x10x64xf32>,
    %c9 = arith.constant 9 : index
    %c0_58 = arith.constant 0 : index
    %c0_59 = arith.constant 0 : index
    %142 = vector.load %arg10[%c9, %c0_58, %c0_59] : memref<10x10x64xf32, #tpu.memory_space<vmem>>, vector<1x10x64xf32>
    tpu.vector_store %arg10[%c9, %c0_58, %c0_59], %139 {strides = array<i32>} : memref<10x10x64xf32, #tpu.memory_space<vmem>>, vector<1x10x64xf32>,
    %c1_60 = arith.constant 1 : index
    %c0_61 = arith.constant 0 : index
    %c0_62 = arith.constant 0 : index
    %143 = vector.load %arg10[%c1_60, %c0_61, %c0_62] : memref<10x10x64xf32, #tpu.memory_space<vmem>>, vector<8x1x64xf32>
    tpu.vector_store %arg10[%c1_60, %c0_61, %c0_62], %140 {strides = array<i32>} : memref<10x10x64xf32, #tpu.memory_space<vmem>>, vector<8x1x64xf32>,
    %c1_63 = arith.constant 1 : index
    %c9_64 = arith.constant 9 : index
    %c0_65 = arith.constant 0 : index
    %144 = vector.load %arg10[%c1_63, %c9_64, %c0_65] : memref<10x10x64xf32, #tpu.memory_space<vmem>>, vector<8x1x64xf32>
    tpu.vector_store %arg10[%c1_63, %c9_64, %c0_65], %140 {strides = array<i32>} : memref<10x10x64xf32, #tpu.memory_space<vmem>>, vector<8x1x64xf32>,
    %c1_66 = arith.constant 1 : index
    %c1_67 = arith.constant 1 : index
    %c0_68 = arith.constant 0 : index
    %145 = vector.load %arg10[%c1_66, %c1_67, %c0_68] : memref<10x10x64xf32, #tpu.memory_space<vmem>>, vector<8x8x64xf32>
    tpu.vector_store %arg10[%c1_66, %c1_67, %c0_68], %138 {strides = array<i32>} : memref<10x10x64xf32, #tpu.memory_space<vmem>>, vector<8x8x64xf32>,
    %c0_69 = arith.constant 0 : index
    %c0_70 = arith.constant 0 : index
    %c0_71 = arith.constant 0 : index
    %146 = vector.load %arg10[%c0_69, %c0_70, %c0_71] : memref<10x10x64xf32, #tpu.memory_space<vmem>>, vector<8x10x64xf32>
    %147 = vector.extract_strided_slice %146 {offsets = [0, 0, 0], sizes = [8, 8, 64], strides = [1, 1, 1]} : vector<8x10x64xf32> to vector<8x8x64xf32>
    %148 = vector.shape_cast %147 : vector<8x8x64xf32> to vector<64x64xf32>
    %c0_72 = arith.constant 0 : index
    %c0_73 = arith.constant 0 : index
    %149 = vector.load %arg11[%c0_72, %c0_73] : memref<64x576xf32, #tpu.memory_space<vmem>>, vector<64x64xf32>
    tpu.vector_store %arg11[%c0_72, %c0_73], %148 {strides = array<i32>} : memref<64x576xf32, #tpu.memory_space<vmem>>, vector<64x64xf32>,
    %150 = vector.extract_strided_slice %146 {offsets = [0, 1, 0], sizes = [8, 8, 64], strides = [1, 1, 1]} : vector<8x10x64xf32> to vector<8x8x64xf32>
    %151 = vector.shape_cast %150 : vector<8x8x64xf32> to vector<64x64xf32>
    %c0_74 = arith.constant 0 : index
    %c64_75 = arith.constant 64 : index
    %152 = vector.load %arg11[%c0_74, %c64_75] : memref<64x576xf32, #tpu.memory_space<vmem>>, vector<64x64xf32>
    tpu.vector_store %arg11[%c0_74, %c64_75], %151 {strides = array<i32>} : memref<64x576xf32, #tpu.memory_space<vmem>>, vector<64x64xf32>,
    %153 = vector.extract_strided_slice %146 {offsets = [0, 2, 0], sizes = [8, 8, 64], strides = [1, 1, 1]} : vector<8x10x64xf32> to vector<8x8x64xf32>
    %154 = vector.shape_cast %153 : vector<8x8x64xf32> to vector<64x64xf32>
    %c0_76 = arith.constant 0 : index
    %c128_77 = arith.constant 128 : index
    %155 = vector.load %arg11[%c0_76, %c128_77] : memref<64x576xf32, #tpu.memory_space<vmem>>, vector<64x64xf32>
    tpu.vector_store %arg11[%c0_76, %c128_77], %154 {strides = array<i32>} : memref<64x576xf32, #tpu.memory_space<vmem>>, vector<64x64xf32>,
    %c1_78 = arith.constant 1 : index
    %c0_79 = arith.constant 0 : index
    %c0_80 = arith.constant 0 : index
    %156 = vector.load %arg10[%c1_78, %c0_79, %c0_80] : memref<10x10x64xf32, #tpu.memory_space<vmem>>, vector<8x10x64xf32>
    %157 = vector.extract_strided_slice %156 {offsets = [0, 0, 0], sizes = [8, 8, 64], strides = [1, 1, 1]} : vector<8x10x64xf32> to vector<8x8x64xf32>
    %158 = vector.shape_cast %157 : vector<8x8x64xf32> to vector<64x64xf32>
    %c0_81 = arith.constant 0 : index
    %c192_82 = arith.constant 192 : index
    %159 = vector.load %arg11[%c0_81, %c192_82] : memref<64x576xf32, #tpu.memory_space<vmem>>, vector<64x64xf32>
    tpu.vector_store %arg11[%c0_81, %c192_82], %158 {strides = array<i32>} : memref<64x576xf32, #tpu.memory_space<vmem>>, vector<64x64xf32>,
    %160 = vector.extract_strided_slice %156 {offsets = [0, 1, 0], sizes = [8, 8, 64], strides = [1, 1, 1]} : vector<8x10x64xf32> to vector<8x8x64xf32>
    %161 = vector.shape_cast %160 : vector<8x8x64xf32> to vector<64x64xf32>
    %c0_83 = arith.constant 0 : index
    %c256_84 = arith.constant 256 : index
    %162 = vector.load %arg11[%c0_83, %c256_84] : memref<64x576xf32, #tpu.memory_space<vmem>>, vector<64x64xf32>
    tpu.vector_store %arg11[%c0_83, %c256_84], %161 {strides = array<i32>} : memref<64x576xf32, #tpu.memory_space<vmem>>, vector<64x64xf32>,
    %163 = vector.extract_strided_slice %156 {offsets = [0, 2, 0], sizes = [8, 8, 64], strides = [1, 1, 1]} : vector<8x10x64xf32> to vector<8x8x64xf32>
    %164 = vector.shape_cast %163 : vector<8x8x64xf32> to vector<64x64xf32>
    %c0_85 = arith.constant 0 : index
    %c320 = arith.constant 320 : index
    %165 = vector.load %arg11[%c0_85, %c320] : memref<64x576xf32, #tpu.memory_space<vmem>>, vector<64x64xf32>
    tpu.vector_store %arg11[%c0_85, %c320], %164 {strides = array<i32>} : memref<64x576xf32, #tpu.memory_space<vmem>>, vector<64x64xf32>,
    %c2_86 = arith.constant 2 : index
    %c0_87 = arith.constant 0 : index
    %c0_88 = arith.constant 0 : index
    %166 = vector.load %arg10[%c2_86, %c0_87, %c0_88] : memref<10x10x64xf32, #tpu.memory_space<vmem>>, vector<8x10x64xf32>
    %167 = vector.extract_strided_slice %166 {offsets = [0, 0, 0], sizes = [8, 8, 64], strides = [1, 1, 1]} : vector<8x10x64xf32> to vector<8x8x64xf32>
    %168 = vector.shape_cast %167 : vector<8x8x64xf32> to vector<64x64xf32>
    %c0_89 = arith.constant 0 : index
    %c384 = arith.constant 384 : index
    %169 = vector.load %arg11[%c0_89, %c384] : memref<64x576xf32, #tpu.memory_space<vmem>>, vector<64x64xf32>
    tpu.vector_store %arg11[%c0_89, %c384], %168 {strides = array<i32>} : memref<64x576xf32, #tpu.memory_space<vmem>>, vector<64x64xf32>,
    %170 = vector.extract_strided_slice %166 {offsets = [0, 1, 0], sizes = [8, 8, 64], strides = [1, 1, 1]} : vector<8x10x64xf32> to vector<8x8x64xf32>
    %171 = vector.shape_cast %170 : vector<8x8x64xf32> to vector<64x64xf32>
    %c0_90 = arith.constant 0 : index
    %c448 = arith.constant 448 : index
    %172 = vector.load %arg11[%c0_90, %c448] : memref<64x576xf32, #tpu.memory_space<vmem>>, vector<64x64xf32>
    tpu.vector_store %arg11[%c0_90, %c448], %171 {strides = array<i32>} : memref<64x576xf32, #tpu.memory_space<vmem>>, vector<64x64xf32>,
    %173 = vector.extract_strided_slice %166 {offsets = [0, 2, 0], sizes = [8, 8, 64], strides = [1, 1, 1]} : vector<8x10x64xf32> to vector<8x8x64xf32>
    %174 = vector.shape_cast %173 : vector<8x8x64xf32> to vector<64x64xf32>
    %c0_91 = arith.constant 0 : index
    %c512 = arith.constant 512 : index
    %175 = vector.load %arg11[%c0_91, %c512] : memref<64x576xf32, #tpu.memory_space<vmem>>, vector<64x64xf32>
    tpu.vector_store %arg11[%c0_91, %c512], %174 {strides = array<i32>} : memref<64x576xf32, #tpu.memory_space<vmem>>, vector<64x64xf32>,
    %c0_92 = arith.constant 0 : index
    %c0_93 = arith.constant 0 : index
    %176 = vector.load %arg11[%c0_92, %c0_93] : memref<64x576xf32, #tpu.memory_space<vmem>>, vector<64x576xf32>
    %c0_94 = arith.constant 0 : index
    %c0_95 = arith.constant 0 : index
    %177 = vector.load %arg5[%c0_94, %c0_95] : memref<576x128xf32, #tpu.memory_space<vmem>>, vector<576x128xf32>
    %cst_96 = arith.constant dense<0.000000e+00> : vector<64x128xf32>
    %178 = tpu.matmul %176, %177, %cst_96 {dimension_numbers = #tpu.dot_dimension_numbers<[1], [0], [0], [1], [0, 0, 1, 1], [], []>} : vector<64x576xf32>, vector<576x128xf32>, vector<64x128xf32> -> vector<64x128xf32>
    %c0_97 = arith.constant 0 : index
    %c0_98 = arith.constant 0 : index
    %179 = vector.load %arg6[%c0_97, %c0_98] : memref<1x128xf32, #tpu.memory_space<vmem>>, vector<1x128xf32>
    %180 = vector.broadcast %179 : vector<1x128xf32> to vector<64x128xf32>
    %181 = arith.addf %178, %180 : vector<64x128xf32>
    %cst_99 = arith.constant 0.000000e+00 : f32
    %182 = vector.broadcast %cst_99 : f32 to vector<64x128xf32>
    %183 = arith.maximumf %181, %182 : vector<64x128xf32>
    %184 = vector.shape_cast %183 : vector<64x128xf32> to vector<8x8x128xf32>
    %185 = vector.extract_strided_slice %184 {offsets = [0, 0, 0], sizes = [1, 8, 128], strides = [1, 1, 1]} : vector<8x8x128xf32> to vector<1x8x128xf32>
    %186 = vector.extract_strided_slice %184 {offsets = [1, 0, 0], sizes = [1, 8, 128], strides = [1, 1, 1]} : vector<8x8x128xf32> to vector<1x8x128xf32>
    %187 = vector.extract_strided_slice %184 {offsets = [2, 0, 0], sizes = [1, 8, 128], strides = [1, 1, 1]} : vector<8x8x128xf32> to vector<1x8x128xf32>
    %188 = arith.maximumf %186, %187 : vector<1x8x128xf32>
    %189 = vector.extract_strided_slice %184 {offsets = [3, 0, 0], sizes = [1, 8, 128], strides = [1, 1, 1]} : vector<8x8x128xf32> to vector<1x8x128xf32>
    %190 = vector.extract_strided_slice %184 {offsets = [4, 0, 0], sizes = [1, 8, 128], strides = [1, 1, 1]} : vector<8x8x128xf32> to vector<1x8x128xf32>
    %191 = arith.maximumf %189, %190 : vector<1x8x128xf32>
    %192 = vector.extract_strided_slice %184 {offsets = [5, 0, 0], sizes = [1, 8, 128], strides = [1, 1, 1]} : vector<8x8x128xf32> to vector<1x8x128xf32>
    %193 = vector.extract_strided_slice %184 {offsets = [6, 0, 0], sizes = [1, 8, 128], strides = [1, 1, 1]} : vector<8x8x128xf32> to vector<1x8x128xf32>
    %194 = arith.maximumf %192, %193 : vector<1x8x128xf32>
    %195 = vector.extract_strided_slice %184 {offsets = [7, 0, 0], sizes = [1, 8, 128], strides = [1, 1, 1]} : vector<8x8x128xf32> to vector<1x8x128xf32>
    %196 = tpu.concatenate %185, %188, %191, %194, %195 in 0 : vector<1x8x128xf32>, vector<1x8x128xf32>, vector<1x8x128xf32>, vector<1x8x128xf32>, vector<1x8x128xf32> -> vector<5x8x128xf32>
    %197 = vector.extract_strided_slice %196 {offsets = [0, 0, 0], sizes = [5, 1, 128], strides = [1, 1, 1]} : vector<5x8x128xf32> to vector<5x1x128xf32>
    %198 = vector.extract_strided_slice %196 {offsets = [0, 1, 0], sizes = [5, 1, 128], strides = [1, 1, 1]} : vector<5x8x128xf32> to vector<5x1x128xf32>
    %199 = vector.extract_strided_slice %196 {offsets = [0, 2, 0], sizes = [5, 1, 128], strides = [1, 1, 1]} : vector<5x8x128xf32> to vector<5x1x128xf32>
    %200 = arith.maximumf %198, %199 : vector<5x1x128xf32>
    %201 = vector.extract_strided_slice %196 {offsets = [0, 3, 0], sizes = [5, 1, 128], strides = [1, 1, 1]} : vector<5x8x128xf32> to vector<5x1x128xf32>
    %202 = vector.extract_strided_slice %196 {offsets = [0, 4, 0], sizes = [5, 1, 128], strides = [1, 1, 1]} : vector<5x8x128xf32> to vector<5x1x128xf32>
    %203 = arith.maximumf %201, %202 : vector<5x1x128xf32>
    %204 = vector.extract_strided_slice %196 {offsets = [0, 5, 0], sizes = [5, 1, 128], strides = [1, 1, 1]} : vector<5x8x128xf32> to vector<5x1x128xf32>
    %205 = vector.extract_strided_slice %196 {offsets = [0, 6, 0], sizes = [5, 1, 128], strides = [1, 1, 1]} : vector<5x8x128xf32> to vector<5x1x128xf32>
    %206 = arith.maximumf %204, %205 : vector<5x1x128xf32>
    %207 = vector.extract_strided_slice %196 {offsets = [0, 7, 0], sizes = [5, 1, 128], strides = [1, 1, 1]} : vector<5x8x128xf32> to vector<5x1x128xf32>
    %208 = tpu.concatenate %197, %200, %203, %206, %207 in 1 : vector<5x1x128xf32>, vector<5x1x128xf32>, vector<5x1x128xf32>, vector<5x1x128xf32>, vector<5x1x128xf32> -> vector<5x5x128xf32>
    %209 = arith.negf %208 : vector<5x5x128xf32>
    %210 = math.exp %209 : vector<5x5x128xf32>
    %cst_100 = arith.constant 1.000000e+00 : f32
    %211 = vector.broadcast %cst_100 : f32 to vector<5x5x128xf32>
    %212 = arith.addf %211, %210 : vector<5x5x128xf32>
    %213 = arith.divf %211, %212 : vector<5x5x128xf32>
    %cst_101 = arith.constant 8.000000e-01 : f32
    %214 = vector.broadcast %cst_101 : f32 to vector<5x5x128xf32>
    %215 = arith.mulf %213, %214 : vector<5x5x128xf32>
    %cst_102 = arith.constant 1.000000e-01 : f32
    %216 = vector.broadcast %cst_102 : f32 to vector<5x5x128xf32>
    %217 = arith.addf %215, %216 : vector<5x5x128xf32>
    %c0_103 = arith.constant 0 : index
    %c0_104 = arith.constant 0 : index
    %c0_105 = arith.constant 0 : index
    %218 = vector.load %arg7[%c0_103, %c0_104, %c0_105] : memref<5x5x128xf32, #tpu.memory_space<vmem>>, vector<5x5x128xf32>
    tpu.vector_store %arg7[%c0_103, %c0_104, %c0_105], %217 {strides = array<i32>} : memref<5x5x128xf32, #tpu.memory_space<vmem>>, vector<5x5x128xf32>,
    return
  }
}

</mosaic_0001>

<bundles_post_ra>
// kernel: net_forward.1
= control target key start
LH: loop header
LB: loop body
LE: loop exit
PB: predicated region body
PF: predicated region fallthrough
CT: control target
= control target key end

     0   :  { %vm243_vm0 = vcmask 1046528   ;;  %vm1854_vm1 = vcmask 261120   ;;  %v9753_v0 = vmov 0.0   ;;  %vm1857_vm2 = vcmask 254976   ;;  %s5756_s19 = smov 32   ;;  %s9745_s0 = inlined_call_operand.vmem [shape: f32[18,18,32], index: 0, kind: input, shape index: {}]   ;;  %s9746_s1 = inlined_call_operand.vmem [shape: f32[9,32], index: 1, kind: input, shape index: {}]   ;;  %s9747_s2 = inlined_call_operand.vmem [shape: f32[1,32], index: 2, kind: input, shape index: {}]   ;;  %s9748_s3 = inlined_call_operand.vmem [shape: f32[288,64], index: 3, kind: input, shape index: {}]   ;;  %s9749_s4 = inlined_call_operand.vmem [shape: f32[1,64], index: 4, kind: input, shape index: {}]   ;;  %s9750_s5 = inlined_call_operand.vmem [shape: f32[576,128], index: 5, kind: input, shape index: {}]   ;;  %s9751_s6 = inlined_call_operand.vmem [shape: f32[1,128], index: 6, kind: input, shape index: {}]   ;;  %s9752_s7 = inlined_call_operand.hbm [shape: f32[5,5,128], index: 7, kind: output, shape index: {}]  }
   0x1   :  { %1855 = vst.msk [vmem:[#allocation2] sm:$0xff] %vm1854_vm1, %v9753_v0  ;;  %v27_v1 = vld [vmem:[%s9746_s1] sm:$0xff]  ;;  %v5810_v2 = vld [vmem:[%s9745_s0 + $0x18] sm:$0xff]  ;;  %v5835_v8 = vld [vmem:[%s9745_s0 + $0x30] sm:$0xff]  ;;  %vm485_vm3 = vcmask 1045504  }
   0x2   :  { %1856 = vst.msk [vmem:[#allocation2 + $0x8] sm:$0xff] %vm1854_vm1, %v9753_v0  ;;  %v5817_v3 = vld [vmem:[%s9747_s2] ss:$0 sm:$0xff]  ;;  %v5826_v5 = vperm.slane %v27_v1, 0  ;;  %v5828_v6 = vperm.slane %v27_v1, 1  ;;  %v5830_v7 = vperm.slane %v27_v1, 2 }
   0x3   :  { %v5822_v4 = vld [vmem:[%s9745_s0 + $0x20] sm:$0xff]  ;;  %1860 = vst.msk [vmem:[#allocation2 + $0x198] sm:$0xff] %vm1854_vm1, %v9753_v0  ;;  %v5840_v9 = vld [vmem:[%s9745_s0 + $0x38] sm:$0xff]  ;;  %v5844_v10 = vperm.slane %v27_v1, 3  ;;  %v5846_v11 = vperm.slane %v27_v1, 4  ;;  %v5848_v12 = vperm.slane %v27_v1, 5 }
   0x4   :  { %1861 = vst.msk [vmem:[#allocation2 + $0x1a0] sm:$0xff] %vm1854_vm1, %v9753_v0  ;;  %v84_v13 = vmul.f32 %v5826_v5, %v5810_v2  ;;  %v150_v14 = vmul.f32 %v5828_v6, %v5810_v2  ;;  %v5858_v15 = vmul.f32 %v5828_v6, %v5822_v4  ;;  %v392_v16 = vmul.f32 %v5830_v7, %v5810_v2  ;;  %v5897_v39 = vld [vmem:[%s9745_s0 + $0x48] sm:$0xff]  ;;  %v5908_v43 = vld [vmem:[%s9745_s0 + $0x50] sm:$0xff] }
   0x5   :  { %1858 = vst.msk [vmem:[#allocation2 + $0x10] sm:$0x3] %vm1857_vm2, %v9753_v0  ;;  %v5866_v17 = vmul.f32 %v5830_v7, %v5822_v4  ;;  %v682_v18 = vmul.f32 %v5835_v8, %v5844_v10  ;;  %v748_v19 = vmul.f32 %v5835_v8, %v5846_v11  ;;  %v5874_v20 = vmul.f32 %v5840_v9, %v5846_v11  ;;  %v5902_v40 = vld [vmem:[%s9746_s1 + $0x8] ss:$0 sm:$0xff] }
   0x6   :  { %1862 = vst.msk [vmem:[#allocation2 + $0x1a8] sm:$0x3] %vm1857_vm2, %v9753_v0  ;;  %v116_v21 = vadd.f32 %v5817_v3, %v84_v13  ;;  %v249_v22 = vrot.slane %v150_v14, 1  ;;  %v250_v23 = vrot.slane %v5858_v15, 1  ;;  %v491_v24 = vrot.slane %v392_v16, 2 }
   0x7   :  { %v492_v26 = vrot.slane %v5866_v17, 2  ;;  %v846_v27 = vrot.slane %v748_v19, 1  ;;  %v847_v28 = vrot.slane %v5874_v20, 1  ;;  %v989_v29 = vmul.f32 %v5835_v8, %v5848_v12 }
   0x8   :  { %v1929_v25 = vld [vmem:[#allocation2] sm:$0xff]  ;;  %v251_v33 = vsel %vm243_vm0, %v249_v22, %v250_v23  ;;  %v5888_v34 = vmul.f32 %v5840_v9, %v5848_v12  ;;  %v5910_v44 = vperm.slane %v27_v1, 6  ;;  %v5916_v49 = vperm.slane %v27_v1, 7 }
   0x9   :  { %v1930_v30 = vld [vmem:[#allocation2 + $0x8] sm:$0xff]  ;;  %v2057_v31 = vrot.slane %v1929_v25, 1  ;;  %1977 = vst.msk [vmem:[#allocation3] sm:$0xff] %vm1854_vm1, %v1929_v25  ;;  %v2266_v32 = vrot.slane %v1929_v25, 2  ;;  %v358_v37 = vadd.f32 %v251_v33, %v116_v21  ;;  %v493_v38 = vsel %vm485_vm3, %v491_v24, %v492_v26 }
   0xa   :  { %v2058_v35 = vrot.slane %v1930_v30, 1  ;;  %1978 = vst.msk [vmem:[#allocation3 + $0x18] sm:$0xff] %vm1854_vm1, %v1930_v30  ;;  %v2267_v36 = vrot.slane %v1930_v30, 2  ;;  %v1087_v41 = vrot.slane %v989_v29, 2  ;;  %v1088_v42 = vrot.slane %v5888_v34, 2 }
   0xb   :  { %v600_v47 = vadd.f32 %v493_v38, %v358_v37  ;;  %v848_v48 = vsel %vm243_vm0, %v846_v27, %v847_v28 }
   0xc   :  { %v2059_v45 = vsel %vm243_vm0, %v2057_v31, %v2058_v35  ;;  %v1931_v46 = vld [vmem:[#allocation2 + $0x10] sm:$0x3]  ;;  %v2268_v50 = vsel %vm485_vm3, %v2266_v32, %v2267_v36  ;;  %v1089_v53 = vsel %vm485_vm3, %v1087_v41, %v1088_v42 }
   0xd   :  { %2137 = vrot.lane.b32.xlu0 %v2059_v45, %s5756_s19  ;;  %v2269_v51 = vrot.slane %v1931_v46, 2  ;;  %v2060_v52 = vrot.slane %v1931_v46, 1 }
   0xe   :  { %12 = vsyncpa [#allocation7], 0  ;;  %v714_v54 = vadd.f32 %v682_v18, %v600_v47  ;;  %v1344_v55 = vmul.f32 %v5897_v39, %v5916_v49  ;;  %v5927_v56 = vmul.f32 %v5908_v43, %v5916_v49  ;;  %v1585_v57 = vmul.f32 %v5902_v40, %v5897_v39  ;;  %v33_v58 = vld [vmem:[%s9745_s0] sm:$0xff]  ;;  %v34_v62 = vld [vmem:[%s9745_s0 + $0x8] sm:$0xff]  ;;  %s5757_s24 = smov 64   ;;  %s5758_s23 = smov 96  }
   0xf   :  { %v2270_v59 = vsel %vm485_vm3, %v2267_v36, %v2269_v51  ;;  %v1278_v60 = vmul.f32 %v5897_v39, %v5910_v44  ;;  %v5939_v61 = vmul.f32 %v5902_v40, %v5908_v43  ;;  %vm1864_vm4 = vcmask 253952   ;;  %v41_v15 = vld [vmem:[%s9745_s0 + $0x40] sm:$0x3]  ;;  %s5760_s26 = smov 128   ;;  %s5761_s27 = smov 8  }
  0x10   :  { %2348 = vrot.lane.b32.xlu1 %v2270_v59, %s5757_s24  ;;  %v955_v63 = vadd.f32 %v848_v48, %v714_v54  ;;  %v1442_v1 = vrot.slane %v1344_v55, 1  ;;  %v1443_v13 = vrot.slane %v5927_v56, 1  ;;  %v1683_v14 = vrot.slane %v1585_v57, 2  ;;  %1866 = vst.msk [vmem:[#allocation2 + $0x30] sm:$0x1] %vm1864_vm4, %v9753_v0 }
  0x11   :  { %v5949_v16 = vsel %vm243_vm0, %v2058_v35, %v2060_v52  ;;  %v1684_v18 = vrot.slane %v5939_v61, 2  ;;  %1865 = vst.msk [vmem:[#allocation2 + $0x18] sm:$0x1] %vm1864_vm4, %v9753_v0  ;;  %v82_v19 = vmul.f32 %v5826_v5, %v33_v58  ;;  %v147_v21 = vmul.f32 %v5828_v6, %v33_v58 }
  0x12   :  { %v1196_v22 = vadd.f32 %v1089_v53, %v955_v63  ;;  %1867 = vst.msk [vmem:[#allocation2 + $0x48] sm:$0x1] %vm1864_vm4, %v9753_v0  ;;  %v83_v24 = vmul.f32 %v5826_v5, %v34_v62  ;;  %v5960_v25 = vmul.f32 %v5828_v6, %v34_v62  ;;  %v389_v27 = vmul.f32 %v5830_v7, %v33_v58 }
  0x13   :  { %v1444_v29 = vsel %vm243_vm0, %v1442_v1, %v1443_v13  ;;  %1868 = vst.msk [vmem:[#allocation2 + $0x60] sm:$0x1] %vm1864_vm4, %v9753_v0  ;;  %v114_v30 = vadd.f32 %v5817_v3, %v82_v19  ;;  %v244_v31 = vrot.slane %v147_v21, 1  ;;  %v5970_v32 = vmul.f32 %v5830_v7, %v34_v62 }
  0x14   :  { %v1310_v33 = vadd.f32 %v1278_v60, %v1196_v22  ;;  %v1685_v35 = vsel %vm485_vm3, %v1683_v14, %v1684_v18  ;;  %1869 = vst.msk [vmem:[#allocation2 + $0x78] sm:$0x1] %vm1864_vm4, %v9753_v0  ;;  %v245_v36 = vrot.slane %v5960_v25, 1  ;;  %v486_v37 = vrot.slane %v389_v27, 2  ;;  %v35_v14 = vld [vmem:[%s9745_s0 + $0x10] sm:$0x3] }
  0x15   :  { %2346 = vrot.lane.b32.xlu0 %v2268_v50, %s5757_s24  ;;  %1870 = vst.msk [vmem:[#allocation2 + $0x90] sm:$0x1] %vm1864_vm4, %v9753_v0  ;;  %v487_v38 = vrot.slane %v5970_v32, 2  ;;  %v680_v41 = vmul.f32 %v5844_v10, %v5810_v2  ;;  %v745_v45 = vmul.f32 %v5846_v11, %v5810_v2  ;;  %v5988_v46 = vmul.f32 %v5846_v11, %v5822_v4 }
  0x16   :  { %v1551_v47 = vadd.f32 %v1444_v29, %v1310_v33  ;;  %1871 = vst.msk [vmem:[#allocation2 + $0xa8] sm:$0x1] %vm1864_vm4, %v9753_v0  ;;  %v246_v48 = vsel %vm243_vm0, %v244_v31, %v245_v36  ;;  %v986_v50 = vmul.f32 %v5848_v12, %v5810_v2  ;;  %v5999_v51 = vmul.f32 %v5848_v12, %v5822_v4  ;;  %v5529_v29 = vld [vmem:[%s9745_s0 + $0x28] sm:$0x3] }
  0x17   :  { %1872 = vst.msk [vmem:[#allocation2 + $0xc0] sm:$0x1] %vm1864_vm4, %v9753_v0  ;;  %v356_v52 = vadd.f32 %v246_v48, %v114_v30  ;;  %v488_v53 = vsel %vm485_vm3, %v486_v37, %v487_v38  ;;  %v841_v54 = vrot.slane %v745_v45, 1  ;;  %v842_v55 = vrot.slane %v5988_v46, 1 }
  0x18   :  { %v1792_v57 = vadd.f32 %v1685_v35, %v1551_v47  ;;  %1873 = vst.msk [vmem:[#allocation2 + $0xd8] sm:$0x1] %vm1864_vm4, %v9753_v0  ;;  %v6009_v2 = vmul.f32 %v5844_v10, %v5822_v4  ;;  %v1082_v58 = vrot.slane %v986_v50, 2  ;;  %v1083_v59 = vrot.slane %v5999_v51, 2  ;;  %v5577_v35 = vld [vmem:[%s9745_s0 + $0x40] sm:$0x3] }
  0x19   :  { %1874 = vst.msk [vmem:[#allocation2 + $0xf0] sm:$0x1] %vm1864_vm4, %v9753_v0  ;;  %v598_v60 = vadd.f32 %v488_v53, %v356_v52  ;;  %v843_v62 = vsel %vm243_vm0, %v841_v54, %v842_v55  ;;  %v1276_v63 = vmul.f32 %v5835_v8, %v5910_v44  ;;  %v1341_v1 = vmul.f32 %v5835_v8, %v5916_v49 }
  0x1a   :  { %v1824_v19 = vmax.f32 %v1792_v57, 0.0  ;;  %1875 = vst.msk [vmem:[#allocation2 + $0x108] sm:$0x1] %vm1864_vm4, %v9753_v0  ;;  %v1084_v21 = vsel %vm485_vm3, %v1082_v58, %v1083_v59  ;;  %v1342_v22 = vmul.f32 %v5840_v9, %v5916_v49  ;;  %v1582_v27 = vmul.f32 %v5902_v40, %v5835_v8 }
  0x1b   :  { %1876 = vst.msk [vmem:[#allocation2 + $0x120] sm:$0x1] %vm1864_vm4, %v9753_v0  ;;  %v712_v30 = vadd.f32 %v680_v41, %v598_v60  ;;  %v1437_v31 = vrot.slane %v1341_v1, 1  ;;  %v1583_v32 = vmul.f32 %v5902_v40, %v5840_v9  ;;  %v115_v33 = vadd.f32 %v5817_v3, %v83_v24 }
  0x1c   :  { %1899 = vst.msk [vmem:[#allocation2 + $0x31] sm:$0xff] %vm1854_vm1, %v1824_v19  ;;  %v1438_v37 = vrot.slane %v1342_v22, 1  ;;  %v1678_v45 = vrot.slane %v1582_v27, 2  ;;  %v149_v46 = vmul.f32 %v5828_v6, %v35_v14  ;;  %v391_v47 = vmul.f32 %v5830_v7, %v35_v14 }
  0x1d   :  { %2139 = vrot.lane.b32.xlu0 %v5949_v16, %s5756_s19  ;;  %1877 = vst.msk [vmem:[#allocation2 + $0x138] sm:$0x1] %vm1864_vm4, %v9753_v0  ;;  %v953_v41 = vadd.f32 %v843_v62, %v712_v30  ;;  %v1679_v24 = vrot.slane %v1583_v32, 2  ;;  %v747_v48 = vmul.f32 %v5529_v29, %v5846_v11  ;;  %v988_v50 = vmul.f32 %v5529_v29, %v5848_v12  ;;  %v38_v62 = vld [vmem:[%s9745_s0 + $0x28] sm:$0x3] }
  0x1e   :  { %1878 = vst.msk [vmem:[#allocation2 + $0x150] sm:$0x1] %vm1864_vm4, %v9753_v0  ;;  %v6053_v51 = vmul.f32 %v5840_v9, %v5910_v44  ;;  %v247_v52 = vrot.slane %v149_v46, 1  ;;  %v489_v53 = vrot.slane %v391_v47, 2  ;;  %v1343_v16 = vmul.f32 %v5577_v35, %v5916_v49 }
  0x1f   :  { %1879 = vst.msk [vmem:[#allocation2 + $0x168] sm:$0x1] %vm1864_vm4, %v9753_v0  ;;  %v1194_v54 = vadd.f32 %v1084_v21, %v953_v41  ;;  %v1439_v57 = vsel %vm243_vm0, %v1437_v31, %v1438_v37  ;;  %v844_v58 = vrot.slane %v747_v48, 1  ;;  %v1085_v60 = vrot.slane %v988_v50, 2 }
  0x20   :  { %1880 = vst.msk [vmem:[#allocation2 + $0x180] sm:$0x1] %vm1864_vm4, %v9753_v0  ;;  %v248_v1 = vsel %vm243_vm0, %v245_v36, %v247_v52  ;;  %v490_v14 = vsel %vm485_vm3, %v487_v38, %v489_v53  ;;  %v1440_v19 = vrot.slane %v1343_v16, 1  ;;  %v1584_v21 = vmul.f32 %v5902_v40, %v5577_v35 }
  0x21   :  { %1881 = vst.msk [vmem:[#allocation2 + $0x29] sm:$0x1] %vm1864_vm4, %v9753_v0  ;;  %v1308_v22 = vadd.f32 %v1276_v63, %v1194_v54  ;;  %v1680_v27 = vsel %vm485_vm3, %v1678_v45, %v1679_v24  ;;  %v357_v29 = vadd.f32 %v248_v1, %v115_v33  ;;  %v845_v30 = vsel %vm243_vm0, %v842_v55, %v844_v58  ;;  %v5532_v63 = vld [vmem:[%s9745_s0 + $0x40] sm:$0x3] }
  0x22   :  { %1882 = vst.msk [vmem:[#allocation2 + $0x41] sm:$0x1] %vm1864_vm4, %v9753_v0  ;;  %v1086_v25 = vsel %vm485_vm3, %v1083_v59, %v1085_v60  ;;  %v1681_v36 = vrot.slane %v1584_v21, 2  ;;  %v85_v38 = vmul.f32 %v5826_v5, %v5822_v4  ;;  %v152_v31 = vmul.f32 %v5828_v6, %v38_v62  ;;  %v5580_v4 = vld [vmem:[%s9745_s0 + $0x58] sm:$0x3] }
  0x23   :  { %v6082_v32 = vld [vmem:[#allocation2 + $0x30] sm:$0xff]  ;;  %1883 = vst.msk [vmem:[#allocation2 + $0x59] sm:$0x1] %vm1864_vm4, %v9753_v0  ;;  %v1549_v55 = vadd.f32 %v1439_v57, %v1308_v22  ;;  %v599_v33 = vadd.f32 %v490_v14, %v357_v29  ;;  %v1441_v35 = vsel %vm243_vm0, %v1438_v37, %v1440_v19  ;;  %v394_v59 = vmul.f32 %v5830_v7, %v38_v62 }
  0x24   :  { %3133 = vrot.lane.b32.xlu2 %v6082_v32, %s5757_s24  ;;  %1884 = vst.msk [vmem:[#allocation2 + $0x71] sm:$0x1] %vm1864_vm4, %v9753_v0  ;;  %v1682_v45 = vsel %vm485_vm3, %v1679_v24, %v1681_v36  ;;  %v117_v46 = vadd.f32 %v5817_v3, %v85_v38  ;;  %v683_v47 = vmul.f32 %v5840_v9, %v5844_v10  ;;  %v252_v48 = vrot.slane %v152_v31, 1 }
  0x25   :  { %1885 = vst.msk [vmem:[#allocation2 + $0x89] sm:$0x1] %vm1864_vm4, %v9753_v0  ;;  %v1790_v37 = vadd.f32 %v1680_v27, %v1549_v55  ;;  %v713_v41 = vadd.f32 %v6009_v2, %v599_v33  ;;  %v494_v50 = vrot.slane %v394_v59, 2  ;;  %v750_v52 = vmul.f32 %v5532_v63, %v5846_v11 }
  0x26   :  { %1886 = vst.msk [vmem:[#allocation2 + $0xa1] sm:$0x1] %vm1864_vm4, %v9753_v0  ;;  %v991_v24 = vmul.f32 %v5532_v63, %v5848_v12  ;;  %v1279_v53 = vmul.f32 %v5908_v43, %v5910_v44  ;;  %v1346_v16 = vmul.f32 %v5580_v4, %v5916_v49  ;;  %v253_v2 = vsel %vm243_vm0, %v250_v23, %v252_v48 }
  0x27   :  { %1887 = vst.msk [vmem:[#allocation2 + $0xb9] sm:$0x1] %vm1864_vm4, %v9753_v0  ;;  %v1822_v54 = vmax.f32 %v1790_v37, 0.0  ;;  %v954_v57 = vadd.f32 %v845_v30, %v713_v41  ;;  %v495_v58 = vsel %vm485_vm3, %v492_v26, %v494_v50  ;;  %v359_v60 = vadd.f32 %v253_v2, %v117_v46 }
  0x28   :  { %1888 = vst.msk [vmem:[#allocation2 + $0xd1] sm:$0x1] %vm1864_vm4, %v9753_v0  ;;  %v849_v62 = vrot.slane %v750_v52, 1  ;;  %v1090_v1 = vrot.slane %v991_v24, 2  ;;  %v1445_v14 = vrot.slane %v1346_v16, 1  ;;  %v1587_v21 = vmul.f32 %v5902_v40, %v5580_v4 }
  0x29   :  { %1889 = vst.msk [vmem:[#allocation2 + $0xe9] sm:$0x1] %vm1864_vm4, %v9753_v0  ;;  %v1195_v19 = vadd.f32 %v1086_v25, %v954_v57  ;;  %v86_v17 = vmul.f32 %v5835_v8, %v5826_v5  ;;  %v87_v23 = vmul.f32 %v5840_v9, %v5826_v5  ;;  %v601_v26 = vadd.f32 %v495_v58, %v359_v60 }
  0x2a   :  { %1890 = vst.msk [vmem:[#allocation2 + $0x101] sm:$0x1] %vm1864_vm4, %v9753_v0  ;;  %v850_v22 = vsel %vm243_vm0, %v847_v28, %v849_v62  ;;  %v1091_v27 = vsel %vm485_vm3, %v1088_v42, %v1090_v1  ;;  %v1446_v29 = vsel %vm243_vm0, %v1443_v13, %v1445_v14  ;;  %v1686_v25 = vrot.slane %v1587_v21, 2 }
  0x2b   :  { %1891 = vst.msk [vmem:[#allocation2 + $0x119] sm:$0x1] %vm1864_vm4, %v9753_v0  ;;  %v1309_v30 = vadd.f32 %v6053_v51, %v1195_v19  ;;  %v118_v36 = vadd.f32 %v5817_v3, %v86_v17  ;;  %v119_v20 = vadd.f32 %v5817_v3, %v87_v23  ;;  %v715_v28 = vadd.f32 %v683_v47, %v601_v26  ;;  %v5535_v47 = vld [vmem:[%s9745_s0 + $0x58] sm:$0x3] }
  0x2c   :  { %1892 = vst.msk [vmem:[#allocation2 + $0x131] sm:$0x1] %vm1864_vm4, %v9753_v0  ;;  %v153_v34 = vmul.f32 %v5835_v8, %v5828_v6  ;;  %v154_v42 = vmul.f32 %v5840_v9, %v5828_v6  ;;  %v155_v56 = vmul.f32 %v5828_v6, %v41_v15  ;;  %v1687_v51 = vsel %vm485_vm3, %v1684_v18, %v1686_v25 }
  0x2d   :  { %1893 = vst.msk [vmem:[#allocation2 + $0x149] sm:$0x1] %vm1864_vm4, %v9753_v0  ;;  %v1550_v13 = vadd.f32 %v1441_v35, %v1309_v30  ;;  %v395_v38 = vmul.f32 %v5835_v8, %v5830_v7  ;;  %v396_v31 = vmul.f32 %v5840_v9, %v5830_v7  ;;  %v956_v63 = vadd.f32 %v850_v22, %v715_v28  ;;  %v6196_v30 = vld [vmem:[%s9745_s0 + $0x60] sm:$0xff] }
  0x2e   :  { %1894 = vst.msk [vmem:[#allocation2 + $0x161] sm:$0x1] %vm1864_vm4, %v9753_v0  ;;  %v254_v55 = vrot.slane %v153_v34, 1  ;;  %v255_v33 = vrot.slane %v154_v42, 1  ;;  %v257_v59 = vrot.slane %v155_v56, 1  ;;  %v397_v61 = vmul.f32 %v5830_v7, %v41_v15 }
  0x2f   :  { %1895 = vst.msk [vmem:[#allocation2 + $0x179] sm:$0x1] %vm1864_vm4, %v9753_v0  ;;  %v1791_v35 = vadd.f32 %v1682_v45, %v1550_v13  ;;  %v496_v18 = vrot.slane %v395_v38, 2  ;;  %v497_v4 = vrot.slane %v396_v31, 2  ;;  %v1197_v8 = vadd.f32 %v1091_v27, %v956_v63  ;;  %v5583_v38 = vld [vmem:[%s9745_s0 + $0x70] sm:$0x3] }
  0x30   :  { %1896 = vst.msk [vmem:[#allocation2 + $0x191] sm:$0x1] %vm1864_vm4, %v9753_v0  ;;  %v256_v9 = vsel %vm243_vm0, %v254_v55, %v255_v33  ;;  %v258_v46 = vsel %vm243_vm0, %v255_v33, %v257_v59  ;;  %v684_v37 = vmul.f32 %v5897_v39, %v5844_v10  ;;  %v499_v24 = vrot.slane %v397_v61, 2 }
  0x31   :  { %1897 = vst.msk [vmem:[#allocation2 + $0x19] sm:$0xff] %vm1854_vm1, %v1822_v54  ;;  %v1823_v45 = vmax.f32 %v1791_v35, 0.0  ;;  %v360_v41 = vadd.f32 %v256_v9, %v118_v36  ;;  %v361_v48 = vadd.f32 %v258_v46, %v119_v20  ;;  %v498_v50 = vsel %vm485_vm3, %v496_v18, %v497_v4  ;;  %v6203_v20 = vld [vmem:[%s9745_s0 + $0x68] sm:$0xff] }
  0x32   :  { %v1311_v52 = vadd.f32 %v1279_v53, %v1197_v8  ;;  %v685_v16 = vmul.f32 %v5908_v43, %v5844_v10  ;;  %v751_v57 = vmul.f32 %v5897_v39, %v5846_v11  ;;  %1981 = vst.msk [vmem:[#allocation3 + $0x60] sm:$0xff] %vm1854_vm1, %v6082_v32  ;;  %v752_v54 = vmul.f32 %v5908_v43, %v5846_v11 }
  0x33   :  { %1898 = vst.msk [vmem:[#allocation2 + $0x21] sm:$0xff] %vm1854_vm1, %v1823_v45  ;;  %v602_v2 = vadd.f32 %v498_v50, %v360_v41  ;;  %v753_v58 = vmul.f32 %v5535_v47, %v5846_v11  ;;  %v992_v53 = vmul.f32 %v5897_v39, %v5848_v12  ;;  %v500_v62 = vsel %vm485_vm3, %v497_v4, %v499_v24 }
  0x34   :  { %v1552_v60 = vadd.f32 %v1446_v29, %v1311_v52  ;;  %v851_v1 = vrot.slane %v751_v57, 1  ;;  %v993_v14 = vmul.f32 %v5908_v43, %v5848_v12  ;;  %v603_v19 = vadd.f32 %v500_v62, %v361_v48 }
  0x35   :  { %v716_v21 = vadd.f32 %v684_v37, %v602_v2  ;;  %v852_v15 = vrot.slane %v752_v54, 1  ;;  %v854_v17 = vrot.slane %v753_v58, 1  ;;  %v994_v26 = vmul.f32 %v5535_v47, %v5848_v12 }
  0x36   :  { %v1793_v23 = vadd.f32 %v1687_v51, %v1552_v60  ;;  %v1092_v22 = vrot.slane %v992_v53, 2  ;;  %v1093_v27 = vrot.slane %v993_v14, 2  ;;  %v717_v29 = vadd.f32 %v685_v16, %v603_v19 }
  0x37   :  { %v853_v25 = vsel %vm243_vm0, %v851_v1, %v852_v15  ;;  %v855_v36 = vsel %vm243_vm0, %v852_v15, %v854_v17  ;;  %v1095_v13 = vrot.slane %v994_v26, 2  ;;  %v1280_v31 = vmul.f32 %v6196_v30, %v5910_v44 }
  0x38   :  { %v6205_v28 = vld [vmem:[#allocation2 + $0x18] sm:$0xff]  ;;  %v1825_v34 = vmax.f32 %v1793_v23, 0.0  ;;  %v957_v42 = vadd.f32 %v853_v25, %v716_v21  ;;  %v1094_v56 = vsel %vm485_vm3, %v1092_v22, %v1093_v27  ;;  %v958_v51 = vadd.f32 %v855_v36, %v717_v29 }
  0x39   :  { %2555 = vrot.lane.b32.xlu1 %v6205_v28, %s5758_s23  ;;  %1979 = vst.msk [vmem:[#allocation3 + $0x30] sm:$0xff] %vm1854_vm1, %v6205_v28  ;;  %v1281_v63 = vmul.f32 %v6203_v20, %v5910_v44  ;;  %v1096_v59 = vsel %vm485_vm3, %v1093_v27, %v1095_v13  ;;  %v1347_v61 = vmul.f32 %v6196_v30, %v5916_v49  ;;  %v3277_v9 = vrot.slane %v6082_v32, 1 }
  0x3a   :  { %v2476_v55 = vld [vmem:[#allocation2 + $0x20] sm:$0xff]  ;;  %v6219_v33 = vld [vmem:[#allocation2 + $0x28] sm:$0x3]  ;;  %1900 = vst.msk [vmem:[#allocation2 + $0x39] sm:$0xff] %vm1854_vm1, %v1825_v34  ;;  %v1198_v35 = vadd.f32 %v1094_v56, %v957_v42  ;;  %v1348_v18 = vmul.f32 %v6203_v20, %v5916_v49  ;;  %v1199_v46 = vadd.f32 %v1096_v59, %v958_v51  ;;  %v1349_v47 = vmul.f32 %v5583_v38, %v5916_v49 }
  0x3b   :  { %v6227_v4 = vrot.slane %v2476_v55, 2  ;;  %v2847_v8 = vrot.slane %v6219_v33, 2  ;;  %2557 = vrot.lane.b32.xlu2 %v2476_v55, %s5758_s23  ;;  %1980 = vst.msk [vmem:[#allocation3 + $0x48] sm:$0xff] %vm1854_vm1, %v2476_v55  ;;  %v3485_v37 = vrot.slane %v6082_v32, 2  ;;  %v1447_v48 = vrot.slane %v1347_v61, 1 }
  0x3c   :  { %v1312_v41 = vadd.f32 %v1280_v31, %v1198_v35  ;;  %v2700_v50 = vrot.slane %v6205_v28, 1  ;;  %v1313_v52 = vadd.f32 %v1281_v63, %v1199_v46  ;;  %v1448_v24 = vrot.slane %v1348_v18, 1  ;;  %v6247_v60 = vld [vmem:[#allocation2 + $0x28] sm:$0x3] }
  0x3d   :  { %v2848_v45 = vsel %vm485_vm3, %v6227_v4, %v2847_v8  ;;  %v1450_v16 = vrot.slane %v1349_v47, 1  ;;  %v6239_v57 = vrot.slane %v2476_v55, 1  ;;  %v1588_v2 = vmul.f32 %v5902_v40, %v6196_v30 }
  0x3e   :  { %2926 = vrot.lane.b32.xlu0 %v2848_v45, %s5756_s19  ;;  %v1589_v54 = vmul.f32 %v5902_v40, %v6203_v20  ;;  %v1590_v58 = vmul.f32 %v5902_v40, %v5583_v38  ;;  %v2844_v53 = vrot.slane %v6205_v28, 2  ;;  %v1449_v62 = vsel %vm243_vm0, %v1447_v48, %v1448_v24 }
  0x3f   :  { %v1451_v1 = vsel %vm243_vm0, %v1448_v24, %v1450_v16  ;;  %v88_v14 = vmul.f32 %v5897_v39, %v5826_v5  ;;  %v1553_v15 = vadd.f32 %v1449_v62, %v1312_v41  ;;  %v1688_v17 = vrot.slane %v1588_v2, 2 }
  0x40   :  { %v1689_v23 = vrot.slane %v1589_v54, 2  ;;  %v156_v26 = vmul.f32 %v5897_v39, %v5828_v6  ;;  %v1554_v25 = vadd.f32 %v1451_v1, %v1313_v52  ;;  %v6270_v36 = vsel %vm243_vm0, %v2700_v50, %v6239_v57  ;;  %v5538_v50 = vld [vmem:[%s9745_s0 + $0x70] sm:$0x3] }
  0x41   :  { %v6253_v19 = vld [vmem:[#allocation2 + $0x38] sm:$0xff]  ;;  %v6255_v21 = vld [vmem:[#allocation2 + $0x40] sm:$0x3]  ;;  %v1691_v34 = vrot.slane %v1590_v58, 2  ;;  %v6283_v56 = vsel %vm485_vm3, %v2844_v53, %v6227_v4  ;;  %v2065_v13 = vrot.slane %v6247_v60, 1  ;;  %v89_v35 = vmul.f32 %v5908_v43, %v5826_v5  ;;  %2812 = vst.msk [vmem:[#allocation3 + $0x8] sm:$0xff] %vm1854_vm1, %v6270_v36 }
  0x42   :  { %v6260_v22 = vrot.slane %v6253_v19, 1  ;;  %v6263_v27 = vrot.slane %v6253_v19, 2  ;;  %3135 = vrot.lane.b32.xlu1 %v6253_v19, %s5757_s24  ;;  %v3488_v29 = vrot.slane %v6255_v21, 2  ;;  %v1690_v28 = vsel %vm485_vm3, %v1688_v17, %v1689_v23  ;;  %1982 = vst.msk [vmem:[#allocation3 + $0x78] sm:$0xff] %vm1854_vm1, %v6253_v19 }
  0x43   :  { %2559 = vrot.lane.b32.xlu2 %v6082_v32, %s5758_s23  ;;  %v44_v32 = vld [vmem:[%s9745_s0 + $0x58] sm:$0x3]  ;;  %v3280_v31 = vrot.slane %v6255_v21, 1  ;;  %v1692_v63 = vsel %vm485_vm3, %v1689_v23, %v1691_v34  ;;  %v1794_v55 = vadd.f32 %v1690_v28, %v1553_v15  ;;  %v120_v61 = vadd.f32 %v5817_v3, %v88_v14 }
  0x44   :  { %v6279_v42 = vsel %vm485_vm3, %v3485_v37, %v6263_v27  ;;  %v3489_v51 = vsel %vm485_vm3, %v6263_v27, %v3488_v29  ;;  %v6295_v38 = vsel %vm243_vm0, %v3277_v9, %v6260_v22  ;;  %v1795_v59 = vadd.f32 %v1692_v63, %v1554_v25 }
  0x45   :  { %3597 = vst.msk [vmem:[#allocation3 + $0x10] sm:$0xff] %vm1854_vm1, %v6279_v42  ;;  %v259_v18 = vrot.slane %v156_v26, 1  ;;  %v1826_v8 = vmax.f32 %v1794_v55, 0.0  ;;  %v157_v9 = vmul.f32 %v5908_v43, %v5828_v6  ;;  %v158_v46 = vmul.f32 %v5828_v6, %v44_v32 }
  0x46   :  { %2141 = vrot.lane.b32.xlu0 %v6270_v36, %s5756_s19  ;;  %3598 = vst.msk [vmem:[#allocation3 + $0x28] sm:$0xff] %vm1854_vm1, %v3489_v51  ;;  %v398_v47 = vmul.f32 %v5897_v39, %v5830_v7  ;;  %v1827_v37 = vmax.f32 %v1795_v59, 0.0  ;;  %v121_v45 = vadd.f32 %v5817_v3, %v89_v35  ;;  %v399_v41 = vmul.f32 %v5908_v43, %v5830_v7 }
  0x47   :  { %v400_v48 = vmul.f32 %v5830_v7, %v44_v32  ;;  %1901 = vst.msk [vmem:[#allocation2 + $0x49] sm:$0xff] %vm1854_vm1, %v1826_v8  ;;  %v260_v52 = vrot.slane %v157_v9, 1  ;;  %v262_v24 = vrot.slane %v158_v46, 1  ;;  %v686_v39 = vmul.f32 %v6196_v30, %v5844_v10 }
  0x48   :  { %v501_v16 = vrot.slane %v398_v47, 2  ;;  %1902 = vst.msk [vmem:[#allocation2 + $0x51] sm:$0xff] %vm1854_vm1, %v1827_v37  ;;  %v502_v43 = vrot.slane %v399_v41, 2  ;;  %v687_v54 = vmul.f32 %v6203_v20, %v5844_v10  ;;  %v754_v58 = vmul.f32 %v6196_v30, %v5846_v11 }
  0x49   :  { %v504_v2 = vrot.slane %v400_v48, 2  ;;  %v261_v53 = vsel %vm243_vm0, %v259_v18, %v260_v52  ;;  %v263_v62 = vsel %vm243_vm0, %v260_v52, %v262_v24  ;;  %v755_v1 = vmul.f32 %v6203_v20, %v5846_v11  ;;  %v6368_v52 = vld [vmem:[#allocation2 + $0x40] sm:$0x3]  ;;  %2814 = vst.msk [vmem:[#allocation3 + $0x38] sm:$0xff] %vm1854_vm1, %v6295_v38 }
  0x4a   :  { %2924 = vrot.lane.b32.xlu1 %v6283_v56, %s5756_s19  ;;  %v756_v14 = vmul.f32 %v5538_v50, %v5846_v11  ;;  %v362_v21 = vadd.f32 %v261_v53, %v120_v61  ;;  %v363_v15 = vadd.f32 %v263_v62, %v121_v45  ;;  %v503_v17 = vsel %vm485_vm3, %v501_v16, %v502_v43  ;;  %v6349_v61 = vld [vmem:[%s9745_s0 + $0x78] sm:$0xff]  ;;  %v6374_v24 = vld [vmem:[%s9745_s0 + $0x80] sm:$0xff] }
  0x4b   :  { %3357 = vrot.lane.b32.xlu2 %v6295_v38, %s5758_s23  ;;  %v505_v23 = vsel %vm485_vm3, %v502_v43, %v504_v2  ;;  %v856_v26 = vrot.slane %v754_v58, 1  ;;  %v857_v29 = vrot.slane %v755_v1, 1  ;;  %v995_v28 = vmul.f32 %v6196_v30, %v5848_v12  ;;  %v5586_v58 = vld [vmem:[%s9745_s0 + $0x88] sm:$0x3] }
  0x4c   :  { %v859_v25 = vrot.slane %v756_v14, 1  ;;  %v604_v34 = vadd.f32 %v503_v17, %v362_v21  ;;  %v605_v51 = vadd.f32 %v505_v23, %v363_v15  ;;  %v996_v32 = vmul.f32 %v6203_v20, %v5848_v12 }
  0x4d   :  { %v997_v63 = vmul.f32 %v5538_v50, %v5848_v12  ;;  %v3281_v55 = vsel %vm243_vm0, %v6260_v22, %v3280_v31  ;;  %v858_v59 = vsel %vm243_vm0, %v856_v26, %v857_v29  ;;  %v1097_v35 = vrot.slane %v995_v28, 2 }
  0x4e   :  { %2928 = vrot.lane.b32.xlu0 %v6279_v42, %s5756_s19  ;;  %v6351_v18 = vld [vmem:[#allocation2 + $0x48] sm:$0xff]  ;;  %v718_v8 = vadd.f32 %v686_v39, %v604_v34  ;;  %v719_v9 = vadd.f32 %v687_v54, %v605_v51  ;;  %v860_v46 = vsel %vm243_vm0, %v857_v29, %v859_v25  ;;  %v1098_v47 = vrot.slane %v996_v32, 2 }
  0x4f   :  { %v2066_v37 = vsel %vm243_vm0, %v6239_v57, %v2065_v13  ;;  %v6356_v45 = vld [vmem:[#allocation2 + $0x50] sm:$0xff]  ;;  %v3490_v31 = vrot.slane %v6351_v18, 2  ;;  %v6359_v41 = vld [vmem:[#allocation2 + $0x58] sm:$0x3]  ;;  %v1100_v48 = vrot.slane %v997_v63, 2  ;;  %1983 = vst.msk [vmem:[#allocation3 + $0x90] sm:$0xff] %vm1854_vm1, %v6351_v18  ;;  %v1282_v16 = vmul.f32 %v6349_v61, %v5910_v44 }
  0x50   :  { %v6366_v50 = vrot.slane %v6356_v45, 2  ;;  %v3493_v13 = vrot.slane %v6359_v41, 2  ;;  %v1350_v39 = vmul.f32 %v6349_v61, %v5916_v49  ;;  %v959_v43 = vadd.f32 %v858_v59, %v718_v8  ;;  %1984 = vst.msk [vmem:[#allocation3 + $0xa8] sm:$0xff] %vm1854_vm1, %v6356_v45 }
  0x51   :  { %v960_v2 = vadd.f32 %v860_v46, %v719_v9  ;;  %v1099_v54 = vsel %vm485_vm3, %v1097_v35, %v1098_v47  ;;  %v6393_v62 = vrot.slane %v6356_v45, 1  ;;  %v1283_v14 = vmul.f32 %v6374_v24, %v5910_v44 }
  0x52   :  { %2350 = vrot.lane.b32.xlu1 %v6283_v56, %s5757_s24  ;;  %v3282_v56 = vrot.slane %v6351_v18, 1  ;;  %v6390_v53 = vsel %vm485_vm3, %v3490_v31, %v6366_v50  ;;  %v3494_v1 = vsel %vm485_vm3, %v6366_v50, %v3493_v13  ;;  %v2852_v21 = vrot.slane %v6368_v52, 2 }
  0x53   :  { %3359 = vrot.lane.b32.xlu2 %v3281_v55, %s5758_s23  ;;  %3599 = vst.msk [vmem:[#allocation3 + $0x40] sm:$0xff] %vm1854_vm1, %v6390_v53  ;;  %v1101_v15 = vsel %vm485_vm3, %v1098_v47, %v1100_v48  ;;  %v1200_v17 = vadd.f32 %v1099_v54, %v959_v43  ;;  %v1351_v23 = vmul.f32 %v6374_v24, %v5916_v49  ;;  %v1452_v25 = vrot.slane %v1350_v39, 1 }
  0x54   :  { %3600 = vst.msk [vmem:[#allocation3 + $0x58] sm:$0xff] %vm1854_vm1, %v3494_v1  ;;  %v1201_v26 = vadd.f32 %v1101_v15, %v960_v2  ;;  %v1352_v29 = vmul.f32 %v5586_v58, %v5916_v49  ;;  %v1591_v28 = vmul.f32 %v5902_v40, %v6349_v61  ;;  %v1592_v32 = vmul.f32 %v5902_v40, %v6374_v24 }
  0x55   :  { %v1314_v34 = vadd.f32 %v1282_v16, %v1200_v17  ;;  %v1453_v51 = vrot.slane %v1351_v23, 1  ;;  %v1593_v63 = vmul.f32 %v5902_v40, %v5586_v58  ;;  %v6415_v55 = vsel %vm243_vm0, %v3282_v56, %v6393_v62 }
  0x56   :  { %2143 = vrot.lane.b32.xlu0 %v2066_v37, %s5756_s19  ;;  %v1315_v59 = vadd.f32 %v1283_v14, %v1201_v26  ;;  %v1455_v35 = vrot.slane %v1352_v29, 1  ;;  %v1693_v8 = vrot.slane %v1591_v28, 2  ;;  %v1694_v46 = vrot.slane %v1592_v32, 2  ;;  %v47_v29 = vld [vmem:[%s9745_s0 + $0x70] sm:$0x3]  ;;  %2816 = vst.msk [vmem:[#allocation3 + $0x68] sm:$0xff] %vm1854_vm1, %v6415_v55 }
  0x57   :  { %v1454_v9 = vsel %vm243_vm0, %v1452_v25, %v1453_v51  ;;  %v1696_v47 = vrot.slane %v1593_v63, 2  ;;  %v2274_v37 = vrot.slane %v6247_v60, 2  ;;  %v2853_v13 = vsel %vm485_vm3, %v6263_v27, %v2852_v21 }
  0x58   :  { %v1456_v31 = vsel %vm243_vm0, %v1453_v51, %v1455_v35  ;;  %v1555_v48 = vadd.f32 %v1454_v9, %v1314_v34  ;;  %v1695_v39 = vsel %vm485_vm3, %v1693_v8, %v1694_v46  ;;  %v159_v2 = vmul.f32 %v6196_v30, %v5828_v6 }
  0x59   :  { %v1556_v16 = vadd.f32 %v1456_v31, %v1315_v59  ;;  %v1697_v56 = vsel %vm485_vm3, %v1694_v46, %v1696_v47  ;;  %v160_v60 = vmul.f32 %v6203_v20, %v5828_v6  ;;  %v90_v58 = vmul.f32 %v6196_v30, %v5826_v5 }
  0x5a   :  { %3137 = vrot.lane.b32.xlu1 %v6351_v18, %s5757_s24  ;;  %v1796_v43 = vadd.f32 %v1695_v39, %v1555_v48  ;;  %v2275_v1 = vsel %vm485_vm3, %v6227_v4, %v2274_v37  ;;  %v264_v21 = vrot.slane %v159_v2, 1  ;;  %v401_v26 = vmul.f32 %v6196_v30, %v5830_v7 }
  0x5b   :  { %3361 = vrot.lane.b32.xlu2 %v6415_v55, %s5758_s23  ;;  %v1797_v54 = vadd.f32 %v1697_v56, %v1556_v16  ;;  %v122_v17 = vadd.f32 %v5817_v3, %v90_v58  ;;  %v265_v23 = vrot.slane %v160_v60, 1  ;;  %v402_v25 = vmul.f32 %v6203_v20, %v5830_v7 }
  0x5c   :  { %v1828_v14 = vmax.f32 %v1796_v43, 0.0  ;;  %v3285_v4 = vrot.slane %v6359_v41, 1  ;;  %v161_v28 = vmul.f32 %v5828_v6, %v47_v29  ;;  %v506_v51 = vrot.slane %v401_v26, 2 }
  0x5d   :  { %v1829_v15 = vmax.f32 %v1797_v54, 0.0  ;;  %v266_v34 = vsel %vm243_vm0, %v264_v21, %v265_v23  ;;  %v91_v30 = vmul.f32 %v6203_v20, %v5826_v5  ;;  %v507_v63 = vrot.slane %v402_v25, 2 }
  0x5e   :  { %2930 = vrot.lane.b32.xlu0 %v2853_v13, %s5756_s19  ;;  %1903 = vst.msk [vmem:[#allocation2 + $0x61] sm:$0xff] %vm1854_vm1, %v1828_v14  ;;  %v364_v32 = vadd.f32 %v266_v34, %v122_v17  ;;  %v757_v59 = vmul.f32 %v6349_v61, %v5846_v11  ;;  %v267_v41 = vrot.slane %v161_v28, 1  ;;  %v403_v35 = vmul.f32 %v5830_v7, %v47_v29 }
  0x5f   :  { %1904 = vst.msk [vmem:[#allocation2 + $0x69] sm:$0xff] %vm1854_vm1, %v1829_v15  ;;  %v688_v8 = vmul.f32 %v6349_v61, %v5844_v10  ;;  %v758_v9 = vmul.f32 %v6374_v24, %v5846_v11  ;;  %v123_v46 = vadd.f32 %v5817_v3, %v91_v30  ;;  %v508_v20 = vsel %vm485_vm3, %v506_v51, %v507_v63  ;;  %v5541_v3 = vld [vmem:[%s9745_s0 + $0x88] sm:$0x3] }
  0x60   :  { %v861_v47 = vrot.slane %v757_v59, 1  ;;  %v998_v37 = vmul.f32 %v6349_v61, %v5848_v12  ;;  %v268_v31 = vsel %vm243_vm0, %v265_v23, %v267_v41  ;;  %v606_v48 = vadd.f32 %v508_v20, %v364_v32  ;;  %v6489_v23 = vld [vmem:[%s9745_s0 + $0x90] sm:$0xff]  ;;  %v6516_v41 = vld [vmem:[#allocation2 + $0x40] sm:$0x3] }
  0x61   :  { %v862_v13 = vrot.slane %v758_v9, 1  ;;  %v3286_v16 = vsel %vm243_vm0, %v6393_v62, %v3285_v4  ;;  %v365_v39 = vadd.f32 %v268_v31, %v123_v46  ;;  %v999_v56 = vmul.f32 %v6374_v24, %v5848_v12  ;;  %v6499_v4 = vld [vmem:[%s9745_s0 + $0x98] sm:$0xff]  ;;  %v5589_v46 = vld [vmem:[%s9745_s0 + $0xa0] sm:$0x3] }
  0x62   :  { %2352 = vrot.lane.b32.xlu1 %v2275_v1, %s5757_s24  ;;  %v720_v60 = vadd.f32 %v688_v8, %v606_v48  ;;  %v759_v54 = vmul.f32 %v5541_v3, %v5846_v11  ;;  %v689_v15 = vmul.f32 %v6374_v24, %v5844_v10  ;;  %v1102_v17 = vrot.slane %v998_v37, 2 }
  0x63   :  { %2561 = vrot.lane.b32.xlu2 %v6253_v19, %s5758_s23  ;;  %v509_v19 = vrot.slane %v403_v35, 2  ;;  %v863_v58 = vsel %vm243_vm0, %v861_v47, %v862_v13  ;;  %v1000_v34 = vmul.f32 %v5541_v3, %v5848_v12  ;;  %v1103_v51 = vrot.slane %v999_v56, 2 }
  0x64   :  { %v864_v29 = vrot.slane %v759_v54, 1  ;;  %v961_v25 = vadd.f32 %v863_v58, %v720_v60  ;;  %v1353_v59 = vmul.f32 %v6489_v23, %v5916_v49  ;;  %v1354_v20 = vmul.f32 %v6499_v4, %v5916_v49 }
  0x65   :  { %v6476_v43 = vld [vmem:[#allocation2 + $0x60] sm:$0xff]  ;;  %v510_v2 = vsel %vm485_vm3, %v507_v63, %v509_v19  ;;  %v1284_v63 = vmul.f32 %v6489_v23, %v5910_v44  ;;  %v1104_v8 = vsel %vm485_vm3, %v1102_v17, %v1103_v51  ;;  %v1105_v9 = vrot.slane %v1000_v34, 2 }
  0x66   :  { %2145 = vrot.lane.b32.xlu0 %v6295_v38, %s5756_s19  ;;  %v6481_v1 = vld [vmem:[#allocation2 + $0x68] sm:$0xff]  ;;  %v3495_v14 = vrot.slane %v6476_v43, 2  ;;  %v607_v21 = vadd.f32 %v510_v2, %v365_v39  ;;  %1985 = vst.msk [vmem:[#allocation3 + $0xc0] sm:$0xff] %vm1854_vm1, %v6476_v43  ;;  %v865_v32 = vsel %vm243_vm0, %v862_v13, %v864_v29  ;;  %v1202_v47 = vadd.f32 %v1104_v8, %v961_v25  ;;  %v6531_v48 = vld [vmem:[#allocation2 + $0x70] sm:$0x3] }
  0x67   :  { %v6494_v26 = vrot.slane %v6481_v1, 2  ;;  %1986 = vst.msk [vmem:[#allocation3 + $0xd8] sm:$0xff] %vm1854_vm1, %v6481_v1  ;;  %v1355_v37 = vmul.f32 %v5589_v46, %v5916_v49  ;;  %v1457_v31 = vrot.slane %v1353_v59, 1  ;;  %v1594_v19 = vmul.f32 %v5902_v40, %v6489_v23  ;;  %v6553_v59 = vld [vmem:[#allocation2 + $0x58] sm:$0x3] }
  0x68   :  { %v721_v28 = vadd.f32 %v689_v15, %v607_v21  ;;  %v1106_v13 = vsel %vm485_vm3, %v1103_v51, %v1105_v9  ;;  %v1458_v39 = vrot.slane %v1354_v20, 1  ;;  %v1595_v3 = vmul.f32 %v5902_v40, %v6499_v4  ;;  %v3739_v20 = vld [vmem:[%s9748_s3 + $0x70] sm:$0xff] }
  0x69   :  { %v6509_v30 = vsel %vm485_vm3, %v3495_v14, %v6494_v26  ;;  %v2070_v56 = vrot.slane %v6516_v41, 1  ;;  %v3498_v2 = vrot.slane %v6531_v48, 2  ;;  %v1316_v54 = vadd.f32 %v1284_v63, %v1202_v47 }
  0x6a   :  { %3139 = vrot.lane.b32.xlu1 %v6356_v45, %s5757_s24  ;;  %3601 = vst.msk [vmem:[#allocation3 + $0x70] sm:$0xff] %vm1854_vm1, %v6509_v30  ;;  %v962_v35 = vadd.f32 %v865_v32, %v721_v28  ;;  %v1459_v58 = vsel %vm243_vm0, %v1457_v31, %v1458_v39  ;;  %v1460_v14 = vrot.slane %v1355_v37, 1  ;;  %v1596_v21 = vmul.f32 %v5902_v40, %v5589_v46 }
  0x6b   :  { %3363 = vrot.lane.b32.xlu2 %v3286_v16, %s5758_s23  ;;  %v1285_v16 = vmul.f32 %v6499_v4, %v5910_v44  ;;  %v1698_v15 = vrot.slane %v1594_v19, 2  ;;  %v3499_v17 = vsel %vm485_vm3, %v6494_v26, %v3498_v2  ;;  %v1557_v25 = vadd.f32 %v1459_v58, %v1316_v54  ;;  %v3735_v58 = vld [vmem:[%s9748_s3 + $0x50] sm:$0xff] }
  0x6c   :  { %v1203_v60 = vadd.f32 %v1106_v13, %v962_v35  ;;  %3602 = vst.msk [vmem:[#allocation3 + $0x88] sm:$0xff] %vm1854_vm1, %v3499_v17  ;;  %v1461_v28 = vsel %vm243_vm0, %v1458_v39, %v1460_v14  ;;  %v1699_v34 = vrot.slane %v1595_v3, 2  ;;  %v1701_v51 = vrot.slane %v1596_v21, 2  ;;  %v3738_v13 = vld [vmem:[%s9748_s3 + $0x68] sm:$0xff]  ;;  %v6605_v17 = vld [vmem:[#allocation2 + $0x58] sm:$0x3] }
  0x6d   :  { %v2071_v32 = vsel %vm243_vm0, %v6260_v22, %v2070_v56  ;;  %v3287_v63 = vrot.slane %v6476_v43, 1  ;;  %v6556_v35 = vrot.slane %v6481_v1, 1  ;;  %v2857_v47 = vrot.slane %v6553_v59, 2 }
  0x6e   :  { %2932 = vrot.lane.b32.xlu0 %v6390_v53, %s5756_s19  ;;  %v1317_v29 = vadd.f32 %v1285_v16, %v1203_v60  ;;  %v1702_v8 = vsel %vm485_vm3, %v1699_v34, %v1701_v51  ;;  %v3737_v16 = vld [vmem:[%s9748_s3 + $0x60] sm:$0xff]  ;;  %v2279_v3 = vrot.slane %v6516_v41, 2  ;;  %v162_v56 = vmul.f32 %v6349_v61, %v5828_v6  ;;  %v3736_v41 = vld [vmem:[%s9748_s3 + $0x58] sm:$0xff]  ;;  %v3734_v51 = vld [vmem:[%s9748_s3 + $0x48] sm:$0xff] }
  0x6f   :  { %v6570_v19 = vsel %vm243_vm0, %v3287_v63, %v6556_v35  ;;  %v2858_v39 = vsel %vm485_vm3, %v6366_v50, %v2857_v47  ;;  %v163_v2 = vmul.f32 %v6374_v24, %v5828_v6  ;;  %vm2233_vm5 = vcmask 523520  }
  0x70   :  { %v1558_v40 = vadd.f32 %v1461_v28, %v1317_v29  ;;  %v92_v60 = vmul.f32 %v6349_v61, %v5826_v5  ;;  %v3290_v54 = vrot.slane %v6531_v48, 1  ;;  %v269_v14 = vrot.slane %v162_v56, 1  ;;  %v6610_v48 = vld [vmem:[%s9747_s2] ss:$0 sm:$0xff]  ;;  %2818 = vst.msk [vmem:[#allocation3 + $0x98] sm:$0xff] %vm1854_vm1, %v6570_v19 }
  0x71   :  { %v404_v21 = vmul.f32 %v6349_v61, %v5830_v7  ;;  %v270_v28 = vrot.slane %v163_v2, 1  ;;  %v2703_v61 = vrot.slane %v6219_v33, 1  ;;  %v93_v47 = vmul.f32 %v6374_v24, %v5826_v5  ;;  %v3726_v33 = vld [vmem:[%s9748_s3 + $0x8] sm:$0xff] }
  0x72   :  { %2354 = vrot.lane.b32.xlu1 %v6279_v42, %s5757_s24  ;;  %v1700_v42 = vsel %vm485_vm3, %v1698_v15, %v1699_v34  ;;  %v1799_v46 = vadd.f32 %v1702_v8, %v1558_v40  ;;  %v2280_v15 = vsel %vm485_vm3, %v6263_v27, %v2279_v3  ;;  %v405_v34 = vmul.f32 %v6374_v24, %v5830_v7 }
  0x73   :  { %2563 = vrot.lane.b32.xlu2 %v6351_v18, %s5758_s23  ;;  %v1798_v9 = vadd.f32 %v1700_v42, %v1557_v25  ;;  %v3740_v18 = vld [vmem:[%s9748_s3 + $0x78] sm:$0xff]  ;;  %v124_v25 = vadd.f32 %v6610_v48, %v92_v60  ;;  %v271_v8 = vsel %vm243_vm0, %v269_v14, %v270_v28  ;;  %v125_v24 = vadd.f32 %v6610_v48, %v93_v47  ;;  %v3731_v14 = vld [vmem:[%s9748_s3 + $0x30] sm:$0xff] }
  0x74   :  { %3861 = vmatpush.msra.mxu0 %v3740_v18  ;;  %v1831_v31 = vmax.f32 %v1799_v46, 0.0  ;;  %v3291_v46 = vsel %vm243_vm0, %v6556_v35, %v3290_v54  ;;  %v690_v56 = vmul.f32 %v6489_v23, %v5844_v10  ;;  %v760_v2 = vmul.f32 %v6489_v23, %v5846_v11 }
  0x75   :  { %v1830_v37 = vmax.f32 %v1798_v9, 0.0  ;;  %v511_v9 = vrot.slane %v404_v21, 2  ;;  %vm2442_vm6 = vcmask 785920   ;;  %v3756_v21 = vld [vmem:[%s9748_s3 + $0xf8] sm:$0xff]  ;;  %v691_v47 = vmul.f32 %v6499_v4, %v5844_v10 }
  0x76   :  { %2147 = vrot.lane.b32.xlu0 %v2071_v32, %s5756_s19  ;;  %3862 = vmatpush.msra.mxu0 %v3739_v20  ;;  %1906 = vst.msk [vmem:[#allocation2 + $0x81] sm:$0xff] %vm1854_vm1, %v1831_v31  ;;  %v50_v32 = vld [vmem:[%s9745_s0 + $0x88] sm:$0x3]  ;;  %v3733_v20 = vld [vmem:[%s9748_s3 + $0x40] sm:$0xff]  ;;  %v2075_v31 = vrot.slane %v6605_v17, 1  ;;  %vm2651_vm7 = vcmask 1048320  }
  0x77   :  { %1905 = vst.msk [vmem:[#allocation2 + $0x79] sm:$0xff] %vm1854_vm1, %v1830_v37  ;;  %v164_v42 = vmul.f32 %v5828_v6, %v50_v32  ;;  %v366_v37 = vadd.f32 %v271_v8, %v124_v25  ;;  %v866_v25 = vrot.slane %v760_v2, 1  ;;  %3974 = vmatpush.msra.mxu1 %v3756_v21  ;;  %v1002_v8 = vmul.f32 %v6499_v4, %v5848_v12 }
  0x78   :  { %3863 = vmatpush.msra.mxu0 %v3738_v13  ;;  %vm4501_vm8 = vcmask 523264   ;;  %vm4440_vm9 = vcmask 1040384   ;;  %vm4449_vm10 = vcmask 1041408   ;;  %vm4458_vm11 = vcmask 1042432  }
  0x79   :  { %v272_v13 = vrot.slane %v164_v42, 1  ;;  %v1001_v42 = vmul.f32 %v6489_v23, %v5848_v12  ;;  %vm4467_vm12 = vcmask 1043456   ;;  %vm4476_vm13 = vcmask 1044480  }
  0x7a   :  { %3141 = vrot.lane.b32.xlu1 %v6476_v43, %s5757_s24  ;;  %3864 = vmatpush.msra.mxu0 %v3737_v16  ;;  %v406_v16 = vmul.f32 %v5830_v7, %v50_v32  ;;  %v5544_v32 = vld [vmem:[%s9745_s0 + $0xa0] sm:$0x3]  ;;  %vm4509_vm14 = vcmask 516096   ;;  %vm4503_vm15 = vcmask 517120   ;;  %vm4622_vm2 = vcmask 1048064  }
  0x7b   :  { %3365 = vrot.lane.b32.xlu2 %v6570_v19, %s5758_s23  ;;  %v1003_v2 = vmul.f32 %v5544_v32, %v5848_v12 }
  0x7c   :  { %3865 = vmatpush.msra.mxu0 %v3736_v41  ;;  %v514_v54 = vrot.slane %v406_v16, 2  ;;  %v761_v41 = vmul.f32 %v6499_v4, %v5846_v11  ;;  %v6696_v16 = vld [vmem:[%s9745_s0 + $0xa8] sm:$0xff] }
  0x7d   :  { %v1286_v21 = vmul.f32 %v6696_v16, %v5910_v44 }
  0x7e   :  { %2934 = vrot.lane.b32.xlu0 %v2858_v39, %s5756_s19  ;;  %v6617_v27 = vld [vmem:[#allocation2 + $0x78] sm:$0xff]  ;;  %v6625_v40 = vld [vmem:[#allocation2 + $0x80] sm:$0xff]  ;;  %3866 = vmatpush.msra.mxu0 %v3735_v58  ;;  %v512_v39 = vrot.slane %v405_v34, 2  ;;  %v3755_v34 = vld [vmem:[%s9748_s3 + $0xf0] sm:$0xff] }
  0x7f   :  { %v2138_v29 = vpop.permute.xlu0 %2137  ;;  %v3500_v63 = vrot.slane %v6617_v27, 2  ;;  %1987 = vst.msk [vmem:[#allocation3 + $0xf0] sm:$0xff] %vm1854_vm1, %v6617_v27  ;;  %v6636_v18 = vrot.slane %v6625_v40, 2  ;;  %v3732_v58 = vld [vmem:[%s9748_s3 + $0x38] sm:$0xff]  ;;  %3975 = vmatpush.msra.mxu1 %v3755_v34 }
  0x80   :  { %2234 = vst.msk [vmem:[#allocation3] sm:$0xff] %vm2233_vm5, %v2138_v29  ;;  %3867 = vmatpush.msra.mxu0 %v3734_v51  ;;  %v513_v60 = vsel %vm485_vm3, %v511_v9, %v512_v39  ;;  %v515_v51 = vsel %vm485_vm3, %v512_v39, %v514_v54  ;;  %v3730_v9 = vld [vmem:[%s9748_s3 + $0x28] sm:$0xff]  ;;  %v6701_v39 = vld [vmem:[%s9745_s0 + $0xb0] sm:$0xff] }
  0x81   :  { %1988 = vst.msk [vmem:[#allocation3 + $0x108] sm:$0xff] %vm1854_vm1, %v6625_v40  ;;  %v6651_v3 = vsel %vm485_vm3, %v3500_v63, %v6636_v18  ;;  %v608_v29 = vadd.f32 %v513_v60, %v366_v37  ;;  %v867_v63 = vrot.slane %v761_v41, 1  ;;  %v3729_v60 = vld [vmem:[%s9748_s3 + $0x20] sm:$0xff]  ;;  %v3754_v54 = vld [vmem:[%s9748_s3 + $0xe8] sm:$0xff]  ;;  %v1357_v34 = vmul.f32 %v6701_v39, %v5916_v49 }
  0x82   :  { %2356 = vrot.lane.b32.xlu1 %v2280_v15, %s5757_s24  ;;  %3603 = vst.msk [vmem:[#allocation3 + $0xa0] sm:$0xff] %vm1854_vm1, %v6651_v3  ;;  %3868 = vmatpush.msra.mxu0 %v3733_v20 }
  0x83   :  { %2565 = vrot.lane.b32.xlu2 %v6356_v45, %s5758_s23  ;;  %v273_v45 = vsel %vm243_vm0, %v270_v28, %v272_v13  ;;  %v722_v37 = vadd.f32 %v690_v56, %v608_v29  ;;  %v762_v13 = vmul.f32 %v5544_v32, %v5846_v11  ;;  %v1108_v56 = vrot.slane %v1002_v8, 2  ;;  %3976 = vmatpush.msra.mxu1 %v3754_v54 }
  0x84   :  { %v367_v15 = vadd.f32 %v273_v45, %v125_v24  ;;  %3869 = vmatpush.msra.mxu0 %v3732_v58  ;;  %v868_v24 = vsel %vm243_vm0, %v866_v25, %v867_v63  ;;  %v1107_v45 = vrot.slane %v1001_v42, 2  ;;  %v1110_v25 = vrot.slane %v1003_v2, 2  ;;  %v6730_v42 = vld [vmem:[%s9746_s1 + $0x8] ss:$0 sm:$0xff] }
  0x85   :  { %v869_v58 = vrot.slane %v762_v13, 1  ;;  %v1597_v8 = vmul.f32 %v6730_v42, %v6696_v16  ;;  %v3728_v13 = vld [vmem:[%s9748_s3 + $0x18] sm:$0xff]  ;;  %v1287_v2 = vmul.f32 %v6701_v39, %v5910_v44 }
  0x86   :  { %2149 = vrot.lane.b32.xlu0 %v6415_v55, %s5756_s19  ;;  %v609_v20 = vadd.f32 %v515_v51, %v367_v15  ;;  %3870 = vmatpush.msra.mxu0 %v3731_v14  ;;  %v963_v14 = vadd.f32 %v868_v24, %v722_v37  ;;  %v6716_v15 = vpop.permute.xlu2 %3133  ;;  %v1109_v29 = vsel %vm485_vm3, %v1107_v45, %v1108_v56  ;;  %v3753_v24 = vld [vmem:[%s9748_s3 + $0xe0] sm:$0xff] }
  0x87   :  { %v2347_v28 = vpop.permute.xlu0 %2346  ;;  %v870_v51 = vsel %vm243_vm0, %v867_v63, %v869_v58  ;;  %v1111_v63 = vsel %vm485_vm3, %v1108_v56, %v1110_v25  ;;  %v1703_v56 = vrot.slane %v1597_v8, 2  ;;  %3977 = vmatpush.msra.mxu1 %v3753_v24  ;;  %v2349_v25 = vpop.permute.xlu1 %2348 }
  0x88   :  { %2443 = vst.msk [vmem:[#allocation3] sm:$0xff] %vm2442_vm6, %v2347_v28  ;;  %v723_v41 = vadd.f32 %v691_v47, %v609_v20  ;;  %3871 = vmatpush.msra.mxu0 %v3730_v9  ;;  %v1356_v28 = vmul.f32 %v6696_v16, %v5916_v49  ;;  %v1204_v32 = vadd.f32 %v1109_v29, %v963_v14 }
  0x89   :  { %v1598_v9 = vmul.f32 %v6730_v42, %v6701_v39 }
  0x8a   :  { %3143 = vrot.lane.b32.xlu1 %v6481_v1, %s5757_s24  ;;  %3872 = vmatpush.msra.mxu0 %v3729_v60  ;;  %v964_v20 = vadd.f32 %v870_v51, %v723_v41  ;;  %v1462_v37 = vrot.slane %v1356_v28, 1  ;;  %v1318_v45 = vadd.f32 %v1286_v21, %v1204_v32  ;;  %v1463_v60 = vrot.slane %v1357_v34, 1  ;;  %v3727_v21 = vld [vmem:[%s9748_s3 + $0x10] sm:$0xff]  ;;  %v3752_v34 = vld [vmem:[%s9748_s3 + $0xd8] sm:$0xff]  ;;  %v6760_v51 = vld [vmem:[#allocation2 + $0x88] sm:$0x3] }
  0x8b   :  { %3367 = vrot.lane.b32.xlu2 %v3291_v46, %s5758_s23  ;;  %v5592_v46 = vld [vmem:[%s9745_s0 + $0xb8] sm:$0x3]  ;;  %v1704_v29 = vrot.slane %v1598_v9, 2  ;;  %v2704_v28 = vsel %vm243_vm0, %v6239_v57, %v2703_v61  ;;  %3978 = vmatpush.msra.mxu1 %v3752_v34  ;;  %v3751_v57 = vld [vmem:[%s9748_s3 + $0xd0] sm:$0xff]  ;;  %v3503_v61 = vrot.slane %v6760_v51, 2 }
  0x8c   :  { %v1358_v47 = vmul.f32 %v5592_v46, %v5916_v49  ;;  %3873 = vmatpush.msra.mxu0 %v3728_v13  ;;  %v1205_v41 = vadd.f32 %v1111_v63, %v964_v20  ;;  %v1599_v14 = vmul.f32 %v6730_v42, %v5592_v46  ;;  %v1464_v32 = vsel %vm243_vm0, %v1462_v37, %v1463_v60  ;;  %v3725_v63 = vld [vmem:[%s9748_s3] sm:$0xff] }
  0x8d   :  { %v2076_v20 = vsel %vm243_vm0, %v6393_v62, %v2075_v31  ;;  %2813 = vst.msk [vmem:[#allocation3 + $0x20] sm:$0xff] %vm1854_vm1, %v2704_v28  ;;  %v1705_v37 = vsel %vm485_vm3, %v1703_v56, %v1704_v29  ;;  %v3750_v31 = vld [vmem:[%s9748_s3 + $0xc8] sm:$0xff]  ;;  %3979 = vmatpush.msra.mxu1 %v3751_v57  ;;  %v3748_v28 = vld [vmem:[%s9748_s3 + $0xb8] sm:$0xff]  ;;  %v165_v57 = vmul.f32 %v6489_v23, %v5828_v6 }
  0x8e   :  { %2936 = vrot.lane.b32.xlu0 %v6509_v30, %s5756_s19  ;;  %v1465_v58 = vrot.slane %v1358_v47, 1  ;;  %3874 = vmatpush.msra.mxu0 %v3727_v21  ;;  %v1319_v46 = vadd.f32 %v1287_v2, %v1205_v41  ;;  %v1706_v9 = vrot.slane %v1599_v14, 2  ;;  %v1559_v47 = vadd.f32 %v1464_v32, %v1318_v45  ;;  %v6792_v45 = vld [vmem:[#allocation2 + $0x70] sm:$0x3]  ;;  %v3749_v41 = vld [vmem:[%s9748_s3 + $0xc0] sm:$0xff] }
  0x8f   :  { %v2140_v54 = vpop.permute.xlu0 %2139  ;;  %v3292_v2 = vrot.slane %v6617_v27, 1  ;;  %3980 = vmatpush.msra.mxu1 %v3750_v31  ;;  %v2862_v14 = vrot.slane %v6792_v45, 2  ;;  %v3747_v21 = vld [vmem:[%s9748_s3 + $0xb0] sm:$0xff]  ;;  %v2284_v32 = vrot.slane %v6605_v17, 2  ;;  %v3295_v17 = vrot.slane %v6760_v51, 1 }
  0x90   :  { %2235 = vst.msk [vmem:[#allocation3 + $0x18] sm:$0xff] %vm2233_vm5, %v2140_v54  ;;  %v1466_v8 = vsel %vm243_vm0, %v1463_v60, %v1465_v58  ;;  %3875 = vmatpush.msra.mxu0 %v3726_v33  ;;  %v1707_v24 = vsel %vm485_vm3, %v1704_v29, %v1706_v9  ;;  %v6795_v60 = vrot.slane %v6625_v40, 1  ;;  %v3746_v33 = vld [vmem:[%s9748_s3 + $0xa8] sm:$0xff]  ;;  %v3745_v9 = vld [vmem:[%s9748_s3 + $0xa0] sm:$0xff] }
  0x91   :  { %2444 = vst.msk [vmem:[#allocation3 + $0x18] sm:$0xff] %vm2442_vm6, %v2349_v25  ;;  %v1560_v13 = vadd.f32 %v1466_v8, %v1319_v46  ;;  %3981 = vmatpush.msra.mxu1 %v3749_v41  ;;  %v2863_v34 = vsel %vm485_vm3, %v6494_v26, %v2862_v14  ;;  %v94_v8 = vmul.f32 %v6489_v23, %v5826_v5  ;;  %v6881_v14 = vld [vmem:[#allocation2 + $0x70] sm:$0x3] }
  0x92   :  { %2358 = vrot.lane.b32.xlu1 %v6390_v53, %s5757_s24  ;;  %v3504_v53 = vsel %vm485_vm3, %v6636_v18, %v3503_v61  ;;  %3876 = vmatpush.msra.mxu0 %v3725_v63  ;;  %v6806_v25 = vsel %vm243_vm0, %v3292_v2, %v6795_v60  ;;  %v166_v61 = vmul.f32 %v6499_v4, %v5828_v6  ;;  %v2708_v2 = vrot.slane %v6368_v52, 1 }
  0x93   :  { %2567 = vrot.lane.b32.xlu2 %v6476_v43, %s5758_s23  ;;  %3604 = vst.msk [vmem:[#allocation3 + $0xb8] sm:$0xff] %vm1854_vm1, %v3504_v53  ;;  %v1800_v43 = vadd.f32 %v1705_v37, %v1559_v47  ;;  %v1801_v54 = vadd.f32 %v1707_v24, %v1560_v13  ;;  %3982 = vmatpush.msra.mxu1 %v3748_v28  ;;  %v3744_v13 = vld [vmem:[%s9748_s3 + $0x98] sm:$0xff]  ;;  %v3742_v28 = vld [vmem:[%s9748_s3 + $0x88] sm:$0xff] }
  0x94   :  { %v275_v63 = vrot.slane %v166_v61, 1  ;;  %v2285_v47 = vsel %vm485_vm3, %v6366_v50, %v2284_v32  ;;  %v126_v36 = vadd.f32 %v6610_v48, %v94_v8  ;;  %v407_v53 = vmul.f32 %v6489_v23, %v5830_v7  ;;  %2820 = vst.msk [vmem:[#allocation3 + $0xc8] sm:$0xff] %vm1854_vm1, %v6806_v25 }
  0x95   :  { %v2558_v56 = vpop.permute.xlu2 %2557  ;;  %v1832_v58 = vmax.f32 %v1800_v43, 0.0  ;;  %v1833_v29 = vmax.f32 %v1801_v54, 0.0  ;;  %3983 = vmatpush.msra.mxu1 %v3747_v21  ;;  %v408_v50 = vmul.f32 %v6499_v4, %v5830_v7  ;;  %v3743_v43 = vld [vmem:[%s9748_s3 + $0x90] sm:$0xff]  ;;  %v3296_v54 = vsel %vm243_vm0, %v6795_v60, %v3295_v17 }
  0x96   :  { %2151 = vrot.lane.b32.xlu0 %v2076_v20, %s5756_s19  ;;  %2653 = vst.msk [vmem:[#allocation3 + $0x18] sm:$0xff] %vm2651_vm7, %v2558_v56  ;;  %v274_v20 = vrot.slane %v165_v57, 1  ;;  %v53_v56 = vld [vmem:[%s9745_s0 + $0xa0] sm:$0x3]  ;;  %v95_v41 = vmul.f32 %v6499_v4, %v5826_v5  ;;  %v763_v8 = vmul.f32 %v6696_v16, %v5846_v11  ;;  %v764_v17 = vmul.f32 %v6701_v39, %v5846_v11 }
  0x97   :  { %1907 = vst.msk [vmem:[#allocation2 + $0x91] sm:$0xff] %vm1854_vm1, %v1832_v58  ;;  %3984 = vmatpush.msra.mxu1 %v3746_v33  ;;  %v167_v58 = vmul.f32 %v5828_v6, %v53_v56  ;;  %v409_v21 = vmul.f32 %v5830_v7, %v53_v56  ;;  %v517_v32 = vrot.slane %v408_v50, 2  ;;  %v692_v33 = vmul.f32 %v6696_v16, %v5844_v10 }
  0x98   :  { %1908 = vst.msk [vmem:[#allocation2 + $0x99] sm:$0xff] %vm1854_vm1, %v1833_v29  ;;  %v276_v24 = vsel %vm243_vm0, %v274_v20, %v275_v63  ;;  %v2080_v20 = vrot.slane %v6881_v14, 1 }
  0x99   :  { %3985 = vmatpush.msra.mxu1 %v3745_v9  ;;  %v368_v38 = vadd.f32 %v276_v24, %v126_v36  ;;  %v277_v4 = vrot.slane %v167_v58, 1  ;;  %v519_v61 = vrot.slane %v409_v21, 2  ;;  %v1004_v9 = vmul.f32 %v6696_v16, %v5848_v12 }
  0x9a   :  { %3145 = vrot.lane.b32.xlu1 %v6617_v27, %s5757_s24  ;;  %v871_v58 = vrot.slane %v763_v8, 1 }
  0x9b   :  { %3369 = vrot.lane.b32.xlu2 %v6806_v25, %s5758_s23  ;;  %3986 = vmatpush.msra.mxu1 %v3744_v13  ;;  %v278_v36 = vsel %vm243_vm0, %v275_v63, %v277_v4  ;;  %v1005_v13 = vmul.f32 %v6701_v39, %v5848_v12  ;;  %v520_v50 = vsel %vm485_vm3, %v517_v32, %v519_v61  ;;  %v1112_v21 = vrot.slane %v1004_v9, 2  ;;  %v3760_v61 = vld [vmem:[%s9748_s3 + $0x118] sm:$0xff] }
  0x9c   :  { %v693_v63 = vmul.f32 %v6701_v39, %v5844_v10  ;;  %5669 = vmatpush.msra.mxu2 %v3760_v61  ;;  %4099 = vmatpush.msrb.mxu0 %v3760_v61 }
  0x9d   :  { %v6830_v46 = vpop.permute.xlu2 %2559  ;;  %3987 = vmatpush.msra.mxu1 %v3743_v43  ;;  %5670 = vmatpush.msra.mxu3 %v3760_v61 }
  0x9e   :  { %2938 = vrot.lane.b32.xlu0 %v2863_v34, %s5756_s19  ;;  %v6843_v37 = vld [vmem:[#allocation2 + $0x90] sm:$0xff]  ;;  %v516_v34 = vrot.slane %v407_v53, 2 }
  0x9f   :  { %v6848_v31 = vld [vmem:[#allocation2 + $0x98] sm:$0xff]  ;;  %v3505_v51 = vrot.slane %v6843_v37, 2  ;;  %1989 = vst.msk [vmem:[#allocation3 + $0x120] sm:$0xff] %vm1854_vm1, %v6843_v37  ;;  %3988 = vmatpush.msra.mxu1 %v3742_v28  ;;  %v872_v28 = vrot.slane %v764_v17, 1  ;;  %v1113_v17 = vrot.slane %v1005_v13, 2 }
  0xa0   :  { %v6861_v23 = vrot.slane %v6848_v31, 2  ;;  %1990 = vst.msk [vmem:[#allocation3 + $0x138] sm:$0xff] %vm1854_vm1, %v6848_v31  ;;  %v518_v53 = vsel %vm485_vm3, %v516_v34, %v517_v32  ;;  %v5595_v13 = vld [vmem:[%s9745_s0 + $0xd0] sm:$0x3] }
  0xa1   :  { %v610_v43 = vadd.f32 %v518_v53, %v368_v38  ;;  %v6930_v38 = vld [vmem:[%s9745_s0 + $0xc8] sm:$0xff]  ;;  %v873_v8 = vsel %vm243_vm0, %v871_v58, %v872_v28  ;;  %v1602_v52 = vmul.f32 %v6730_v42, %v5595_v13 }
  0xa2   :  { %2360 = vrot.lane.b32.xlu1 %v2285_v47, %s5757_s24  ;;  %v6885_v29 = vsel %vm485_vm3, %v3505_v51, %v6861_v23  ;;  %v3741_v47 = vld [vmem:[%s9748_s3 + $0x80] sm:$0xff]  ;;  %v5547_v51 = vld [vmem:[%s9745_s0 + $0xb8] sm:$0x3] }
  0xa3   :  { %2569 = vrot.lane.b32.xlu2 %v6481_v1, %s5758_s23  ;;  %3605 = vst.msk [vmem:[#allocation3 + $0xd0] sm:$0xff] %vm1854_vm1, %v6885_v29  ;;  %v127_v1 = vadd.f32 %v6610_v48, %v95_v41  ;;  %v765_v56 = vmul.f32 %v5547_v51, %v5846_v11  ;;  %v6922_v41 = vld [vmem:[%s9745_s0 + $0xc0] sm:$0xff]  ;;  %3989 = vmatpush.msra.mxu1 %v3741_v47 }
  0xa4   :  { %v724_v4 = vadd.f32 %v692_v33, %v610_v43  ;;  %v1006_v32 = vmul.f32 %v5547_v51, %v5848_v12  ;;  %v1288_v33 = vmul.f32 %v6922_v41, %v5910_v44  ;;  %v1359_v9 = vmul.f32 %v6922_v41, %v5916_v49 }
  0xa5   :  { %v6896_v57 = vpop.permute.xlu2 %3357  ;;  %v369_v24 = vadd.f32 %v278_v36, %v127_v1  ;;  %v874_v1 = vrot.slane %v765_v56, 1  ;;  %v1360_v43 = vmul.f32 %v6930_v38, %v5916_v49  ;;  %5668 = vmatpush.msrb.mxu1 %v3760_v61 }
  0xa6   :  { %2153 = vrot.lane.b32.xlu0 %v6570_v19, %s5756_s19  ;;  %v965_v51 = vadd.f32 %v873_v8, %v724_v4  ;;  %v1467_v56 = vrot.slane %v1359_v9, 1  ;;  %v1361_v4 = vmul.f32 %v5595_v13, %v5916_v49  ;;  %v1601_v8 = vmul.f32 %v6730_v42, %v6930_v38 }
  0xa7   :  { %v611_v34 = vadd.f32 %v520_v50, %v369_v24  ;;  %v875_v53 = vsel %vm243_vm0, %v872_v28, %v874_v1  ;;  %v1115_v24 = vrot.slane %v1006_v32, 2  ;;  %v1114_v50 = vsel %vm485_vm3, %v1112_v21, %v1113_v17  ;;  %v3759_v21 = vld [vmem:[%s9748_s3 + $0x110] sm:$0xff] }
  0xa8   :  { %v1289_v1 = vmul.f32 %v6930_v38, %v5910_v44  ;;  %v1468_v32 = vrot.slane %v1360_v43, 1  ;;  %5672 = vmatpush.msra.mxu2 %v3759_v21  ;;  %4100 = vmatpush.msrb.mxu0 %v3759_v21  ;;  %v1709_v43 = vrot.slane %v1601_v8, 2  ;;  %v2081_v13 = vsel %vm243_vm0, %v6556_v35, %v2080_v20  ;;  %v6994_v20 = vld [vmem:[#allocation2 + $0x88] sm:$0x3] }
  0xa9   :  { %v725_v36 = vadd.f32 %v693_v63, %v611_v34  ;;  %v1116_v28 = vsel %vm485_vm3, %v1113_v17, %v1115_v24  ;;  %v1206_v34 = vadd.f32 %v1114_v50, %v965_v51  ;;  %v2709_v17 = vsel %vm243_vm0, %v6260_v22, %v2708_v2  ;;  %v3758_v24 = vld [vmem:[%s9748_s3 + $0x108] sm:$0xff]  ;;  %v6972_v50 = vld [vmem:[#allocation2 + $0xa0] sm:$0x3]  ;;  %5671 = vmatpush.msrb.mxu1 %v3759_v21 }
  0xaa   :  { %3147 = vrot.lane.b32.xlu1 %v6625_v40, %s5757_s24  ;;  %2815 = vst.msk [vmem:[#allocation3 + $0x50] sm:$0xff] %vm1854_vm1, %v2709_v17  ;;  %v1469_v61 = vsel %vm243_vm0, %v1467_v56, %v1468_v32  ;;  %5673 = vmatpush.msra.mxu3 %v3759_v21  ;;  %v3757_v22 = vld [vmem:[%s9748_s3 + $0x100] sm:$0xff]  ;;  %v3508_v2 = vrot.slane %v6972_v50, 2  ;;  %v3637_v56 = vld [vmem:[#allocation3 + $0x40] sm:$0xff]  ;;  %v3297_v8 = vrot.slane %v6843_v37, 1 }
  0xab   :  { %v2556_v47 = vpop.permute.xlu1 %2555  ;;  %3371 = vrot.lane.b32.xlu2 %v3296_v54, %s5758_s23  ;;  %v1600_v54 = vmul.f32 %v6730_v42, %v6922_v41  ;;  %v966_v58 = vadd.f32 %v875_v53, %v725_v36  ;;  %v1320_v36 = vadd.f32 %v1288_v33, %v1206_v34  ;;  %v1470_v53 = vrot.slane %v1361_v4, 1  ;;  %5675 = vmatpush.msra.mxu2 %v3758_v24 }
  0xac   :  { %2652 = vst.msk [vmem:[#allocation3] sm:$0xff] %vm2651_vm7, %v2556_v47  ;;  %v1711_v34 = vrot.slane %v1602_v52, 2  ;;  %4101 = vmatpush.msrb.mxu0 %v3758_v24  ;;  %v3509_v21 = vsel %vm485_vm3, %v6861_v23, %v3508_v2  ;;  %5674 = vmatpush.msrb.mxu1 %v3758_v24 }
  0xad   :  { %v3360_v63 = vpop.permute.xlu2 %3359  ;;  %v1708_v9 = vrot.slane %v1600_v54, 2  ;;  %v1207_v47 = vadd.f32 %v1116_v28, %v966_v58  ;;  %v1471_v54 = vsel %vm243_vm0, %v1468_v32, %v1470_v53  ;;  %v1561_v58 = vadd.f32 %v1469_v61, %v1320_v36  ;;  %5678 = vmatpush.msra.mxu2 %v3757_v22  ;;  %3606 = vst.msk [vmem:[#allocation3 + $0xe8] sm:$0xff] %vm1854_vm1, %v3509_v21 }
  0xae   :  { %2940 = vrot.lane.b32.xlu0 %v6651_v3, %s5756_s19  ;;  %5625 = vmatmul.msk.f32.vlgmr.msra.gmra.mxu2 %vm1854_vm1, %v3637_v56  ;;  %v2867_v53 = vrot.slane %v6994_v20, 2  ;;  %v3300_v56 = vrot.slane %v6972_v50, 1 }
  0xaf   :  { %v1321_v33 = vadd.f32 %v1289_v1, %v1207_v47  ;;  %v1710_v28 = vsel %vm485_vm3, %v1708_v9, %v1709_v43  ;;  %v6997_v9 = vrot.slane %v6848_v31, 1  ;;  %4102 = vmatpush.msrb.mxu0 %v3757_v22  ;;  %5676 = vmatpush.msra.mxu3 %v3758_v24 }
  0xb0   :  { %v2927_v51 = vpop.permute.xlu0 %2926  ;;  %5677 = vmatpush.msrb.mxu1 %v3757_v22  ;;  %v2868_v24 = vsel %vm485_vm3, %v6636_v18, %v2867_v53 }
  0xb1   :  { %3021 = vst.msk [vmem:[#allocation3 + $0x20] sm:$0xff] %vm2233_vm5, %v2927_v51  ;;  %v1562_v1 = vadd.f32 %v1471_v54, %v1321_v33  ;;  %v7011_v52 = vsel %vm243_vm0, %v3297_v8, %v6997_v9  ;;  %5679 = vmatpush.msra.mxu3 %v3757_v22  ;;  %v168_v22 = vmul.f32 %v6696_v16, %v5828_v6 }
  0xb2   :  { %2362 = vrot.lane.b32.xlu1 %v6509_v30, %s5757_s24  ;;  %v1802_v30 = vadd.f32 %v1710_v28, %v1561_v58  ;;  %v169_v33 = vmul.f32 %v6701_v39, %v5828_v6  ;;  %v96_v58 = vmul.f32 %v6696_v16, %v5826_v5  ;;  %v3301_v55 = vsel %vm243_vm0, %v6997_v9, %v3300_v56 }
  0xb3   :  { %v3629_v4 = vld [vmem:[#allocation3] sm:$0xff]  ;;  %2571 = vrot.lane.b32.xlu2 %v6617_v27, %s5758_s23  ;;  %v1712_v27 = vsel %vm485_vm3, %v1709_v43, %v1711_v34  ;;  %v2289_v43 = vrot.slane %v6881_v14, 2  ;;  %v279_v14 = vrot.slane %v168_v22, 1  ;;  %2822 = vst.msk [vmem:[#allocation3 + $0xf8] sm:$0xff] %vm1854_vm1, %v7011_v52 }
  0xb4   :  { %v3136_v32 = vpop.permute.xlu1 %3135  ;;  %3877 = vmatmul.f32.vlgmr.msra.gmra.mxu0 %v3629_v4  ;;  %v1803_v47 = vadd.f32 %v1712_v27, %v1562_v1  ;;  %v1834_v36 = vmax.f32 %v1802_v30, 0.0  ;;  %v128_v34 = vadd.f32 %v6610_v48, %v96_v58  ;;  %v280_v4 = vrot.slane %v169_v33, 1  ;;  %v3640_v30 = vld [vmem:[#allocation3 + $0x58] sm:$0xff] }
  0xb5   :  { %3230 = vst.msk [vmem:[#allocation3 + $0x20] sm:$0xff] %vm2442_vm6, %v3136_v32  ;;  %v7003_v17 = vpop.permute.xlu2 %3361  ;;  %v2713_v27 = vrot.slane %v6553_v59, 1  ;;  %v694_v58 = vmul.f32 %v6922_v41, %v5844_v10 }
  0xb6   :  { %3454 = vst.msk [vmem:[#allocation3 + $0x20] sm:$0xff] %vm2651_vm7, %v3360_v63  ;;  %2155 = vrot.lane.b32.xlu0 %v2081_v13, %s5756_s19  ;;  %v1835_v51 = vmax.f32 %v1803_v47, 0.0  ;;  %v3632_v63 = vld [vmem:[#allocation3 + $0x18] sm:$0xff]  ;;  %v2290_v13 = vsel %vm485_vm3, %v6494_v26, %v2289_v43  ;;  %v411_v26 = vmul.f32 %v6701_v39, %v5830_v7  ;;  %v281_v8 = vsel %vm243_vm0, %v279_v14, %v280_v4 }
  0xb7   :  { %1909 = vst.msk [vmem:[#allocation2 + $0xa9] sm:$0xff] %vm1854_vm1, %v1834_v36  ;;  %5626 = vmatmul.msk.f32.gmra.mxu2 %vm1854_vm1, %v3640_v30  ;;  %v97_v47 = vmul.f32 %v6701_v39, %v5826_v5  ;;  %v7069_v36 = vld [vmem:[#allocation2 + $0x88] sm:$0x3]  ;;  %v766_v14 = vmul.f32 %v6922_v41, %v5846_v11 }
  0xb8   :  { %v2142_v61 = vpop.permute.xlu0 %2141  ;;  %1910 = vst.msk [vmem:[#allocation2 + $0xb1] sm:$0xff] %vm1854_vm1, %v1835_v51  ;;  %v370_v51 = vadd.f32 %v281_v8, %v128_v34  ;;  %v522_v43 = vrot.slane %v411_v26, 2  ;;  %v7107_v26 = vld [vmem:[%s9745_s0 + $0xd8] sm:$0xff]  ;;  %v695_v8 = vmul.f32 %v6930_v38, %v5844_v10 }
  0xb9   :  { %2236 = vst.msk [vmem:[#allocation3 + $0x30] sm:$0xff] %vm2233_vm5, %v2142_v61 }
  0xba   :  { %3149 = vrot.lane.b32.xlu1 %v6843_v37, %s5757_s24 }
  0xbb   :  { %3373 = vrot.lane.b32.xlu2 %v7011_v52, %s5758_s23 }
  0xbc   :  { %v2925_v2 = vpop.permute.xlu1 %2924  ;;  %3880 = vmatmul.f32.gmra.mxu0 %v3632_v63 }
  0xbd   :  { %3020 = vst.msk [vmem:[#allocation3 + $0x8] sm:$0xff] %vm2233_vm5, %v2925_v2  ;;  %v7027_v54 = vpop.permute.xlu2 %2561 }
  0xbe   :  { %3229 = vst.msk [vmem:[#allocation3 + $0x8] sm:$0xff] %vm2442_vm6, %v6716_v15  ;;  %2942 = vrot.lane.b32.xlu0 %v2868_v24, %s5756_s19  ;;  %v7039_v28 = vld [vmem:[#allocation2 + $0xa8] sm:$0xff]  ;;  %v56_v15 = vld [vmem:[%s9745_s0 + $0xb8] sm:$0x3] }
  0xbf   :  { %3453 = vst.msk [vmem:[#allocation3 + $0x8] sm:$0xff] %vm2651_vm7, %v6896_v57  ;;  %v3510_v1 = vrot.slane %v7039_v28, 2  ;;  %v410_v57 = vmul.f32 %v6696_v16, %v5830_v7  ;;  %v7053_v50 = vld [vmem:[#allocation2 + $0xb0] sm:$0xff]  ;;  %v170_v32 = vmul.f32 %v5828_v6, %v56_v15  ;;  %v412_v61 = vmul.f32 %v5830_v7, %v56_v15 }
  0xc0   :  { %v2929_v21 = vpop.permute.xlu0 %2928  ;;  %1991 = vst.msk [vmem:[#allocation3 + $0x150] sm:$0xff] %vm1854_vm1, %v7039_v28  ;;  %v7060_v16 = vrot.slane %v7053_v50, 2 }
  0xc1   :  { %3022 = vst.msk [vmem:[#allocation3 + $0x38] sm:$0xff] %vm2233_vm5, %v2929_v21  ;;  %v282_v53 = vrot.slane %v170_v32, 1  ;;  %v521_v63 = vrot.slane %v410_v57, 2  ;;  %v524_v33 = vrot.slane %v412_v61, 2  ;;  %v767_v21 = vmul.f32 %v6930_v38, %v5846_v11 }
  0xc2   :  { %2364 = vrot.lane.b32.xlu1 %v2290_v13, %s5757_s24  ;;  %1992 = vst.msk [vmem:[#allocation3 + $0x168] sm:$0xff] %vm1854_vm1, %v7053_v50  ;;  %v7078_v39 = vsel %vm485_vm3, %v3510_v1, %v7060_v16  ;;  %v2085_v13 = vrot.slane %v7069_v36, 1  ;;  %v876_v57 = vrot.slane %v766_v14, 1 }
  0xc3   :  { %2573 = vrot.lane.b32.xlu2 %v6625_v40, %s5758_s23  ;;  %v129_v40 = vadd.f32 %v6610_v48, %v97_v47  ;;  %v283_v22 = vsel %vm243_vm0, %v280_v4, %v282_v53  ;;  %v523_v34 = vsel %vm485_vm3, %v521_v63, %v522_v43  ;;  %v5550_v4 = vld [vmem:[%s9745_s0 + $0xd0] sm:$0x3]  ;;  %3607 = vst.msk [vmem:[#allocation3 + $0x100] sm:$0xff] %vm1854_vm1, %v7078_v39  ;;  %v877_v47 = vrot.slane %v767_v21, 1 }
  0xc4   :  { %v2351_v24 = vpop.permute.xlu1 %2350  ;;  %v612_v1 = vadd.f32 %v523_v34, %v370_v51  ;;  %v768_v15 = vmul.f32 %v5550_v4, %v5846_v11  ;;  %v1007_v53 = vmul.f32 %v6922_v41, %v5848_v12  ;;  %v1008_v63 = vmul.f32 %v6930_v38, %v5848_v12  ;;  %v3633_v21 = vld [vmem:[#allocation3 + $0x20] sm:$0xff] }
  0xc5   :  { %2445 = vst.msk [vmem:[#allocation3 + $0x30] sm:$0xff] %vm2442_vm6, %v2351_v24  ;;  %v7082_v2 = vpop.permute.xlu2 %3363  ;;  %v371_v56 = vadd.f32 %v283_v22, %v129_v40  ;;  %v1009_v24 = vmul.f32 %v5550_v4, %v5848_v12  ;;  %v7120_v40 = vld [vmem:[%s9745_s0 + $0xe0] sm:$0xff]  ;;  %v878_v22 = vsel %vm243_vm0, %v876_v57, %v877_v47 }
  0xc6   :  { %2654 = vst.msk [vmem:[#allocation3 + $0x30] sm:$0xff] %vm2651_vm7, %v6830_v46  ;;  %2157 = vrot.lane.b32.xlu0 %v6806_v25, %s5756_s19  ;;  %v3630_v48 = vld [vmem:[#allocation3 + $0x8] sm:$0xff]  ;;  %v525_v46 = vsel %vm485_vm3, %v522_v43, %v524_v33  ;;  %v726_v51 = vadd.f32 %v694_v58, %v612_v1  ;;  %v879_v61 = vrot.slane %v768_v15, 1  ;;  %v1117_v33 = vrot.slane %v1007_v53, 2  ;;  %v5598_v1 = vld [vmem:[%s9745_s0 + $0xe8] sm:$0x3] }
  0xc7   :  { %3990 = vmatmul.f32.vlgmr.msra.gmra.mxu1 %v3630_v48  ;;  %v613_v32 = vadd.f32 %v525_v46, %v371_v56  ;;  %v1290_v58 = vmul.f32 %v7107_v26, %v5910_v44  ;;  %v1118_v56 = vrot.slane %v1008_v63, 2  ;;  %v1120_v34 = vrot.slane %v1009_v24, 2 }
  0xc8   :  { %v2144_v30 = vpop.permute.xlu0 %2143  ;;  %v880_v14 = vsel %vm243_vm0, %v877_v47, %v879_v61  ;;  %v967_v48 = vadd.f32 %v878_v22, %v726_v51  ;;  %v1362_v15 = vmul.f32 %v7107_v26, %v5916_v49  ;;  %v1363_v57 = vmul.f32 %v7120_v40, %v5916_v49 }
  0xc9   :  { %2237 = vst.msk [vmem:[#allocation3 + $0x48] sm:$0xff] %vm2233_vm5, %v2144_v30  ;;  %v727_v43 = vadd.f32 %v695_v8, %v613_v32  ;;  %v1119_v8 = vsel %vm485_vm3, %v1117_v33, %v1118_v56  ;;  %v1121_v47 = vsel %vm485_vm3, %v1118_v56, %v1120_v34  ;;  %v1364_v53 = vmul.f32 %v5598_v1, %v5916_v49  ;;  %v7157_v56 = vld [vmem:[#allocation2 + $0xb8] sm:$0x3] }
  0xca   :  { %3151 = vrot.lane.b32.xlu1 %v6848_v31, %s5757_s24  ;;  %v1604_v51 = vmul.f32 %v6730_v42, %v7120_v40  ;;  %v2714_v61 = vsel %vm243_vm0, %v6393_v62, %v2713_v27  ;;  %v1208_v63 = vadd.f32 %v1119_v8, %v967_v48  ;;  %v1472_v22 = vrot.slane %v1362_v15, 1  ;;  %v3643_v62 = vld [vmem:[#allocation3 + $0x70] sm:$0xff] }
  0xcb   :  { %3375 = vrot.lane.b32.xlu2 %v3301_v55, %s5758_s23  ;;  %v968_v46 = vadd.f32 %v880_v14, %v727_v43  ;;  %v1603_v55 = vmul.f32 %v6730_v42, %v7107_v26  ;;  %2817 = vst.msk [vmem:[#allocation3 + $0x80] sm:$0xff] %vm1854_vm1, %v2714_v61  ;;  %v1291_v43 = vmul.f32 %v7120_v40, %v5910_v44  ;;  %v1473_v33 = vrot.slane %v1363_v57, 1  ;;  %v7176_v8 = vld [vmem:[#allocation2 + $0xa0] sm:$0x3] }
  0xcc   :  { %v3138_v4 = vpop.permute.xlu1 %3137  ;;  %v1322_v34 = vadd.f32 %v1290_v58, %v1208_v63  ;;  %v1605_v59 = vmul.f32 %v6730_v42, %v5598_v1  ;;  %v3513_v27 = vrot.slane %v7157_v56, 2  ;;  %5627 = vmatmul.msk.f32.gmra.mxu2 %vm1854_vm1, %v3643_v62  ;;  %v1714_v58 = vrot.slane %v1604_v51, 2 }
  0xcd   :  { %3231 = vst.msk [vmem:[#allocation3 + $0x38] sm:$0xff] %vm2442_vm6, %v3138_v4  ;;  %v3635_v30 = vld [vmem:[#allocation3 + $0x30] sm:$0xff]  ;;  %v7139_v32 = vpop.permute.xlu2 %2563  ;;  %v1209_v24 = vadd.f32 %v1121_v47, %v968_v46  ;;  %v1713_v4 = vrot.slane %v1603_v55, 2  ;;  %v2086_v42 = vsel %vm243_vm0, %v6795_v60, %v2085_v13  ;;  %v7179_v47 = vrot.slane %v7053_v50, 1 }
  0xce   :  { %3455 = vst.msk [vmem:[#allocation3 + $0x38] sm:$0xff] %vm2651_vm7, %v7003_v17  ;;  %2944 = vrot.lane.b32.xlu0 %v6885_v29, %s5756_s19  ;;  %3883 = vmatmul.f32.gmra.mxu0 %v3635_v30  ;;  %v1475_v17 = vrot.slane %v1364_v53, 1  ;;  %v1716_v57 = vrot.slane %v1605_v59, 2  ;;  %v3514_v1 = vsel %vm485_vm3, %v7060_v16, %v3513_v27  ;;  %v171_v59 = vmul.f32 %v6922_v41, %v5828_v6 }
  0xcf   :  { %3993 = vmatmul.f32.gmra.mxu1 %v3633_v21  ;;  %v1323_v48 = vadd.f32 %v1291_v43, %v1209_v24  ;;  %v1474_v21 = vsel %vm243_vm0, %v1472_v22, %v1473_v33  ;;  %3608 = vst.msk [vmem:[#allocation3 + $0x118] sm:$0xff] %vm1854_vm1, %v3514_v1  ;;  %v1715_v53 = vsel %vm485_vm3, %v1713_v4, %v1714_v58  ;;  %v2872_v24 = vrot.slane %v7176_v8, 2 }
  0xd0   :  { %v2931_v14 = vpop.permute.xlu0 %2930  ;;  %v1476_v46 = vsel %vm243_vm0, %v1473_v33, %v1475_v17  ;;  %v1563_v15 = vadd.f32 %v1474_v21, %v1322_v34  ;;  %v1717_v13 = vsel %vm485_vm3, %v1714_v58, %v1716_v57  ;;  %v172_v4 = vmul.f32 %v6930_v38, %v5828_v6 }
  0xd1   :  { %3023 = vst.msk [vmem:[#allocation3 + $0x50] sm:$0xff] %vm2233_vm5, %v2931_v14  ;;  %v1564_v55 = vadd.f32 %v1476_v46, %v1323_v48  ;;  %v2294_v14 = vrot.slane %v7069_v36, 2  ;;  %v98_v27 = vmul.f32 %v6922_v41, %v5826_v5  ;;  %v284_v21 = vrot.slane %v171_v59, 1  ;;  %v7222_v46 = vld [vmem:[%s9747_s2] ss:$0 sm:$0xff] }
  0xd2   :  { %2366 = vrot.lane.b32.xlu1 %v6651_v3, %s5757_s24  ;;  %v3302_v3 = vrot.slane %v7039_v28, 1  ;;  %v1804_v61 = vadd.f32 %v1715_v53, %v1563_v15  ;;  %v285_v58 = vrot.slane %v172_v4, 1  ;;  %v413_v57 = vmul.f32 %v6922_v41, %v5830_v7 }
  0xd3   :  { %2575 = vrot.lane.b32.xlu2 %v6843_v37, %s5758_s23  ;;  %v1805_v63 = vadd.f32 %v1717_v13, %v1564_v55  ;;  %v2295_v48 = vsel %vm485_vm3, %v6636_v18, %v2294_v14  ;;  %v130_v15 = vadd.f32 %v7222_v46, %v98_v27  ;;  %v3305_v1 = vrot.slane %v7157_v56, 1  ;;  %v59_v18 = vld [vmem:[%s9745_s0 + $0xd0] sm:$0x3] }
  0xd4   :  { %v2353_v30 = vpop.permute.xlu1 %2352  ;;  %v1836_v43 = vmax.f32 %v1804_v61, 0.0  ;;  %v7193_v17 = vsel %vm243_vm0, %v3302_v3, %v7179_v47  ;;  %v173_v3 = vmul.f32 %v5828_v6, %v59_v18  ;;  %v286_v53 = vsel %vm243_vm0, %v284_v21, %v285_v58 }
  0xd5   :  { %2446 = vst.msk [vmem:[#allocation3 + $0x48] sm:$0xff] %vm2442_vm6, %v2353_v30  ;;  %v3636_v37 = vld [vmem:[#allocation3 + $0x38] sm:$0xff]  ;;  %v7185_v51 = vpop.permute.xlu2 %3365  ;;  %v1837_v22 = vmax.f32 %v1805_v63, 0.0  ;;  %v3646_v30 = vld [vmem:[#allocation3 + $0x88] sm:$0xff]  ;;  %v526_v41 = vrot.slane %v413_v57, 2  ;;  %v99_v61 = vmul.f32 %v6930_v38, %v5826_v5  ;;  %v2718_v63 = vrot.slane %v6792_v45, 1 }
  0xd6   :  { %2655 = vst.msk [vmem:[#allocation3 + $0x48] sm:$0xff] %vm2651_vm7, %v7027_v54  ;;  %2159 = vrot.lane.b32.xlu0 %v2086_v42, %s5756_s19  ;;  %v2873_v54 = vsel %vm485_vm3, %v6861_v23, %v2872_v24  ;;  %5628 = vmatmul.msk.f32.gmra.mxu2 %vm1854_vm1, %v3646_v30  ;;  %v7250_v24 = vld [vmem:[#allocation2 + $0xa0] sm:$0x3]  ;;  %v3306_v4 = vsel %vm243_vm0, %v7179_v47, %v3305_v1  ;;  %v7294_v30 = vld [vmem:[%s9745_s0 + $0xf0] sm:$0xff] }
  0xd7   :  { %3996 = vmatmul.f32.gmra.mxu1 %v3636_v37  ;;  %1911 = vst.msk [vmem:[#allocation2 + $0xc1] sm:$0xff] %vm1854_vm1, %v1836_v43  ;;  %v131_v14 = vadd.f32 %v7222_v46, %v99_v61  ;;  %v2090_v21 = vrot.slane %v7250_v24, 1  ;;  %v1011_v61 = vmul.f32 %v7120_v40, %v5848_v12 }
  0xd8   :  { %v2146_v33 = vpop.permute.xlu0 %2145  ;;  %1912 = vst.msk [vmem:[#allocation2 + $0xc9] sm:$0xff] %vm1854_vm1, %v1837_v22  ;;  %v287_v22 = vrot.slane %v173_v3, 1 }
  0xd9   :  { %2238 = vst.msk [vmem:[#allocation3 + $0x60] sm:$0xff] %vm2233_vm5, %v2146_v33  ;;  %v372_v33 = vadd.f32 %v286_v53, %v130_v15 }
  0xda   :  { %3153 = vrot.lane.b32.xlu1 %v7039_v28, %s5757_s24  ;;  %v288_v27 = vsel %vm243_vm0, %v285_v58, %v287_v22  ;;  %v3649_v22 = vld [vmem:[#allocation3 + $0xa0] sm:$0xff]  ;;  %2824 = vst.msk [vmem:[#allocation3 + $0x128] sm:$0xff] %vm1854_vm1, %v7193_v17 }
  0xdb   :  { %3377 = vrot.lane.b32.xlu2 %v7193_v17, %s5758_s23  ;;  %v373_v15 = vadd.f32 %v288_v27, %v131_v14  ;;  %v1365_v27 = vmul.f32 %v7294_v30, %v5916_v49 }
  0xdc   :  { %v3140_v34 = vpop.permute.xlu1 %3139 }
  0xdd   :  { %3232 = vst.msk [vmem:[#allocation3 + $0x50] sm:$0xff] %vm2442_vm6, %v3140_v34  ;;  %v3638_v36 = vld [vmem:[#allocation3 + $0x48] sm:$0xff]  ;;  %v7210_v62 = vpop.permute.xlu2 %2565 }
  0xde   :  { %3456 = vst.msk [vmem:[#allocation3 + $0x50] sm:$0xff] %vm2651_vm7, %v7082_v2  ;;  %2946 = vrot.lane.b32.xlu0 %v2873_v54, %s5756_s19  ;;  %3886 = vmatmul.f32.gmra.mxu0 %v3638_v36  ;;  %v414_v2 = vmul.f32 %v6930_v38, %v5830_v7  ;;  %v7234_v55 = vld [vmem:[#allocation2 + $0xc0] sm:$0xff]  ;;  %v415_v38 = vmul.f32 %v5830_v7, %v59_v18 }
  0xdf   :  { %v7239_v37 = vld [vmem:[#allocation2 + $0xc8] sm:$0xff]  ;;  %v3515_v56 = vrot.slane %v7234_v55, 2  ;;  %1993 = vst.msk [vmem:[#allocation3 + $0x180] sm:$0xff] %vm1854_vm1, %v7234_v55  ;;  %v1010_v18 = vmul.f32 %v7107_v26, %v5848_v12  ;;  %5629 = vmatmul.msk.f32.gmra.mxu2 %vm1854_vm1, %v3649_v22 }
  0xe0   :  { %v2933_v42 = vpop.permute.xlu0 %2932  ;;  %v527_v13 = vrot.slane %v414_v2, 2  ;;  %v7253_v43 = vrot.slane %v7239_v37, 2  ;;  %1994 = vst.msk [vmem:[#allocation3 + $0x198] sm:$0xff] %vm1854_vm1, %v7239_v37  ;;  %v529_v57 = vrot.slane %v415_v38, 2  ;;  %v5553_v2 = vld [vmem:[%s9745_s0 + $0xe8] sm:$0x3] }
  0xe1   :  { %3024 = vst.msk [vmem:[#allocation3 + $0x68] sm:$0xff] %vm2233_vm5, %v2933_v42  ;;  %v769_v42 = vmul.f32 %v7107_v26, %v5846_v11  ;;  %v771_v1 = vmul.f32 %v5553_v2, %v5846_v11  ;;  %v1012_v38 = vmul.f32 %v5553_v2, %v5848_v12  ;;  %v7332_v22 = vld [vmem:[%s9746_s1 + $0x8] ss:$0 sm:$0xff] }
  0xe2   :  { %2368 = vrot.lane.b32.xlu1 %v2295_v48, %s5757_s24  ;;  %v528_v54 = vsel %vm485_vm3, %v526_v41, %v527_v13  ;;  %v7271_v36 = vsel %vm485_vm3, %v3515_v56, %v7253_v43  ;;  %v530_v53 = vsel %vm485_vm3, %v527_v13, %v529_v57  ;;  %v697_v41 = vmul.f32 %v7120_v40, %v5844_v10 }
  0xe3   :  { %2577 = vrot.lane.b32.xlu2 %v6848_v31, %s5758_s23  ;;  %v696_v31 = vmul.f32 %v7107_v26, %v5844_v10  ;;  %v614_v48 = vadd.f32 %v528_v54, %v372_v33  ;;  %3609 = vst.msk [vmem:[#allocation3 + $0x130] sm:$0xff] %vm1854_vm1, %v7271_v36  ;;  %v881_v56 = vrot.slane %v769_v42, 1  ;;  %v615_v33 = vadd.f32 %v530_v53, %v373_v15  ;;  %v7306_v54 = vld [vmem:[%s9745_s0 + $0xf8] sm:$0xff] }
  0xe4   :  { %v2355_v19 = vpop.permute.xlu1 %2354  ;;  %v884_v14 = vrot.slane %v771_v1, 1  ;;  %v1122_v13 = vrot.slane %v1010_v18, 2  ;;  %v1125_v2 = vrot.slane %v1012_v38, 2  ;;  %v5601_v18 = vld [vmem:[%s9745_s0 + $0x100] sm:$0x3]  ;;  %v1477_v53 = vrot.slane %v1365_v27, 1 }
  0xe5   :  { %2447 = vst.msk [vmem:[#allocation3 + $0x60] sm:$0xff] %vm2442_vm6, %v2355_v19  ;;  %v3639_v34 = vld [vmem:[#allocation3 + $0x50] sm:$0xff]  ;;  %v7265_v59 = vpop.permute.xlu2 %3367  ;;  %v728_v58 = vadd.f32 %v696_v31, %v614_v48  ;;  %v1123_v31 = vrot.slane %v1011_v61, 2  ;;  %v729_v48 = vadd.f32 %v697_v41, %v615_v33  ;;  %v1606_v33 = vmul.f32 %v7332_v22, %v7294_v30 }
  0xe6   :  { %2656 = vst.msk [vmem:[#allocation3 + $0x60] sm:$0xff] %vm2651_vm7, %v7139_v32  ;;  %2161 = vrot.lane.b32.xlu0 %v7011_v52, %s5756_s19  ;;  %3999 = vmatmul.f32.gmra.mxu1 %v3639_v34  ;;  %v770_v32 = vmul.f32 %v7120_v40, %v5846_v11  ;;  %v1292_v34 = vmul.f32 %v7294_v30, %v5910_v44 }
  0xe7   :  { %v1124_v1 = vsel %vm485_vm3, %v1122_v13, %v1123_v31  ;;  %v1126_v61 = vsel %vm485_vm3, %v1123_v31, %v1125_v2  ;;  %v1293_v38 = vmul.f32 %v7306_v54, %v5910_v44  ;;  %v1608_v45 = vmul.f32 %v7332_v22, %v5601_v18 }
  0xe8   :  { %v2148_v3 = vpop.permute.xlu0 %2147  ;;  %v882_v19 = vrot.slane %v770_v32, 1  ;;  %v1718_v2 = vrot.slane %v1606_v33, 2  ;;  %v7371_v33 = vrot.slane %v7239_v37, 1 }
  0xe9   :  { %2239 = vst.msk [vmem:[#allocation3 + $0x78] sm:$0xff] %vm2233_vm5, %v2148_v3  ;;  %v1366_v3 = vmul.f32 %v7306_v54, %v5916_v49 }
  0xea   :  { %3155 = vrot.lane.b32.xlu1 %v7053_v50, %s5757_s24  ;;  %v883_v15 = vsel %vm243_vm0, %v881_v56, %v882_v19  ;;  %v885_v57 = vsel %vm243_vm0, %v882_v19, %v884_v14  ;;  %v2719_v19 = vsel %vm243_vm0, %v6556_v35, %v2718_v63  ;;  %v3652_v35 = vld [vmem:[#allocation3 + $0xb8] sm:$0xff] }
  0xeb   :  { %3379 = vrot.lane.b32.xlu2 %v3306_v4, %s5758_s23  ;;  %v969_v32 = vadd.f32 %v883_v15, %v728_v58  ;;  %v970_v56 = vadd.f32 %v885_v57, %v729_v48  ;;  %v1367_v58 = vmul.f32 %v5601_v18, %v5916_v49  ;;  %2819 = vst.msk [vmem:[#allocation3 + $0xb0] sm:$0xff] %vm1854_vm1, %v2719_v19  ;;  %v1478_v31 = vrot.slane %v1366_v3, 1  ;;  %v7349_v15 = vld [vmem:[#allocation2 + $0xd0] sm:$0x3] }
  0xec   :  { %v3142_v42 = vpop.permute.xlu1 %3141  ;;  %v3518_v63 = vrot.slane %v7349_v15, 2  ;;  %5630 = vmatmul.msk.f32.gmra.mxu2 %vm1854_vm1, %v3652_v35  ;;  %v2091_v18 = vsel %vm243_vm0, %v6997_v9, %v2090_v21 }
  0xed   :  { %3233 = vst.msk [vmem:[#allocation3 + $0x68] sm:$0xff] %vm2442_vm6, %v3142_v42  ;;  %v3641_v4 = vld [vmem:[#allocation3 + $0x60] sm:$0xff]  ;;  %v7325_v41 = vpop.permute.xlu2 %2567  ;;  %v1210_v14 = vadd.f32 %v1124_v1, %v969_v32  ;;  %v1211_v13 = vadd.f32 %v1126_v61, %v970_v56  ;;  %v1480_v27 = vrot.slane %v1367_v58, 1  ;;  %v1479_v32 = vsel %vm243_vm0, %v1477_v53, %v1478_v31  ;;  %v7368_v58 = vld [vmem:[#allocation2 + $0xb8] sm:$0x3] }
  0xee   :  { %3457 = vst.msk [vmem:[#allocation3 + $0x68] sm:$0xff] %vm2651_vm7, %v7185_v51  ;;  %2948 = vrot.lane.b32.xlu0 %v7078_v39, %s5756_s19  ;;  %3889 = vmatmul.f32.gmra.mxu0 %v3641_v4  ;;  %v1607_v51 = vmul.f32 %v7332_v22, %v7306_v54  ;;  %v1721_v4 = vrot.slane %v1608_v45, 2  ;;  %v3519_v53 = vsel %vm485_vm3, %v7253_v43, %v3518_v63  ;;  %v3655_v45 = vld [vmem:[#allocation3 + $0xd0] sm:$0xff] }
  0xef   :  { %v1324_v57 = vadd.f32 %v1292_v34, %v1210_v14  ;;  %v1325_v42 = vadd.f32 %v1293_v38, %v1211_v13  ;;  %v1481_v1 = vsel %vm243_vm0, %v1478_v31, %v1480_v27  ;;  %3610 = vst.msk [vmem:[#allocation3 + $0x148] sm:$0xff] %vm1854_vm1, %v3519_v53  ;;  %v2877_v31 = vrot.slane %v7368_v58, 2 }
  0xf0   :  { %v2935_v48 = vpop.permute.xlu0 %2934  ;;  %v1719_v34 = vrot.slane %v1607_v51, 2  ;;  %v174_v63 = vmul.f32 %v7107_v26, %v5828_v6  ;;  %v416_v53 = vmul.f32 %v7107_v26, %v5830_v7 }
  0xf1   :  { %3025 = vst.msk [vmem:[#allocation3 + $0x80] sm:$0xff] %vm2233_vm5, %v2935_v48  ;;  %v1565_v3 = vadd.f32 %v1479_v32, %v1324_v57  ;;  %v1566_v56 = vadd.f32 %v1481_v1, %v1325_v42  ;;  %v175_v42 = vmul.f32 %v7120_v40, %v5828_v6  ;;  %v100_v1 = vmul.f32 %v7107_v26, %v5826_v5 }
  0xf2   :  { %2370 = vrot.lane.b32.xlu1 %v6885_v29, %s5757_s24  ;;  %v3307_v29 = vrot.slane %v7234_v55, 1  ;;  %v1720_v19 = vsel %vm485_vm3, %v1718_v2, %v1719_v34  ;;  %v1722_v21 = vsel %vm485_vm3, %v1719_v34, %v1721_v4  ;;  %v2878_v2 = vsel %vm485_vm3, %v7060_v16, %v2877_v31 }
  0xf3   :  { %2579 = vrot.lane.b32.xlu2 %v7039_v28, %s5758_s23  ;;  %v1806_v38 = vadd.f32 %v1720_v19, %v1565_v3  ;;  %v1807_v13 = vadd.f32 %v1722_v21, %v1566_v56  ;;  %v289_v34 = vrot.slane %v174_v63, 1  ;;  %v132_v4 = vadd.f32 %v7222_v46, %v100_v1  ;;  %v3658_v19 = vld [vmem:[#allocation3 + $0xe8] sm:$0xff] }
  0xf4   :  { %v2357_v61 = vpop.permute.xlu1 %2356  ;;  %v7385_v57 = vsel %vm243_vm0, %v3307_v29, %v7371_v33  ;;  %5631 = vmatmul.msk.f32.gmra.mxu2 %vm1854_vm1, %v3655_v45  ;;  %v417_v56 = vmul.f32 %v7120_v40, %v5830_v7  ;;  %v3310_v29 = vrot.slane %v7349_v15, 1  ;;  %v531_v26 = vrot.slane %v416_v53, 2 }
  0xf5   :  { %2448 = vst.msk [vmem:[#allocation3 + $0x78] sm:$0xff] %vm2442_vm6, %v2357_v61  ;;  %v3642_v28 = vld [vmem:[#allocation3 + $0x68] sm:$0xff]  ;;  %v7377_v14 = vpop.permute.xlu2 %3369  ;;  %v1838_v27 = vmax.f32 %v1806_v38, 0.0  ;;  %v1839_v51 = vmax.f32 %v1807_v13, 0.0  ;;  %v101_v31 = vmul.f32 %v7120_v40, %v5826_v5 }
  0xf6   :  { %2657 = vst.msk [vmem:[#allocation3 + $0x78] sm:$0xff] %vm2651_vm7, %v7210_v62  ;;  %2163 = vrot.lane.b32.xlu0 %v2091_v18, %s5756_s19  ;;  %4002 = vmatmul.f32.gmra.mxu1 %v3642_v28  ;;  %v2299_v62 = vrot.slane %v7250_v24, 2  ;;  %v290_v18 = vrot.slane %v175_v42, 1  ;;  %v532_v38 = vrot.slane %v417_v56, 2 }
  0xf7   :  { %1913 = vst.msk [vmem:[#allocation2 + $0xd9] sm:$0xff] %vm1854_vm1, %v1838_v27  ;;  %v2723_v27 = vrot.slane %v6994_v20, 1 }
  0xf8   :  { %v2150_v48 = vpop.permute.xlu0 %2149  ;;  %1914 = vst.msk [vmem:[#allocation2 + $0xe1] sm:$0xff] %vm1854_vm1, %v1839_v51  ;;  %v2300_v3 = vsel %vm485_vm3, %v6861_v23, %v2299_v62  ;;  %v291_v28 = vsel %vm243_vm0, %v289_v34, %v290_v18  ;;  %v7438_v51 = vld [vmem:[#allocation2 + $0xb8] sm:$0x3] }
  0xf9   :  { %2240 = vst.msk [vmem:[#allocation3 + $0x90] sm:$0xff] %vm2233_vm5, %v2150_v48  ;;  %v374_v62 = vadd.f32 %v291_v28, %v132_v4  ;;  %v2095_v4 = vrot.slane %v7438_v51, 1 }
  0xfa   :  { %3157 = vrot.lane.b32.xlu1 %v7234_v55, %s5757_s24  ;;  %2826 = vst.msk [vmem:[#allocation3 + $0x158] sm:$0xff] %vm1854_vm1, %v7385_v57 }
  0xfb   :  { %3381 = vrot.lane.b32.xlu2 %v7385_v57, %s5758_s23 }
  0xfc   :  { %v3144_v35 = vpop.permute.xlu1 %3143  ;;  %5632 = vmatmul.msk.f32.gmra.mxu2 %vm1854_vm1, %v3658_v19  ;;  %v1013_v19 = vmul.f32 %v7294_v30, %v5848_v12 }
  0xfd   :  { %3234 = vst.msk [vmem:[#allocation3 + $0x80] sm:$0xff] %vm2442_vm6, %v3144_v35  ;;  %v3644_v24 = vld [vmem:[#allocation3 + $0x78] sm:$0xff]  ;;  %v7403_v32 = vpop.permute.xlu2 %2569  ;;  %v533_v35 = vsel %vm485_vm3, %v531_v26, %v532_v38 }
  0xfe   :  { %3458 = vst.msk [vmem:[#allocation3 + $0x80] sm:$0xff] %vm2651_vm7, %v7265_v59  ;;  %2950 = vrot.lane.b32.xlu0 %v2878_v2, %s5756_s19  ;;  %3892 = vmatmul.f32.gmra.mxu0 %v3644_v24  ;;  %v62_v59 = vld [vmem:[%s9745_s0 + $0xe8] sm:$0x3]  ;;  %v7422_v23 = vld [vmem:[#allocation2 + $0xd8] sm:$0xff]  ;;  %v133_v2 = vadd.f32 %v7222_v46, %v101_v31  ;;  %v3311_v24 = vsel %vm243_vm0, %v7371_v33, %v3310_v29 }
  0xff   :  { %v176_v21 = vmul.f32 %v5828_v6, %v62_v59  ;;  %v7427_v13 = vld [vmem:[#allocation2 + $0xe0] sm:$0xff]  ;;  %v3520_v15 = vrot.slane %v7422_v23, 2  ;;  %1995 = vst.msk [vmem:[#allocation3 + $0x1b0] sm:$0xff] %vm1854_vm1, %v7422_v23  ;;  %v418_v40 = vmul.f32 %v5830_v7, %v62_v59  ;;  %v616_v34 = vadd.f32 %v533_v35, %v374_v62  ;;  %v3661_v62 = vld [vmem:[#allocation3 + $0x100] sm:$0xff] }
 0x100   :  { %v2937_v61 = vpop.permute.xlu0 %2936  ;;  %v7441_v48 = vrot.slane %v7427_v13, 2  ;;  %1996 = vst.msk [vmem:[#allocation3 + $0x1c8] sm:$0xff] %vm1854_vm1, %v7427_v13  ;;  %v772_v29 = vmul.f32 %v7294_v30, %v5846_v11 }
 0x101   :  { %3026 = vst.msk [vmem:[#allocation3 + $0x98] sm:$0xff] %vm2233_vm5, %v2937_v61  ;;  %v292_v45 = vrot.slane %v176_v21, 1  ;;  %v534_v56 = vrot.slane %v418_v40, 2  ;;  %v5556_v61 = vld [vmem:[%s9745_s0 + $0x100] sm:$0x3]  ;;  %v7482_v21 = vld [vmem:[%s9745_s0 + $0x108] sm:$0xff] }
 0x102   :  { %2372 = vrot.lane.b32.xlu1 %v2300_v3, %s5757_s24  ;;  %v7459_v1 = vsel %vm485_vm3, %v3520_v15, %v7441_v48  ;;  %v774_v59 = vmul.f32 %v5556_v61, %v5846_v11  ;;  %v699_v15 = vmul.f32 %v7306_v54, %v5844_v10  ;;  %v886_v31 = vrot.slane %v772_v29, 1 }
 0x103   :  { %2581 = vrot.lane.b32.xlu2 %v7053_v50, %s5758_s23  ;;  %v698_v50 = vmul.f32 %v7294_v30, %v5844_v10  ;;  %v293_v3 = vsel %vm243_vm0, %v290_v18, %v292_v45  ;;  %3611 = vst.msk [vmem:[#allocation3 + $0x160] sm:$0xff] %vm1854_vm1, %v7459_v1  ;;  %v535_v26 = vsel %vm485_vm3, %v532_v38, %v534_v56  ;;  %v1127_v38 = vrot.slane %v1013_v19, 2  ;;  %v5604_v19 = vld [vmem:[%s9745_s0 + $0x118] sm:$0x3] }
 0x104   :  { %v2359_v25 = vpop.permute.xlu1 %2358  ;;  %v375_v53 = vadd.f32 %v293_v3, %v133_v2  ;;  %v1014_v45 = vmul.f32 %v7306_v54, %v5848_v12  ;;  %v889_v40 = vrot.slane %v774_v59, 1  ;;  %v1015_v35 = vmul.f32 %v5556_v61, %v5848_v12  ;;  %5633 = vmatmul.msk.f32.gmra.mxu2 %vm1854_vm1, %v3661_v62 }
 0x105   :  { %2449 = vst.msk [vmem:[#allocation3 + $0x90] sm:$0xff] %vm2442_vm6, %v2359_v25  ;;  %v3645_v63 = vld [vmem:[#allocation3 + $0x80] sm:$0xff]  ;;  %v7453_v42 = vpop.permute.xlu2 %3371  ;;  %v730_v18 = vadd.f32 %v698_v50, %v616_v34  ;;  %v1294_v3 = vmul.f32 %v7482_v21, %v5910_v44  ;;  %v1368_v34 = vmul.f32 %v7482_v21, %v5916_v49  ;;  %v1611_v20 = vmul.f32 %v7332_v22, %v5604_v19 }
 0x106   :  { %2658 = vst.msk [vmem:[#allocation3 + $0x90] sm:$0xff] %vm2651_vm7, %v7325_v41  ;;  %2165 = vrot.lane.b32.xlu0 %v7193_v17, %s5756_s19  ;;  %4005 = vmatmul.f32.gmra.mxu1 %v3645_v63  ;;  %v773_v41 = vmul.f32 %v7306_v54, %v5846_v11  ;;  %v617_v25 = vadd.f32 %v535_v26, %v375_v53  ;;  %v7494_v50 = vld [vmem:[%s9745_s0 + $0x110] sm:$0xff]  ;;  %v1128_v63 = vrot.slane %v1014_v45, 2  ;;  %v1130_v29 = vrot.slane %v1015_v35, 2 }
 0x107   :  { %v1369_v26 = vmul.f32 %v7494_v50, %v5916_v49  ;;  %v1482_v45 = vrot.slane %v1368_v34, 1  ;;  %v1295_v35 = vmul.f32 %v7494_v50, %v5910_v44 }
 0x108   :  { %v2152_v28 = vpop.permute.xlu0 %2151  ;;  %v887_v2 = vrot.slane %v773_v41, 1  ;;  %v731_v53 = vadd.f32 %v699_v15, %v617_v25  ;;  %v1131_v62 = vsel %vm485_vm3, %v1128_v63, %v1130_v29  ;;  %v1609_v25 = vmul.f32 %v7332_v22, %v7482_v21 }
 0x109   :  { %2241 = vst.msk [vmem:[#allocation3 + $0xa8] sm:$0xff] %vm2233_vm5, %v2152_v28  ;;  %v1129_v28 = vsel %vm485_vm3, %v1127_v38, %v1128_v63  ;;  %v1483_v63 = vrot.slane %v1369_v26, 1 }
 0x10a   :  { %3159 = vrot.lane.b32.xlu1 %v7239_v37, %s5757_s24  ;;  %v888_v56 = vsel %vm243_vm0, %v886_v31, %v887_v2  ;;  %v890_v61 = vsel %vm243_vm0, %v887_v2, %v889_v40  ;;  %v2724_v2 = vsel %vm243_vm0, %v6795_v60, %v2723_v27  ;;  %v1723_v29 = vrot.slane %v1609_v25, 2  ;;  %v3664_v60 = vld [vmem:[#allocation3 + $0x118] sm:$0xff] }
 0x10b   :  { %3383 = vrot.lane.b32.xlu2 %v3311_v24, %s5758_s23  ;;  %v971_v59 = vadd.f32 %v888_v56, %v730_v18  ;;  %v972_v31 = vadd.f32 %v890_v61, %v731_v53  ;;  %v1370_v18 = vmul.f32 %v5604_v19, %v5916_v49  ;;  %2821 = vst.msk [vmem:[#allocation3 + $0xe0] sm:$0xff] %vm1854_vm1, %v2724_v2  ;;  %v7532_v56 = vld [vmem:[#allocation2 + $0xe8] sm:$0x3]  ;;  %v7554_v25 = vrot.slane %v7427_v13, 1 }
 0x10c   :  { %v3146_v41 = vpop.permute.xlu1 %3145  ;;  %v3523_v27 = vrot.slane %v7532_v56, 2  ;;  %5634 = vmatmul.msk.f32.gmra.mxu2 %vm1854_vm1, %v3664_v60  ;;  %v2096_v19 = vsel %vm243_vm0, %v7179_v47, %v2095_v4 }
 0x10d   :  { %3235 = vst.msk [vmem:[#allocation3 + $0x98] sm:$0xff] %vm2442_vm6, %v3146_v41  ;;  %v3647_v24 = vld [vmem:[#allocation3 + $0x90] sm:$0xff]  ;;  %v7513_v15 = vpop.permute.xlu2 %2571  ;;  %v1212_v40 = vadd.f32 %v1129_v28, %v971_v59  ;;  %v1213_v38 = vadd.f32 %v1131_v62, %v972_v31  ;;  %v1485_v34 = vrot.slane %v1370_v18, 1  ;;  %v1484_v59 = vsel %vm243_vm0, %v1482_v45, %v1483_v63  ;;  %v7551_v18 = vld [vmem:[#allocation2 + $0xd0] sm:$0x3] }
 0x10e   :  { %3459 = vst.msk [vmem:[#allocation3 + $0x98] sm:$0xff] %vm2651_vm7, %v7377_v14  ;;  %2952 = vrot.lane.b32.xlu0 %v7271_v36, %s5756_s19  ;;  %3895 = vmatmul.f32.gmra.mxu0 %v3647_v24  ;;  %v1610_v14 = vmul.f32 %v7332_v22, %v7494_v50  ;;  %v1726_v24 = vrot.slane %v1611_v20, 2  ;;  %v3524_v45 = vsel %vm485_vm3, %v7441_v48, %v3523_v27  ;;  %v3667_v20 = vld [vmem:[#allocation3 + $0x130] sm:$0xff] }
 0x10f   :  { %v1326_v61 = vadd.f32 %v1294_v3, %v1212_v40  ;;  %v1327_v41 = vadd.f32 %v1295_v35, %v1213_v38  ;;  %v1486_v28 = vsel %vm243_vm0, %v1483_v63, %v1485_v34  ;;  %3612 = vst.msk [vmem:[#allocation3 + $0x178] sm:$0xff] %vm1854_vm1, %v3524_v45  ;;  %v2882_v63 = vrot.slane %v7551_v18, 2 }
 0x110   :  { %v2939_v53 = vpop.permute.xlu0 %2938  ;;  %v1724_v3 = vrot.slane %v1610_v14, 2  ;;  %v177_v27 = vmul.f32 %v7294_v30, %v5828_v6 }
 0x111   :  { %3027 = vst.msk [vmem:[#allocation3 + $0xb0] sm:$0xff] %vm2233_vm5, %v2939_v53  ;;  %v1567_v26 = vadd.f32 %v1484_v59, %v1326_v61  ;;  %v1568_v31 = vadd.f32 %v1486_v28, %v1327_v41  ;;  %v178_v41 = vmul.f32 %v7306_v54, %v5828_v6  ;;  %v102_v28 = vmul.f32 %v7294_v30, %v5826_v5 }
 0x112   :  { %2374 = vrot.lane.b32.xlu1 %v7078_v39, %s5757_s24  ;;  %v3312_v39 = vrot.slane %v7422_v23, 1  ;;  %v1725_v2 = vsel %vm485_vm3, %v1723_v29, %v1724_v3  ;;  %v1727_v4 = vsel %vm485_vm3, %v1724_v3, %v1726_v24  ;;  %v2883_v29 = vsel %vm485_vm3, %v7253_v43, %v2882_v63  ;;  %v65_v24 = vld [vmem:[%s9745_s0 + $0x100] sm:$0x3] }
 0x113   :  { %2583 = vrot.lane.b32.xlu2 %v7234_v55, %s5758_s23  ;;  %v1808_v35 = vadd.f32 %v1725_v2, %v1567_v26  ;;  %v1809_v38 = vadd.f32 %v1727_v4, %v1568_v31  ;;  %v294_v3 = vrot.slane %v177_v27, 1  ;;  %v295_v45 = vrot.slane %v178_v41, 1  ;;  %v3670_v4 = vld [vmem:[#allocation3 + $0x148] sm:$0xff] }
 0x114   :  { %v2361_v62 = vpop.permute.xlu1 %2360  ;;  %v7568_v61 = vsel %vm243_vm0, %v3312_v39, %v7554_v25  ;;  %5635 = vmatmul.msk.f32.gmra.mxu2 %vm1854_vm1, %v3667_v20  ;;  %v419_v31 = vmul.f32 %v7294_v30, %v5830_v7  ;;  %v3315_v39 = vrot.slane %v7532_v56, 1  ;;  %v179_v2 = vmul.f32 %v5828_v6, %v65_v24 }
 0x115   :  { %2450 = vst.msk [vmem:[#allocation3 + $0xa8] sm:$0xff] %vm2442_vm6, %v2361_v62  ;;  %v3648_v55 = vld [vmem:[#allocation3 + $0x98] sm:$0xff]  ;;  %v7560_v40 = vpop.permute.xlu2 %3373  ;;  %v1840_v34 = vmax.f32 %v1808_v35, 0.0  ;;  %v1841_v14 = vmax.f32 %v1809_v38, 0.0  ;;  %v296_v35 = vsel %vm243_vm0, %v294_v3, %v295_v45 }
 0x116   :  { %2659 = vst.msk [vmem:[#allocation3 + $0xa8] sm:$0xff] %vm2651_vm7, %v7403_v32  ;;  %2167 = vrot.lane.b32.xlu0 %v2096_v19, %s5756_s19  ;;  %4008 = vmatmul.f32.gmra.mxu1 %v3648_v55  ;;  %v2304_v32 = vrot.slane %v7438_v51, 2  ;;  %v134_v19 = vadd.f32 %v7222_v46, %v102_v28  ;;  %v103_v55 = vmul.f32 %v7306_v54, %v5826_v5  ;;  %v536_v38 = vrot.slane %v419_v31, 2 }
 0x117   :  { %1915 = vst.msk [vmem:[#allocation2 + $0xf1] sm:$0xff] %vm1854_vm1, %v1840_v34  ;;  %v297_v34 = vrot.slane %v179_v2, 1  ;;  %v3316_v28 = vsel %vm243_vm0, %v7554_v25, %v3315_v39  ;;  %v701_v39 = vmul.f32 %v7494_v50, %v5844_v10 }
 0x118   :  { %v2154_v53 = vpop.permute.xlu0 %2153  ;;  %1916 = vst.msk [vmem:[#allocation2 + $0xf9] sm:$0xff] %vm1854_vm1, %v1841_v14  ;;  %v2305_v26 = vsel %vm485_vm3, %v7060_v16, %v2304_v32  ;;  %v2728_v14 = vrot.slane %v7176_v8, 1  ;;  %v135_v20 = vadd.f32 %v7222_v46, %v103_v55  ;;  %v376_v32 = vadd.f32 %v296_v35, %v134_v19  ;;  %v5559_v19 = vld [vmem:[%s9745_s0 + $0x118] sm:$0x3]  ;;  %v7667_v55 = vld [vmem:[%s9745_s0 + $0x120] sm:$0xff] }
 0x119   :  { %2242 = vst.msk [vmem:[#allocation3 + $0xc0] sm:$0xff] %vm2233_vm5, %v2154_v53  ;;  %v777_v2 = vmul.f32 %v5559_v19, %v5846_v11 }
 0x11a   :  { %3161 = vrot.lane.b32.xlu1 %v7422_v23, %s5757_s24  ;;  %2828 = vst.msk [vmem:[#allocation3 + $0x188] sm:$0xff] %vm1854_vm1, %v7568_v61 }
 0x11b   :  { %3385 = vrot.lane.b32.xlu2 %v7568_v61, %s5758_s23 }
 0x11c   :  { %v3148_v60 = vpop.permute.xlu1 %3147  ;;  %5636 = vmatmul.msk.f32.gmra.mxu2 %vm1854_vm1, %v3670_v4  ;;  %v1016_v4 = vmul.f32 %v7482_v21, %v5848_v12 }
 0x11d   :  { %3236 = vst.msk [vmem:[#allocation3 + $0xb0] sm:$0xff] %vm2442_vm6, %v3148_v60  ;;  %v3650_v51 = vld [vmem:[#allocation3 + $0xa8] sm:$0xff]  ;;  %v7586_v59 = vpop.permute.xlu2 %2573  ;;  %v421_v60 = vmul.f32 %v5830_v7, %v65_v24 }
 0x11e   :  { %3460 = vst.msk [vmem:[#allocation3 + $0xb0] sm:$0xff] %vm2651_vm7, %v7453_v42  ;;  %2954 = vrot.lane.b32.xlu0 %v2883_v29, %s5756_s19  ;;  %3898 = vmatmul.f32.gmra.mxu0 %v3650_v51  ;;  %v420_v42 = vmul.f32 %v7306_v54, %v5830_v7  ;;  %v7606_v16 = vld [vmem:[#allocation2 + $0xf0] sm:$0xff]  ;;  %v298_v29 = vsel %vm243_vm0, %v295_v45, %v297_v34 }
 0x11f   :  { %v7612_v63 = vld [vmem:[#allocation2 + $0xf8] sm:$0xff]  ;;  %v3525_v56 = vrot.slane %v7606_v16, 2  ;;  %v7621_v54 = vld [vmem:[#allocation2 + $0xd0] sm:$0x3]  ;;  %1997 = vst.msk [vmem:[#allocation3 + $0x1e0] sm:$0xff] %vm1854_vm1, %v7606_v16  ;;  %v377_v3 = vadd.f32 %v298_v29, %v135_v20  ;;  %v539_v31 = vrot.slane %v421_v60, 2  ;;  %v1017_v20 = vmul.f32 %v7494_v50, %v5848_v12 }
 0x120   :  { %v2941_v62 = vpop.permute.xlu0 %2940  ;;  %v537_v30 = vrot.slane %v420_v42, 2  ;;  %v7624_v53 = vrot.slane %v7612_v63, 2  ;;  %1998 = vst.msk [vmem:[#allocation3 + $0x1f8] sm:$0xff] %vm1854_vm1, %v7612_v63  ;;  %v2100_v45 = vrot.slane %v7621_v54, 1  ;;  %v775_v42 = vmul.f32 %v7482_v21, %v5846_v11 }
 0x121   :  { %3028 = vst.msk [vmem:[#allocation3 + $0xc8] sm:$0xff] %vm2233_vm5, %v2941_v62  ;;  %v776_v62 = vmul.f32 %v7494_v50, %v5846_v11  ;;  %v894_v29 = vrot.slane %v777_v2, 1  ;;  %v1018_v60 = vmul.f32 %v5559_v19, %v5848_v12  ;;  %v5607_v2 = vld [vmem:[%s9745_s0 + $0x130] sm:$0x3] }
 0x122   :  { %2376 = vrot.lane.b32.xlu1 %v2305_v26, %s5757_s24  ;;  %v538_v27 = vsel %vm485_vm3, %v536_v38, %v537_v30  ;;  %v7643_v26 = vsel %vm485_vm3, %v3525_v56, %v7624_v53  ;;  %v540_v38 = vsel %vm485_vm3, %v537_v30, %v539_v31  ;;  %v891_v56 = vrot.slane %v775_v42, 1 }
 0x123   :  { %2585 = vrot.lane.b32.xlu2 %v7239_v37, %s5758_s23  ;;  %v700_v37 = vmul.f32 %v7482_v21, %v5844_v10  ;;  %v618_v24 = vadd.f32 %v538_v27, %v376_v32  ;;  %3613 = vst.msk [vmem:[#allocation3 + $0x190] sm:$0xff] %vm1854_vm1, %v7643_v26  ;;  %v892_v34 = vrot.slane %v776_v62, 1  ;;  %v3673_v32 = vld [vmem:[#allocation3 + $0x160] sm:$0xff]  ;;  %v1132_v27 = vrot.slane %v1016_v4, 2 }
 0x124   :  { %v2363_v52 = vpop.permute.xlu1 %2362  ;;  %5637 = vmatmul.msk.f32.gmra.mxu2 %vm1854_vm1, %v3673_v32  ;;  %v1135_v62 = vrot.slane %v1018_v60, 2 }
 0x125   :  { %2451 = vst.msk [vmem:[#allocation3 + $0xc0] sm:$0xff] %vm2442_vm6, %v2363_v52  ;;  %v3651_v41 = vld [vmem:[#allocation3 + $0xb0] sm:$0xff]  ;;  %v7637_v51 = vpop.permute.xlu2 %3375  ;;  %v619_v52 = vadd.f32 %v540_v38, %v377_v3  ;;  %v893_v30 = vsel %vm243_vm0, %v891_v56, %v892_v34  ;;  %v1296_v3 = vmul.f32 %v7667_v55, %v5910_v44  ;;  %v895_v31 = vsel %vm243_vm0, %v892_v34, %v894_v29 }
 0x126   :  { %2660 = vst.msk [vmem:[#allocation3 + $0xc0] sm:$0xff] %vm2651_vm7, %v7513_v15  ;;  %2169 = vrot.lane.b32.xlu0 %v7385_v57, %s5756_s19  ;;  %4011 = vmatmul.f32.gmra.mxu1 %v3651_v41  ;;  %v732_v15 = vadd.f32 %v700_v37, %v618_v24  ;;  %v7677_v37 = vld [vmem:[%s9745_s0 + $0x128] sm:$0xff]  ;;  %v1133_v41 = vrot.slane %v1017_v20, 2  ;;  %v1371_v24 = vmul.f32 %v7667_v55, %v5916_v49 }
 0x127   :  { %v733_v19 = vadd.f32 %v701_v39, %v619_v52  ;;  %v1372_v38 = vmul.f32 %v7677_v37, %v5916_v49  ;;  %v1373_v56 = vmul.f32 %v5607_v2, %v5916_v49  ;;  %v1297_v52 = vmul.f32 %v7677_v37, %v5910_v44 }
 0x128   :  { %v2156_v35 = vpop.permute.xlu0 %2155  ;;  %v973_v42 = vadd.f32 %v893_v30, %v732_v15  ;;  %v1487_v20 = vrot.slane %v1371_v24, 1  ;;  %v1136_v34 = vsel %vm485_vm3, %v1133_v41, %v1135_v62  ;;  %v2729_v29 = vsel %vm243_vm0, %v6997_v9, %v2728_v14 }
 0x129   :  { %2243 = vst.msk [vmem:[#allocation3 + $0xd8] sm:$0xff] %vm2233_vm5, %v2156_v35  ;;  %v1134_v35 = vsel %vm485_vm3, %v1132_v27, %v1133_v41  ;;  %v974_v15 = vadd.f32 %v895_v31, %v733_v19  ;;  %v1488_v60 = vrot.slane %v1372_v38, 1  ;;  %v1490_v27 = vrot.slane %v1373_v56, 1  ;;  %v7712_v41 = vld [vmem:[#allocation2 + $0xe8] sm:$0x3] }
 0x12a   :  { %3163 = vrot.lane.b32.xlu1 %v7427_v13, %s5757_s24  ;;  %v1214_v32 = vadd.f32 %v1134_v35, %v973_v42  ;;  %v1612_v30 = vmul.f32 %v7332_v22, %v7667_v55  ;;  %2823 = vst.msk [vmem:[#allocation3 + $0x110] sm:$0xff] %vm1854_vm1, %v2729_v29  ;;  %v1613_v19 = vmul.f32 %v7332_v22, %v7677_v37  ;;  %v7718_v42 = vld [vmem:[#allocation2 + $0x100] sm:$0x3] }
 0x12b   :  { %3387 = vrot.lane.b32.xlu2 %v3316_v28, %s5758_s23  ;;  %v1215_v24 = vadd.f32 %v1136_v34, %v974_v15  ;;  %v1614_v31 = vmul.f32 %v7332_v22, %v5607_v2  ;;  %v1489_v9 = vsel %vm243_vm0, %v1487_v20, %v1488_v60  ;;  %v1491_v14 = vsel %vm243_vm0, %v1488_v60, %v1490_v27 }
 0x12c   :  { %v3150_v4 = vpop.permute.xlu1 %3149  ;;  %v1728_v62 = vrot.slane %v1612_v30, 2  ;;  %v3528_v35 = vrot.slane %v7718_v42, 2  ;;  %v1729_v56 = vrot.slane %v1613_v19, 2  ;;  %v2101_v2 = vsel %vm243_vm0, %v7371_v33, %v2100_v45  ;;  %v68_v45 = vld [vmem:[%s9745_s0 + $0x118] sm:$0x3] }
 0x12d   :  { %3237 = vst.msk [vmem:[#allocation3 + $0xc8] sm:$0xff] %vm2442_vm6, %v3150_v4  ;;  %v3653_v28 = vld [vmem:[#allocation3 + $0xc0] sm:$0xff]  ;;  %v7697_v39 = vpop.permute.xlu2 %2575  ;;  %v3676_v4 = vld [vmem:[#allocation3 + $0x178] sm:$0xff]  ;;  %v1329_v38 = vadd.f32 %v1297_v52, %v1215_v24  ;;  %v2887_v20 = vrot.slane %v7712_v41, 2  ;;  %v104_v15 = vmul.f32 %v7482_v21, %v5826_v5  ;;  %v3317_v34 = vrot.slane %v7606_v16, 1 }
 0x12e   :  { %3461 = vst.msk [vmem:[#allocation3 + $0xc8] sm:$0xff] %vm2651_vm7, %v7560_v40  ;;  %2956 = vrot.lane.b32.xlu0 %v7459_v1, %s5756_s19  ;;  %3901 = vmatmul.f32.gmra.mxu0 %v3653_v28  ;;  %v1328_v40 = vadd.f32 %v1296_v3, %v1214_v32  ;;  %v1731_v28 = vrot.slane %v1614_v31, 2  ;;  %v1730_v52 = vsel %vm485_vm3, %v1728_v62, %v1729_v56  ;;  %v7744_v60 = vrot.slane %v7612_v63, 1 }
 0x12f   :  { %5638 = vmatmul.msk.f32.gmra.mxu2 %vm1854_vm1, %v3676_v4  ;;  %v1570_v32 = vadd.f32 %v1491_v14, %v1329_v38  ;;  %v105_v30 = vmul.f32 %v7494_v50, %v5826_v5  ;;  %v136_v31 = vadd.f32 %v7222_v46, %v104_v15  ;;  %v2309_v14 = vrot.slane %v7621_v54, 2 }
 0x130   :  { %v2943_v8 = vpop.permute.xlu0 %2942  ;;  %v1569_v3 = vadd.f32 %v1489_v9, %v1328_v40  ;;  %9762 = vst [vmem:[#allocation9_spill] sm:$0xff] %v7744_v60  ;;  %v181_v9 = vmul.f32 %v7494_v50, %v5828_v6  ;;  %v423_v54 = vmul.f32 %v7494_v50, %v5830_v7 }
 0x131   :  { %3029 = vst.msk [vmem:[#allocation3 + $0xe0] sm:$0xff] %vm2233_vm5, %v2943_v8  ;;  %v180_v8 = vmul.f32 %v7482_v21, %v5828_v6  ;;  %v137_v4 = vadd.f32 %v7222_v46, %v105_v30  ;;  %v424_v46 = vmul.f32 %v5830_v7, %v68_v45 }
 0x132   :  { %2378 = vrot.lane.b32.xlu1 %v7271_v36, %s5757_s24  ;;  %v3529_v36 = vsel %vm485_vm3, %v7624_v53, %v3528_v35  ;;  %v1810_v27 = vadd.f32 %v1730_v52, %v1569_v3  ;;  %v182_v35 = vmul.f32 %v5828_v6, %v68_v45 }
 0x133   :  { %2587 = vrot.lane.b32.xlu2 %v7422_v23, %s5758_s23  ;;  %3614 = vst.msk [vmem:[#allocation3 + $0x1a8] sm:$0xff] %vm1854_vm1, %v3529_v36  ;;  %v1732_v23 = vsel %vm485_vm3, %v1729_v56, %v1731_v28  ;;  %v299_v3 = vrot.slane %v180_v8, 1  ;;  %v300_v56 = vrot.slane %v181_v9, 1  ;;  %v422_v28 = vmul.f32 %v7482_v21, %v5830_v7  ;;  %v3679_v36 = vld [vmem:[#allocation3 + $0x190] sm:$0xff]  ;;  %v5562_v21 = vld [vmem:[%s9745_s0 + $0x130] sm:$0x3] }
 0x134   :  { %v2365_v29 = vpop.permute.xlu1 %2364  ;;  %v1811_v19 = vadd.f32 %v1732_v23, %v1570_v32  ;;  %v1842_v62 = vmax.f32 %v1810_v27, 0.0  ;;  %v542_v27 = vrot.slane %v423_v54, 2  ;;  %v544_v30 = vrot.slane %v424_v46, 2 }
 0x135   :  { %2452 = vst.msk [vmem:[#allocation3 + $0xd8] sm:$0xff] %vm2442_vm6, %v2365_v29  ;;  %v3654_v24 = vld [vmem:[#allocation3 + $0xc8] sm:$0xff]  ;;  %v7751_v40 = vpop.permute.xlu2 %3377  ;;  %v301_v32 = vsel %vm243_vm0, %v299_v3, %v300_v56  ;;  %v541_v52 = vrot.slane %v422_v28, 2  ;;  %v2888_v29 = vsel %vm485_vm3, %v7441_v48, %v2887_v20  ;;  %v702_v8 = vmul.f32 %v7667_v55, %v5844_v10 }
 0x136   :  { %2661 = vst.msk [vmem:[#allocation3 + $0xd8] sm:$0xff] %vm2651_vm7, %v7586_v59  ;;  %2171 = vrot.lane.b32.xlu0 %v2101_v2, %s5756_s19  ;;  %4014 = vmatmul.f32.gmra.mxu1 %v3654_v24  ;;  %v1843_v38 = vmax.f32 %v1811_v19, 0.0  ;;  %v7768_v59 = vsel %vm243_vm0, %v3317_v34, %v7744_v60  ;;  %v302_v2 = vrot.slane %v182_v35, 1  ;;  %v778_v34 = vmul.f32 %v7667_v55, %v5846_v11 }
 0x137   :  { %9763 = vst [vmem:[#allocation10_spill] sm:$0xff] %v7768_v59  ;;  %5639 = vmatmul.msk.f32.gmra.mxu2 %vm1854_vm1, %v3679_v36  ;;  %v378_v45 = vadd.f32 %v301_v32, %v136_v31  ;;  %v2310_v19 = vsel %vm485_vm3, %v7253_v43, %v2309_v14  ;;  %v779_v9 = vmul.f32 %v7677_v37, %v5846_v11  ;;  %v3320_v36 = vrot.slane %v7718_v42, 1  ;;  %v7814_v32 = vld [vmem:[#allocation2 + $0xe8] sm:$0x3] }
 0x138   :  { %v2158_v15 = vpop.permute.xlu0 %2157  ;;  %1917 = vst.msk [vmem:[#allocation2 + $0x109] sm:$0xff] %vm1854_vm1, %v1842_v62  ;;  %v303_v50 = vsel %vm243_vm0, %v300_v56, %v302_v2  ;;  %v780_v31 = vmul.f32 %v5562_v21, %v5846_v11  ;;  %v545_v35 = vsel %vm485_vm3, %v542_v27, %v544_v30  ;;  %v703_v43 = vmul.f32 %v7677_v37, %v5844_v10 }
 0x139   :  { %2244 = vst.msk [vmem:[#allocation3 + $0xf0] sm:$0xff] %vm2233_vm5, %v2158_v15  ;;  %v379_v23 = vadd.f32 %v303_v50, %v137_v4  ;;  %v543_v4 = vsel %vm485_vm3, %v541_v52, %v542_v27  ;;  %v896_v14 = vrot.slane %v778_v34, 1  ;;  %v1019_v3 = vmul.f32 %v7667_v55, %v5848_v12 }
 0x13a   :  { %3165 = vrot.lane.b32.xlu1 %v7606_v16, %s5757_s24  ;;  %1918 = vst.msk [vmem:[#allocation2 + $0x111] sm:$0xff] %vm1854_vm1, %v1843_v38  ;;  %v620_v38 = vadd.f32 %v543_v4, %v378_v45  ;;  %v897_v15 = vrot.slane %v779_v9, 1  ;;  %v899_v2 = vrot.slane %v780_v31, 1  ;;  %v1020_v54 = vmul.f32 %v7677_v37, %v5848_v12  ;;  %v3682_v45 = vld [vmem:[#allocation3 + $0x1a8] sm:$0xff] }
 0x13b   :  { %3389 = vrot.lane.b32.xlu2 %v7768_v59, %s5758_s23  ;;  %v621_v28 = vadd.f32 %v545_v35, %v379_v23  ;;  %v1021_v52 = vmul.f32 %v5562_v21, %v5848_v12  ;;  %v1137_v31 = vrot.slane %v1019_v3, 2  ;;  %v3321_v4 = vsel %vm243_vm0, %v7744_v60, %v3320_v36 }
 0x13c   :  { %v3152_v24 = vpop.permute.xlu1 %3151  ;;  %v898_v42 = vsel %vm243_vm0, %v896_v14, %v897_v15  ;;  %v900_v27 = vsel %vm243_vm0, %v897_v15, %v899_v2  ;;  %v2105_v35 = vrot.slane %v7814_v32, 1 }
 0x13d   :  { %3238 = vst.msk [vmem:[#allocation3 + $0xe0] sm:$0xff] %vm2442_vm6, %v3152_v24  ;;  %v3656_v20 = vld [vmem:[#allocation3 + $0xd8] sm:$0xff]  ;;  %v7798_v62 = vpop.permute.xlu2 %2577  ;;  %v735_v23 = vadd.f32 %v703_v43, %v621_v28  ;;  %v7838_v24 = vld [vmem:[%s9745_s0 + $0x138] sm:$0xff]  ;;  %v1140_v14 = vrot.slane %v1021_v52, 2 }
 0x13e   :  { %3462 = vst.msk [vmem:[#allocation3 + $0xe0] sm:$0xff] %vm2651_vm7, %v7637_v51  ;;  %2958 = vrot.lane.b32.xlu0 %v2888_v29, %s5756_s19  ;;  %3904 = vmatmul.f32.gmra.mxu0 %v3656_v20  ;;  %v734_v29 = vadd.f32 %v702_v8, %v620_v38  ;;  %v7843_v8 = vld [vmem:[%s9745_s0 + $0x140] sm:$0xff]  ;;  %v1138_v20 = vrot.slane %v1020_v54, 2  ;;  %v1298_v2 = vmul.f32 %v7838_v24, %v5910_v44 }
 0x13f   :  { %v7809_v56 = vld [vmem:[#allocation2 + $0x108] sm:$0xff]  ;;  %5640 = vmatmul.msk.f32.gmra.mxu2 %vm1854_vm1, %v3682_v45  ;;  %v976_v9 = vadd.f32 %v900_v27, %v735_v23  ;;  %v1299_v54 = vmul.f32 %v7843_v8, %v5910_v44  ;;  %v1375_v45 = vmul.f32 %v7843_v8, %v5916_v49 }
 0x140   :  { %v2945_v46 = vpop.permute.xlu0 %2944  ;;  %v3530_v51 = vrot.slane %v7809_v56, 2  ;;  %1999 = vst.msk [vmem:[#allocation3 + $0x210] sm:$0xff] %vm1854_vm1, %v7809_v56  ;;  %v1139_v15 = vsel %vm485_vm3, %v1137_v31, %v1138_v20 }
 0x141   :  { %3030 = vst.msk [vmem:[#allocation3 + $0xf8] sm:$0xff] %vm2233_vm5, %v2945_v46  ;;  %v7821_v34 = vld [vmem:[#allocation2 + $0x110] sm:$0xff]  ;;  %v7823_v50 = vld [vmem:[#allocation2 + $0x118] sm:$0x3]  ;;  %v1141_v46 = vsel %vm485_vm3, %v1138_v20, %v1140_v14  ;;  %v1493_v31 = vrot.slane %v1375_v45, 1  ;;  %v2733_v14 = vrot.slane %v7368_v58, 1  ;;  %v184_v58 = vmul.f32 %v7677_v37, %v5828_v6 }
 0x142   :  { %2380 = vrot.lane.b32.xlu1 %v2310_v19, %s5757_s24  ;;  %v7829_v21 = vrot.slane %v7821_v34, 2  ;;  %v3533_v30 = vrot.slane %v7823_v50, 2  ;;  %v975_v19 = vadd.f32 %v898_v42, %v734_v29  ;;  %2000 = vst.msk [vmem:[#allocation3 + $0x228] sm:$0xff] %vm1854_vm1, %v7821_v34  ;;  %v1217_v52 = vadd.f32 %v1141_v46, %v976_v9 }
 0x143   :  { %2589 = vrot.lane.b32.xlu2 %v7427_v13, %s5758_s23  ;;  %v5610_v13 = vld [vmem:[%s9745_s0 + $0x148] sm:$0x3] }
 0x144   :  { %v2367_v17 = vpop.permute.xlu1 %2366  ;;  %v7854_v43 = vsel %vm485_vm3, %v3530_v51, %v7829_v21  ;;  %v3534_v28 = vsel %vm485_vm3, %v7829_v21, %v3533_v30  ;;  %v1216_v36 = vadd.f32 %v1139_v15, %v975_v19  ;;  %v1374_v51 = vmul.f32 %v7838_v24, %v5916_v49 }
 0x145   :  { %2453 = vst.msk [vmem:[#allocation3 + $0xf0] sm:$0xff] %vm2442_vm6, %v2367_v17  ;;  %v3657_v38 = vld [vmem:[#allocation3 + $0xe0] sm:$0xff]  ;;  %v7860_v3 = vpop.permute.xlu2 %3379  ;;  %v1376_v29 = vmul.f32 %v5610_v13, %v5916_v49  ;;  %v1616_v30 = vmul.f32 %v7332_v22, %v7843_v8  ;;  %v1617_v19 = vmul.f32 %v7332_v22, %v5610_v13  ;;  %v1331_v9 = vadd.f32 %v1299_v54, %v1217_v52 }
 0x146   :  { %2662 = vst.msk [vmem:[#allocation3 + $0xf0] sm:$0xff] %vm2651_vm7, %v7697_v39  ;;  %2173 = vrot.lane.b32.xlu0 %v7568_v61, %s5756_s19  ;;  %4017 = vmatmul.f32.gmra.mxu1 %v3657_v38  ;;  %v1615_v39 = vmul.f32 %v7332_v22, %v7838_v24  ;;  %v1330_v42 = vadd.f32 %v1298_v2, %v1216_v36  ;;  %v1492_v27 = vrot.slane %v1374_v51, 1  ;;  %v71_v52 = vld [vmem:[%s9745_s0 + $0x130] sm:$0x3] }
 0x147   :  { %3615 = vst.msk [vmem:[#allocation3 + $0x1c0] sm:$0xff] %vm1854_vm1, %v7854_v43  ;;  %v1495_v20 = vrot.slane %v1376_v29, 1  ;;  %v1734_v38 = vrot.slane %v1616_v30, 2  ;;  %v106_v15 = vmul.f32 %v7667_v55, %v5826_v5  ;;  %v183_v2 = vmul.f32 %v7667_v55, %v5828_v6 }
 0x148   :  { %v2160_v23 = vpop.permute.xlu0 %2159  ;;  %3616 = vst.msk [vmem:[#allocation3 + $0x1d8] sm:$0xff] %vm1854_vm1, %v3534_v28  ;;  %v1733_v17 = vrot.slane %v1615_v39, 2  ;;  %v1736_v28 = vrot.slane %v1617_v19, 2  ;;  %v1494_v22 = vsel %vm243_vm0, %v1492_v27, %v1493_v31  ;;  %v2106_v39 = vsel %vm243_vm0, %v7554_v25, %v2105_v35 }
 0x149   :  { %2245 = vst.msk [vmem:[#allocation3 + $0x108] sm:$0xff] %vm2233_vm5, %v2160_v23  ;;  %v1496_v13 = vsel %vm243_vm0, %v1493_v31, %v1495_v20  ;;  %v1571_v46 = vadd.f32 %v1494_v22, %v1330_v42  ;;  %v7915_v42 = vld [vmem:[%s9747_s2] ss:$0 sm:$0xff]  ;;  %v2734_v35 = vsel %vm243_vm0, %v7179_v47, %v2733_v14  ;;  %v185_v31 = vmul.f32 %v5828_v6, %v71_v52 }
 0x14a   :  { %3167 = vrot.lane.b32.xlu1 %v7612_v63, %s5757_s24  ;;  %v1572_v36 = vadd.f32 %v1496_v13, %v1331_v9  ;;  %v1735_v51 = vsel %vm485_vm3, %v1733_v17, %v1734_v38  ;;  %v1737_v23 = vsel %vm485_vm3, %v1734_v38, %v1736_v28  ;;  %v138_v27 = vadd.f32 %v7915_v42, %v106_v15 }
 0x14b   :  { %3391 = vrot.lane.b32.xlu2 %v3321_v4, %s5758_s23  ;;  %v107_v4 = vmul.f32 %v7677_v37, %v5826_v5  ;;  %v1812_v19 = vadd.f32 %v1735_v51, %v1571_v46  ;;  %2825 = vst.msk [vmem:[#allocation3 + $0x140] sm:$0xff] %vm1854_vm1, %v2734_v35  ;;  %v304_v20 = vrot.slane %v183_v2, 1  ;;  %v305_v17 = vrot.slane %v184_v58, 1  ;;  %v2504_v58 = vld [vmem:[#allocation2 + $0x100] sm:$0x3] }
 0x14c   :  { %v3154_v54 = vpop.permute.xlu1 %3153  ;;  %v1813_v9 = vadd.f32 %v1737_v23, %v1572_v36  ;;  %v426_v47 = vmul.f32 %v7677_v37, %v5830_v7  ;;  %v307_v13 = vrot.slane %v185_v31, 1  ;;  %v7939_v46 = vrot.slane %v7821_v34, 1 }
 0x14d   :  { %3239 = vst.msk [vmem:[#allocation3 + $0xf8] sm:$0xff] %vm2442_vm6, %v3154_v54  ;;  %v3659_v45 = vld [vmem:[#allocation3 + $0xf0] sm:$0xff]  ;;  %v7907_v29 = vpop.permute.xlu2 %2579  ;;  %v1844_v28 = vmax.f32 %v1812_v19, 0.0  ;;  %v139_v22 = vadd.f32 %v7915_v42, %v107_v4  ;;  %v306_v14 = vsel %vm243_vm0, %v304_v20, %v305_v17  ;;  %v427_v54 = vmul.f32 %v5830_v7, %v71_v52 }
 0x14e   :  { %3463 = vst.msk [vmem:[#allocation3 + $0xf8] sm:$0xff] %vm2651_vm7, %v7751_v40  ;;  %2960 = vrot.lane.b32.xlu0 %v7643_v26, %s5756_s19  ;;  %3907 = vmatmul.f32.gmra.mxu0 %v3659_v45  ;;  %v3685_v30 = vld [vmem:[#allocation3 + $0x1c0] sm:$0xff]  ;;  %v425_v40 = vmul.f32 %v7667_v55, %v5830_v7  ;;  %v1845_v15 = vmax.f32 %v1813_v9, 0.0  ;;  %v3322_v55 = vrot.slane %v7809_v56, 1  ;;  %v380_v37 = vadd.f32 %v306_v14, %v138_v27  ;;  %v7958_v9 = vpop.f32.mrf.mxu0 }
 0x14f   :  { %5641 = vmatmul.msk.f32.gmra.mxu2 %vm1854_vm1, %v3685_v30  ;;  %9764 = vst [vmem:[#allocation11_spill] sm:$0xff] %v7939_v46  ;;  %v547_v36 = vrot.slane %v426_v47, 2  ;;  %v308_v51 = vsel %vm243_vm0, %v305_v17, %v307_v13  ;;  %v549_v52 = vrot.slane %v427_v54, 2  ;;  %v704_v4 = vmul.f32 %v7838_v24, %v5844_v10  ;;  %v3688_v27 = vld [vmem:[#allocation3 + $0x1d8] sm:$0xff] }
 0x150   :  { %v2947_v38 = vpop.permute.xlu0 %2946  ;;  %v546_v2 = vrot.slane %v425_v40, 2  ;;  %1919 = vst.msk [vmem:[#allocation2 + $0x121] sm:$0xff] %vm1854_vm1, %v1844_v28  ;;  %v705_v45 = vmul.f32 %v7843_v8, %v5844_v10  ;;  %v381_v30 = vadd.f32 %v308_v51, %v139_v22  ;;  %v781_v35 = vmul.f32 %v7838_v24, %v5846_v11  ;;  %v7964_v28 = vpop.f32.mrf.mxu1 }
 0x151   :  { %3031 = vst.msk [vmem:[#allocation3 + $0x110] sm:$0xff] %vm2233_vm5, %v2947_v38  ;;  %v782_v19 = vmul.f32 %v7843_v8, %v5846_v11  ;;  %v2892_v17 = vrot.slane %v2504_v58, 2  ;;  %v550_v40 = vsel %vm485_vm3, %v547_v36, %v549_v52  ;;  %v7972_v13 = vsel %vm243_vm0, %v3322_v55, %v7939_v46 }
 0x152   :  { %2382 = vrot.lane.b32.xlu1 %v7459_v1, %s5757_s24  ;;  %1920 = vst.msk [vmem:[#allocation2 + $0x129] sm:$0xff] %vm1854_vm1, %v1845_v15  ;;  %v5565_v1 = vld [vmem:[%s9745_s0 + $0x148] sm:$0x3]  ;;  %v623_v15 = vadd.f32 %v550_v40, %v381_v30  ;;  %v901_v47 = vrot.slane %v781_v35, 1 }
 0x153   :  { %2591 = vrot.lane.b32.xlu2 %v7606_v16, %s5758_s23  ;;  %v548_v16 = vsel %vm485_vm3, %v546_v2, %v547_v36  ;;  %9765 = vst [vmem:[#allocation12_spill] sm:$0xff] %v7958_v9  ;;  %v783_v22 = vmul.f32 %v5565_v1, %v5846_v11  ;;  %v902_v14 = vrot.slane %v782_v19, 1  ;;  %v1022_v2 = vmul.f32 %v7838_v24, %v5848_v12 }
 0x154   :  { %v2369_v23 = vpop.permute.xlu1 %2368  ;;  %v622_v38 = vadd.f32 %v548_v16, %v380_v37  ;;  %9766 = vst [vmem:[#allocation13_spill] sm:$0xff] %v7964_v28  ;;  %v737_v58 = vadd.f32 %v705_v45, %v623_v15  ;;  %v1024_v51 = vmul.f32 %v5565_v1, %v5848_v12  ;;  %v7992_v45 = vld [vmem:[%s9745_s0 + $0x158] sm:$0xff]  ;;  %v2893_v1 = vsel %vm485_vm3, %v7624_v53, %v2892_v17 }
 0x155   :  { %2454 = vst.msk [vmem:[#allocation3 + $0x108] sm:$0xff] %vm2442_vm6, %v2369_v23  ;;  %v3660_v31 = vld [vmem:[#allocation3 + $0xf8] sm:$0xff]  ;;  %v7961_v20 = vpop.permute.xlu2 %3381  ;;  %v903_v37 = vsel %vm243_vm0, %v901_v47, %v902_v14  ;;  %v904_v36 = vrot.slane %v783_v22, 1  ;;  %v1142_v23 = vrot.slane %v1022_v2, 2 }
 0x156   :  { %2663 = vst.msk [vmem:[#allocation3 + $0x108] sm:$0xff] %vm2651_vm7, %v7798_v62  ;;  %2175 = vrot.lane.b32.xlu0 %v2106_v39, %s5756_s19  ;;  %4020 = vmatmul.f32.gmra.mxu1 %v3660_v31  ;;  %v736_v54 = vadd.f32 %v704_v4, %v622_v38  ;;  %v1023_v62 = vmul.f32 %v7843_v8, %v5848_v12  ;;  %v2314_v31 = vrot.slane %v7814_v32, 2  ;;  %v1145_v47 = vrot.slane %v1024_v51, 2 }
 0x157   :  { %9767 = vst [vmem:[#allocation14_spill] sm:$0xff] %v7972_v13  ;;  %5642 = vmatmul.msk.f32.gmra.mxu2 %vm1854_vm1, %v3688_v27  ;;  %v7982_v55 = vld [vmem:[#allocation2 + $0x120] sm:$0xff]  ;;  %v7987_v27 = vld [vmem:[%s9745_s0 + $0x150] sm:$0xff]  ;;  %v905_v19 = vsel %vm243_vm0, %v902_v14, %v904_v36 }
 0x158   :  { %v2162_v39 = vpop.permute.xlu0 %2161  ;;  %v977_v52 = vadd.f32 %v903_v37, %v736_v54  ;;  %v1143_v4 = vrot.slane %v1023_v62, 2  ;;  %v3535_v16 = vrot.slane %v7982_v55, 2  ;;  %v978_v15 = vadd.f32 %v905_v19, %v737_v58  ;;  %2001 = vst.msk [vmem:[#allocation3 + $0x240] sm:$0xff] %vm1854_vm1, %v7982_v55  ;;  %v5613_v14 = vld [vmem:[%s9745_s0 + $0x160] sm:$0x3] }
 0x159   :  { %2246 = vst.msk [vmem:[#allocation3 + $0x120] sm:$0xff] %vm2233_vm5, %v2162_v39  ;;  %v7998_v30 = vld [vmem:[#allocation2 + $0x128] sm:$0xff]  ;;  %v8001_v35 = vld [vmem:[#allocation2 + $0x130] sm:$0x3]  ;;  %v1300_v32 = vmul.f32 %v7987_v27, %v5910_v44  ;;  %v1301_v54 = vmul.f32 %v7992_v45, %v5910_v44  ;;  %v1377_v36 = vmul.f32 %v7987_v27, %v5916_v49  ;;  %v1378_v19 = vmul.f32 %v7992_v45, %v5916_v49 }
 0x15a   :  { %3169 = vrot.lane.b32.xlu1 %v7809_v56, %s5757_s24  ;;  %v8008_v40 = vrot.slane %v7998_v30, 2  ;;  %v3538_v38 = vrot.slane %v8001_v35, 2  ;;  %v1144_v22 = vsel %vm485_vm3, %v1142_v23, %v1143_v4  ;;  %2002 = vst.msk [vmem:[#allocation3 + $0x258] sm:$0xff] %vm1854_vm1, %v7998_v30  ;;  %v1146_v51 = vsel %vm485_vm3, %v1143_v4, %v1145_v47  ;;  %v8038_v23 = vpop.f32.mrf.mxu0  ;;  %v8058_v47 = vld [vmem:[%s9746_s1 + $0x8] ss:$0 sm:$0xff]  ;;  %s5515_s1 = sshll.u32 %s9752_s7, 4  ;;  %s5516_s1 = int_to_ptr.hbm [resolvable:$true] %s5515_s1 }
 0x15b   :  { %3393 = vrot.lane.b32.xlu2 %v7972_v13, %s5758_s23  ;;  %v1218_v37 = vadd.f32 %v1144_v22, %v977_v52  ;;  %9768 = vst [vmem:[#allocation15_spill] sm:$0xff] %v8038_v23  ;;  %v1219_v52 = vadd.f32 %v1146_v51, %v978_v15  ;;  %v1497_v22 = vrot.slane %v1377_v36, 1  ;;  %v3325_v15 = vrot.slane %v7823_v50, 1  ;;  %v8070_v36 = vld [vmem:[#allocation2 + $0x100] sm:$0x3] }
 0x15c   :  { %v3156_v17 = vpop.permute.xlu1 %3155  ;;  %v8028_v39 = vsel %vm485_vm3, %v3535_v16, %v8008_v40  ;;  %v3539_v58 = vsel %vm485_vm3, %v8008_v40, %v3538_v38  ;;  %v2315_v16 = vsel %vm485_vm3, %v7441_v48, %v2314_v31  ;;  %v1379_v38 = vmul.f32 %v5613_v14, %v5916_v49 }
 0x15d   :  { %3240 = vst.msk [vmem:[#allocation3 + $0x110] sm:$0xff] %vm2442_vm6, %v3156_v17  ;;  %v3662_v2 = vld [vmem:[#allocation3 + $0x108] sm:$0xff]  ;;  %v8024_v62 = vpop.permute.xlu2 %2581  ;;  %v1332_v4 = vadd.f32 %v1300_v32, %v1218_v37  ;;  %v1333_v17 = vadd.f32 %v1301_v54, %v1219_v52  ;;  %v1498_v48 = vrot.slane %v1378_v19, 1  ;;  %v1618_v32 = vmul.f32 %v8058_v47, %v7987_v27 }
 0x15e   :  { %3464 = vst.msk [vmem:[#allocation3 + $0x110] sm:$0xff] %vm2651_vm7, %v7860_v3  ;;  %2962 = vrot.lane.b32.xlu0 %v2893_v1, %s5756_s19  ;;  %3910 = vmatmul.f32.gmra.mxu0 %v3662_v2  ;;  %v8047_v3 = vpop.f32.mrf.mxu1  ;;  %v1500_v31 = vrot.slane %v1379_v38, 1  ;;  %v1619_v50 = vmul.f32 %v8058_v47, %v7992_v45  ;;  %v1620_v57 = vmul.f32 %v8058_v47, %v5613_v14 }
 0x15f   :  { %3617 = vst.msk [vmem:[#allocation3 + $0x1f0] sm:$0xff] %vm1854_vm1, %v8028_v39  ;;  %v1499_v54 = vsel %vm243_vm0, %v1497_v22, %v1498_v48  ;;  %v1738_v52 = vrot.slane %v1618_v32, 2  ;;  %v74_v22 = vld [vmem:[%s9745_s0 + $0x148] sm:$0x3]  ;;  %v108_v14 = vmul.f32 %v7838_v24, %v5826_v5  ;;  %v187_v32 = vmul.f32 %v7843_v8, %v5828_v6 }
 0x160   :  { %9769 = vst [vmem:[#allocation16_spill] sm:$0xff] %v8047_v3  ;;  %v2949_v1 = vpop.permute.xlu0 %2948  ;;  %v1501_v2 = vsel %vm243_vm0, %v1498_v48, %v1500_v31  ;;  %v1573_v51 = vadd.f32 %v1499_v54, %v1332_v4  ;;  %v1739_v38 = vrot.slane %v1619_v50, 2  ;;  %v109_v48 = vmul.f32 %v7843_v8, %v5826_v5 }
 0x161   :  { %3618 = vst.msk [vmem:[#allocation3 + $0x208] sm:$0xff] %vm1854_vm1, %v3539_v58  ;;  %v3326_v4 = vsel %vm243_vm0, %v7939_v46, %v3325_v15  ;;  %v186_v31 = vmul.f32 %v7838_v24, %v5828_v6  ;;  %v188_v3 = vmul.f32 %v5828_v6, %v74_v22  ;;  %v310_v54 = vrot.slane %v187_v32, 1 }
 0x162   :  { %3032 = vst.msk [vmem:[#allocation3 + $0x128] sm:$0xff] %vm2233_vm5, %v2949_v1  ;;  %2384 = vrot.lane.b32.xlu1 %v2315_v16, %s5757_s24  ;;  %v1574_v16 = vadd.f32 %v1501_v2, %v1333_v17  ;;  %v1741_v1 = vrot.slane %v1620_v57, 2  ;;  %v8094_v2 = vld [vmem:[#allocation2 + $0x118] sm:$0x3]  ;;  %v140_v57 = vadd.f32 %v7915_v42, %v108_v14  ;;  %v8099_v15 = vpop.f32.mrf.mxu0  ;;  %v141_v58 = vadd.f32 %v7915_v42, %v109_v48 }
 0x163   :  { %2593 = vrot.lane.b32.xlu2 %v7612_v63, %s5758_s23  ;;  %9770 = vst [vmem:[#allocation17_spill] sm:$0xff] %v8099_v15  ;;  %v312_v14 = vrot.slane %v188_v3, 1  ;;  %v430_v48 = vmul.f32 %v5830_v7, %v74_v22  ;;  %v5568_v3 = vld [vmem:[%s9745_s0 + $0x160] sm:$0x3]  ;;  %v706_v22 = vmul.f32 %v7987_v27, %v5844_v10 }
 0x164   :  { %v2371_v37 = vpop.permute.xlu1 %2370  ;;  %v1742_v50 = vsel %vm485_vm3, %v1739_v38, %v1741_v1 }
 0x165   :  { %2455 = vst.msk [vmem:[#allocation3 + $0x120] sm:$0xff] %vm2442_vm6, %v2371_v37  ;;  %v3663_v63 = vld [vmem:[#allocation3 + $0x110] sm:$0xff]  ;;  %v8073_v19 = vpop.permute.xlu2 %3383  ;;  %v1815_v0 = vadd.f32 %v1742_v50, %v1574_v16  ;;  %v554_v28 = vrot.slane %v430_v48, 2  ;;  %v786_v48 = vmul.f32 %v5568_v3, %v5846_v11 }
 0x166   :  { %2664 = vst.msk [vmem:[#allocation3 + $0x120] sm:$0xff] %vm2651_vm7, %v7907_v29  ;;  %2177 = vrot.lane.b32.xlu0 %v7768_v59, %s5756_s19  ;;  %4023 = vmatmul.f32.gmra.mxu1 %v3663_v63  ;;  %v3691_v17 = vld [vmem:[#allocation3 + $0x1f0] sm:$0xff]  ;;  %v1740_v29 = vsel %vm485_vm3, %v1738_v52, %v1739_v38  ;;  %v428_v52 = vmul.f32 %v7838_v24, %v5830_v7  ;;  %v8108_v1 = vpop.f32.mrf.mxu1 }
 0x167   :  { %5643 = vmatmul.msk.f32.gmra.mxu2 %vm1854_vm1, %v3691_v17  ;;  %v1814_v63 = vadd.f32 %v1740_v29, %v1573_v51  ;;  %v309_v17 = vrot.slane %v186_v31, 1  ;;  %v429_v38 = vmul.f32 %v7843_v8, %v5830_v7  ;;  %9771 = vst [vmem:[#allocation18_spill] sm:$0xff] %v8108_v1  ;;  %v2897_v51 = vrot.slane %v8094_v2, 2 }
 0x168   :  { %v2164_v37 = vpop.permute.xlu0 %2163  ;;  %v1847_v31 = vmax.f32 %v1815_v0, 0.0  ;;  %v551_v24 = vrot.slane %v428_v52, 2  ;;  %v3694_v8 = vld [vmem:[#allocation3 + $0x208] sm:$0xff] }
 0x169   :  { %2247 = vst.msk [vmem:[#allocation3 + $0x138] sm:$0xff] %vm2233_vm5, %v2164_v37  ;;  %v1846_v16 = vmax.f32 %v1814_v63, 0.0  ;;  %v311_v32 = vsel %vm243_vm0, %v309_v17, %v310_v54  ;;  %v552_v29 = vrot.slane %v429_v38, 2  ;;  %v313_v37 = vsel %vm243_vm0, %v310_v54, %v312_v14 }
 0x16a   :  { %3171 = vrot.lane.b32.xlu1 %v7821_v34, %s5757_s24  ;;  %v382_v23 = vadd.f32 %v311_v32, %v140_v57  ;;  %v383_v2 = vadd.f32 %v313_v37, %v141_v58  ;;  %v707_v54 = vmul.f32 %v7992_v45, %v5844_v10  ;;  %v784_v57 = vmul.f32 %v7987_v27, %v5846_v11  ;;  %v8159_v37 = vld [vmem:[%s9745_s0 + $0x168] sm:$0xff] }
 0x16b   :  { %3395 = vrot.lane.b32.xlu2 %v3326_v4, %s5758_s23  ;;  %1921 = vst.msk [vmem:[#allocation2 + $0x139] sm:$0xff] %vm1854_vm1, %v1846_v16  ;;  %v553_v63 = vsel %vm485_vm3, %v551_v24, %v552_v29  ;;  %v9772_v17 = vrot.slane %v7551_v18, 1  ;;  %v555_v52 = vsel %vm485_vm3, %v552_v29, %v554_v28  ;;  %v8140_v16 = vpop.f32.mrf.mxu2  ;;  %v8147_v18 = vpop.f32.mrf.mxu0  ;;  %v1025_v28 = vmul.f32 %v7987_v27, %v5848_v12 }
 0x16c   :  { %v3158_v50 = vpop.permute.xlu1 %3157  ;;  %v624_v38 = vadd.f32 %v553_v63, %v382_v23  ;;  %9773 = vst [vmem:[#allocation19_spill] sm:$0xff] %v8140_v16  ;;  %v625_v14 = vadd.f32 %v555_v52, %v383_v2  ;;  %v906_v32 = vrot.slane %v784_v57, 1  ;;  %v1026_v23 = vmul.f32 %v7992_v45, %v5848_v12  ;;  %v8176_v57 = vld [vmem:[%s9745_s0 + $0x170] sm:$0xff] }
 0x16d   :  { %3241 = vst.msk [vmem:[#allocation3 + $0x128] sm:$0xff] %vm2442_vm6, %v3158_v50  ;;  %v3665_v0 = vld [vmem:[#allocation3 + $0x120] sm:$0xff]  ;;  %v8124_v4 = vpop.permute.xlu2 %2583  ;;  %v2739_v58 = vsel %vm243_vm0, %v7371_v33, %v9772_v17  ;;  %v909_v50 = vrot.slane %v786_v48, 1  ;;  %v8171_v63 = vsel %vm485_vm3, %v7829_v21, %v2897_v51  ;;  %v1028_v61 = vmul.f32 %v8159_v37, %v5848_v12 }
 0x16e   :  { %3465 = vst.msk [vmem:[#allocation3 + $0x128] sm:$0xff] %vm2651_vm7, %v7961_v20  ;;  %2964 = vrot.lane.b32.xlu0 %v7854_v43, %s5756_s19  ;;  %3913 = vmatmul.f32.gmra.mxu0 %v3665_v0  ;;  %v785_v20 = vmul.f32 %v7992_v45, %v5846_v11  ;;  %v738_v33 = vadd.f32 %v706_v22, %v624_v38  ;;  %v8161_v0 = vpop.f32.mrf.mxu1  ;;  %v9776_v22 = vrot.slane %v8070_v36, 1 }
 0x16f   :  { %5644 = vmatmul.msk.f32.gmra.mxu2 %vm1854_vm1, %v3694_v8  ;;  %1922 = vst.msk [vmem:[#allocation2 + $0x141] sm:$0xff] %vm1854_vm1, %v1847_v31  ;;  %v739_v31 = vadd.f32 %v707_v54, %v625_v14  ;;  %v1027_v8 = vmul.f32 %v5568_v3, %v5848_v12  ;;  %v1147_v3 = vrot.slane %v1025_v28, 2  ;;  %v1148_v54 = vrot.slane %v1026_v23, 2 }
 0x170   :  { %9774 = vst [vmem:[#allocation20_spill] sm:$0xff] %v8147_v18  ;;  %v2951_v24 = vpop.permute.xlu0 %2950  ;;  %v907_v29 = vrot.slane %v785_v20, 1  ;;  %v2111_v2 = vsel %vm243_vm0, %v7744_v60, %v9776_v22  ;;  %v8186_v14 = vrot.slane %v7998_v30, 1 }
 0x171   :  { %2827 = vst.msk [vmem:[#allocation3 + $0x170] sm:$0xff] %vm1854_vm1, %v2739_v58  ;;  %v1150_v51 = vrot.slane %v1027_v8, 2 }
 0x172   :  { %3033 = vst.msk [vmem:[#allocation3 + $0x140] sm:$0xff] %vm2233_vm5, %v2951_v24  ;;  %2386 = vrot.lane.b32.xlu1 %v7643_v26, %s5757_s24  ;;  %v3327_v26 = vrot.slane %v7982_v55, 1  ;;  %v8181_v17 = vld [vmem:[#allocation2 + $0x138] sm:$0xff]  ;;  %v908_v58 = vsel %vm243_vm0, %v906_v32, %v907_v29  ;;  %v910_v52 = vsel %vm243_vm0, %v907_v29, %v909_v50  ;;  %v1302_v24 = vmul.f32 %v8159_v37, %v5910_v44 }
 0x173   :  { %9775 = vst [vmem:[#allocation21_spill] sm:$0xff] %v8161_v0  ;;  %2595 = vrot.lane.b32.xlu2 %v7809_v56, %s5758_s23  ;;  %v979_v20 = vadd.f32 %v908_v58, %v738_v33  ;;  %v980_v48 = vadd.f32 %v910_v52, %v739_v31  ;;  %v3540_v23 = vrot.slane %v8181_v17, 2  ;;  %v1149_v32 = vsel %vm485_vm3, %v1147_v3, %v1148_v54  ;;  %v5616_v50 = vld [vmem:[%s9745_s0 + $0x178] sm:$0x3]  ;;  %v8209_v58 = vpop.f32.mrf.mxu2 }
 0x174   :  { %v2373_v38 = vpop.permute.xlu1 %2372  ;;  %v1151_v29 = vsel %vm485_vm3, %v1148_v54, %v1150_v51  ;;  %v1303_v33 = vmul.f32 %v8176_v57, %v5910_v44  ;;  %v2319_v31 = vrot.slane %v8070_v36, 2  ;;  %9777 = vst [vmem:[#allocation22_spill] sm:$0xff] %v8209_v58  ;;  %v3890_v36 = vpop.f32.mrf.mxu0 }
 0x175   :  { %2456 = vst.msk [vmem:[#allocation3 + $0x138] sm:$0xff] %vm2442_vm6, %v2373_v38  ;;  %v3666_v56 = vld [vmem:[#allocation3 + $0x128] sm:$0xff]  ;;  %v8191_v28 = vpop.permute.xlu2 %3385  ;;  %v1220_v3 = vadd.f32 %v1149_v32, %v979_v20  ;;  %v1221_v54 = vadd.f32 %v1151_v29, %v980_v48  ;;  %v1382_v32 = vmul.f32 %v5616_v50, %v5916_v49  ;;  %v8227_v29 = vld [vmem:[%s9749_s4] ss:$0 sm:$0xff] }
 0x176   :  { %2665 = vst.msk [vmem:[#allocation3 + $0x138] sm:$0xff] %vm2651_vm7, %v8024_v62  ;;  %2179 = vrot.lane.b32.xlu0 %v2111_v2, %s5756_s19  ;;  %4026 = vmatmul.f32.gmra.mxu1 %v3666_v56  ;;  %v8205_v8 = vld [vmem:[#allocation2 + $0x140] sm:$0xff]  ;;  %v8207_v22 = vld [vmem:[#allocation2 + $0x148] sm:$0x3]  ;;  %v1380_v62 = vmul.f32 %v8159_v37, %v5916_v49  ;;  %v1381_v2 = vmul.f32 %v8176_v57, %v5916_v49 }
 0x177   :  { %v8212_v52 = vrot.slane %v8205_v8, 2  ;;  %v3543_v51 = vrot.slane %v8207_v22, 2  ;;  %v8221_v56 = vsel %vm243_vm0, %v3327_v26, %v8186_v14  ;;  %v1334_v20 = vadd.f32 %v1302_v24, %v1220_v3  ;;  %v4003_v24 = vpop.f32.mrf.mxu1 }
 0x178   :  { %v2166_v38 = vpop.permute.xlu0 %2165  ;;  %v1335_v48 = vadd.f32 %v1303_v33, %v1221_v54  ;;  %v1502_v26 = vrot.slane %v1380_v62, 1  ;;  %v1503_v18 = vrot.slane %v1381_v2, 1  ;;  %v1505_v33 = vrot.slane %v1382_v32, 1  ;;  %2834 = vst.msk [vmem:[#allocation3 + $0x218] sm:$0xff] %vm1854_vm1, %v8221_v56 }
 0x179   :  { %9778 = vst [vmem:[#allocation23_spill] sm:$0xff] %v8212_v52  ;;  %v8232_v58 = vsel %vm485_vm3, %v3540_v23, %v8212_v52  ;;  %v3544_v0 = vsel %vm485_vm3, %v8212_v52, %v3543_v51  ;;  %v1621_v3 = vmul.f32 %v8058_v47, %v8159_v37  ;;  %v1622_v23 = vmul.f32 %v8058_v47, %v8176_v57 }
 0x17a   :  { %2248 = vst.msk [vmem:[#allocation3 + $0x150] sm:$0xff] %vm2233_vm5, %v2166_v38  ;;  %3173 = vrot.lane.b32.xlu1 %v7982_v55, %s5757_s24  ;;  %v1623_v54 = vmul.f32 %v8058_v47, %v5616_v50  ;;  %v3891_v51 = vadd.f32 %v8227_v29, %v3890_v36  ;;  %v2320_v62 = vsel %vm485_vm3, %v7624_v53, %v2319_v31  ;;  %v3330_v32 = vrot.slane %v8001_v35, 1  ;;  %v8257_v50 = vld [vmem:[%s9745_s0 + $0x160] sm:$0x3] }
 0x17b   :  { %9779 = vst [vmem:[#allocation24_spill] sm:$0xff] %v8232_v58  ;;  %3397 = vrot.lane.b32.xlu2 %v8221_v56, %s5758_s23  ;;  %v1504_v2 = vsel %vm243_vm0, %v1502_v26, %v1503_v18  ;;  %v1506_v16 = vsel %vm243_vm0, %v1503_v18, %v1505_v33  ;;  %v1743_v1 = vrot.slane %v1621_v3, 2  ;;  %v1744_v15 = vrot.slane %v1622_v23, 2  ;;  %v2510_v18 = vld [vmem:[#allocation2 + $0x130] sm:$0x3] }
 0x17c   :  { %3619 = vst.msk [vmem:[#allocation3 + $0x220] sm:$0xff] %vm1854_vm1, %v8232_v58  ;;  %v3160_v38 = vpop.permute.xlu1 %3159  ;;  %v1575_v9 = vadd.f32 %v1504_v2, %v1334_v20  ;;  %v4004_v36 = vadd.f32 %v4003_v24, %v3891_v51  ;;  %v1576_v26 = vadd.f32 %v1506_v16, %v1335_v48  ;;  %v1746_v35 = vrot.slane %v1623_v54, 2  ;;  %v4116_v16 = vpop.f32.mrf.mxu2 }
 0x17d   :  { %3620 = vst.msk [vmem:[#allocation3 + $0x238] sm:$0xff] %vm1854_vm1, %v3544_v0  ;;  %v3668_v53 = vld [vmem:[#allocation3 + $0x138] sm:$0xff]  ;;  %v8260_v31 = vpop.permute.xlu2 %2585  ;;  %v8262_v0 = vld [vmem:[#allocation2 + $0x118] sm:$0x3]  ;;  %v110_v20 = vmul.f32 %v7987_v27, %v5826_v5  ;;  %v111_v24 = vmul.f32 %v7992_v45, %v5826_v5  ;;  %v189_v33 = vmul.f32 %v7987_v27, %v5828_v6  ;;  %v1745_v48 = vsel %vm485_vm3, %v1743_v1, %v1744_v15 }
 0x17e   :  { %3242 = vst.msk [vmem:[#allocation3 + $0x140] sm:$0xff] %vm2442_vm6, %v3160_v38  ;;  %2966 = vrot.lane.b32.xlu0 %v8171_v63, %s5756_s19  ;;  %3916 = vmatmul.f32.gmra.mxu0 %v3668_v53  ;;  %v1747_v3 = vsel %vm485_vm3, %v1744_v15, %v1746_v35  ;;  %v191_v63 = vmul.f32 %v5828_v6, %v8257_v50  ;;  %v2115_v54 = vrot.slane %v8262_v0, 1  ;;  %v3893_v53 = vpop.f32.mrf.mxu0  ;;  %v2902_v1 = vrot.slane %v2510_v18, 2  ;;  %v8370_v38 = vld [vmem:[%s9745_s0 + $0x188] sm:$0xff] }
 0x17f   :  { %3466 = vst.msk [vmem:[#allocation3 + $0x140] sm:$0xff] %vm2651_vm7, %v8073_v19  ;;  %v190_v19 = vmul.f32 %v7992_v45, %v5828_v6  ;;  %v1816_v51 = vadd.f32 %v1745_v48, %v1575_v9  ;;  %v1817_v2 = vadd.f32 %v1747_v3, %v1576_v26  ;;  %v314_v59 = vrot.slane %v189_v33, 1 }
 0x180   :  { %v2953_v23 = vpop.permute.xlu0 %2952  ;;  %v8283_v35 = vadd.f32 %v4116_v16, %v4004_v36  ;;  %v142_v58 = vadd.f32 %v7915_v42, %v110_v20  ;;  %v317_v9 = vrot.slane %v191_v63, 1  ;;  %v3331_v26 = vsel %vm243_vm0, %v8186_v14, %v3330_v32  ;;  %v5571_v63 = vld [vmem:[%s9745_s0 + $0x178] sm:$0x3] }
 0x181   :  { %3034 = vst.msk [vmem:[#allocation3 + $0x158] sm:$0xff] %vm2233_vm5, %v2953_v23  ;;  %v315_v15 = vrot.slane %v190_v19, 1  ;;  %v1848_v52 = vmax.f32 %v1816_v51, 0.0  ;;  %v1849_v48 = vmax.f32 %v1817_v2, 0.0  ;;  %v143_v18 = vadd.f32 %v7915_v42, %v111_v24 }
 0x182   :  { %2388 = vrot.lane.b32.xlu1 %v2320_v62, %s5757_s24  ;;  %v8295_v33 = vadd.f32 %v8227_v29, %v3893_v53  ;;  %v8307_v32 = vsel %vm485_vm3, %v8008_v40, %v2902_v1  ;;  %v431_v24 = vmul.f32 %v7987_v27, %v5830_v7  ;;  %v432_v16 = vmul.f32 %v7992_v45, %v5830_v7 }
 0x183   :  { %v3697_v60 = vld [vmem:[#allocation3 + $0x220] sm:$0xff]  ;;  %2597 = vrot.lane.b32.xlu2 %v7821_v34, %s5758_s23  ;;  %v316_v36 = vsel %vm243_vm0, %v314_v59, %v315_v15  ;;  %1923 = vst.msk [vmem:[#allocation2 + $0x151] sm:$0xff] %vm1854_vm1, %v1848_v52  ;;  %v318_v59 = vsel %vm243_vm0, %v315_v15, %v317_v9  ;;  %v433_v23 = vmul.f32 %v5830_v7, %v8257_v50 }
 0x184   :  { %5645 = vmatmul.msk.f32.gmra.mxu2 %vm1854_vm1, %v3697_v60  ;;  %v2375_v62 = vpop.permute.xlu1 %2374  ;;  %v8299_v60 = vsel %vm243_vm0, %v7939_v46, %v2115_v54  ;;  %v384_v19 = vadd.f32 %v316_v36, %v142_v58  ;;  %v3700_v27 = vld [vmem:[#allocation3 + $0x238] sm:$0xff]  ;;  %1924 = vst.msk [vmem:[#allocation2 + $0x159] sm:$0xff] %vm1854_vm1, %v1849_v48  ;;  %v385_v45 = vadd.f32 %v318_v59, %v143_v18  ;;  %v556_v54 = vrot.slane %v431_v24, 2  ;;  %v8348_v59 = vpop.f32.mrf.mxu2 }
 0x185   :  { %2457 = vst.msk [vmem:[#allocation3 + $0x150] sm:$0xff] %vm2442_vm6, %v2375_v62  ;;  %v8303_v20 = vpop.permute.xlu2 %3387  ;;  %v708_v58 = vmul.f32 %v8159_v37, %v5844_v10  ;;  %v709_v2 = vmul.f32 %v8176_v57, %v5844_v10  ;;  %v787_v53 = vmul.f32 %v8159_v37, %v5846_v11  ;;  %v788_v1 = vmul.f32 %v8176_v57, %v5846_v11 }
 0x186   :  { %v3669_v34 = vld [vmem:[#allocation3 + $0x140] sm:$0xff]  ;;  %2666 = vst.msk [vmem:[#allocation3 + $0x150] sm:$0xff] %vm2651_vm7, %v8124_v4  ;;  %2181 = vrot.lane.b32.xlu0 %v7972_v13, %s5756_s19  ;;  %v557_v4 = vrot.slane %v432_v16, 2  ;;  %v559_v15 = vrot.slane %v433_v23, 2  ;;  %v789_v9 = vmul.f32 %v5571_v63, %v5846_v11  ;;  %v1029_v62 = vmul.f32 %v8176_v57, %v5848_v12 }
 0x187   :  { %4029 = vmatmul.f32.gmra.mxu1 %v3669_v34  ;;  %v911_v18 = vrot.slane %v787_v53, 1  ;;  %v912_v36 = vrot.slane %v788_v1, 1  ;;  %v8346_v34 = vpop.f32.mrf.mxu1 }
 0x188   :  { %v2168_v51 = vpop.permute.xlu0 %2167  ;;  %v558_v50 = vsel %vm485_vm3, %v556_v54, %v557_v4  ;;  %v560_v16 = vsel %vm485_vm3, %v557_v4, %v559_v15  ;;  %v914_v23 = vrot.slane %v789_v9, 1  ;;  %v1030_v54 = vmul.f32 %v5571_v63, %v5848_v12 }
 0x189   :  { %2249 = vst.msk [vmem:[#allocation3 + $0x168] sm:$0xff] %vm2233_vm5, %v2168_v51  ;;  %v626_v48 = vadd.f32 %v558_v50, %v384_v19  ;;  %v8358_v19 = vld [vmem:[%s9745_s0 + $0x180] sm:$0xff]  ;;  %v627_v50 = vadd.f32 %v560_v16, %v385_v45  ;;  %v913_v63 = vsel %vm243_vm0, %v911_v18, %v912_v36 }
 0x18a   :  { %3175 = vrot.lane.b32.xlu1 %v7998_v30, %s5757_s24  ;;  %v8351_v24 = vld [vmem:[#allocation2 + $0x150] sm:$0xff]  ;;  %v915_v9 = vsel %vm243_vm0, %v912_v36, %v914_v23  ;;  %v1155_v52 = vrot.slane %v1030_v54, 2  ;;  %v1304_v36 = vmul.f32 %v8358_v19, %v5910_v44 }
 0x18b   :  { %3399 = vrot.lane.b32.xlu2 %v3331_v26, %s5758_s23  ;;  %v3545_v53 = vrot.slane %v8351_v24, 2  ;;  %v740_v26 = vadd.f32 %v708_v58, %v626_v48  ;;  %v3896_v3 = vpop.f32.mrf.mxu0  ;;  %v8376_v45 = vld [vmem:[#allocation2 + $0x158] sm:$0xff]  ;;  %v8378_v58 = vld [vmem:[#allocation2 + $0x160] sm:$0x3]  ;;  %v741_v48 = vadd.f32 %v709_v2, %v627_v50  ;;  %v5619_v54 = vld [vmem:[%s9745_s0 + $0x190] sm:$0x3] }
 0x18c   :  { %5646 = vmatmul.msk.f32.gmra.mxu2 %vm1854_vm1, %v3700_v27  ;;  %v1152_v27 = vrot.slane %v1028_v61, 2  ;;  %v3162_v51 = vpop.permute.xlu1 %3161  ;;  %v1153_v61 = vrot.slane %v1029_v62, 2  ;;  %v8383_v62 = vrot.slane %v8376_v45, 2  ;;  %v3548_v16 = vrot.slane %v8378_v58, 2 }
 0x18d   :  { %3243 = vst.msk [vmem:[#allocation3 + $0x158] sm:$0xff] %vm2442_vm6, %v3162_v51  ;;  %v3671_v4 = vld [vmem:[#allocation3 + $0x150] sm:$0xff]  ;;  %v8363_v15 = vpop.permute.xlu2 %2587  ;;  %v981_v18 = vadd.f32 %v913_v63, %v740_v26  ;;  %v3897_v51 = vadd.f32 %v8227_v29, %v3896_v3  ;;  %v982_v50 = vadd.f32 %v915_v9, %v741_v48  ;;  %v1384_v3 = vmul.f32 %v8370_v38, %v5916_v49 }
 0x18e   :  { %3467 = vst.msk [vmem:[#allocation3 + $0x158] sm:$0xff] %vm2651_vm7, %v8191_v28  ;;  %2968 = vrot.lane.b32.xlu0 %v8028_v39, %s5756_s19  ;;  %3919 = vmatmul.f32.gmra.mxu0 %v3671_v4  ;;  %v1154_v28 = vsel %vm485_vm3, %v1152_v27, %v1153_v61  ;;  %v1156_v23 = vsel %vm485_vm3, %v1153_v61, %v1155_v52  ;;  %v2324_v9 = vrot.slane %v8262_v0, 2 }
 0x18f   :  { %9780 = vst [vmem:[#allocation25_spill] sm:$0xff] %v8383_v62  ;;  %v1222_v26 = vadd.f32 %v1154_v28, %v981_v18  ;;  %v1305_v4 = vmul.f32 %v8370_v38, %v5910_v44  ;;  %v8397_v63 = vsel %vm485_vm3, %v3545_v53, %v8383_v62  ;;  %v3549_v52 = vsel %vm485_vm3, %v8383_v62, %v3548_v16 }
 0x190   :  { %v2955_v2 = vpop.permute.xlu0 %2954  ;;  %v1383_v27 = vmul.f32 %v8358_v19, %v5916_v49  ;;  %3621 = vst.msk [vmem:[#allocation3 + $0x250] sm:$0xff] %vm1854_vm1, %v8397_v63  ;;  %v1223_v61 = vadd.f32 %v1156_v23, %v982_v50  ;;  %v1385_v48 = vmul.f32 %v5619_v54, %v5916_v49  ;;  %v1508_v28 = vrot.slane %v1384_v3, 1 }
 0x191   :  { %3035 = vst.msk [vmem:[#allocation3 + $0x170] sm:$0xff] %vm2233_vm5, %v2955_v2  ;;  %v1336_v53 = vadd.f32 %v1304_v36, %v1222_v26  ;;  %v1625_v2 = vmul.f32 %v8058_v47, %v8370_v38  ;;  %v1626_v50 = vmul.f32 %v8058_v47, %v5619_v54  ;;  %v4007_v26 = vadd.f32 %v8346_v34, %v8295_v33 }
 0x192   :  { %2390 = vrot.lane.b32.xlu1 %v7854_v43, %s5757_s24  ;;  %3622 = vst.msk [vmem:[#allocation3 + $0x268] sm:$0xff] %vm1854_vm1, %v3549_v52  ;;  %v1507_v16 = vrot.slane %v1383_v27, 1  ;;  %v1624_v43 = vmul.f32 %v8058_v47, %v8358_v19  ;;  %v1337_v23 = vadd.f32 %v1305_v4, %v1223_v61  ;;  %v1510_v36 = vrot.slane %v1385_v48, 1 }
 0x193   :  { %v4009_v18 = vpop.f32.mrf.mxu1  ;;  %2599 = vrot.lane.b32.xlu2 %v7982_v55, %s5758_s23  ;;  %v4122_v55 = vpop.f32.mrf.mxu2  ;;  %v1749_v13 = vrot.slane %v1625_v2, 2  ;;  %v9781_v54 = vmov 0.0   ;;  %v1751_v61 = vrot.slane %v1626_v50, 2  ;;  %v192_v2 = vmul.f32 %v8159_v37, %v5828_v6 }
 0x194   :  { %v4010_v1 = vadd.f32 %v4009_v18, %v3897_v51  ;;  %v2377_v0 = vpop.permute.xlu1 %2376  ;;  %v1509_v3 = vsel %vm243_vm0, %v1507_v16, %v1508_v28  ;;  %v1748_v46 = vrot.slane %v1624_v43, 2  ;;  %v1511_v33 = vsel %vm243_vm0, %v1508_v28, %v1510_v36  ;;  %4502 = vst.msk [vmem:[#allocation4] sm:$0xff] %vm4501_vm8, %v9781_v54 }
 0x195   :  { %2458 = vst.msk [vmem:[#allocation3 + $0x168] sm:$0xff] %vm2442_vm6, %v2377_v0  ;;  %v3672_v52 = vld [vmem:[#allocation3 + $0x158] sm:$0xff]  ;;  %v8422_v27 = vpop.permute.xlu2 %3389  ;;  %v1577_v34 = vadd.f32 %v1509_v3, %v1336_v53  ;;  %v1578_v51 = vadd.f32 %v1511_v33, %v1337_v23  ;;  %v9784_v16 = vrot.slane %v8181_v17, 1  ;;  %v113_v43 = vmul.f32 %v8176_v57, %v5826_v5 }
 0x196   :  { %v4123_v62 = vadd.f32 %v4122_v55, %v4010_v1  ;;  %2667 = vst.msk [vmem:[#allocation3 + $0x168] sm:$0xff] %vm2651_vm7, %v8260_v31  ;;  %2183 = vrot.lane.b32.xlu0 %v8299_v60, %s5756_s19  ;;  %4032 = vmatmul.f32.gmra.mxu1 %v3672_v52  ;;  %v1750_v4 = vsel %vm485_vm3, %v1748_v46, %v1749_v13  ;;  %v9782_v1 = vrot.slane %v7712_v41, 1  ;;  %v9783_v60 = vrot.slane %v8205_v8, 1  ;;  %v8470_v52 = vld [vmem:[#allocation2 + $0x130] sm:$0x3] }
 0x197   :  { %4506 = vst.msk [vmem:[#allocation4 + $0x90] sm:$0xff] %vm4501_vm8, %v9781_v54  ;;  %v1818_v28 = vadd.f32 %v1750_v4, %v1577_v34  ;;  %v112_v46 = vmul.f32 %v8159_v37, %v5826_v5  ;;  %v3703_v41 = vld [vmem:[#allocation3 + $0x250] sm:$0xff]  ;;  %v193_v0 = vmul.f32 %v8176_v57, %v5828_v6  ;;  %v9785_v23 = vmax.f32 %v8283_v35, 0.0 }
 0x198   :  { %v2744_v31 = vsel %vm243_vm0, %v7554_v25, %v9782_v1  ;;  %v4206_v48 = vmax.f32 %v4123_v62, 0.0  ;;  %v2170_v18 = vpop.permute.xlu0 %2169  ;;  %v3334_v53 = vsel %vm243_vm0, %v9784_v16, %v9783_v60  ;;  %v1752_v25 = vsel %vm485_vm3, %v1749_v13, %v1751_v61  ;;  %v80_v62 = vld [vmem:[%s9745_s0 + $0x178] sm:$0x3]  ;;  %5647 = vmatmul.msk.f32.gmra.mxu2 %vm1854_vm1, %v3703_v41  ;;  %4511 = vst.msk [vmem:[#allocation4 + $0x20] sm:$0x1] %vm4509_vm14, %v9781_v54 }
 0x199   :  { %2250 = vst.msk [vmem:[#allocation3 + $0x180] sm:$0xff] %vm2233_vm5, %v2170_v18  ;;  %v1819_v13 = vadd.f32 %v1752_v25, %v1578_v51  ;;  %v1850_v50 = vmax.f32 %v1818_v28, 0.0  ;;  %v8464_v5 = vadd.f32 %v8348_v59, %v4007_v26  ;;  %v2325_v55 = vsel %vm485_vm3, %v7829_v21, %v2324_v9  ;;  %v3706_v60 = vld [vmem:[#allocation3 + $0x268] sm:$0xff] }
 0x19a   :  { %v4234_v36 = vmax.f32 %v9785_v23, %v4206_v48  ;;  %3177 = vrot.lane.b32.xlu1 %v8181_v17, %s5757_s24  ;;  %2829 = vst.msk [vmem:[#allocation3 + $0x1a0] sm:$0xff] %vm1854_vm1, %v2744_v31  ;;  %v3335_v35 = vrot.slane %v8207_v22, 1  ;;  %v144_v51 = vadd.f32 %v7915_v42, %v112_v46  ;;  %v194_v59 = vmul.f32 %v5828_v6, %v80_v62  ;;  %v5574_v23 = vld [vmem:[%s9745_s0 + $0x190] sm:$0x3] }
 0x19b   :  { %3401 = vrot.lane.b32.xlu2 %v3334_v53, %s5758_s23  ;;  %v1851_v34 = vmax.f32 %v1819_v13, 0.0  ;;  %1925 = vst.msk [vmem:[#allocation2 + $0x169] sm:$0xff] %vm1854_vm1, %v1850_v50  ;;  %v3899_v26 = vpop.f32.mrf.mxu0  ;;  %v145_v21 = vadd.f32 %v7915_v42, %v113_v43  ;;  %v319_v22 = vrot.slane %v192_v2, 1  ;;  %v320_v9 = vrot.slane %v193_v0, 1 }
 0x19c   :  { %v4257_v3 = vrot.slane %v4234_v36, 1  ;;  %v3164_v33 = vpop.permute.xlu1 %3163  ;;  %v434_v1 = vmul.f32 %v8159_v37, %v5830_v7  ;;  %v2120_v6 = vrot.slane %v8470_v52, 1  ;;  %v322_v48 = vrot.slane %v194_v59, 1  ;;  %4519 = vst.msk [vmem:[#allocation4 + $0x29] sm:$0x1] %vm4509_vm14, %v9781_v54 }
 0x19d   :  { %3244 = vst.msk [vmem:[#allocation3 + $0x170] sm:$0xff] %vm2442_vm6, %v3164_v33  ;;  %v3674_v4 = vld [vmem:[#allocation3 + $0x168] sm:$0xff]  ;;  %v8476_v61 = vpop.permute.xlu2 %2589  ;;  %v435_v42 = vmul.f32 %v8176_v57, %v5830_v7  ;;  %v4205_v18 = vmax.f32 %v8464_v5, 0.0  ;;  %v321_v37 = vsel %vm243_vm0, %v319_v22, %v320_v9  ;;  %v3900_v53 = vadd.f32 %v8227_v29, %v3899_v26 }
 0x19e   :  { %v8481_v31 = vmax.f32 %v4234_v36, %v4257_v3  ;;  %3468 = vst.msk [vmem:[#allocation3 + $0x170] sm:$0xff] %vm2651_vm7, %v8303_v20  ;;  %2970 = vrot.lane.b32.xlu0 %v8307_v32, %s5756_s19  ;;  %3922 = vmatmul.f32.gmra.mxu0 %v3674_v4  ;;  %v436_v20 = vmul.f32 %v5830_v7, %v80_v62  ;;  %v561_v16 = vrot.slane %v434_v1, 2  ;;  %v9786_v46 = vrot.slane %v8205_v8, 1 }
 0x19f   :  { %1926 = vst.msk [vmem:[#allocation2 + $0x171] sm:$0xff] %vm1854_vm1, %v1851_v34  ;;  %v323_v41 = vsel %vm243_vm0, %v320_v9, %v322_v48  ;;  %v386_v25 = vadd.f32 %v321_v37, %v144_v51  ;;  %v562_v2 = vrot.slane %v435_v42, 2  ;;  %v8508_v62 = vsel %vm243_vm0, %v8186_v14, %v2120_v6 }
 0x1a0   :  { %v4321_v32 = vrot.slane %v8481_v31, 1  ;;  %v2957_v28 = vpop.permute.xlu0 %2956  ;;  %v8499_v57 = vsel %vm243_vm0, %v9786_v46, %v3335_v35  ;;  %v387_v43 = vadd.f32 %v323_v41, %v145_v21  ;;  %v564_v0 = vrot.slane %v436_v20, 2  ;;  %5648 = vmatmul.msk.f32.gmra.mxu2 %vm1854_vm1, %v3706_v60  ;;  %4510 = vst.msk [vmem:[#allocation4 + $0x10] sm:$0x1] %vm4509_vm14, %v9781_v54 }
 0x1a1   :  { %3036 = vst.msk [vmem:[#allocation3 + $0x188] sm:$0xff] %vm2233_vm5, %v2957_v28  ;;  %v4337_v7 = vrot.slane %v8481_v31, 2  ;;  %v710_v36 = vmul.f32 %v8358_v19, %v5844_v10  ;;  %v790_v13 = vmul.f32 %v8358_v19, %v5846_v11  ;;  %v711_v33 = vmul.f32 %v8370_v38, %v5844_v10 }
 0x1a2   :  { %2392 = vrot.lane.b32.xlu1 %v2325_v55, %s5757_s24  ;;  %v8517_v35 = vld [vmem:[#allocation2 + $0x168] sm:$0xff]  ;;  %v563_v55 = vsel %vm485_vm3, %v561_v16, %v562_v2  ;;  %v565_v3 = vsel %vm485_vm3, %v562_v2, %v564_v0  ;;  %v791_v34 = vmul.f32 %v8370_v38, %v5846_v11  ;;  %v4442_v51 = vsel %vm4440_vm9, %v8481_v31, %v4321_v32 }
 0x1a3   :  { %v4012_v50 = vpop.f32.mrf.mxu1  ;;  %2601 = vrot.lane.b32.xlu2 %v7998_v30, %s5758_s23  ;;  %v3550_v4 = vrot.slane %v8517_v35, 2  ;;  %v628_v21 = vadd.f32 %v563_v55, %v386_v25  ;;  %2007 = vst.msk [vmem:[#allocation3 + $0x2d0] sm:$0xff] %vm1854_vm1, %v8517_v35  ;;  %v4125_v30 = vpop.f32.mrf.mxu2  ;;  %v629_v10 = vadd.f32 %v565_v3, %v387_v43  ;;  %v792_v1 = vmul.f32 %v5574_v23, %v5846_v11  ;;  %v5620_v43 = vld [vmem:[%s9745_s0 + $0x198] sm:$0xff] }
 0x1a4   :  { %v4013_v59 = vadd.f32 %v4012_v50, %v3900_v53  ;;  %v2379_v26 = vpop.permute.xlu1 %2378  ;;  %v916_v6 = vrot.slane %v790_v13, 1  ;;  %v917_v48 = vrot.slane %v791_v34, 1  ;;  %v1031_v16 = vmul.f32 %v8358_v19, %v5848_v12  ;;  %4512 = vst.msk [vmem:[#allocation4 + $0x30] sm:$0x1] %vm4509_vm14, %v9781_v54 }
 0x1a5   :  { %2459 = vst.msk [vmem:[#allocation3 + $0x180] sm:$0xff] %vm2442_vm6, %v2379_v26  ;;  %v3675_v22 = vld [vmem:[#allocation3 + $0x170] sm:$0xff]  ;;  %v8533_v9 = vpop.permute.xlu2 %3391  ;;  %v742_v20 = vadd.f32 %v710_v36, %v628_v21  ;;  %v743_v53 = vadd.f32 %v711_v33, %v629_v10  ;;  %v919_v41 = vrot.slane %v792_v1, 1  ;;  %v1032_v19 = vmul.f32 %v8370_v38, %v5848_v12 }
 0x1a6   :  { %v4126_v42 = vadd.f32 %v4125_v30, %v4013_v59  ;;  %2668 = vst.msk [vmem:[#allocation3 + $0x180] sm:$0xff] %vm2651_vm7, %v8363_v15  ;;  %2185 = vrot.lane.b32.xlu0 %v8221_v56, %s5756_s19  ;;  %4035 = vmatmul.f32.gmra.mxu1 %v3675_v22  ;;  %v8540_v60 = vld [vmem:[#allocation2 + $0x170] sm:$0xff]  ;;  %v8542_v37 = vld [vmem:[#allocation2 + $0x178] sm:$0x3]  ;;  %v918_v15 = vsel %vm243_vm0, %v916_v6, %v917_v48  ;;  %v1157_v13 = vrot.slane %v1031_v16, 2  ;;  %v5621_v38 = vld [vmem:[%s9745_s0 + $0x1a0] sm:$0xff] }
 0x1a7   :  { %v8547_v11 = vrot.slane %v8540_v60, 2  ;;  %v3553_v32 = vrot.slane %v8542_v37, 2  ;;  %2008 = vst.msk [vmem:[#allocation3 + $0x2e8] sm:$0xff] %vm1854_vm1, %v8540_v60  ;;  %v983_v25 = vadd.f32 %v918_v15, %v742_v20  ;;  %v1033_v36 = vmul.f32 %v5574_v23, %v5848_v12  ;;  %v5622_v12 = vld [vmem:[%s9745_s0 + $0x1a8] sm:$0x3]  ;;  %v5079_v16 = vld [vmem:[%s9750_s5 + $0x238] sm:$0xff] }
 0x1a8   :  { %v4207_v28 = vmax.f32 %v4126_v42, 0.0  ;;  %v2172_v46 = vpop.permute.xlu0 %2171  ;;  %v4451_v50 = vsel %vm4449_vm10, %v4442_v51, %v4337_v7  ;;  %v920_v3 = vsel %vm243_vm0, %v917_v48, %v919_v41  ;;  %v1158_v33 = vrot.slane %v1032_v19, 2  ;;  %5280 = vmatpush.msrb.mxu2 %v5079_v16  ;;  %v5074_v16 = vld [vmem:[%s9750_s5 + $0x210] sm:$0xff]  ;;  %4513 = vst.msk [vmem:[#allocation4 + $0x40] sm:$0x1] %vm4509_vm14, %v9781_v54 }
 0x1a9   :  { %2251 = vst.msk [vmem:[#allocation3 + $0x198] sm:$0xff] %vm2233_vm5, %v2172_v46  ;;  %v8561_v2 = vsel %vm485_vm3, %v3550_v4, %v8547_v11  ;;  %v3554_v0 = vsel %vm485_vm3, %v8547_v11, %v3553_v32  ;;  %v984_v5 = vadd.f32 %v920_v3, %v743_v53  ;;  %v1306_v7 = vmul.f32 %v5620_v43, %v5910_v44 }
 0x1aa   :  { %v4235_v55 = vmax.f32 %v4205_v18, %v4207_v28  ;;  %3623 = vst.msk [vmem:[#allocation3 + $0x280] sm:$0xff] %vm1854_vm1, %v8561_v2  ;;  %3179 = vrot.lane.b32.xlu1 %v8205_v8, %s5757_s24  ;;  %v1160_v18 = vrot.slane %v1033_v36, 2  ;;  %v1386_v23 = vmul.f32 %v5620_v43, %v5916_v49  ;;  %v1159_v59 = vsel %vm485_vm3, %v1157_v13, %v1158_v33 }
 0x1ab   :  { %3624 = vst.msk [vmem:[#allocation3 + $0x298] sm:$0xff] %vm1854_vm1, %v3554_v0  ;;  %3403 = vrot.lane.b32.xlu2 %v8499_v57, %s5758_s23  ;;  %v1307_v26 = vmul.f32 %v5621_v38, %v5910_v44  ;;  %v1387_v4 = vmul.f32 %v5621_v38, %v5916_v49  ;;  %v1224_v22 = vadd.f32 %v1159_v59, %v983_v25  ;;  %v4353_v6 = vrot.slane %v8481_v31, 3  ;;  %v9787_v44 = vld [vmem:[#allocation24_spill] sm:$0xff] }
 0x1ac   :  { %v4289_v34 = vrot.slane %v4235_v55, 1  ;;  %v3166_v51 = vpop.permute.xlu1 %3165  ;;  %v1161_v57 = vsel %vm485_vm3, %v1158_v33, %v1160_v18  ;;  %v1388_v10 = vmul.f32 %v5622_v12, %v5916_v49  ;;  %v1512_v1 = vrot.slane %v1386_v23, 1  ;;  %v5078_v25 = vld [vmem:[%s9750_s5 + $0x230] sm:$0xff]  ;;  %4514 = vst.msk [vmem:[#allocation4 + $0x50] sm:$0x1] %vm4509_vm14, %v9781_v54 }
 0x1ad   :  { %3245 = vst.msk [vmem:[#allocation3 + $0x188] sm:$0xff] %vm2442_vm6, %v3166_v51  ;;  %v3677_v21 = vld [vmem:[#allocation3 + $0x180] sm:$0xff]  ;;  %v8589_v30 = vpop.permute.xlu2 %2591  ;;  %v1225_v42 = vadd.f32 %v1161_v57, %v984_v5  ;;  %v1513_v20 = vrot.slane %v1387_v4, 1  ;;  %v1338_v32 = vadd.f32 %v1306_v7, %v1224_v22  ;;  %v1627_v49 = vmul.f32 %v8058_v47, %v5620_v43  ;;  %5281 = vmatpush.msrb.mxu2 %v5078_v25  ;;  %v5076_v57 = vld [vmem:[%s9750_s5 + $0x220] sm:$0xff]  ;;  %v8684_v25 = vpop.f32.mrf.mxu0 }
 0x1ae   :  { %v4305_v48 = vmax.f32 %v4235_v55, %v4289_v34  ;;  %3469 = vst.msk [vmem:[#allocation3 + $0x188] sm:$0xff] %vm2651_vm7, %v8422_v27  ;;  %2972 = vrot.lane.b32.xlu0 %v9787_v44, %s5756_s19  ;;  %3925 = vmatmul.f32.gmra.mxu0 %v3677_v21  ;;  %v1515_v53 = vrot.slane %v1388_v10, 1  ;;  %v1628_v31 = vmul.f32 %v8058_v47, %v5621_v38  ;;  %v8620_v34 = vld [vmem:[#allocation2 + $0x148] sm:$0x3]  ;;  %v3337_v22 = vrot.slane %v8351_v24, 1 }
 0x1af   :  { %v4460_v15 = vsel %vm4458_vm11, %v4451_v50, %v4353_v6  ;;  %v1339_v0 = vadd.f32 %v1307_v26, %v1225_v42  ;;  %v1514_v36 = vsel %vm243_vm0, %v1512_v1, %v1513_v20  ;;  %v1629_v13 = vmul.f32 %v8058_v47, %v5622_v12  ;;  %4515 = vst.msk [vmem:[#allocation4 + $0x60] sm:$0x1] %vm4509_vm14, %v9781_v54 }
 0x1b0   :  { %v4377_v27 = vrot.slane %v4305_v48, 4  ;;  %v4393_v28 = vrot.slane %v4305_v48, 5  ;;  %v4409_v46 = vrot.slane %v4305_v48, 6  ;;  %v2959_v41 = vpop.permute.xlu0 %2958  ;;  %v1516_v43 = vsel %vm243_vm0, %v1513_v20, %v1515_v53  ;;  %v5075_v20 = vld [vmem:[%s9750_s5 + $0x218] sm:$0xff]  ;;  %4516 = vst.msk [vmem:[#allocation4 + $0x70] sm:$0x1] %vm4509_vm14, %v9781_v54 }
 0x1b1   :  { %v3709_v19 = vld [vmem:[#allocation3 + $0x280] sm:$0xff]  ;;  %3037 = vst.msk [vmem:[#allocation3 + $0x1a0] sm:$0xff] %vm2233_vm5, %v2959_v41  ;;  %v1579_v50 = vadd.f32 %v1514_v36, %v1338_v32  ;;  %v1753_v55 = vrot.slane %v1627_v49, 2  ;;  %v1754_v3 = vrot.slane %v1628_v31, 2  ;;  %v4425_v33 = vrot.slane %v4305_v48, 7  ;;  %v9788_v32 = vld [vmem:[#allocation23_spill] sm:$0xff] }
 0x1b2   :  { %v4469_v38 = vsel %vm4467_vm12, %v4460_v15, %v4377_v27  ;;  %5649 = vmatmul.msk.f32.gmra.mxu2 %vm1854_vm1, %v3709_v19  ;;  %2394 = vrot.lane.b32.xlu1 %v8028_v39, %s5757_s24  ;;  %v1580_v18 = vadd.f32 %v1516_v43, %v1339_v0  ;;  %v1756_v7 = vrot.slane %v1629_v13, 2  ;;  %v5077_v39 = vld [vmem:[%s9750_s5 + $0x228] sm:$0xff]  ;;  %v2907_v6 = vrot.slane %v8620_v34, 2  ;;  %v9789_v15 = vld [vmem:[#allocation10_spill] sm:$0xff]  ;;  %v8694_v43 = vpop.f32.mrf.mxu2  ;;  %4517 = vst.msk [vmem:[#allocation4 + $0x80] sm:$0x1] %vm4509_vm14, %v9781_v54 }
 0x1b3   :  { %v4478_v5 = vsel %vm4476_vm13, %v4469_v38, %v4393_v28  ;;  %2603 = vrot.lane.b32.xlu2 %v8181_v17, %s5758_s23  ;;  %v1755_v23 = vsel %vm485_vm3, %v1753_v55, %v1754_v3  ;;  %v3712_v10 = vld [vmem:[#allocation3 + $0x298] sm:$0xff]  ;;  %5282 = vmatpush.msrb.mxu2 %v5077_v39  ;;  %v8641_v48 = vrot.slane %v8376_v45, 1  ;;  %v2329_v49 = vrot.slane %v8470_v52, 2  ;;  %2830 = vst.msk [vmem:[#allocation3 + $0x1b8] sm:$0xff] %vm1854_vm1, %v9789_v15  ;;  %v8670_v27 = vld [vmem:[#allocation2 + $0x140] sm:$0xff]  ;;  %v4015_v55 = vpop.f32.mrf.mxu1 }
 0x1b4   :  { %v4486_v47 = vsel %vm485_vm3, %v4478_v5, %v4409_v46  ;;  %v2381_v12 = vpop.permute.xlu1 %2380  ;;  %v1757_v26 = vsel %vm485_vm3, %v1754_v3, %v1756_v7  ;;  %v1820_v17 = vadd.f32 %v1755_v23, %v1579_v50  ;;  %v2908_v53 = vsel %vm485_vm3, %v9788_v32, %v2907_v6  ;;  %v5073_v28 = vld [vmem:[%s9750_s5 + $0x208] sm:$0xff]  ;;  %v5072_v41 = vld [vmem:[%s9750_s5 + $0x200] sm:$0xff]  ;;  %2004 = vst.msk [vmem:[#allocation3 + $0x288] sm:$0xff] %vm1854_vm1, %v8670_v27 }
 0x1b5   :  { %v4494_v51 = vsel %vm243_vm0, %v4486_v47, %v4425_v33  ;;  %2460 = vst.msk [vmem:[#allocation3 + $0x198] sm:$0xff] %vm2442_vm6, %v2381_v12  ;;  %v3678_v59 = vld [vmem:[#allocation3 + $0x188] sm:$0xff]  ;;  %v8628_v4 = vpop.permute.xlu2 %3393  ;;  %v1821_v21 = vadd.f32 %v1757_v26, %v1580_v18  ;;  %5283 = vmatpush.msrb.mxu2 %v5076_v57  ;;  %v2330_v19 = vsel %vm485_vm3, %v8008_v40, %v2329_v49  ;;  %v2123_v36 = vrot.slane %v8670_v27, 1  ;;  %v8766_v32 = vld [vmem:[#allocation2 + $0x148] sm:$0x3] }
 0x1b6   :  { %4527 = vst.msk [vmem:[#allocation4 + $0x21] sm:$0xff] %vm4501_vm8, %v4494_v51  ;;  %2187 = vrot.lane.b32.xlu0 %v8508_v62, %s5756_s19  ;;  %4038 = vmatmul.f32.gmra.mxu1 %v3678_v59  ;;  %v1852_v1 = vmax.f32 %v1820_v17, 0.0  ;;  %v8643_v62 = vld [vmem:[#allocation2 + $0x138] sm:$0xff]  ;;  %v3340_v7 = vrot.slane %v8378_v58, 1  ;;  %v3903_v15 = vadd.f32 %v8227_v29, %v8684_v25 }
 0x1b7   :  { %2669 = vst.msk [vmem:[#allocation3 + $0x198] sm:$0xff] %vm2651_vm7, %v8476_v61  ;;  %v1853_v42 = vmax.f32 %v1821_v21, 0.0  ;;  %v8653_v61 = vsel %vm243_vm0, %v3337_v22, %v8641_v48  ;;  %5284 = vmatpush.msrb.mxu2 %v5075_v20  ;;  %v2122_v0 = vrot.slane %v8643_v62, 1  ;;  %v2331_v6 = vrot.slane %v8643_v62, 2 }
 0x1b8   :  { %v2174_v44 = vpop.permute.xlu0 %2173  ;;  %2003 = vst.msk [vmem:[#allocation3 + $0x270] sm:$0xff] %vm1854_vm1, %v8643_v62  ;;  %v3341_v26 = vsel %vm243_vm0, %v8641_v48, %v3340_v7  ;;  %v8807_v7 = vld [vmem:[#allocation2 + $0x160] sm:$0x3] }
 0x1b9   :  { %2252 = vst.msk [vmem:[#allocation3 + $0x1b0] sm:$0xff] %vm2233_vm5, %v2174_v44  ;;  %5285 = vmatpush.msrb.mxu2 %v5074_v16  ;;  %v2124_v5 = vsel %vm243_vm0, %v2122_v0, %v2123_v36  ;;  %v2332_v44 = vrot.slane %v8670_v27, 2 }
 0x1ba   :  { %5650 = vmatmul.msk.f32.gmra.mxu2 %vm1854_vm1, %v3712_v10  ;;  %1927 = vst.msk [vmem:[#allocation2 + $0x181] sm:$0xff] %vm1854_vm1, %v1852_v1  ;;  %3181 = vrot.lane.b32.xlu1 %v8351_v24, %s5757_s24  ;;  %v8752_v10 = vpop.f32.mrf.mxu2 }
 0x1bb   :  { %1928 = vst.msk [vmem:[#allocation2 + $0x189] sm:$0xff] %vm1854_vm1, %v1853_v42  ;;  %3405 = vrot.lane.b32.xlu2 %v8653_v61, %s5758_s23  ;;  %5286 = vmatpush.msrb.mxu2 %v5073_v28 }
 0x1bc   :  { %v3168_v31 = vpop.permute.xlu1 %3167  ;;  %4518 = vst.msk [vmem:[#allocation4 + $0x19] sm:$0x1] %vm4509_vm14, %v9781_v54 }
 0x1bd   :  { %3246 = vst.msk [vmem:[#allocation3 + $0x1a0] sm:$0xff] %vm2442_vm6, %v3168_v31  ;;  %v8676_v46 = vpop.permute.xlu2 %2593  ;;  %5287 = vmatpush.msrb.mxu2 %v5072_v41  ;;  %v8736_v58 = vld [vmem:[#allocation4 + $0x20] sm:$0xff]  ;;  %v4833_v21 = vld [vmem:[#allocation4 + $0x28] sm:$0x3]  ;;  %v2333_v41 = vsel %vm485_vm3, %v2331_v6, %v2332_v44 }
 0x1be   :  { %3470 = vst.msk [vmem:[#allocation3 + $0x1a0] sm:$0xff] %vm2651_vm7, %v8533_v9  ;;  %2974 = vrot.lane.b32.xlu0 %v2908_v53, %s5756_s19  ;;  %v3680_v52 = vld [vmem:[#allocation3 + $0x198] sm:$0xff]  ;;  %v4928_v59 = vrot.slane %v8736_v58, 2  ;;  %v4580_v17 = vrot.slane %v8736_v58, 1  ;;  %v8745_v57 = vld [vmem:[#allocation4 + $0x28] sm:$0x3] }
 0x1bf   :  { %3928 = vmatmul.f32.gmra.mxu0 %v3680_v52  ;;  %v4929_v22 = vrot.slane %v4833_v21, 2  ;;  %v4873_v42 = vrot.slane %v4833_v21, 1  ;;  %4520 = vst.msk [vmem:[#allocation4 + $0x39] sm:$0x1] %vm4509_vm14, %v9781_v54 }
 0x1c0   :  { %v2961_v9 = vpop.permute.xlu0 %2960  ;;  %4521 = vst.msk [vmem:[#allocation4 + $0x49] sm:$0x1] %vm4509_vm14, %v9781_v54 }
 0x1c1   :  { %v8696_v13 = vld [vmem:[#allocation2 + $0x180] sm:$0xff]  ;;  %3038 = vst.msk [vmem:[#allocation3 + $0x1b8] sm:$0xff] %vm2233_vm5, %v2961_v9  ;;  %v4930_v20 = vsel %vm485_vm3, %v4928_v59, %v4929_v22  ;;  %v8775_v31 = vsel %vm243_vm0, %v4580_v17, %v4873_v42 }
 0x1c2   :  { %v8699_v40 = vld [vmem:[#allocation2 + $0x188] sm:$0xff]  ;;  %v3555_v38 = vrot.slane %v8696_v13, 2  ;;  %v8702_v50 = vld [vmem:[#allocation2 + $0x190] sm:$0x3]  ;;  %2396 = vrot.lane.b32.xlu1 %v2330_v19, %s5757_s24  ;;  %4960 = vst.msk [vmem:[#allocation5 + $0x20] sm:$0xff] %vm4501_vm8, %v4930_v20  ;;  %v2125_v19 = vrot.slane %v8766_v32, 1 }
 0x1c3   :  { %v8708_v3 = vrot.slane %v8699_v40, 2  ;;  %v3558_v33 = vrot.slane %v8702_v50, 2  ;;  %2605 = vrot.lane.b32.xlu2 %v8205_v8, %s5758_s23  ;;  %v8733_v8 = vpop.f32.mrf.mxu0  ;;  %v8754_v1 = vpop.f32.mrf.mxu1  ;;  %v5717_v9 = vld [vmem:[#allocation2 + $0x100] sm:$0x3]  ;;  %4522 = vst.msk [vmem:[#allocation4 + $0x59] sm:$0x1] %vm4509_vm14, %v9781_v54 }
 0x1c4   :  { %v2383_v18 = vpop.permute.xlu1 %2382  ;;  %4523 = vst.msk [vmem:[#allocation4 + $0x69] sm:$0x1] %vm4509_vm14, %v9781_v54 }
 0x1c5   :  { %v8723_v47 = vsel %vm485_vm3, %v3555_v38, %v8708_v3  ;;  %v3559_v12 = vsel %vm485_vm3, %v8708_v3, %v3558_v33  ;;  %2461 = vst.msk [vmem:[#allocation3 + $0x1b0] sm:$0xff] %vm2442_vm6, %v2383_v18  ;;  %v3681_v23 = vld [vmem:[#allocation3 + $0x1a0] sm:$0xff]  ;;  %v8728_v39 = vpop.permute.xlu2 %3395  ;;  %v2748_v38 = vrot.slane %v5717_v9, 1 }
 0x1c6   :  { %3625 = vst.msk [vmem:[#allocation3 + $0x2b0] sm:$0xff] %vm1854_vm1, %v8723_v47  ;;  %2189 = vrot.lane.b32.xlu0 %v2124_v5, %s5756_s19  ;;  %4041 = vmatmul.f32.gmra.mxu1 %v3681_v23  ;;  %v8811_v23 = vrot.slane %v8540_v60, 1 }
 0x1c7   :  { %3626 = vst.msk [vmem:[#allocation3 + $0x2c8] sm:$0xff] %vm1854_vm1, %v3559_v12  ;;  %v3342_v12 = vrot.slane %v8517_v35, 1 }
 0x1c8   :  { %2670 = vst.msk [vmem:[#allocation3 + $0x1b0] sm:$0xff] %vm2651_vm7, %v8589_v30  ;;  %v2176_v51 = vpop.permute.xlu0 %2175  ;;  %v4581_v30 = vrot.slane %v8745_v57, 1 }
 0x1c9   :  { %2253 = vst.msk [vmem:[#allocation3 + $0x1c8] sm:$0xff] %vm2233_vm5, %v2176_v51  ;;  %v4134_v51 = vpop.f32.mrf.mxu2  ;;  %v8830_v6 = vsel %vm243_vm0, %v3342_v12, %v8811_v23  ;;  %v4972_v20 = vld [vmem:[#allocation5 + $0x20] sm:$0xff] }
 0x1ca   :  { %3183 = vrot.lane.b32.xlu1 %v8376_v45, %s5757_s24  ;;  %v8769_v53 = vsel %vm243_vm0, %v4580_v17, %v4581_v30  ;;  %4524 = vst.msk [vmem:[#allocation4 + $0x79] sm:$0x1] %vm4509_vm14, %v9781_v54  ;;  %v9790_v17 = vld [vmem:[#allocation9_spill] sm:$0xff] }
 0x1cb   :  { %3407 = vrot.lane.b32.xlu2 %v3341_v26, %s5758_s23  ;;  %v3908_v28 = vpop.f32.mrf.mxu0  ;;  %4525 = vst.msk [vmem:[#allocation4 + $0x89] sm:$0x1] %vm4509_vm14, %v9781_v54  ;;  %v2749_v21 = vsel %vm243_vm0, %v9790_v17, %v2748_v38  ;;  %v9793_v17 = vld [vmem:[#allocation11_spill] sm:$0xff] }
 0x1cc   :  { %v3170_v16 = vpop.permute.xlu1 %3169  ;;  %v3909_v25 = vadd.f32 %v8227_v29, %v3908_v28  ;;  %4848 = vst.msk [vmem:[#allocation5 + $0x18] sm:$0xff] %vm4501_vm8, %v8736_v58  ;;  %v2334_v28 = vrot.slane %v8766_v32, 2 }
 0x1cd   :  { %v3715_v49 = vld [vmem:[#allocation3 + $0x2b0] sm:$0xff]  ;;  %v8772_v62 = vpop.permute.xlu2 %2595  ;;  %3247 = vst.msk [vmem:[#allocation3 + $0x1b8] sm:$0xff] %vm2442_vm6, %v3170_v16  ;;  %v9791_v16 = vld [vmem:[#allocation25_spill] sm:$0xff] }
 0x1ce   :  { %5651 = vmatmul.msk.f32.gmra.mxu2 %vm1854_vm1, %v3715_v49  ;;  %2976 = vrot.lane.b32.xlu0 %v8397_v63, %s5756_s19  ;;  %v4016_v63 = vadd.f32 %v4015_v55, %v3903_v15  ;;  %v3718_v33 = vld [vmem:[#allocation3 + $0x2c8] sm:$0xff]  ;;  %v2126_v55 = vsel %vm243_vm0, %v2123_v36, %v2125_v19  ;;  %3471 = vst.msk [vmem:[#allocation3 + $0x1b8] sm:$0xff] %vm2651_vm7, %v8628_v4 }
 0x1cf   :  { %v3683_v52 = vld [vmem:[#allocation3 + $0x1b0] sm:$0xff]  ;;  %2831 = vst.msk [vmem:[#allocation3 + $0x1d0] sm:$0xff] %vm1854_vm1, %v2749_v21 }
 0x1d0   :  { %3931 = vmatmul.f32.gmra.mxu0 %v3683_v52  ;;  %v2963_v0 = vpop.permute.xlu0 %2962  ;;  %v4129_v26 = vadd.f32 %v8694_v43, %v4016_v63  ;;  %v2912_v43 = vrot.slane %v8807_v7, 2  ;;  %v8844_v52 = vld [vmem:[#allocation2 + $0x150] sm:$0xff]  ;;  %4552 = vst.msk [vmem:[#allocation5 + $0x50] sm:$0xff] %vm4501_vm8, %v8736_v58 }
 0x1d1   :  { %3039 = vst.msk [vmem:[#allocation3 + $0x1d0] sm:$0xff] %vm2233_vm5, %v2963_v0  ;;  %v8855_v0 = vld [vmem:[%s9749_s4] ss:$0 sm:$0xff]  ;;  %v2127_v9 = vrot.slane %v8844_v52, 1 }
 0x1d2   :  { %2398 = vrot.lane.b32.xlu1 %v2333_v41, %s5757_s24  ;;  %v4208_v42 = vmax.f32 %v4129_v26, 0.0  ;;  %v2913_v15 = vsel %vm485_vm3, %v9791_v16, %v2912_v43  ;;  %v8846_v41 = vld [vmem:[#allocation2 + $0x158] sm:$0xff]  ;;  %v3906_v32 = vadd.f32 %v8855_v0, %v8733_v8  ;;  %2005 = vst.msk [vmem:[#allocation3 + $0x2a0] sm:$0xff] %vm1854_vm1, %v8844_v52  ;;  %v3345_v43 = vrot.slane %v8542_v37, 1 }
 0x1d3   :  { %v4021_v5 = vpop.f32.mrf.mxu1  ;;  %2607 = vrot.lane.b32.xlu2 %v8351_v24, %s5758_s23  ;;  %v2128_v38 = vrot.slane %v8846_v41, 1  ;;  %2006 = vst.msk [vmem:[#allocation3 + $0x2b8] sm:$0xff] %vm1854_vm1, %v8846_v41 }
 0x1d4   :  { %v4022_v29 = vadd.f32 %v4021_v5, %v3909_v25  ;;  %v2385_v18 = vpop.permute.xlu1 %2384  ;;  %v4019_v5 = vadd.f32 %v8754_v1, %v3906_v32  ;;  %v5720_v32 = vld [vmem:[#allocation2 + $0x130] sm:$0x3]  ;;  %2838 = vst.msk [vmem:[#allocation3 + $0x278] sm:$0xff] %vm1854_vm1, %v8653_v61 }
 0x1d5   :  { %v8816_v36 = vpop.permute.xlu2 %3397  ;;  %2462 = vst.msk [vmem:[#allocation3 + $0x1c8] sm:$0xff] %vm2442_vm6, %v2385_v18  ;;  %v9792_v18 = vld [vmem:[#allocation14_spill] sm:$0xff]  ;;  %v2129_v1 = vsel %vm243_vm0, %v2127_v9, %v2128_v38  ;;  %v2336_v9 = vrot.slane %v8844_v52, 2 }
 0x1d6   :  { %5652 = vmatmul.msk.f32.gmra.mxu2 %vm1854_vm1, %v3718_v33  ;;  %v4135_v24 = vadd.f32 %v4134_v51, %v4022_v29  ;;  %2191 = vrot.lane.b32.xlu0 %v2126_v55, %s5756_s19  ;;  %2671 = vst.msk [vmem:[#allocation3 + $0x1c8] sm:$0xff] %vm2651_vm7, %v8676_v46  ;;  %v2335_v46 = vsel %vm485_vm3, %v2332_v44, %v2334_v28  ;;  %v5719_v33 = vld [vmem:[#allocation2 + $0x118] sm:$0x3]  ;;  %v3684_v55 = vld [vmem:[#allocation3 + $0x1b8] sm:$0xff] }
 0x1d7   :  { %v2753_v8 = vrot.slane %v5719_v33, 1  ;;  %4044 = vmatmul.f32.gmra.mxu1 %v3684_v55  ;;  %2832 = vst.msk [vmem:[#allocation3 + $0x1e8] sm:$0xff] %vm1854_vm1, %v9792_v18  ;;  %v3346_v28 = vsel %vm243_vm0, %v8811_v23, %v3345_v43  ;;  %v2337_v33 = vrot.slane %v8846_v41, 2  ;;  %v4638_v18 = vrot.slane %v8745_v57, 2 }
 0x1d8   :  { %v4210_v22 = vmax.f32 %v4135_v24, 0.0  ;;  %v2178_v30 = vpop.permute.xlu0 %2177  ;;  %2840 = vst.msk [vmem:[#allocation3 + $0x2a8] sm:$0xff] %vm1854_vm1, %v8830_v6 }
 0x1d9   :  { %2254 = vst.msk [vmem:[#allocation3 + $0x1e0] sm:$0xff] %vm2233_vm5, %v2178_v30  ;;  %v2754_v21 = vsel %vm243_vm0, %v9793_v17, %v2753_v8  ;;  %v3347_v8 = vrot.slane %v8696_v13, 1 }
 0x1da   :  { %3185 = vrot.lane.b32.xlu1 %v8517_v35, %s5757_s24  ;;  %v4236_v49 = vmax.f32 %v4208_v42, %v4210_v22  ;;  %v4137_v22 = vpop.f32.mrf.mxu2  ;;  %v4674_v42 = vld [vmem:[#allocation4 + $0x28] sm:$0x3]  ;;  %2833 = vst.msk [vmem:[#allocation3 + $0x200] sm:$0xff] %vm1854_vm1, %v2754_v21 }
 0x1db   :  { %3409 = vrot.lane.b32.xlu2 %v8830_v6, %s5758_s23  ;;  %v3911_v25 = vpop.f32.mrf.mxu0  ;;  %4504 = vst.msk [vmem:[#allocation4 + $0x8] sm:$0x3] %vm4503_vm15, %v9781_v54 }
 0x1dc   :  { %v3172_v4 = vpop.permute.xlu1 %3171  ;;  %v4258_v63 = vrot.slane %v4236_v49, 1  ;;  %v3912_v27 = vadd.f32 %v8855_v0, %v3911_v25  ;;  %4507 = vst.msk [vmem:[#allocation4 + $0x98] sm:$0x3] %vm4503_vm15, %v9781_v54  ;;  %v3100_v54 = vld [vmem:[#allocation2 + $0x1a8] sm:$0x3] }
 0x1dd   :  { %v8850_v19 = vpop.permute.xlu2 %2597  ;;  %3248 = vst.msk [vmem:[#allocation3 + $0x1d0] sm:$0xff] %vm2442_vm6, %v3172_v4  ;;  %v3686_v51 = vld [vmem:[#allocation3 + $0x1c8] sm:$0xff]  ;;  %v4739_v4 = vrot.slane %v4674_v42, 1 }
 0x1de   :  { %5655 = vmatmul.msk.f32.vlgmr.msrb.gmra.mxu2 %vm4501_vm8, %v4972_v20  ;;  %2978 = vrot.lane.b32.xlu0 %v2913_v15, %s5756_s19  ;;  %3472 = vst.msk [vmem:[#allocation3 + $0x1d0] sm:$0xff] %vm2651_vm7, %v8728_v39  ;;  %v8876_v44 = vmax.f32 %v4236_v49, %v4258_v63  ;;  %v4132_v39 = vadd.f32 %v8752_v10, %v4019_v5  ;;  %v4673_v10 = vld [vmem:[#allocation4 + $0x20] sm:$0xff]  ;;  %v2758_v63 = vrot.slane %v5720_v32, 1  ;;  %v8916_v5 = vrot.slane %v8699_v40, 1 }
 0x1df   :  { %3934 = vmatmul.f32.gmra.mxu0 %v3686_v51 }
 0x1e0   :  { %v2965_v29 = vpop.permute.xlu0 %2964  ;;  %v4322_v20 = vrot.slane %v8876_v44, 1  ;;  %v4209_v37 = vmax.f32 %v4132_v39, 0.0  ;;  %v4338_v25 = vrot.slane %v8876_v44, 2  ;;  %v2759_v61 = vsel %vm243_vm0, %v8186_v14, %v2758_v63 }
 0x1e1   :  { %3040 = vst.msk [vmem:[#allocation3 + $0x1e8] sm:$0xff] %vm2233_vm5, %v2965_v29  ;;  %v8920_v29 = vld [vmem:[#allocation2 + $0x160] sm:$0x3]  ;;  %v4354_v57 = vrot.slane %v8876_v44, 3  ;;  %v3349_v17 = vsel %vm243_vm0, %v3347_v8, %v8916_v5  ;;  %v4639_v14 = vsel %vm485_vm3, %v4928_v59, %v4638_v18  ;;  %v9004_v18 = vld [vmem:[#allocation2 + $0x198] sm:$0xff] }
 0x1e2   :  { %2400 = vrot.lane.b32.xlu1 %v2335_v46, %s5757_s24  ;;  %v4443_v56 = vsel %vm4440_vm9, %v8876_v44, %v4322_v20  ;;  %2835 = vst.msk [vmem:[#allocation3 + $0x230] sm:$0xff] %vm1854_vm1, %v2759_v61 }
 0x1e3   :  { %v4024_v12 = vpop.f32.mrf.mxu1  ;;  %2609 = vrot.lane.b32.xlu2 %v8376_v45, %s5758_s23  ;;  %v4452_v39 = vsel %vm4449_vm10, %v4443_v56, %v4338_v25  ;;  %2842 = vst.msk [vmem:[#allocation3 + $0x2d8] sm:$0xff] %vm1854_vm1, %v3349_v17 }
 0x1e4   :  { %v4025_v26 = vadd.f32 %v4024_v12, %v3912_v27  ;;  %v2387_v24 = vpop.permute.xlu1 %2386  ;;  %v4461_v44 = vsel %vm4458_vm11, %v4452_v39, %v4354_v57  ;;  %4665 = vst.msk [vmem:[#allocation5 + $0x58] sm:$0xff] %vm4501_vm8, %v4639_v14 }
 0x1e5   :  { %2463 = vst.msk [vmem:[#allocation3 + $0x1e0] sm:$0xff] %vm2442_vm6, %v2387_v24  ;;  %v8892_v30 = vpop.permute.xlu2 %3399  ;;  %v3687_v49 = vld [vmem:[#allocation3 + $0x1d0] sm:$0xff]  ;;  %v2130_v24 = vrot.slane %v8920_v29, 1 }
 0x1e6   :  { %v4138_v45 = vadd.f32 %v4137_v22, %v4025_v26  ;;  %2672 = vst.msk [vmem:[#allocation3 + $0x1e0] sm:$0xff] %vm2651_vm7, %v8772_v62  ;;  %2193 = vrot.lane.b32.xlu0 %v2129_v1, %s5756_s19  ;;  %4047 = vmatmul.f32.gmra.mxu1 %v3687_v49  ;;  %v4738_v62 = vrot.slane %v4673_v10, 1  ;;  %v2338_v26 = vsel %vm485_vm3, %v2336_v9, %v2337_v33  ;;  %v8961_v49 = vld [vmem:[#allocation2 + $0x178] sm:$0x3] }
 0x1e7   :  { %v2131_v58 = vsel %vm243_vm0, %v2128_v38, %v2130_v24 }
 0x1e8   :  { %v4211_v16 = vmax.f32 %v4138_v45, 0.0  ;;  %v2180_v15 = vpop.permute.xlu0 %2179  ;;  %v4740_v1 = vsel %vm243_vm0, %v4738_v62, %v4739_v4  ;;  %v2339_v62 = vrot.slane %v8920_v29, 2  ;;  %v3350_v29 = vrot.slane %v8702_v50, 1 }
 0x1e9   :  { %2255 = vst.msk [vmem:[#allocation3 + $0x1f8] sm:$0xff] %vm2233_vm5, %v2180_v15 }
 0x1ea   :  { %v4237_v46 = vmax.f32 %v4209_v37, %v4211_v16  ;;  %3187 = vrot.lane.b32.xlu1 %v8540_v60, %s5757_s24  ;;  %4768 = vst.msk [vmem:[#allocation5 + $0x38] sm:$0xff] %vm4501_vm8, %v4740_v1  ;;  %v2340_v8 = vsel %vm485_vm3, %v2337_v33, %v2339_v62  ;;  %v5721_v1 = vld [vmem:[#allocation2 + $0x138] sm:$0xff] }
 0x1eb   :  { %3411 = vrot.lane.b32.xlu2 %v3346_v28, %s5758_s23  ;;  %v3914_v56 = vpop.f32.mrf.mxu0  ;;  %v2760_v39 = vrot.slane %v5721_v1, 1 }
 0x1ec   :  { %v4290_v55 = vrot.slane %v4237_v46, 1  ;;  %v3174_v52 = vpop.permute.xlu1 %3173 }
 0x1ed   :  { %3249 = vst.msk [vmem:[#allocation3 + $0x1e8] sm:$0xff] %vm2442_vm6, %v3174_v52  ;;  %v3689_v27 = vld [vmem:[#allocation3 + $0x1e0] sm:$0xff]  ;;  %v8926_v12 = vpop.permute.xlu2 %2599 }
 0x1ee   :  { %v4306_v51 = vmax.f32 %v4237_v46, %v4290_v55  ;;  %3473 = vst.msk [vmem:[#allocation3 + $0x1e8] sm:$0xff] %vm2651_vm7, %v8816_v36  ;;  %2980 = vrot.lane.b32.xlu0 %v8561_v2, %s5756_s19  ;;  %3937 = vmatmul.f32.gmra.mxu0 %v3689_v27  ;;  %v9006_v27 = vld [vmem:[#allocation2 + $0x1a0] sm:$0xff] }
 0x1ef   :  { %v3561_v24 = vrot.slane %v9006_v27, 2 }
 0x1f0   :  { %v4378_v36 = vrot.slane %v4306_v51, 4  ;;  %v4394_v21 = vrot.slane %v4306_v51, 5  ;;  %v2967_v43 = vpop.permute.xlu0 %2966  ;;  %v4410_v22 = vrot.slane %v4306_v51, 6  ;;  %v4426_v10 = vrot.slane %v4306_v51, 7  ;;  %v9008_v51 = vld [vmem:[#allocation2 + $0x140] sm:$0xff] }
 0x1f1   :  { %3041 = vst.msk [vmem:[#allocation3 + $0x200] sm:$0xff] %vm2233_vm5, %v2967_v43  ;;  %v2761_v61 = vrot.slane %v9008_v51, 1 }
 0x1f2   :  { %v4470_v45 = vsel %vm4467_vm12, %v4461_v44, %v4378_v36  ;;  %2402 = vrot.lane.b32.xlu1 %v2338_v26, %s5757_s24 }
 0x1f3   :  { %v4479_v42 = vsel %vm4476_vm13, %v4470_v45, %v4394_v21  ;;  %2611 = vrot.lane.b32.xlu2 %v8517_v35, %s5758_s23  ;;  %v2917_v35 = vrot.slane %v8961_v49, 2  ;;  %v4027_v41 = vpop.f32.mrf.mxu1  ;;  %v2762_v50 = vsel %vm243_vm0, %v2760_v39, %v2761_v61 }
 0x1f4   :  { %v4487_v59 = vsel %vm485_vm3, %v4479_v42, %v4410_v22  ;;  %v2389_v20 = vpop.permute.xlu1 %2388  ;;  %2836 = vst.msk [vmem:[#allocation3 + $0x248] sm:$0xff] %vm1854_vm1, %v2762_v50  ;;  %v2763_v50 = vrot.slane %v8620_v34, 1 }
 0x1f5   :  { %v4495_v37 = vsel %vm243_vm0, %v4487_v59, %v4426_v10  ;;  %2464 = vst.msk [vmem:[#allocation3 + $0x1f8] sm:$0xff] %vm2442_vm6, %v2389_v20  ;;  %v3690_v16 = vld [vmem:[#allocation3 + $0x1e8] sm:$0xff]  ;;  %v8965_v15 = vpop.permute.xlu2 %3401  ;;  %v2918_v28 = vsel %vm485_vm3, %v8547_v11, %v2917_v35 }
 0x1f6   :  { %4528 = vst.msk [vmem:[#allocation4 + $0x31] sm:$0xff] %vm4501_vm8, %v4495_v37  ;;  %2195 = vrot.lane.b32.xlu0 %v2131_v58, %s5756_s19  ;;  %4050 = vmatmul.f32.gmra.mxu1 %v3690_v16  ;;  %v9045_v58 = vld [vmem:[#allocation2 + $0x178] sm:$0x3] }
 0x1f7   :  { %2673 = vst.msk [vmem:[#allocation3 + $0x1f8] sm:$0xff] %vm2651_vm7, %v8850_v19  ;;  %v2344_v51 = vrot.slane %v9045_v58, 2 }
 0x1f8   :  { %v2182_v38 = vpop.permute.xlu0 %2181 }
 0x1f9   :  { %2256 = vst.msk [vmem:[#allocation3 + $0x210] sm:$0xff] %vm2233_vm5, %v2182_v38 }
 0x1fa   :  { %3189 = vrot.lane.b32.xlu1 %v8696_v13, %s5757_s24 }
 0x1fb   :  { %3413 = vrot.lane.b32.xlu2 %v3349_v17, %s5758_s23  ;;  %v9023_v17 = vpop.f32.mrf.mxu0 }
 0x1fc   :  { %v3176_v4 = vpop.permute.xlu1 %3175 }
 0x1fd   :  { %3250 = vst.msk [vmem:[#allocation3 + $0x200] sm:$0xff] %vm2442_vm6, %v3176_v4  ;;  %v8980_v32 = vpop.permute.xlu2 %2601  ;;  %v8982_v19 = vld [vmem:[#allocation4 + $0x30] sm:$0xff]  ;;  %v4835_v63 = vld [vmem:[#allocation4 + $0x38] sm:$0x3]  ;;  %v2135_v4 = vrot.slane %v9045_v58, 1 }
 0x1fe   :  { %3474 = vst.msk [vmem:[#allocation3 + $0x200] sm:$0xff] %vm2651_vm7, %v8892_v30  ;;  %2982 = vrot.lane.b32.xlu0 %v2918_v28, %s5756_s19  ;;  %v3692_v25 = vld [vmem:[#allocation3 + $0x1f8] sm:$0xff]  ;;  %v4931_v46 = vrot.slane %v8982_v19, 2  ;;  %v4932_v9 = vrot.slane %v4835_v63, 2  ;;  %v8996_v30 = vpop.f32.mrf.mxu2  ;;  %v4875_v14 = vrot.slane %v8982_v19, 1  ;;  %v4876_v44 = vrot.slane %v4835_v63, 1 }
 0x1ff   :  { %3940 = vmatmul.f32.gmra.mxu0 %v3692_v25  ;;  %4849 = vst.msk [vmem:[#allocation5 + $0x40] sm:$0xff] %vm4501_vm8, %v8982_v19  ;;  %v4675_v59 = vld [vmem:[#allocation4 + $0x30] sm:$0xff]  ;;  %v4676_v20 = vld [vmem:[#allocation4 + $0x38] sm:$0x3]  ;;  %v3915_v28 = vadd.f32 %v8855_v0, %v3914_v56  ;;  %v2136_v56 = vsel %vm243_vm0, %v8811_v23, %v2135_v4 }
 0x200   :  { %v2969_v55 = vpop.permute.xlu0 %2968  ;;  %v4933_v52 = vsel %vm485_vm3, %v4931_v46, %v4932_v9  ;;  %4553 = vst.msk [vmem:[#allocation5 + $0x78] sm:$0xff] %vm4501_vm8, %v8982_v19  ;;  %v9050_v37 = vsel %vm243_vm0, %v4875_v14, %v4876_v44  ;;  %v4741_v63 = vrot.slane %v4675_v59, 1  ;;  %v4742_v25 = vrot.slane %v4676_v20, 1  ;;  %v4535_v59 = vld [vmem:[#allocation4 + $0x8] sm:$0x3] }
 0x201   :  { %3042 = vst.msk [vmem:[#allocation3 + $0x218] sm:$0xff] %vm2233_vm5, %v2969_v55 }
 0x202   :  { %2404 = vrot.lane.b32.xlu1 %v2340_v8, %s5757_s24  ;;  %4961 = vst.msk [vmem:[#allocation5 + $0x48] sm:$0xff] %vm4501_vm8, %v4933_v52  ;;  %v4028_v8 = vadd.f32 %v4027_v41, %v3915_v28  ;;  %v3352_v41 = vrot.slane %v9004_v18, 1  ;;  %v4575_v28 = vrot.slane %v4535_v59, 1 }
 0x203   :  { %2613 = vrot.lane.b32.xlu2 %v8540_v60, %s5758_s23  ;;  %v3560_v60 = vrot.slane %v9004_v18, 2 }
 0x204   :  { %v2391_v33 = vpop.permute.xlu1 %2390  ;;  %v9041_v45 = vpop.f32.mrf.mxu1  ;;  %v4141_v1 = vadd.f32 %v8996_v30, %v4028_v8  ;;  %v3563_v30 = vrot.slane %v3100_v54, 2 }
 0x205   :  { %2465 = vst.msk [vmem:[#allocation3 + $0x210] sm:$0xff] %vm2442_vm6, %v2391_v33  ;;  %v3693_v57 = vld [vmem:[#allocation3 + $0x200] sm:$0xff]  ;;  %v9012_v26 = vpop.permute.xlu2 %3403  ;;  %v3562_v36 = vsel %vm485_vm3, %v3560_v60, %v3561_v24 }
 0x206   :  { %2674 = vst.msk [vmem:[#allocation3 + $0x210] sm:$0xff] %vm2651_vm7, %v8926_v12  ;;  %2197 = vrot.lane.b32.xlu0 %v8830_v6, %s5756_s19  ;;  %4053 = vmatmul.f32.gmra.mxu1 %v3693_v57  ;;  %v3351_v12 = vsel %vm243_vm0, %v8916_v5, %v3350_v29  ;;  %v9032_v6 = vld [vmem:[#allocation4 + $0x38] sm:$0x3]  ;;  %v9039_v22 = vpop.f32.mrf.mxu2  ;;  %v9075_v33 = vld [vmem:[#allocation2 + $0x190] sm:$0x3]  ;;  %v4212_v44 = vmax.f32 %v4141_v1, 0.0  ;;  %v3564_v34 = vsel %vm485_vm3, %v3561_v24, %v3563_v30 }
 0x207   :  { %3627 = vst.msk [vmem:[#allocation3 + $0x2e0] sm:$0xff] %vm1854_vm1, %v3562_v36  ;;  %v4641_v10 = vrot.slane %v9032_v6, 2  ;;  %v9086_v60 = vld [vmem:[#allocation4] sm:$0xff]  ;;  %v2922_v36 = vrot.slane %v9075_v33, 2 }
 0x208   :  { %v2184_v21 = vpop.permute.xlu0 %2183  ;;  %4550 = vst.msk [vmem:[#allocation5] sm:$0xff] %vm4501_vm8, %v9086_v60 }
 0x209   :  { %2257 = vst.msk [vmem:[#allocation3 + $0x228] sm:$0xff] %vm2233_vm5, %v2184_v21  ;;  %v4977_v43 = vld [vmem:[#allocation5 + $0x48] sm:$0xff]  ;;  %v4642_v38 = vsel %vm485_vm3, %v4931_v46, %v4641_v10  ;;  %v4743_v46 = vsel %vm243_vm0, %v4741_v63, %v4742_v25 }
 0x20a   :  { %5656 = vmatmul.msk.f32.gmra.mxu2 %vm4501_vm8, %v4977_v43  ;;  %3191 = vrot.lane.b32.xlu1 %v8699_v40, %s5757_s24  ;;  %4666 = vst.msk [vmem:[#allocation5 + $0x80] sm:$0xff] %vm4501_vm8, %v4642_v38  ;;  %v2764_v43 = vsel %vm243_vm0, %v2761_v61, %v2763_v50  ;;  %v4574_v38 = vrot.slane %v9086_v60, 1 }
 0x20b   :  { %3415 = vrot.lane.b32.xlu2 %v3351_v12, %s5758_s23  ;;  %v3920_v62 = vpop.f32.mrf.mxu0  ;;  %4769 = vst.msk [vmem:[#allocation5 + $0x60] sm:$0xff] %vm4501_vm8, %v4743_v46  ;;  %v3355_v46 = vrot.slane %v3100_v54, 1 }
 0x20c   :  { %v3178_v42 = vpop.permute.xlu1 %3177  ;;  %2837 = vst.msk [vmem:[#allocation3 + $0x260] sm:$0xff] %vm1854_vm1, %v2764_v43  ;;  %v4576_v25 = vsel %vm243_vm0, %v4574_v38, %v4575_v28 }
 0x20d   :  { %3251 = vst.msk [vmem:[#allocation3 + $0x218] sm:$0xff] %vm2442_vm6, %v3178_v42  ;;  %v3695_v16 = vld [vmem:[#allocation3 + $0x210] sm:$0xff]  ;;  %v9053_v35 = vpop.permute.xlu2 %2603  ;;  %v2923_v42 = vsel %vm485_vm3, %v8708_v3, %v2922_v36 }
 0x20e   :  { %3475 = vst.msk [vmem:[#allocation3 + $0x218] sm:$0xff] %vm2651_vm7, %v8965_v15  ;;  %2984 = vrot.lane.b32.xlu0 %v8723_v47, %s5756_s19  ;;  %3943 = vmatmul.f32.gmra.mxu0 %v3695_v16  ;;  %v3921_v15 = vadd.f32 %v8855_v0, %v3920_v62  ;;  %v4146_v29 = vpop.f32.mrf.mxu2  ;;  %v2345_v16 = vsel %vm485_vm3, %v8547_v11, %v2344_v51 }
 0x20f   :  { %3628 = vst.msk [vmem:[#allocation3 + $0x2f8] sm:$0xff] %vm1854_vm1, %v3564_v34 }
 0x210   :  { %v2971_v9 = vpop.permute.xlu0 %2970 }
 0x211   :  { %3043 = vst.msk [vmem:[#allocation3 + $0x230] sm:$0xff] %vm2233_vm5, %v2971_v9 }
 0x212   :  { %2406 = vrot.lane.b32.xlu1 %v8561_v2, %s5757_s24  ;;  %v3353_v2 = vrot.slane %v9006_v27, 1 }
 0x213   :  { %v4033_v47 = vpop.f32.mrf.mxu1  ;;  %2615 = vrot.lane.b32.xlu2 %v8696_v13, %s5758_s23 }
 0x214   :  { %v4034_v55 = vadd.f32 %v4033_v47, %v3921_v15  ;;  %v2393_v52 = vpop.permute.xlu1 %2392 }
 0x215   :  { %2466 = vst.msk [vmem:[#allocation3 + $0x228] sm:$0xff] %vm2442_vm6, %v2393_v52  ;;  %v3696_v39 = vld [vmem:[#allocation3 + $0x218] sm:$0xff]  ;;  %v9081_v57 = vpop.permute.xlu2 %3405 }
 0x216   :  { %v4147_v13 = vadd.f32 %v4146_v29, %v4034_v55  ;;  %2675 = vst.msk [vmem:[#allocation3 + $0x228] sm:$0xff] %vm2651_vm7, %v8980_v32  ;;  %2199 = vrot.lane.b32.xlu0 %v2136_v56, %s5756_s19  ;;  %4056 = vmatmul.f32.gmra.mxu1 %v3696_v39  ;;  %v3354_v32 = vsel %vm243_vm0, %v3352_v41, %v3353_v2  ;;  %v4584_v29 = vrot.slane %v9032_v6, 1 }
 0x218   :  { %v4214_v21 = vmax.f32 %v4147_v13, 0.0  ;;  %v2186_v12 = vpop.permute.xlu0 %2185 }
 0x219   :  { %2258 = vst.msk [vmem:[#allocation3 + $0x240] sm:$0xff] %vm2233_vm5, %v2186_v12 }
 0x21a   :  { %3193 = vrot.lane.b32.xlu1 %v9004_v18, %s5757_s24  ;;  %v4238_v10 = vmax.f32 %v4212_v44, %v4214_v21  ;;  %v3918_v18 = vadd.f32 %v8855_v0, %v9023_v17 }
 0x21b   :  { %3417 = vrot.lane.b32.xlu2 %v3354_v32, %s5758_s23  ;;  %v3923_v58 = vpop.f32.mrf.mxu0 }
 0x21c   :  { %v3180_v61 = vpop.permute.xlu1 %3179  ;;  %v4259_v3 = vrot.slane %v4238_v10, 1  ;;  %v4031_v62 = vadd.f32 %v9041_v45, %v3918_v18  ;;  %v3924_v17 = vadd.f32 %v8855_v0, %v3923_v58  ;;  %v4149_v45 = vpop.f32.mrf.mxu2 }
 0x21d   :  { %3252 = vst.msk [vmem:[#allocation3 + $0x230] sm:$0xff] %vm2442_vm6, %v3180_v61  ;;  %v3698_v24 = vld [vmem:[#allocation3 + $0x228] sm:$0xff]  ;;  %v9111_v20 = vpop.permute.xlu2 %2605 }
 0x21e   :  { %3476 = vst.msk [vmem:[#allocation3 + $0x230] sm:$0xff] %vm2651_vm7, %v9012_v26  ;;  %2986 = vrot.lane.b32.xlu0 %v2923_v42, %s5756_s19  ;;  %3946 = vmatmul.f32.gmra.mxu0 %v3698_v24  ;;  %v4275_v26 = vmax.f32 %v4238_v10, %v4259_v3  ;;  %v4144_v11 = vadd.f32 %v9039_v22, %v4031_v62  ;;  %v2768_v62 = vrot.slane %v8807_v7, 1 }
 0x21f   :  { %v3356_v22 = vsel %vm243_vm0, %v3353_v2, %v3355_v46  ;;  %v4585_v2 = vsel %vm243_vm0, %v4875_v14, %v4584_v29 }
 0x220   :  { %v2973_v4 = vpop.permute.xlu0 %2972  ;;  %v4323_v55 = vrot.slane %v4275_v26, 1  ;;  %v4213_v52 = vmax.f32 %v4144_v11, 0.0  ;;  %v4339_v1 = vrot.slane %v4275_v26, 2 }
 0x221   :  { %3044 = vst.msk [vmem:[#allocation3 + $0x248] sm:$0xff] %vm2233_vm5, %v2973_v4  ;;  %v2769_v4 = vsel %vm243_vm0, %v8641_v48, %v2768_v62 }
 0x222   :  { %2408 = vrot.lane.b32.xlu1 %v2345_v16, %s5757_s24  ;;  %2839 = vst.msk [vmem:[#allocation3 + $0x290] sm:$0xff] %vm1854_vm1, %v2769_v4 }
 0x223   :  { %v4036_v63 = vpop.f32.mrf.mxu1  ;;  %2617 = vrot.lane.b32.xlu2 %v8699_v40, %s5758_s23 }
 0x224   :  { %v4037_v9 = vadd.f32 %v4036_v63, %v3924_v17  ;;  %v2395_v8 = vpop.permute.xlu1 %2394 }
 0x225   :  { %2467 = vst.msk [vmem:[#allocation3 + $0x240] sm:$0xff] %vm2442_vm6, %v2395_v8  ;;  %v3699_v15 = vld [vmem:[#allocation3 + $0x230] sm:$0xff]  ;;  %v3408_v47 = vpop.permute.xlu2 %3407  ;;  %v4152_v8 = vpop.f32.mrf.mxu2 }
 0x226   :  { %v4150_v56 = vadd.f32 %v4149_v45, %v4037_v9  ;;  %2676 = vst.msk [vmem:[#allocation3 + $0x240] sm:$0xff] %vm2651_vm7, %v9053_v35  ;;  %4598 = vrot.lane.b32.xlu0 %v4576_v25, %s5757_s24  ;;  %4059 = vmatmul.f32.gmra.mxu1 %v3699_v15  ;;  %v4444_v35 = vsel %vm4440_vm9, %v4275_v26, %v4323_v55 }
 0x227   :  { %v4453_v6 = vsel %vm4449_vm10, %v4444_v35, %v4339_v1 }
 0x228   :  { %v4215_v40 = vmax.f32 %v4150_v56, 0.0  ;;  %v2188_v41 = vpop.permute.xlu0 %2187 }
 0x229   :  { %2259 = vst.msk [vmem:[#allocation3 + $0x258] sm:$0xff] %vm2233_vm5, %v2188_v41 }
 0x22a   :  { %v4239_v39 = vmax.f32 %v4213_v52, %v4215_v40  ;;  %3195 = vrot.lane.b32.xlu1 %v9006_v27, %s5757_s24  ;;  %v4355_v27 = vrot.slane %v4275_v26, 3 }
 0x22b   :  { %3419 = vrot.lane.b32.xlu2 %v3356_v22, %s5758_s23  ;;  %v3926_v46 = vpop.f32.mrf.mxu0 }
 0x22c   :  { %v4291_v13 = vrot.slane %v4239_v39, 1  ;;  %v3182_v50 = vpop.permute.xlu1 %3181  ;;  %v4462_v43 = vsel %vm4458_vm11, %v4453_v6, %v4355_v27 }
 0x22d   :  { %3253 = vst.msk [vmem:[#allocation3 + $0x248] sm:$0xff] %vm2442_vm6, %v3182_v50  ;;  %v3701_v54 = vld [vmem:[#allocation3 + $0x240] sm:$0xff]  ;;  %v2608_v36 = vpop.permute.xlu2 %2607 }
 0x22e   :  { %v4307_v30 = vmax.f32 %v4239_v39, %v4291_v13  ;;  %3477 = vst.msk [vmem:[#allocation3 + $0x248] sm:$0xff] %vm2651_vm7, %v9081_v57  ;;  %4604 = vrot.lane.b32.xlu0 %v4585_v2, %s5757_s24  ;;  %3949 = vmatmul.f32.gmra.mxu0 %v3701_v54  ;;  %v4155_v54 = vpop.f32.mrf.mxu2 }
 0x230   :  { %v4379_v21 = vrot.slane %v4307_v30, 4  ;;  %v4395_v12 = vrot.slane %v4307_v30, 5  ;;  %v2975_v32 = vpop.permute.xlu0 %2974  ;;  %v4411_v19 = vrot.slane %v4307_v30, 6  ;;  %v4427_v44 = vrot.slane %v4307_v30, 7 }
 0x231   :  { %3045 = vst.msk [vmem:[#allocation3 + $0x260] sm:$0xff] %vm2233_vm5, %v2975_v32  ;;  %v2773_v32 = vrot.slane %v8961_v49, 1 }
 0x232   :  { %v4471_v14 = vsel %vm4467_vm12, %v4462_v43, %v4379_v21 }
 0x233   :  { %v4480_v34 = vsel %vm4476_vm13, %v4471_v14, %v4395_v12  ;;  %4602 = vrot.lane.b32.xlu2 %v8769_v53, %s5757_s24  ;;  %v4039_v1 = vpop.f32.mrf.mxu1  ;;  %v3927_v12 = vadd.f32 %v8855_v0, %v3926_v46  ;;  %v2774_v14 = vsel %vm243_vm0, %v8811_v23, %v2773_v32 }
 0x234   :  { %v4488_v57 = vsel %vm485_vm3, %v4480_v34, %v4411_v19  ;;  %v2397_v10 = vpop.permute.xlu1 %2396  ;;  %2841 = vst.msk [vmem:[#allocation3 + $0x2c0] sm:$0xff] %vm1854_vm1, %v2774_v14 }
 0x235   :  { %v4496_v42 = vsel %vm243_vm0, %v4488_v57, %v4427_v44  ;;  %2468 = vst.msk [vmem:[#allocation3 + $0x258] sm:$0xff] %vm2442_vm6, %v2397_v10  ;;  %v3702_v51 = vld [vmem:[#allocation3 + $0x248] sm:$0xff]  ;;  %v3410_v61 = vpop.permute.xlu2 %3409  ;;  %v4040_v19 = vadd.f32 %v4039_v1, %v3927_v12 }
 0x236   :  { %4529 = vst.msk [vmem:[#allocation4 + $0x41] sm:$0xff] %vm4501_vm8, %v4496_v42  ;;  %4062 = vmatmul.f32.gmra.mxu1 %v3702_v51  ;;  %v4158_v10 = vpop.f32.mrf.mxu2 }
 0x237   :  { %2677 = vst.msk [vmem:[#allocation3 + $0x258] sm:$0xff] %vm2651_vm7, %v9111_v20  ;;  %v4153_v51 = vadd.f32 %v4152_v8, %v4040_v19 }
 0x238   :  { %v2190_v59 = vpop.permute.xlu0 %2189 }
 0x239   :  { %2260 = vst.msk [vmem:[#allocation3 + $0x270] sm:$0xff] %vm2233_vm5, %v2190_v59 }
 0x23c   :  { %v3184_v24 = vpop.permute.xlu1 %3183  ;;  %v3929_v50 = vpop.f32.mrf.mxu0 }
 0x23d   :  { %3254 = vst.msk [vmem:[#allocation3 + $0x260] sm:$0xff] %vm2442_vm6, %v3184_v24  ;;  %v2610_v53 = vpop.permute.xlu2 %2609  ;;  %v9164_v18 = vld [vmem:[#allocation4 + $0x40] sm:$0xff]  ;;  %v4837_v3 = vld [vmem:[#allocation4 + $0x48] sm:$0x3]  ;;  %v3930_v24 = vadd.f32 %v8855_v0, %v3929_v50 }
 0x23e   :  { %3478 = vst.msk [vmem:[#allocation3 + $0x260] sm:$0xff] %vm2651_vm7, %v3408_v47  ;;  %v3704_v58 = vld [vmem:[#allocation3 + $0x258] sm:$0xff]  ;;  %v4934_v16 = vrot.slane %v9164_v18, 2  ;;  %v4935_v38 = vrot.slane %v4837_v3, 2  ;;  %v4543_v7 = vld [vmem:[#allocation4 + $0x48] sm:$0x3] }
 0x23f   :  { %3952 = vmatmul.f32.gmra.mxu0 %v3704_v58  ;;  %4850 = vst.msk [vmem:[#allocation5 + $0x68] sm:$0xff] %vm4501_vm8, %v9164_v18  ;;  %v4678_v9 = vld [vmem:[#allocation4 + $0x48] sm:$0x3]  ;;  %v4644_v48 = vrot.slane %v4543_v7, 2  ;;  %v4744_v45 = vrot.slane %v9164_v18, 1  ;;  %v4587_v15 = vrot.slane %v4543_v7, 1 }
 0x240   :  { %v2977_v20 = vpop.permute.xlu0 %2976  ;;  %v4936_v28 = vsel %vm485_vm3, %v4934_v16, %v4935_v38  ;;  %4554 = vst.msk [vmem:[#allocation5 + $0xa0] sm:$0xff] %vm4501_vm8, %v9164_v18  ;;  %v4879_v47 = vrot.slane %v4837_v3, 1  ;;  %v4785_v56 = vrot.slane %v4678_v9, 2  ;;  %v4745_v13 = vrot.slane %v4678_v9, 1 }
 0x241   :  { %3046 = vst.msk [vmem:[#allocation3 + $0x278] sm:$0xff] %vm2233_vm5, %v2977_v20  ;;  %v4645_v52 = vsel %vm485_vm3, %v4934_v16, %v4644_v48  ;;  %v9186_v40 = vsel %vm243_vm0, %v4744_v45, %v4587_v15  ;;  %v4216_v3 = vmax.f32 %v4153_v51, 0.0 }
 0x242   :  { %4962 = vst.msk [vmem:[#allocation5 + $0x70] sm:$0xff] %vm4501_vm8, %v4936_v28  ;;  %v9189_v41 = vsel %vm243_vm0, %v4744_v45, %v4879_v47  ;;  %v9193_v29 = vsel %vm485_vm3, %v4934_v16, %v4785_v56  ;;  %v4746_v2 = vsel %vm243_vm0, %v4744_v45, %v4745_v13 }
 0x243   :  { %4667 = vst.msk [vmem:[#allocation5 + $0xa8] sm:$0xff] %vm4501_vm8, %v4645_v52  ;;  %v4042_v30 = vpop.f32.mrf.mxu1  ;;  %v2778_v52 = vrot.slane %v9075_v33, 1 }
 0x244   :  { %v2399_v17 = vpop.permute.xlu1 %2398  ;;  %4770 = vst.msk [vmem:[#allocation5 + $0x88] sm:$0xff] %vm4501_vm8, %v4746_v2  ;;  %v4043_v58 = vadd.f32 %v4042_v30, %v3930_v24  ;;  %v3721_v2 = vld [vmem:[#allocation3 + $0x2e0] sm:$0xff] }
 0x245   :  { %2469 = vst.msk [vmem:[#allocation3 + $0x270] sm:$0xff] %vm2442_vm6, %v2399_v17  ;;  %v3705_v26 = vld [vmem:[#allocation3 + $0x260] sm:$0xff]  ;;  %v3412_v63 = vpop.permute.xlu2 %3411  ;;  %5653 = vmatmul.msk.f32.vlgmr.msra.gmra.mxu3 %vm1854_vm1, %v3721_v2 }
 0x246   :  { %2678 = vst.msk [vmem:[#allocation3 + $0x270] sm:$0xff] %vm2651_vm7, %v2608_v36  ;;  %4065 = vmatmul.f32.gmra.mxu1 %v3705_v26  ;;  %v4156_v17 = vadd.f32 %v4155_v54, %v4043_v58 }
 0x248   :  { %v2192_v25 = vpop.permute.xlu0 %2191  ;;  %v4217_v46 = vmax.f32 %v4156_v17, 0.0 }
 0x249   :  { %2261 = vst.msk [vmem:[#allocation3 + $0x288] sm:$0xff] %vm2233_vm5, %v2192_v25  ;;  %v4982_v11 = vld [vmem:[#allocation5 + $0x70] sm:$0xff] }
 0x24a   :  { %5657 = vmatmul.msk.f32.gmra.mxu2 %vm4501_vm8, %v4982_v11  ;;  %v4161_v11 = vpop.f32.mrf.mxu2 }
 0x24c   :  { %v3186_v55 = vpop.permute.xlu1 %3185 }
 0x24d   :  { %3255 = vst.msk [vmem:[#allocation3 + $0x278] sm:$0xff] %vm2442_vm6, %v3186_v55  ;;  %v3707_v22 = vld [vmem:[#allocation3 + $0x270] sm:$0xff]  ;;  %v2612_v39 = vpop.permute.xlu2 %2611  ;;  %v3932_v43 = vpop.f32.mrf.mxu0 }
 0x24e   :  { %3479 = vst.msk [vmem:[#allocation3 + $0x278] sm:$0xff] %vm2651_vm7, %v3410_v61  ;;  %3955 = vmatmul.f32.gmra.mxu0 %v3707_v22  ;;  %v3933_v34 = vadd.f32 %v8855_v0, %v3932_v43 }
 0x250   :  { %v2979_v35 = vpop.permute.xlu0 %2978 }
 0x251   :  { %3047 = vst.msk [vmem:[#allocation3 + $0x290] sm:$0xff] %vm2233_vm5, %v2979_v35  ;;  %v2779_v35 = vsel %vm243_vm0, %v8916_v5, %v2778_v52 }
 0x252   :  { %2843 = vst.msk [vmem:[#allocation3 + $0x2f0] sm:$0xff] %vm1854_vm1, %v2779_v35  ;;  %v4164_v24 = vpop.f32.mrf.mxu2 }
 0x254   :  { %v2401_v36 = vpop.permute.xlu1 %2400  ;;  %v4045_v42 = vpop.f32.mrf.mxu1 }
 0x255   :  { %2470 = vst.msk [vmem:[#allocation3 + $0x288] sm:$0xff] %vm2442_vm6, %v2401_v36  ;;  %v3708_v6 = vld [vmem:[#allocation3 + $0x278] sm:$0xff]  ;;  %v3414_v27 = vpop.permute.xlu2 %3413  ;;  %v4046_v49 = vadd.f32 %v4045_v42, %v3933_v34 }
 0x256   :  { %2679 = vst.msk [vmem:[#allocation3 + $0x288] sm:$0xff] %vm2651_vm7, %v2610_v53  ;;  %4068 = vmatmul.f32.gmra.mxu1 %v3708_v6 }
 0x257   :  { %v4159_v23 = vadd.f32 %v4158_v10, %v4046_v49 }
 0x258   :  { %v2194_v21 = vpop.permute.xlu0 %2193 }
 0x259   :  { %2262 = vst.msk [vmem:[#allocation3 + $0x2a0] sm:$0xff] %vm2233_vm5, %v2194_v21  ;;  %v4218_v16 = vmax.f32 %v4159_v23, 0.0 }
 0x25b   :  { %v4240_v20 = vmax.f32 %v4216_v3, %v4218_v16 }
 0x25c   :  { %v3188_v44 = vpop.permute.xlu1 %3187  ;;  %v3935_v53 = vpop.f32.mrf.mxu0 }
 0x25d   :  { %3256 = vst.msk [vmem:[#allocation3 + $0x290] sm:$0xff] %vm2442_vm6, %v3188_v44  ;;  %v3710_v57 = vld [vmem:[#allocation3 + $0x288] sm:$0xff]  ;;  %v2614_v61 = vpop.permute.xlu2 %2613  ;;  %v3936_v28 = vadd.f32 %v8855_v0, %v3935_v53  ;;  %v4260_v26 = vrot.slane %v4240_v20, 1 }
 0x25e   :  { %3480 = vst.msk [vmem:[#allocation3 + $0x290] sm:$0xff] %vm2651_vm7, %v3412_v63  ;;  %3958 = vmatmul.f32.gmra.mxu0 %v3710_v57 }
 0x25f   :  { %v4276_v9 = vmax.f32 %v4240_v20, %v4260_v26 }
 0x260   :  { %v2981_v59 = vpop.permute.xlu0 %2980 }
 0x261   :  { %3048 = vst.msk [vmem:[#allocation3 + $0x2a8] sm:$0xff] %vm2233_vm5, %v2981_v59  ;;  %v4324_v48 = vrot.slane %v4276_v9, 1  ;;  %v4340_v15 = vrot.slane %v4276_v9, 2  ;;  %v4356_v54 = vrot.slane %v4276_v9, 3 }
 0x263   :  { %v4048_v4 = vpop.f32.mrf.mxu1  ;;  %v4445_v55 = vsel %vm4440_vm9, %v4276_v9, %v4324_v48  ;;  %v4167_v9 = vpop.f32.mrf.mxu2 }
 0x264   :  { %v2403_v38 = vpop.permute.xlu1 %2402  ;;  %v4049_v63 = vadd.f32 %v4048_v4, %v3936_v28  ;;  %v4454_v13 = vsel %vm4449_vm10, %v4445_v55, %v4340_v15 }
 0x265   :  { %2471 = vst.msk [vmem:[#allocation3 + $0x2a0] sm:$0xff] %vm2442_vm6, %v2403_v38  ;;  %v3711_v62 = vld [vmem:[#allocation3 + $0x290] sm:$0xff]  ;;  %v3416_v25 = vpop.permute.xlu2 %3415  ;;  %v4463_v33 = vsel %vm4458_vm11, %v4454_v13, %v4356_v54 }
 0x266   :  { %2680 = vst.msk [vmem:[#allocation3 + $0x2a0] sm:$0xff] %vm2651_vm7, %v2612_v39  ;;  %4071 = vmatmul.f32.gmra.mxu1 %v3711_v62  ;;  %v4162_v8 = vadd.f32 %v4161_v11, %v4049_v63  ;;  %v3724_v62 = vld [vmem:[#allocation3 + $0x2f8] sm:$0xff] }
 0x267   :  { %5654 = vmatmul.msk.f32.gmra.mxu3 %vm1854_vm1, %v3724_v62 }
 0x268   :  { %v2196_v7 = vpop.permute.xlu0 %2195  ;;  %v4219_v0 = vmax.f32 %v4162_v8, 0.0 }
 0x269   :  { %2263 = vst.msk [vmem:[#allocation3 + $0x2b8] sm:$0xff] %vm2233_vm5, %v2196_v7 }
 0x26a   :  { %v4241_v47 = vmax.f32 %v4217_v46, %v4219_v0 }
 0x26b   :  { %v3938_v10 = vpop.f32.mrf.mxu0 }
 0x26c   :  { %v3190_v45 = vpop.permute.xlu1 %3189  ;;  %v4292_v22 = vrot.slane %v4241_v47, 1 }
 0x26d   :  { %3257 = vst.msk [vmem:[#allocation3 + $0x2a8] sm:$0xff] %vm2442_vm6, %v3190_v45  ;;  %v3713_v56 = vld [vmem:[#allocation3 + $0x2a0] sm:$0xff]  ;;  %v2616_v1 = vpop.permute.xlu2 %2615 }
 0x26e   :  { %3481 = vst.msk [vmem:[#allocation3 + $0x2a8] sm:$0xff] %vm2651_vm7, %v3414_v27  ;;  %3961 = vmatmul.f32.gmra.mxu0 %v3713_v56  ;;  %v4308_v50 = vmax.f32 %v4241_v47, %v4292_v22  ;;  %v9269_v47 = vld [vmem:[%s9749_s4] ss:$0 sm:$0xff] }
 0x26f   :  { %v3939_v56 = vadd.f32 %v9269_v47, %v3938_v10 }
 0x270   :  { %v2983_v39 = vpop.permute.xlu0 %2982  ;;  %v4380_v36 = vrot.slane %v4308_v50, 4  ;;  %v4396_v6 = vrot.slane %v4308_v50, 5  ;;  %v4412_v27 = vrot.slane %v4308_v50, 6  ;;  %v4428_v12 = vrot.slane %v4308_v50, 7 }
 0x271   :  { %3049 = vst.msk [vmem:[#allocation3 + $0x2c0] sm:$0xff] %vm2233_vm5, %v2983_v39 }
 0x272   :  { %v4472_v21 = vsel %vm4467_vm12, %v4463_v33, %v4380_v36  ;;  %v4170_v33 = vpop.f32.mrf.mxu2 }
 0x273   :  { %v4481_v32 = vsel %vm4476_vm13, %v4472_v21, %v4396_v6  ;;  %v4051_v16 = vpop.f32.mrf.mxu1 }
 0x274   :  { %v2405_v30 = vpop.permute.xlu1 %2404  ;;  %v4489_v43 = vsel %vm485_vm3, %v4481_v32, %v4412_v27  ;;  %v4052_v35 = vadd.f32 %v4051_v16, %v3939_v56 }
 0x275   :  { %2472 = vst.msk [vmem:[#allocation3 + $0x2b8] sm:$0xff] %vm2442_vm6, %v2405_v30  ;;  %v3714_v5 = vld [vmem:[#allocation3 + $0x2a8] sm:$0xff]  ;;  %v3418_v19 = vpop.permute.xlu2 %3417  ;;  %v4497_v14 = vsel %vm243_vm0, %v4489_v43, %v4428_v12 }
 0x276   :  { %2681 = vst.msk [vmem:[#allocation3 + $0x2b8] sm:$0xff] %vm2651_vm7, %v2614_v61  ;;  %4074 = vmatmul.f32.gmra.mxu1 %v3714_v5  ;;  %v4165_v30 = vadd.f32 %v4164_v24, %v4052_v35  ;;  %v3631_v24 = vld [vmem:[#allocation3 + $0x10] sm:$0xff] }
 0x277   :  { %4530 = vst.msk [vmem:[#allocation4 + $0x51] sm:$0xff] %vm4501_vm8, %v4497_v14 }
 0x278   :  { %v2198_v44 = vpop.permute.xlu0 %2197  ;;  %v4220_v32 = vmax.f32 %v4165_v30, 0.0 }
 0x279   :  { %2264 = vst.msk [vmem:[#allocation3 + $0x2d0] sm:$0xff] %vm2233_vm5, %v2198_v44 }
 0x27c   :  { %v3192_v34 = vpop.permute.xlu1 %3191  ;;  %v3941_v17 = vpop.f32.mrf.mxu0 }
 0x27d   :  { %3258 = vst.msk [vmem:[#allocation3 + $0x2c0] sm:$0xff] %vm2442_vm6, %v3192_v34  ;;  %v3716_v57 = vld [vmem:[#allocation3 + $0x2b8] sm:$0xff]  ;;  %v9238_v42 = vpop.permute.xlu2 %2617  ;;  %v3942_v44 = vadd.f32 %v9269_v47, %v3941_v17 }
 0x27e   :  { %3482 = vst.msk [vmem:[#allocation3 + $0x2c0] sm:$0xff] %vm2651_vm7, %v3416_v25  ;;  %3964 = vmatmul.f32.gmra.mxu0 %v3716_v57  ;;  %v9240_v49 = vld [vmem:[#allocation4 + $0x50] sm:$0xff]  ;;  %v4545_v61 = vld [vmem:[#allocation4 + $0x58] sm:$0x3] }
 0x27f   :  { %v4839_v59 = vld [vmem:[#allocation4 + $0x58] sm:$0x3]  ;;  %v4589_v23 = vrot.slane %v9240_v49, 1  ;;  %v4590_v53 = vrot.slane %v4545_v61, 1  ;;  %v4937_v3 = vrot.slane %v9240_v49, 2  ;;  %4555 = vst.msk [vmem:[#allocation5 + $0xc8] sm:$0xff] %vm4501_vm8, %v9240_v49 }
 0x280   :  { %v2985_v51 = vpop.permute.xlu0 %2984  ;;  %v4938_v58 = vrot.slane %v4839_v59, 2  ;;  %4851 = vst.msk [vmem:[#allocation5 + $0x90] sm:$0xff] %vm4501_vm8, %v9240_v49  ;;  %v4680_v25 = vld [vmem:[#allocation4 + $0x58] sm:$0x3]  ;;  %v4882_v11 = vrot.slane %v4839_v59, 1  ;;  %v4647_v39 = vrot.slane %v4545_v61, 2 }
 0x281   :  { %3050 = vst.msk [vmem:[#allocation3 + $0x2d8] sm:$0xff] %vm2233_vm5, %v2985_v51  ;;  %v4591_v38 = vsel %vm243_vm0, %v4589_v23, %v4590_v53  ;;  %v4788_v7 = vrot.slane %v4680_v25, 2  ;;  %v4748_v22 = vrot.slane %v4680_v25, 1 }
 0x282   :  { %v4939_v20 = vsel %vm485_vm3, %v4937_v3, %v4938_v58  ;;  %4608 = vrot.lane.b32.xlu2 %v4591_v38, %s5757_s24  ;;  %v9259_v0 = vsel %vm243_vm0, %v4589_v23, %v4882_v11  ;;  %v4648_v2 = vsel %vm485_vm3, %v4937_v3, %v4647_v39 }
 0x283   :  { %4963 = vst.msk [vmem:[#allocation5 + $0x98] sm:$0xff] %vm4501_vm8, %v4939_v20  ;;  %v4054_v8 = vpop.f32.mrf.mxu1  ;;  %v9262_v45 = vsel %vm485_vm3, %v4937_v3, %v4788_v7  ;;  %v4749_v13 = vsel %vm243_vm0, %v4589_v23, %v4748_v22  ;;  %v4173_v3 = vpop.f32.mrf.mxu2 }
 0x284   :  { %v2407_v28 = vpop.permute.xlu1 %2406  ;;  %4771 = vst.msk [vmem:[#allocation5 + $0xb0] sm:$0xff] %vm4501_vm8, %v4749_v13  ;;  %v4055_v10 = vadd.f32 %v4054_v8, %v3942_v44 }
 0x285   :  { %2473 = vst.msk [vmem:[#allocation3 + $0x2d0] sm:$0xff] %vm2442_vm6, %v2407_v28  ;;  %v3717_v4 = vld [vmem:[#allocation3 + $0x2c0] sm:$0xff]  ;;  %v3420_v26 = vpop.permute.xlu2 %3419 }
 0x286   :  { %2682 = vst.msk [vmem:[#allocation3 + $0x2d0] sm:$0xff] %vm2651_vm7, %v2616_v1  ;;  %4077 = vmatmul.f32.gmra.mxu1 %v3717_v4  ;;  %v4168_v23 = vadd.f32 %v4167_v9, %v4055_v10 }
 0x287   :  { %4668 = vst.msk [vmem:[#allocation5 + $0xd0] sm:$0xff] %vm4501_vm8, %v4648_v2 }
 0x288   :  { %v2200_v63 = vpop.permute.xlu0 %2199  ;;  %v4221_v20 = vmax.f32 %v4168_v23, 0.0 }
 0x289   :  { %2265 = vst.msk [vmem:[#allocation3 + $0x2e8] sm:$0xff] %vm2233_vm5, %v2200_v63 }
 0x28a   :  { %v4987_v46 = vld [vmem:[#allocation5 + $0x98] sm:$0xff] }
 0x28b   :  { %5658 = vmatmul.msk.f32.gmra.mxu2 %vm4501_vm8, %v4987_v46  ;;  %v3944_v55 = vpop.f32.mrf.mxu0  ;;  %v4176_v30 = vpop.f32.mrf.mxu2 }
 0x28c   :  { %v3194_v48 = vpop.permute.xlu1 %3193  ;;  %v3945_v50 = vadd.f32 %v9269_v47, %v3944_v55 }
 0x28d   :  { %3259 = vst.msk [vmem:[#allocation3 + $0x2d8] sm:$0xff] %vm2442_vm6, %v3194_v48  ;;  %v3719_v15 = vld [vmem:[#allocation3 + $0x2d0] sm:$0xff]  ;;  %v4603_v52 = vpop.permute.xlu2 %4602 }
 0x28e   :  { %3483 = vst.msk [vmem:[#allocation3 + $0x2d8] sm:$0xff] %vm2651_vm7, %v3418_v19  ;;  %3967 = vmatmul.f32.gmra.mxu0 %v3719_v15 }
 0x28f   :  { %4625 = vst.msk [vmem:[#allocation5 + $0x50] sm:$0xff] %vm4622_vm2, %v4603_v52 }
 0x290   :  { %v2987_v1 = vpop.permute.xlu0 %2986 }
 0x291   :  { %3051 = vst.msk [vmem:[#allocation3 + $0x2f0] sm:$0xff] %vm2233_vm5, %v2987_v1 }
 0x293   :  { %v4057_v54 = vpop.f32.mrf.mxu1  ;;  %v4179_v44 = vpop.f32.mrf.mxu2 }
 0x294   :  { %v4058_v36 = vadd.f32 %v4057_v54, %v3945_v50  ;;  %v2409_v6 = vpop.permute.xlu1 %2408 }
 0x295   :  { %2474 = vst.msk [vmem:[#allocation3 + $0x2e8] sm:$0xff] %vm2442_vm6, %v2409_v6  ;;  %v3720_v27 = vld [vmem:[#allocation3 + $0x2d8] sm:$0xff] }
 0x296   :  { %v4171_v21 = vadd.f32 %v4170_v33, %v4058_v36  ;;  %2683 = vst.msk [vmem:[#allocation3 + $0x2e8] sm:$0xff] %vm2651_vm7, %v9238_v42  ;;  %4080 = vmatmul.f32.gmra.mxu1 %v3720_v27 }
 0x298   :  { %v4222_v5 = vmax.f32 %v4171_v21, 0.0  ;;  %v4599_v12 = vpop.permute.xlu0 %4598 }
 0x299   :  { %4623 = vst.msk [vmem:[#allocation5] sm:$0xff] %vm4622_vm2, %v4599_v12  ;;  %v9311_v12 = vld [vmem:[#allocation4 + $0x20] sm:$0xff] }
 0x29a   :  { %v4242_v43 = vmax.f32 %v4220_v32, %v4222_v5 }
 0x29b   :  { %v3947_v57 = vpop.f32.mrf.mxu0 }
 0x29c   :  { %v3196_v19 = vpop.permute.xlu1 %3195  ;;  %v4261_v34 = vrot.slane %v4242_v43, 1  ;;  %v3948_v51 = vadd.f32 %v9269_v47, %v3947_v57 }
 0x29d   :  { %3260 = vst.msk [vmem:[#allocation3 + $0x2f0] sm:$0xff] %vm2442_vm6, %v3196_v19  ;;  %v3722_v14 = vld [vmem:[#allocation3 + $0x2e8] sm:$0xff] }
 0x29e   :  { %3484 = vst.msk [vmem:[#allocation3 + $0x2f0] sm:$0xff] %vm2651_vm7, %v3420_v26  ;;  %3970 = vmatmul.f32.gmra.mxu0 %v3722_v14  ;;  %v4277_v61 = vmax.f32 %v4242_v43, %v4261_v34  ;;  %v3634_v26 = vld [vmem:[#allocation3 + $0x28] sm:$0xff] }
 0x2a0   :  { %v4605_v42 = vpop.permute.xlu0 %4604  ;;  %v4325_v38 = vrot.slane %v4277_v61, 1  ;;  %v4341_v62 = vrot.slane %v4277_v61, 2  ;;  %v4357_v7 = vrot.slane %v4277_v61, 3 }
 0x2a1   :  { %4626 = vst.msk [vmem:[#allocation5 + $0x78] sm:$0xff] %vm4622_vm2, %v4605_v42 }
 0x2a2   :  { %v4446_v17 = vsel %vm4440_vm9, %v4277_v61, %v4325_v38 }
 0x2a3   :  { %v4060_v59 = vpop.f32.mrf.mxu1  ;;  %v4455_v25 = vsel %vm4449_vm10, %v4446_v17, %v4341_v62 }
 0x2a4   :  { %v4061_v53 = vadd.f32 %v4060_v59, %v3948_v51  ;;  %v4464_v46 = vsel %vm4458_vm11, %v4455_v25, %v4357_v7 }
 0x2a5   :  { %v3723_v58 = vld [vmem:[#allocation3 + $0x2f0] sm:$0xff] }
 0x2a6   :  { %v4174_v16 = vadd.f32 %v4173_v3, %v4061_v53  ;;  %4083 = vmatmul.f32.gmra.mxu1 %v3723_v58  ;;  %5623 = vmatmul.msk.f32.vlgmr.msrb.gmra.mxu0 %vm1854_vm1, %v3631_v24 }
 0x2a8   :  { %v4223_v28 = vmax.f32 %v4174_v16, 0.0  ;;  %v4182_v16 = vpop.f32.mrf.mxu2 }
 0x2aa   :  { %v4243_v4 = vmax.f32 %v4221_v20, %v4223_v28 }
 0x2ab   :  { %v3950_v36 = vpop.f32.mrf.mxu0 }
 0x2ac   :  { %v4293_v63 = vrot.slane %v4243_v4, 1  ;;  %v3951_v51 = vadd.f32 %v9269_v47, %v3950_v36 }
 0x2ae   :  { %v4309_v11 = vmax.f32 %v4243_v4, %v4293_v63  ;;  %5624 = vmatmul.msk.f32.vlgmr.msrb.gmra.mxu1 %vm1854_vm1, %v3634_v26 }
 0x2b0   :  { %v4381_v9 = vrot.slane %v4309_v11, 4  ;;  %v4397_v8 = vrot.slane %v4309_v11, 5  ;;  %v4413_v48 = vrot.slane %v4309_v11, 6  ;;  %v4429_v56 = vrot.slane %v4309_v11, 7 }
 0x2b2   :  { %v4473_v15 = vsel %vm4467_vm12, %v4464_v46, %v4381_v9 }
 0x2b3   :  { %v4482_v55 = vsel %vm4476_vm13, %v4473_v15, %v4397_v8  ;;  %v4063_v27 = vpop.f32.mrf.mxu1 }
 0x2b4   :  { %v4490_v52 = vsel %vm485_vm3, %v4482_v55, %v4413_v48  ;;  %v4064_v24 = vadd.f32 %v4063_v27, %v3951_v51  ;;  %v4185_v48 = vpop.f32.mrf.mxu2 }
 0x2b5   :  { %v4498_v22 = vsel %vm243_vm0, %v4490_v52, %v4429_v56 }
 0x2b6   :  { %4531 = vst.msk [vmem:[#allocation4 + $0x61] sm:$0xff] %vm4501_vm8, %v4498_v22  ;;  %v4177_v38 = vadd.f32 %v4176_v30, %v4064_v24 }
 0x2b8   :  { %v4224_v62 = vmax.f32 %v4177_v38, 0.0 }
 0x2bc   :  { %v3953_v21 = vpop.f32.mrf.mxu0 }
 0x2bd   :  { %v9298_v1 = vld [vmem:[#allocation4 + $0x60] sm:$0xff]  ;;  %v4547_v39 = vld [vmem:[#allocation4 + $0x68] sm:$0x3]  ;;  %v3954_v17 = vadd.f32 %v9269_v47, %v3953_v21 }
 0x2be   :  { %v4841_v35 = vld [vmem:[#allocation4 + $0x68] sm:$0x3]  ;;  %v4592_v13 = vrot.slane %v9298_v1, 1  ;;  %v4593_v50 = vrot.slane %v4547_v39, 1  ;;  %4556 = vst.msk [vmem:[#allocation5 + $0xf0] sm:$0xff] %vm4501_vm8, %v9298_v1  ;;  %v4940_v2 = vrot.slane %v9298_v1, 2 }
 0x2bf   :  { %v4941_v54 = vrot.slane %v4841_v35, 2  ;;  %4852 = vst.msk [vmem:[#allocation5 + $0xb8] sm:$0xff] %vm4501_vm8, %v9298_v1  ;;  %v4682_v32 = vld [vmem:[#allocation4 + $0x68] sm:$0x3]  ;;  %v4885_v19 = vrot.slane %v4841_v35, 1  ;;  %v4650_v14 = vrot.slane %v4547_v39, 2 }
 0x2c0   :  { %v4594_v6 = vsel %vm243_vm0, %v4592_v13, %v4593_v50  ;;  %v4791_v43 = vrot.slane %v4682_v32, 2  ;;  %v4751_v59 = vrot.slane %v4682_v32, 1 }
 0x2c1   :  { %v4942_v33 = vsel %vm485_vm3, %v4940_v2, %v4941_v54  ;;  %4610 = vrot.lane.b32.xlu0 %v4594_v6, %s5757_s24  ;;  %v9319_v10 = vsel %vm243_vm0, %v4592_v13, %v4885_v19  ;;  %v4651_v42 = vsel %vm485_vm3, %v4940_v2, %v4650_v14 }
 0x2c2   :  { %4964 = vst.msk [vmem:[#allocation5 + $0xc0] sm:$0xff] %vm4501_vm8, %v4942_v33  ;;  %v9316_v57 = vsel %vm485_vm3, %v4940_v2, %v4791_v43  ;;  %v4752_v23 = vsel %vm243_vm0, %v4592_v13, %v4751_v59 }
 0x2c3   :  { %v4066_v34 = vpop.f32.mrf.mxu1  ;;  %4669 = vst.msk [vmem:[#allocation5 + $0xf8] sm:$0xff] %vm4501_vm8, %v4651_v42 }
 0x2c4   :  { %4772 = vst.msk [vmem:[#allocation5 + $0xd8] sm:$0xff] %vm4501_vm8, %v4752_v23 }
 0x2c9   :  { %v4992_v5 = vld [vmem:[#allocation5 + $0xc0] sm:$0xff]  ;;  %4697 = vrot.lane.b32.xlu0 %v9311_v12, %s5757_s24 }
 0x2ca   :  { %5659 = vmatmul.msk.f32.gmra.mxu2 %vm4501_vm8, %v4992_v5 }
 0x2cb   :  { %v3956_v61 = vpop.f32.mrf.mxu0 }
 0x2cc   :  { %v3957_v53 = vadd.f32 %v9269_v47, %v3956_v61 }
 0x2d1   :  { %4703 = vrot.lane.b32.xlu0 %v9240_v49, %s5757_s24  ;;  %v4067_v49 = vadd.f32 %v4066_v34, %v3954_v17 }
 0x2d3   :  { %v4069_v3 = vpop.f32.mrf.mxu1  ;;  %v4180_v8 = vadd.f32 %v4179_v44, %v4067_v49 }
 0x2d4   :  { %v4070_v58 = vadd.f32 %v4069_v3, %v3957_v53 }
 0x2d5   :  { %v4225_v55 = vmax.f32 %v4180_v8, 0.0 }
 0x2d6   :  { %v4183_v20 = vadd.f32 %v4182_v16, %v4070_v58 }
 0x2d8   :  { %v4226_v28 = vmax.f32 %v4183_v20, 0.0 }
 0x2da   :  { %v4244_v4 = vmax.f32 %v4224_v62, %v4226_v28 }
 0x2db   :  { %v3959_v25 = vpop.f32.mrf.mxu0 }
 0x2dc   :  { %v4609_v26 = vpop.permute.xlu2 %4608  ;;  %v4262_v63 = vrot.slane %v4244_v4, 1  ;;  %v3960_v11 = vadd.f32 %v9269_v47, %v3959_v25 }
 0x2dd   :  { %4628 = vst.msk [vmem:[#allocation5 + $0xc8] sm:$0xff] %vm4622_vm2, %v4609_v26 }
 0x2de   :  { %v4278_v7 = vmax.f32 %v4244_v4, %v4262_v63 }
 0x2e0   :  { %v4326_v56 = vrot.slane %v4278_v7, 1  ;;  %v4342_v22 = vrot.slane %v4278_v7, 2  ;;  %v4358_v54 = vrot.slane %v4278_v7, 3 }
 0x2e2   :  { %v4447_v35 = vsel %vm4440_vm9, %v4278_v7, %v4326_v56 }
 0x2e3   :  { %v4072_v9 = vpop.f32.mrf.mxu1  ;;  %v4456_v50 = vsel %vm4449_vm10, %v4447_v35, %v4342_v22 }
 0x2e4   :  { %v4073_v46 = vadd.f32 %v4072_v9, %v3960_v11  ;;  %v4465_v33 = vsel %vm4458_vm11, %v4456_v50, %v4358_v54 }
 0x2e6   :  { %v4186_v15 = vadd.f32 %v4185_v48, %v4073_v46  ;;  %v4194_v46 = vpop.f32.mrf.mxu3  ;;  %v4188_v48 = vpop.f32.mrf.mxu2 }
 0x2e8   :  { %v4227_v52 = vmax.f32 %v4186_v15, 0.0 }
 0x2ea   :  { %v4245_v39 = vmax.f32 %v4225_v55, %v4227_v52 }
 0x2eb   :  { %v3962_v42 = vpop.f32.mrf.mxu0 }
 0x2ec   :  { %v4294_v13 = vrot.slane %v4245_v39, 1  ;;  %v3963_v63 = vadd.f32 %v9269_v47, %v3962_v42 }
 0x2ee   :  { %v4310_v2 = vmax.f32 %v4245_v39, %v4294_v13  ;;  %v9794_v13 = vld [vmem:[#allocation17_spill] sm:$0xff] }
 0x2ef   :  { %v3885_v50 = vadd.f32 %v9269_v47, %v9794_v13 }
 0x2f0   :  { %v4382_v36 = vrot.slane %v4310_v2, 4  ;;  %v4398_v6 = vrot.slane %v4310_v2, 5  ;;  %v4414_v30 = vrot.slane %v4310_v2, 6  ;;  %v4430_v21 = vrot.slane %v4310_v2, 7  ;;  %v9795_v2 = vld [vmem:[#allocation18_spill] sm:$0xff] }
 0x2f1   :  { %v3998_v54 = vadd.f32 %v9795_v2, %v3885_v50 }
 0x2f2   :  { %v4474_v27 = vsel %vm4467_vm12, %v4465_v33, %v4382_v36  ;;  %v9796_v33 = vld [vmem:[#allocation12_spill] sm:$0xff] }
 0x2f3   :  { %v4483_v5 = vsel %vm4476_vm13, %v4474_v27, %v4398_v6  ;;  %v4075_v61 = vpop.f32.mrf.mxu1 }
 0x2f4   :  { %v4491_v32 = vsel %vm485_vm3, %v4483_v5, %v4414_v30  ;;  %v4076_v11 = vadd.f32 %v4075_v61, %v3963_v63  ;;  %v3879_v30 = vadd.f32 %v9269_v47, %v9796_v33  ;;  %v9801_v63 = vld [vmem:[#allocation15_spill] sm:$0xff] }
 0x2f5   :  { %v4499_v43 = vsel %vm243_vm0, %v4491_v32, %v4430_v21  ;;  %v9797_v21 = vld [vmem:[#allocation13_spill] sm:$0xff]  ;;  %v9798_v32 = vld [vmem:[#allocation19_spill] sm:$0xff] }
 0x2f6   :  { %4532 = vst.msk [vmem:[#allocation4 + $0x71] sm:$0xff] %vm4501_vm8, %v4499_v43  ;;  %v4189_v56 = vadd.f32 %v4188_v48, %v4076_v11  ;;  %v3992_v5 = vadd.f32 %v9797_v21, %v3879_v30  ;;  %v4111_v43 = vadd.f32 %v9798_v32, %v3998_v54 }
 0x2f8   :  { %v4228_v22 = vmax.f32 %v4189_v56, 0.0  ;;  %v9803_v56 = vld [vmem:[#allocation22_spill] sm:$0xff] }
 0x2fb   :  { %v3965_v59 = vpop.f32.mrf.mxu0 }
 0x2fc   :  { %v3966_v36 = vadd.f32 %v9269_v47, %v3965_v59  ;;  %v9799_v59 = vld [vmem:[#allocation20_spill] sm:$0xff] }
 0x2fd   :  { %v9340_v19 = vld [vmem:[#allocation4 + $0x70] sm:$0xff]  ;;  %v4843_v14 = vld [vmem:[#allocation4 + $0x78] sm:$0x3] }
 0x2fe   :  { %v4943_v44 = vrot.slane %v9340_v19, 2  ;;  %v4944_v34 = vrot.slane %v4843_v14, 2  ;;  %4853 = vst.msk [vmem:[#allocation5 + $0xe0] sm:$0xff] %vm4501_vm8, %v9340_v19  ;;  %v4549_v23 = vld [vmem:[#allocation4 + $0x78] sm:$0x3]  ;;  %v4753_v3 = vrot.slane %v9340_v19, 1 }
 0x2ff   :  { %4557 = vst.msk [vmem:[#allocation5 + $0x118] sm:$0xff] %vm4501_vm8, %v9340_v19  ;;  %v4684_v53 = vld [vmem:[#allocation4 + $0x78] sm:$0x3]  ;;  %v4596_v58 = vrot.slane %v4549_v23, 1  ;;  %v4888_v16 = vrot.slane %v4843_v14, 1  ;;  %v4653_v28 = vrot.slane %v4549_v23, 2  ;;  %v4191_v14 = vpop.f32.mrf.mxu2 }
 0x300   :  { %v4945_v51 = vsel %vm485_vm3, %v4943_v44, %v4944_v34  ;;  %v4794_v38 = vrot.slane %v4684_v53, 2  ;;  %v4754_v49 = vrot.slane %v4684_v53, 1  ;;  %v4197_v34 = vpop.f32.mrf.mxu3 }
 0x301   :  { %4965 = vst.msk [vmem:[#allocation5 + $0xe8] sm:$0xff] %vm4501_vm8, %v4945_v51  ;;  %v9352_v62 = vsel %vm243_vm0, %v4753_v3, %v4596_v58  ;;  %v9355_v4 = vsel %vm243_vm0, %v4753_v3, %v4888_v16  ;;  %v4654_v26 = vsel %vm485_vm3, %v4943_v44, %v4653_v28  ;;  %v4202_v58 = vmax.f32 %v4111_v43, 0.0 }
 0x302   :  { %v9358_v17 = vsel %vm485_vm3, %v4943_v44, %v4794_v38  ;;  %4670 = vst.msk [vmem:[#allocation5 + $0x120] sm:$0xff] %vm4501_vm8, %v4654_v26  ;;  %v4755_v9 = vsel %vm243_vm0, %v4753_v3, %v4754_v49  ;;  %v3888_v3 = vadd.f32 %v9269_v47, %v9799_v59 }
 0x303   :  { %v4078_v20 = vpop.f32.mrf.mxu1  ;;  %4773 = vst.msk [vmem:[#allocation5 + $0x100] sm:$0xff] %vm4501_vm8, %v4755_v9  ;;  %v9802_v9 = vld [vmem:[#allocation16_spill] sm:$0xff] }
 0x304   :  { %v4079_v27 = vadd.f32 %v4078_v20, %v3966_v36  ;;  %v9800_v20 = vld [vmem:[#allocation21_spill] sm:$0xff] }
 0x305   :  { %v4001_v28 = vadd.f32 %v9800_v20, %v3888_v3 }
 0x308   :  { %v4997_v24 = vld [vmem:[#allocation5 + $0xe8] sm:$0xff] }
 0x309   :  { %5660 = vmatmul.msk.f32.gmra.mxu2 %vm4501_vm8, %v4997_v24  ;;  %v4192_v24 = vadd.f32 %v4191_v14, %v4079_v27 }
 0x30b   :  { %v3968_v25 = vpop.f32.mrf.mxu0  ;;  %v4229_v49 = vmax.f32 %v4192_v24, 0.0 }
 0x30c   :  { %v3969_v7 = vadd.f32 %v9269_v47, %v3968_v25  ;;  %v3882_v25 = vadd.f32 %v9269_v47, %v9801_v63 }
 0x313   :  { %v4081_v8 = vpop.f32.mrf.mxu1 }
 0x314   :  { %v4082_v15 = vadd.f32 %v4081_v8, %v3969_v7  ;;  %v3995_v8 = vadd.f32 %v9802_v9, %v3882_v25 }
 0x316   :  { %v4195_v55 = vadd.f32 %v4194_v46, %v4082_v15 }
 0x318   :  { %v4230_v52 = vmax.f32 %v4195_v55, 0.0  ;;  %v4114_v55 = vadd.f32 %v9803_v56, %v4001_v28 }
 0x31a   :  { %v4246_v39 = vmax.f32 %v4228_v22, %v4230_v52  ;;  %v4203_v54 = vmax.f32 %v4114_v55, 0.0 }
 0x31b   :  { %v3971_v35 = vpop.f32.mrf.mxu0 }
 0x31c   :  { %v4263_v6 = vrot.slane %v4246_v39, 1  ;;  %v3972_v44 = vadd.f32 %v9269_v47, %v3971_v35 }
 0x31e   :  { %v4279_v42 = vmax.f32 %v4246_v39, %v4263_v6 }
 0x320   :  { %v4327_v26 = vrot.slane %v4279_v42, 1  ;;  %v4343_v46 = vrot.slane %v4279_v42, 2  ;;  %v4359_v36 = vrot.slane %v4279_v42, 3 }
 0x322   :  { %v4448_v52 = vsel %vm4440_vm9, %v4279_v42, %v4327_v26 }
 0x323   :  { %v4084_v51 = vpop.f32.mrf.mxu1  ;;  %v4104_v61 = vpop.f32.mrf.mxu0  ;;  %v4457_v50 = vsel %vm4449_vm10, %v4448_v52, %v4343_v46  ;;  %v5725_v46 = vld [vmem:[#allocation4 + $0x30] sm:$0xff] }
 0x324   :  { %v4085_v23 = vadd.f32 %v4084_v51, %v3972_v44  ;;  %v4105_v53 = vadd.f32 %v4104_v61, %v3992_v5  ;;  %v4466_v27 = vsel %vm4458_vm11, %v4457_v50, %v4359_v36 }
 0x326   :  { %v4200_v16 = vmax.f32 %v4105_v53, 0.0  ;;  %v4198_v38 = vadd.f32 %v4197_v34, %v4085_v23 }
 0x328   :  { %v4232_v11 = vmax.f32 %v4200_v16, %v4202_v58  ;;  %v4231_v7 = vmax.f32 %v4198_v38, 0.0 }
 0x32a   :  { %v4256_v48 = vrot.slane %v4232_v11, 1  ;;  %v4247_v15 = vmax.f32 %v4229_v49, %v4231_v7 }
 0x32b   :  { %v4107_v22 = vpop.f32.mrf.mxu1 }
 0x32c   :  { %v4272_v39 = vmax.f32 %v4232_v11, %v4256_v48  ;;  %v4295_v35 = vrot.slane %v4247_v15, 1  ;;  %v4108_v13 = vadd.f32 %v4107_v22, %v3995_v8  ;;  %v4781_v48 = vrot.slane %v5725_v46, 2 }
 0x32e   :  { %v4320_v2 = vrot.slane %v4272_v39, 1  ;;  %v4311_v47 = vmax.f32 %v4247_v15, %v4295_v35  ;;  %v4201_v6 = vmax.f32 %v4108_v13, 0.0  ;;  %v4336_v21 = vrot.slane %v4272_v39, 2  ;;  %v5726_v15 = vld [vmem:[#allocation4 + $0x38] sm:$0x3] }
 0x32f   :  { %v4352_v59 = vrot.slane %v4272_v39, 3  ;;  %v4782_v56 = vrot.slane %v5726_v15, 2 }
 0x330   :  { %v4383_v33 = vrot.slane %v4311_v47, 4  ;;  %v4399_v30 = vrot.slane %v4311_v47, 5  ;;  %v4233_v5 = vmax.f32 %v4201_v6, %v4203_v54  ;;  %v4441_v32 = vsel %vm4440_vm9, %v4272_v39, %v4320_v2 }
 0x331   :  { %v4415_v43 = vrot.slane %v4311_v47, 6  ;;  %v4431_v44 = vrot.slane %v4311_v47, 7  ;;  %v4450_v42 = vsel %vm4449_vm10, %v4441_v32, %v4336_v21  ;;  %v4783_v35 = vsel %vm485_vm3, %v4781_v48, %v4782_v56  ;;  %v5032_v48 = vld [vmem:[%s9750_s5 + $0xc0] sm:$0xff] }
 0x332   :  { %v4475_v14 = vsel %vm4467_vm12, %v4466_v27, %v4383_v33  ;;  %v4288_v51 = vrot.slane %v4233_v5, 1  ;;  %v4459_v16 = vsel %vm4458_vm11, %v4450_v42, %v4352_v59  ;;  %v5020_v42 = vld [vmem:[%s9750_s5 + $0x60] sm:$0xff] }
 0x333   :  { %v4484_v34 = vsel %vm4476_vm13, %v4475_v14, %v4399_v30  ;;  %v4611_v61 = vpop.permute.xlu0 %4610  ;;  %v5012_v59 = vld [vmem:[%s9750_s5 + $0x20] sm:$0xff] }
 0x334   :  { %v4492_v24 = vsel %vm485_vm3, %v4484_v34, %v4415_v43  ;;  %4629 = vst.msk [vmem:[#allocation5 + $0xf0] sm:$0xff] %vm4622_vm2, %v4611_v61  ;;  %v4304_v53 = vmax.f32 %v4233_v5, %v4288_v51  ;;  %v5022_v34 = vld [vmem:[%s9750_s5 + $0x70] sm:$0xff]  ;;  %v5728_v51 = vld [vmem:[#allocation4 + $0x8] sm:$0x3] }
 0x335   :  { %v4500_v23 = vsel %vm243_vm0, %v4492_v24, %v4431_v44  ;;  %v4632_v61 = vrot.slane %v5728_v51, 2 }
 0x336   :  { %4533 = vst.msk [vmem:[#allocation4 + $0x81] sm:$0xff] %vm4501_vm8, %v4500_v23  ;;  %v4376_v3 = vrot.slane %v4304_v53, 4  ;;  %v4392_v58 = vrot.slane %v4304_v53, 5  ;;  %v4408_v38 = vrot.slane %v4304_v53, 6  ;;  %v4424_v28 = vrot.slane %v4304_v53, 7  ;;  %v5015_v23 = vld [vmem:[%s9750_s5 + $0x38] sm:$0xff] }
 0x337   :  { %v5014_v53 = vld [vmem:[%s9750_s5 + $0x30] sm:$0xff] }
 0x338   :  { %v4468_v20 = vsel %vm4467_vm12, %v4459_v16, %v4376_v3  ;;  %v5011_v3 = vld [vmem:[%s9750_s5 + $0x18] sm:$0xff]  ;;  %v5008_v16 = vld [vmem:[%s9750_s5] sm:$0xff] }
 0x339   :  { %v4477_v26 = vsel %vm4476_vm13, %v4468_v20, %v4392_v58  ;;  %v5010_v58 = vld [vmem:[%s9750_s5 + $0x10] sm:$0xff]  ;;  %v5039_v20 = vld [vmem:[%s9750_s5 + $0xf8] sm:$0xff] }
 0x33a   :  { %v4485_v63 = vsel %vm485_vm3, %v4477_v26, %v4408_v38  ;;  %v4968_v38 = vld [vmem:[#allocation5] sm:$0xff] }
 0x33b   :  { %v4698_v25 = vpop.permute.xlu0 %4697  ;;  %v4493_v49 = vsel %vm243_vm0, %v4485_v63, %v4424_v28  ;;  %v5038_v28 = vld [vmem:[%s9750_s5 + $0xf0] sm:$0xff]  ;;  %v5037_v63 = vld [vmem:[%s9750_s5 + $0xe8] sm:$0xff]  ;;  %v4998_v51 = vld [vmem:[#allocation5 + $0xf0] sm:$0xff] }
 0x33c   :  { %4526 = vst.msk [vmem:[#allocation4 + $0x11] sm:$0xff] %vm4501_vm8, %v4493_v49 }
 0x33d   :  { %v4685_v11 = vld [vmem:[#allocation4 + $0x80] sm:$0xff]  ;;  %v4845_v7 = vld [vmem:[#allocation4 + $0x88] sm:$0x3] }
 0x33e   :  { %v4796_v9 = vrot.slane %v4685_v11, 2  ;;  %4709 = vrot.lane.b32.xlu0 %v4685_v11, %s5757_s24  ;;  %v4947_v8 = vrot.slane %v4845_v7, 2  ;;  %4854 = vst.msk [vmem:[#allocation5 + $0x108] sm:$0xff] %vm4501_vm8, %v4685_v11  ;;  %v4686_v33 = vld [vmem:[#allocation4 + $0x88] sm:$0x3]  ;;  %v4756_v30 = vrot.slane %v4685_v11, 1 }
 0x33f   :  { %v4757_v27 = vrot.slane %v4686_v33, 1  ;;  %v5035_v11 = vld [vmem:[%s9750_s5 + $0xd8] sm:$0xff] }
 0x340   :  { %v4948_v55 = vsel %vm485_vm3, %v4796_v9, %v4947_v8 }
 0x341   :  { %4966 = vst.msk [vmem:[#allocation5 + $0x110] sm:$0xff] %vm4501_vm8, %v4948_v55  ;;  %v4758_v21 = vsel %vm243_vm0, %v4756_v30, %v4757_v27  ;;  %v5026_v27 = vld [vmem:[%s9750_s5 + $0x90] sm:$0xff] }
 0x342   :  { %4774 = vst.msk [vmem:[#allocation5 + $0x128] sm:$0xff] %vm4501_vm8, %v4758_v21 }
 0x343   :  { %v4704_v52 = vpop.permute.xlu0 %4703  ;;  %v4536_v22 = vld [vmem:[#allocation4 + $0x10] sm:$0xff]  ;;  %v4537_v39 = vld [vmem:[#allocation4 + $0x18] sm:$0x3] }
 0x344   :  { %4723 = vst.msk [vmem:[#allocation5 + $0xa8] sm:$0xff] %vm4622_vm2, %v4704_v52  ;;  %v4634_v13 = vrot.slane %v4536_v22, 2  ;;  %v4635_v50 = vrot.slane %v4537_v39, 2  ;;  %4695 = vrot.lane.b32.xlu2 %v4536_v22, %s5757_s24  ;;  %v4735_v2 = vrot.slane %v4536_v22, 1  ;;  %v4578_v47 = vrot.slane %v4537_v39, 1  ;;  %v5031_v52 = vld [vmem:[%s9750_s5 + $0xb8] sm:$0xff] }
 0x345   :  { %4551 = vst.msk [vmem:[#allocation5 + $0x28] sm:$0xff] %vm4501_vm8, %v4536_v22  ;;  %v4672_v5 = vld [vmem:[#allocation4 + $0x18] sm:$0x3]  ;;  %v5030_v22 = vld [vmem:[%s9750_s5 + $0xb0] sm:$0xff] }
 0x346   :  { %4803 = vrot.lane.b32.xlu0 %v4783_v35, %s5757_s24  ;;  %v4636_v54 = vsel %vm485_vm3, %v4634_v13, %v4635_v50  ;;  %v4579_v36 = vsel %vm243_vm0, %v4735_v2, %v4578_v47  ;;  %v4736_v32 = vrot.slane %v4672_v5, 1  ;;  %v5028_v47 = vld [vmem:[%s9750_s5 + $0xa0] sm:$0xff] }
 0x347   :  { %4664 = vst.msk [vmem:[#allocation5 + $0x30] sm:$0xff] %vm4501_vm8, %v4636_v54  ;;  %4600 = vrot.lane.b32.xlu1 %v4579_v36, %s5757_s24 }
 0x348   :  { %v5002_v6 = vld [vmem:[#allocation5 + $0x110] sm:$0xff]  ;;  %4720 = vst.msk [vmem:[#allocation5 + $0x30] sm:$0xff] %vm4622_vm2, %v4698_v25 }
 0x349   :  { %5661 = vmatmul.msk.f32.gmra.mxu2 %vm4501_vm8, %v5002_v6  ;;  %v5036_v25 = vld [vmem:[%s9750_s5 + $0xe0] sm:$0xff] }
 0x34c   :  { %4701 = vrot.lane.b32.xlu2 %v9164_v18, %s5757_s24  ;;  %v4778_v18 = vrot.slane %v9311_v12, 2 }
 0x34e   :  { %4809 = vrot.lane.b32.xlu0 %v9316_v57, %s5757_s24  ;;  %v5727_v57 = vld [vmem:[#allocation4 + $0x28] sm:$0x3] }
 0x34f   :  { %4606 = vrot.lane.b32.xlu1 %v9186_v40, %s5757_s24  ;;  %v4779_v43 = vrot.slane %v5727_v57, 2  ;;  %v4737_v40 = vsel %vm243_vm0, %v4735_v2, %v4736_v32  ;;  %v5029_v2 = vld [vmem:[%s9750_s5 + $0xa8] sm:$0xff] }
 0x350   :  { %4767 = vst.msk [vmem:[#allocation5 + $0x10] sm:$0xff] %vm4501_vm8, %v4737_v40  ;;  %v5025_v57 = vld [vmem:[%s9750_s5 + $0x88] sm:$0xff] }
 0x351   :  { %v4780_v14 = vsel %vm485_vm3, %v4778_v18, %v4779_v43  ;;  %v4983_v18 = vld [vmem:[#allocation5 + $0x78] sm:$0xff]  ;;  %v5024_v43 = vld [vmem:[%s9750_s5 + $0x80] sm:$0xff] }
 0x354   :  { %4707 = vrot.lane.b32.xlu2 %v9340_v19, %s5757_s24  ;;  %v4797_v19 = vrot.slane %v4686_v33, 2  ;;  %v4978_v33 = vld [vmem:[#allocation5 + $0x50] sm:$0xff] }
 0x356   :  { %4896 = vrot.lane.b32.xlu0 %v8775_v31, %s5757_s24  ;;  %v4891_v31 = vrot.slane %v4845_v7, 1  ;;  %v4798_v44 = vsel %vm485_vm3, %v4796_v9, %v4797_v19  ;;  %v5034_v7 = vld [vmem:[%s9750_s5 + $0xd0] sm:$0xff]  ;;  %v5055_v19 = vld [vmem:[%s9750_s5 + $0x178] sm:$0xff] }
 0x357   :  { %4612 = vrot.lane.b32.xlu1 %v9352_v62, %s5757_s24  ;;  %v4776_v62 = vrot.slane %v4672_v5, 2 }
 0x358   :  { %v4892_v12 = vsel %vm243_vm0, %v4756_v30, %v4891_v31  ;;  %v5027_v30 = vld [vmem:[%s9750_s5 + $0x98] sm:$0xff] }
 0x35c   :  { %4801 = vrot.lane.b32.xlu2 %v4780_v14, %s5757_s24 }
 0x35e   :  { %4902 = vrot.lane.b32.xlu0 %v9259_v0, %s5757_s24  ;;  %v4777_v0 = vsel %vm485_vm3, %v4634_v13, %v4776_v62  ;;  %v5054_v62 = vld [vmem:[%s9750_s5 + $0x170] sm:$0xff] }
 0x35f   :  { %4699 = vrot.lane.b32.xlu1 %v5725_v46, %s5757_s24  ;;  %v5033_v46 = vld [vmem:[%s9750_s5 + $0xc8] sm:$0xff] }
 0x364   :  { %4807 = vrot.lane.b32.xlu2 %v9262_v45, %s5757_s24  ;;  %v5023_v45 = vld [vmem:[%s9750_s5 + $0x78] sm:$0xff] }
 0x365   :  { %5108 = vmatpush.msrb.mxu3 %v5023_v45  ;;  %v5053_v45 = vld [vmem:[%s9750_s5 + $0x168] sm:$0xff] }
 0x366   :  { %4908 = vrot.lane.b32.xlu0 %v4892_v12, %s5757_s24 }
 0x367   :  { %4705 = vrot.lane.b32.xlu1 %v9298_v1, %s5757_s24  ;;  %v4631_v1 = vrot.slane %v9086_v60, 2  ;;  %5109 = vmatpush.msrb.mxu3 %v5022_v34  ;;  %v5021_v60 = vld [vmem:[%s9750_s5 + $0x68] sm:$0xff]  ;;  %v5052_v34 = vld [vmem:[%s9750_s5 + $0x160] sm:$0xff] }
 0x369   :  { %v4633_v24 = vsel %vm485_vm3, %v4631_v1, %v4632_v61  ;;  %5110 = vmatpush.msrb.mxu3 %v5021_v60  ;;  %v5051_v61 = vld [vmem:[%s9750_s5 + $0x158] sm:$0xff] }
 0x36a   :  { %4663 = vst.msk [vmem:[#allocation5 + $0x8] sm:$0xff] %vm4501_vm8, %v4633_v24  ;;  %v5050_v24 = vld [vmem:[%s9750_s5 + $0x150] sm:$0xff] }
 0x36b   :  { %5111 = vmatpush.msrb.mxu3 %v5020_v42 }
 0x36c   :  { %4813 = vrot.lane.b32.xlu2 %v4798_v44, %s5757_s24 }
 0x36f   :  { %4799 = vrot.lane.b32.xlu1 %v4777_v0, %s5757_s24  ;;  %v4993_v0 = vld [vmem:[#allocation5 + $0xc8] sm:$0xff] }
 0x374   :  { %4900 = vrot.lane.b32.xlu2 %v9189_v41, %s5757_s24  ;;  %v5019_v41 = vld [vmem:[%s9750_s5 + $0x58] sm:$0xff] }
 0x375   :  { %5112 = vmatpush.msrb.mxu3 %v5019_v41  ;;  %v5049_v41 = vld [vmem:[%s9750_s5 + $0x148] sm:$0xff] }
 0x377   :  { %4805 = vrot.lane.b32.xlu1 %v9193_v29, %s5757_s24  ;;  %v5018_v29 = vld [vmem:[%s9750_s5 + $0x50] sm:$0xff] }
 0x378   :  { %5113 = vmatpush.msrb.mxu3 %v5018_v29  ;;  %v5048_v29 = vld [vmem:[%s9750_s5 + $0x140] sm:$0xff] }
 0x37c   :  { %4906 = vrot.lane.b32.xlu2 %v9355_v4, %s5757_s24  ;;  %v5017_v4 = vld [vmem:[%s9750_s5 + $0x48] sm:$0xff] }
 0x37d   :  { %5114 = vmatpush.msrb.mxu3 %v5017_v4 }
 0x37f   :  { %4811 = vrot.lane.b32.xlu1 %v9358_v17, %s5757_s24  ;;  %v5016_v17 = vld [vmem:[%s9750_s5 + $0x40] sm:$0xff] }
 0x380   :  { %5115 = vmatpush.msrb.mxu3 %v5016_v17 }
 0x382   :  { %5116 = vmatpush.msrb.mxu3 %v5015_v23  ;;  %v5047_v23 = vld [vmem:[%s9750_s5 + $0x138] sm:$0xff] }
 0x384   :  { %5117 = vmatpush.msrb.mxu3 %v5014_v53  ;;  %v5046_v53 = vld [vmem:[%s9750_s5 + $0x130] sm:$0xff] }
 0x387   :  { %4898 = vrot.lane.b32.xlu1 %v9050_v37, %s5757_s24  ;;  %v5013_v37 = vld [vmem:[%s9750_s5 + $0x28] sm:$0xff] }
 0x388   :  { %5118 = vmatpush.msrb.mxu3 %v5013_v37 }
 0x38a   :  { %5119 = vmatpush.msrb.mxu3 %v5012_v59  ;;  %v4974_v59 = vld [vmem:[#allocation5 + $0x30] sm:$0xff] }
 0x38c   :  { %5120 = vmatpush.msrb.mxu3 %v5011_v3  ;;  %v5045_v3 = vld [vmem:[%s9750_s5 + $0x128] sm:$0xff] }
 0x38e   :  { %5121 = vmatpush.msrb.mxu3 %v5010_v58  ;;  %v5044_v58 = vld [vmem:[%s9750_s5 + $0x120] sm:$0xff] }
 0x38f   :  { %4904 = vrot.lane.b32.xlu1 %v9319_v10, %s5757_s24  ;;  %v5009_v10 = vld [vmem:[%s9750_s5 + $0x8] sm:$0xff] }
 0x390   :  { %5122 = vmatpush.msrb.mxu3 %v5009_v10 }
 0x392   :  { %5123 = vmatpush.msrb.mxu3 %v5008_v16  ;;  %v5043_v16 = vld [vmem:[%s9750_s5 + $0x118] sm:$0xff] }
 0x393   :  { %5124 = vmatmul.f32.vlgmr.msrb.gmra.mxu3 %v4968_v38  ;;  %v5042_v38 = vld [vmem:[%s9750_s5 + $0x110] sm:$0xff] }
 0x394   :  { %5149 = vmatpush.msra.mxu3 %v5039_v20 }
 0x396   :  { %5150 = vmatpush.msra.mxu3 %v5038_v28  ;;  %v5041_v28 = vld [vmem:[%s9750_s5 + $0x108] sm:$0xff] }
 0x398   :  { %5151 = vmatpush.msra.mxu3 %v5037_v63  ;;  %v4846_v63 = vld [vmem:[#allocation4 + $0x90] sm:$0xff] }
 0x399   :  { %4855 = vst.msk [vmem:[#allocation5 + $0x130] sm:$0xff] %vm4501_vm8, %v4846_v63 }
 0x39a   :  { %5152 = vmatpush.msra.mxu3 %v5036_v25  ;;  %v4847_v25 = vld [vmem:[#allocation4 + $0x98] sm:$0x3] }
 0x39c   :  { %5153 = vmatpush.msra.mxu3 %v5035_v11  ;;  %v4949_v11 = vrot.slane %v4846_v63, 2 }
 0x39e   :  { %v4696_v26 = vpop.permute.xlu2 %4695  ;;  %5154 = vmatpush.msra.mxu3 %v5034_v7  ;;  %v4894_v7 = vrot.slane %v4847_v25, 1 }
 0x39f   :  { %4719 = vst.msk [vmem:[#allocation5 + $0x8] sm:$0xff] %vm4622_vm2, %v4696_v26  ;;  %v5040_v26 = vld [vmem:[%s9750_s5 + $0x100] sm:$0xff] }
 0x3a0   :  { %5155 = vmatpush.msra.mxu3 %v5033_v46 }
 0x3a2   :  { %5156 = vmatpush.msra.mxu3 %v5032_v48  ;;  %v4989_v48 = vld [vmem:[#allocation5 + $0xa8] sm:$0xff] }
 0x3a4   :  { %5157 = vmatpush.msra.mxu3 %v5031_v52  ;;  %v5069_v52 = vld [vmem:[%s9750_s5 + $0x1e8] sm:$0xff] }
 0x3a6   :  { %v4702_v49 = vpop.permute.xlu2 %4701  ;;  %5158 = vmatpush.msra.mxu3 %v5030_v22  ;;  %v4969_v17 = vld [vmem:[#allocation5 + $0x8] sm:$0xff]  ;;  %v5068_v22 = vld [vmem:[%s9750_s5 + $0x1e0] sm:$0xff] }
 0x3a7   :  { %4722 = vst.msk [vmem:[#allocation5 + $0x80] sm:$0xff] %vm4622_vm2, %v4702_v49  ;;  %v4893_v49 = vrot.slane %v4846_v63, 1 }
 0x3a8   :  { %5159 = vmatpush.msra.mxu3 %v5029_v2  ;;  %v5065_v2 = vld [vmem:[%s9750_s5 + $0x1c8] sm:$0xff] }
 0x3aa   :  { %5160 = vmatpush.msra.mxu3 %v5028_v47  ;;  %v5064_v47 = vld [vmem:[%s9750_s5 + $0x1c0] sm:$0xff] }
 0x3ac   :  { %5161 = vmatpush.msra.mxu3 %v5027_v30 }
 0x3ae   :  { %v4708_v9 = vpop.permute.xlu2 %4707  ;;  %5162 = vmatpush.msra.mxu3 %v5026_v27  ;;  %v4984_v20 = vld [vmem:[#allocation5 + $0x80] sm:$0xff]  ;;  %v5061_v27 = vld [vmem:[%s9750_s5 + $0x1a8] sm:$0xff] }
 0x3af   :  { %4725 = vst.msk [vmem:[#allocation5 + $0xf8] sm:$0xff] %vm4622_vm2, %v4708_v9  ;;  %v4950_v9 = vrot.slane %v4847_v25, 2 }
 0x3b0   :  { %v4710_v8 = vpop.permute.xlu0 %4709  ;;  %5163 = vmatpush.msra.mxu3 %v5025_v57 }
 0x3b1   :  { %4726 = vst.msk [vmem:[#allocation5 + $0x120] sm:$0xff] %vm4622_vm2, %v4710_v8  ;;  %v4895_v8 = vsel %vm243_vm0, %v4893_v49, %v4894_v7  ;;  %v4951_v46 = vsel %vm485_vm3, %v4949_v11, %v4950_v9 }
 0x3b2   :  { %5164 = vmatpush.msra.mxu3 %v5024_v43  ;;  %4967 = vst.msk [vmem:[#allocation5 + $0x138] sm:$0xff] %vm4501_vm8, %v4951_v46  ;;  %4910 = vrot.lane.b32.xlu1 %v4895_v8, %s5757_s24  ;;  %v5058_v43 = vld [vmem:[%s9750_s5 + $0x190] sm:$0xff] }
 0x3b4   :  { %5190 = vmatpush.msrb.mxu3 %v5055_v19 }
 0x3b6   :  { %v4802_v15 = vpop.permute.xlu2 %4801  ;;  %5191 = vmatpush.msrb.mxu3 %v5054_v62 }
 0x3b7   :  { %4824 = vst.msk [vmem:[#allocation5 + $0x38] sm:$0xff] %vm4622_vm2, %v4802_v15  ;;  %v5071_v15 = vld [vmem:[%s9750_s5 + $0x1f8] sm:$0xff] }
 0x3b8   :  { %v4804_v56 = vpop.permute.xlu0 %4803  ;;  %5192 = vmatpush.msrb.mxu3 %v5053_v45 }
 0x3b9   :  { %4825 = vst.msk [vmem:[#allocation5 + $0x60] sm:$0xff] %vm4622_vm2, %v4804_v56  ;;  %v4601_v55 = vpop.permute.xlu1 %4600  ;;  %v5070_v56 = vld [vmem:[%s9750_s5 + $0x1f0] sm:$0xff] }
 0x3ba   :  { %4624 = vst.msk [vmem:[#allocation5 + $0x28] sm:$0xff] %vm4622_vm2, %v4601_v55  ;;  %5193 = vmatpush.msrb.mxu3 %v5052_v34 }
 0x3bc   :  { %5194 = vmatpush.msrb.mxu3 %v5051_v61 }
 0x3be   :  { %v4808_v39 = vpop.permute.xlu2 %4807  ;;  %5195 = vmatpush.msrb.mxu3 %v5050_v24  ;;  %v4975_v30 = vld [vmem:[#allocation5 + $0x38] sm:$0xff] }
 0x3bf   :  { %4827 = vst.msk [vmem:[#allocation5 + $0xb0] sm:$0xff] %vm4622_vm2, %v4808_v39  ;;  %v4999_v39 = vld [vmem:[#allocation5 + $0xf8] sm:$0xff] }
 0x3c0   :  { %v4810_v35 = vpop.permute.xlu0 %4809  ;;  %5196 = vmatpush.msrb.mxu3 %v5049_v41 }
 0x3c1   :  { %4828 = vst.msk [vmem:[#allocation5 + $0xd8] sm:$0xff] %vm4622_vm2, %v4810_v35  ;;  %v4607_v13 = vpop.permute.xlu1 %4606  ;;  %v4973_v50 = vld [vmem:[#allocation5 + $0x28] sm:$0xff] }
 0x3c2   :  { %4627 = vst.msk [vmem:[#allocation5 + $0xa0] sm:$0xff] %vm4622_vm2, %v4607_v13  ;;  %5127 = vmatmul.f32.gmra.mxu3 %v4973_v50  ;;  %v5067_v35 = vld [vmem:[%s9750_s5 + $0x1d8] sm:$0xff]  ;;  %v5066_v13 = vld [vmem:[%s9750_s5 + $0x1d0] sm:$0xff] }
 0x3c3   :  { %5197 = vmatpush.msrb.mxu3 %v5048_v29  ;;  %v5004_v50 = vld [vmem:[#allocation5 + $0x120] sm:$0xff] }
 0x3c5   :  { %5198 = vmatpush.msrb.mxu3 %v5047_v23 }
 0x3c6   :  { %v4814_v54 = vpop.permute.xlu2 %4813  ;;  %v4990_v19 = vld [vmem:[#allocation5 + $0xb0] sm:$0xff] }
 0x3c7   :  { %4830 = vst.msk [vmem:[#allocation5 + $0x128] sm:$0xff] %vm4622_vm2, %v4814_v54  ;;  %5199 = vmatpush.msrb.mxu3 %v5046_v53 }
 0x3c8   :  { %v4897_v36 = vpop.permute.xlu0 %4896 }
 0x3c9   :  { %4920 = vst.msk [vmem:[#allocation5 + $0x18] sm:$0xff] %vm4622_vm2, %v4897_v36  ;;  %v4613_v6 = vpop.permute.xlu1 %4612  ;;  %v4988_v12 = vld [vmem:[#allocation5 + $0xa0] sm:$0xff]  ;;  %5200 = vmatpush.msrb.mxu3 %v5045_v3  ;;  %v5063_v36 = vld [vmem:[%s9750_s5 + $0x1b8] sm:$0xff] }
 0x3ca   :  { %4630 = vst.msk [vmem:[#allocation5 + $0x118] sm:$0xff] %vm4622_vm2, %v4613_v6  ;;  %5130 = vmatmul.f32.gmra.mxu3 %v4978_v33  ;;  %v5062_v33 = vld [vmem:[%s9750_s5 + $0x1b0] sm:$0xff] }
 0x3cb   :  { %5201 = vmatpush.msrb.mxu3 %v5044_v58  ;;  %v5007_v58 = vld [vmem:[#allocation5 + $0x138] sm:$0xff] }
 0x3cc   :  { %5662 = vmatmul.msk.f32.gmra.mxu2 %vm4501_vm8, %v5007_v58 }
 0x3cd   :  { %5202 = vmatpush.msrb.mxu3 %v5043_v16 }
 0x3ce   :  { %v4901_v21 = vpop.permute.xlu2 %4900 }
 0x3cf   :  { %4922 = vst.msk [vmem:[#allocation5 + $0x68] sm:$0xff] %vm4622_vm2, %v4901_v21  ;;  %5203 = vmatpush.msrb.mxu3 %v5042_v38 }
 0x3d0   :  { %v4903_v5 = vpop.permute.xlu0 %4902  ;;  %v4971_v61 = vld [vmem:[#allocation5 + $0x18] sm:$0xff] }
 0x3d1   :  { %4923 = vst.msk [vmem:[#allocation5 + $0x90] sm:$0xff] %vm4622_vm2, %v4903_v5  ;;  %v4700_v32 = vpop.permute.xlu1 %4699  ;;  %v5003_v42 = vld [vmem:[#allocation5 + $0x118] sm:$0xff]  ;;  %5204 = vmatpush.msrb.mxu3 %v5041_v28  ;;  %v5060_v5 = vld [vmem:[%s9750_s5 + $0x1a0] sm:$0xff] }
 0x3d2   :  { %4721 = vst.msk [vmem:[#allocation5 + $0x58] sm:$0xff] %vm4622_vm2, %v4700_v32  ;;  %5133 = vmatmul.f32.gmra.mxu3 %v4983_v18  ;;  %v4980_v32 = vld [vmem:[#allocation5 + $0x60] sm:$0xff]  ;;  %v5059_v18 = vld [vmem:[%s9750_s5 + $0x198] sm:$0xff] }
 0x3d3   :  { %5205 = vmatpush.msrb.mxu3 %v5040_v26 }
 0x3d6   :  { %v4907_v40 = vpop.permute.xlu2 %4906 }
 0x3d7   :  { %4925 = vst.msk [vmem:[#allocation5 + $0xe0] sm:$0xff] %vm4622_vm2, %v4907_v40 }
 0x3d8   :  { %v4909_v14 = vpop.permute.xlu0 %4908  ;;  %v4986_v3 = vld [vmem:[#allocation5 + $0x90] sm:$0xff] }
 0x3d9   :  { %4926 = vst.msk [vmem:[#allocation5 + $0x108] sm:$0xff] %vm4622_vm2, %v4909_v14  ;;  %v4706_v31 = vpop.permute.xlu1 %4705  ;;  %v4979_v10 = vld [vmem:[#allocation5 + $0x58] sm:$0xff] }
 0x3da   :  { %4724 = vst.msk [vmem:[#allocation5 + $0xd0] sm:$0xff] %vm4622_vm2, %v4706_v31  ;;  %5136 = vmatmul.f32.gmra.mxu3 %v4988_v12  ;;  %v5057_v14 = vld [vmem:[%s9750_s5 + $0x188] sm:$0xff]  ;;  %v5056_v12 = vld [vmem:[%s9750_s5 + $0x180] sm:$0xff]  ;;  %s5759_s5 = smov [#allocation6]  }
 0x3de   :  { %v4996_v25 = vld [vmem:[#allocation5 + $0xe0] sm:$0xff] }
 0x3e0   :  { %v5001_v9 = vld [vmem:[#allocation5 + $0x108] sm:$0xff] }
 0x3e1   :  { %v4800_v44 = vpop.permute.xlu1 %4799  ;;  %v4994_v55 = vld [vmem:[#allocation5 + $0xd0] sm:$0xff] }
 0x3e2   :  { %4823 = vst.msk [vmem:[#allocation5 + $0x10] sm:$0xff] %vm4622_vm2, %v4800_v44  ;;  %5139 = vmatmul.f32.gmra.mxu3 %v4993_v0  ;;  %v4995_v44 = vld [vmem:[#allocation5 + $0xd8] sm:$0xff] }
 0x3e9   :  { %v4806_v1 = vpop.permute.xlu1 %4805  ;;  %v4970_v54 = vld [vmem:[#allocation5 + $0x10] sm:$0xff] }
 0x3ea   :  { %4826 = vst.msk [vmem:[#allocation5 + $0x88] sm:$0xff] %vm4622_vm2, %v4806_v1  ;;  %5142 = vmatmul.f32.gmra.mxu3 %v4998_v51  ;;  %v5005_v1 = vld [vmem:[#allocation5 + $0x128] sm:$0xff] }
 0x3f1   :  { %v4812_v60 = vpop.permute.xlu1 %4811  ;;  %v4985_v40 = vld [vmem:[#allocation5 + $0x88] sm:$0xff] }
 0x3f2   :  { %4829 = vst.msk [vmem:[#allocation5 + $0x100] sm:$0xff] %vm4622_vm2, %v4812_v60  ;;  %5145 = vmatmul.f32.gmra.mxu3 %v5003_v42  ;;  %v5690_v42 = vld [vmem:[%s9751_s6] ss:$0 sm:$0xff]  ;;  %s5513_s6 = sshll.u32 %s5759_s5, 4  ;;  %s5514_s6 = int_to_ptr.vmem [resolvable:$true] %s5513_s6 }
 0x3f9   :  { %v4899_v4 = vpop.permute.xlu1 %4898  ;;  %v5000_v45 = vld [vmem:[#allocation5 + $0x100] sm:$0xff] }
 0x3fa   :  { %4921 = vst.msk [vmem:[#allocation5 + $0x40] sm:$0xff] %vm4622_vm2, %v4899_v4  ;;  %5165 = vmatmul.f32.vlgmr.msra.gmra.mxu3 %v4969_v17  ;;  %v4981_v17 = vld [vmem:[#allocation5 + $0x68] sm:$0xff] }
 0x3fb   :  { %5231 = vmatpush.msra.mxu3 %v5071_v15 }
 0x3fd   :  { %5232 = vmatpush.msra.mxu3 %v5070_v56 }
 0x3ff   :  { %5233 = vmatpush.msra.mxu3 %v5069_v52 }
 0x401   :  { %v4905_v37 = vpop.permute.xlu1 %4904  ;;  %5234 = vmatpush.msra.mxu3 %v5068_v22  ;;  %v4976_v60 = vld [vmem:[#allocation5 + $0x40] sm:$0xff] }
 0x402   :  { %4924 = vst.msk [vmem:[#allocation5 + $0xb8] sm:$0xff] %vm4622_vm2, %v4905_v37  ;;  %5168 = vmatmul.f32.gmra.mxu3 %v4974_v59 }
 0x403   :  { %5235 = vmatpush.msra.mxu3 %v5067_v35 }
 0x405   :  { %5236 = vmatpush.msra.mxu3 %v5066_v13 }
 0x407   :  { %5237 = vmatpush.msra.mxu3 %v5065_v2 }
 0x409   :  { %5238 = vmatpush.msra.mxu3 %v5064_v47 }
 0x40a   :  { %5171 = vmatmul.f32.gmra.mxu3 %v4979_v10 }
 0x40b   :  { %5239 = vmatpush.msra.mxu3 %v5063_v36 }
 0x40d   :  { %5240 = vmatpush.msra.mxu3 %v5062_v33 }
 0x40f   :  { %5241 = vmatpush.msra.mxu3 %v5061_v27 }
 0x411   :  { %5242 = vmatpush.msra.mxu3 %v5060_v5 }
 0x412   :  { %5174 = vmatmul.f32.gmra.mxu3 %v4984_v20  ;;  %v4991_v20 = vld [vmem:[#allocation5 + $0xb8] sm:$0xff] }
 0x413   :  { %5243 = vmatpush.msra.mxu3 %v5059_v18  ;;  %v5289_v18 = vpop.f32.mrf.mxu2 }
 0x415   :  { %5244 = vmatpush.msra.mxu3 %v5058_v43 }
 0x416   :  { %v9661_v6 = vpop.f32.mrf.mxu3 }
 0x417   :  { %5245 = vmatpush.msra.mxu3 %v5057_v14  ;;  %v5126_v22 = vadd.f32 %v5690_v42, %v9661_v6 }
 0x419   :  { %5246 = vmatpush.msra.mxu3 %v5056_v12 }
 0x41a   :  { %5177 = vmatmul.f32.gmra.mxu3 %v4989_v48 }
 0x422   :  { %5180 = vmatmul.f32.gmra.mxu3 %v4994_v55 }
 0x424   :  { %v4911_v23 = vpop.permute.xlu1 %4910 }
 0x425   :  { %4927 = vst.msk [vmem:[#allocation5 + $0x130] sm:$0xff] %vm4622_vm2, %v4911_v23 }
 0x42a   :  { %5183 = vmatmul.f32.gmra.mxu3 %v4999_v39 }
 0x42c   :  { %v5006_v15 = vld [vmem:[#allocation5 + $0x130] sm:$0xff] }
 0x432   :  { %5186 = vmatmul.f32.gmra.mxu3 %v5004_v50 }
 0x43a   :  { %5206 = vmatmul.f32.vlgmr.msrb.gmra.mxu3 %v4970_v54 }
 0x442   :  { %5209 = vmatmul.f32.gmra.mxu3 %v4975_v30 }
 0x445   :  { %v5128_v21 = vpop.f32.mrf.mxu3 }
 0x446   :  { %v5129_v41 = vadd.f32 %v5690_v42, %v5128_v21 }
 0x44a   :  { %5212 = vmatmul.f32.gmra.mxu3 %v4980_v32 }
 0x44d   :  { %v5131_v57 = vpop.f32.mrf.mxu3 }
 0x44e   :  { %v5132_v53 = vadd.f32 %v5690_v42, %v5131_v57 }
 0x452   :  { %5215 = vmatmul.f32.gmra.mxu3 %v4985_v40 }
 0x455   :  { %v5134_v31 = vpop.f32.mrf.mxu3 }
 0x456   :  { %v5135_v10 = vadd.f32 %v5690_v42, %v5134_v31  ;;  %v5292_v31 = vpop.f32.mrf.mxu2 }
 0x45a   :  { %5218 = vmatmul.f32.gmra.mxu3 %v4990_v19 }
 0x45d   :  { %v5137_v62 = vpop.f32.mrf.mxu3 }
 0x45e   :  { %v5138_v28 = vadd.f32 %v5690_v42, %v5137_v62 }
 0x462   :  { %5221 = vmatmul.f32.gmra.mxu3 %v4995_v44 }
 0x465   :  { %v5140_v0 = vpop.f32.mrf.mxu3 }
 0x466   :  { %v5141_v49 = vadd.f32 %v5690_v42, %v5140_v0 }
 0x46a   :  { %5224 = vmatmul.f32.gmra.mxu3 %v5000_v45 }
 0x46d   :  { %v5143_v34 = vpop.f32.mrf.mxu3 }
 0x46e   :  { %v5144_v8 = vadd.f32 %v5690_v42, %v5143_v34 }
 0x472   :  { %5227 = vmatmul.f32.gmra.mxu3 %v5005_v1 }
 0x475   :  { %v5146_v51 = vpop.f32.mrf.mxu3 }
 0x476   :  { %v5147_v56 = vadd.f32 %v5690_v42, %v5146_v51 }
 0x47a   :  { %5247 = vmatmul.f32.vlgmr.msra.gmra.mxu3 %v4971_v61 }
 0x47d   :  { %v5166_v24 = vpop.f32.mrf.mxu3 }
 0x47e   :  { %v5167_v39 = vadd.f32 %v5166_v24, %v5126_v22  ;;  %v5295_v24 = vpop.f32.mrf.mxu2 }
 0x482   :  { %5250 = vmatmul.f32.gmra.mxu3 %v4976_v60 }
 0x485   :  { %v5169_v29 = vpop.f32.mrf.mxu3 }
 0x486   :  { %v5170_v4 = vadd.f32 %v5169_v29, %v5129_v41 }
 0x48a   :  { %5253 = vmatmul.f32.gmra.mxu3 %v4981_v17 }
 0x48d   :  { %v5172_v37 = vpop.f32.mrf.mxu3 }
 0x48e   :  { %v5173_v59 = vadd.f32 %v5172_v37, %v5132_v53  ;;  %v5298_v37 = vpop.f32.mrf.mxu2 }
 0x492   :  { %5256 = vmatmul.f32.gmra.mxu3 %v4986_v3 }
 0x495   :  { %v5175_v16 = vpop.f32.mrf.mxu3 }
 0x496   :  { %v5176_v38 = vadd.f32 %v5175_v16, %v5135_v10 }
 0x49a   :  { %5259 = vmatmul.f32.gmra.mxu3 %v4991_v20 }
 0x49d   :  { %v5178_v26 = vpop.f32.mrf.mxu3 }
 0x49e   :  { %v9689_v63 = vadd.f32 %v5178_v26, %v5138_v28 }
 0x4a2   :  { %5262 = vmatmul.f32.gmra.mxu3 %v4996_v25 }
 0x4a5   :  { %v5181_v11 = vpop.f32.mrf.mxu3 }
 0x4a6   :  { %v5182_v7 = vadd.f32 %v5181_v11, %v5141_v49 }
 0x4aa   :  { %5265 = vmatmul.f32.gmra.mxu3 %v5001_v9 }
 0x4ad   :  { %v5184_v46 = vpop.f32.mrf.mxu3 }
 0x4ae   :  { %v9691_v48 = vadd.f32 %v5184_v46, %v5144_v8 }
 0x4b2   :  { %5268 = vmatmul.f32.gmra.mxu3 %v5006_v15 }
 0x4b5   :  { %v5187_v55 = vpop.f32.mrf.mxu3 }
 0x4b6   :  { %v9693_v52 = vadd.f32 %v5187_v55, %v5147_v56 }
 0x4bd   :  { %v5207_v35 = vpop.f32.mrf.mxu3 }
 0x4be   :  { %v5208_v13 = vadd.f32 %v5207_v35, %v5167_v39 }
 0x4c5   :  { %v5210_v50 = vpop.f32.mrf.mxu3 }
 0x4c6   :  { %v5211_v2 = vadd.f32 %v5210_v50, %v5170_v4 }
 0x4cd   :  { %v5213_v47 = vpop.f32.mrf.mxu3 }
 0x4ce   :  { %v5214_v54 = vadd.f32 %v5213_v47, %v5173_v59 }
 0x4d5   :  { %v5216_v36 = vpop.f32.mrf.mxu3 }
 0x4d6   :  { %v5217_v33 = vadd.f32 %v5216_v36, %v5176_v38 }
 0x4dd   :  { %v5219_v30 = vpop.f32.mrf.mxu3 }
 0x4de   :  { %v5220_v26 = vadd.f32 %v5219_v30, %v9689_v63 }
 0x4e5   :  { %v5222_v27 = vpop.f32.mrf.mxu3 }
 0x4e6   :  { %v9696_v21 = vadd.f32 %v5222_v27, %v5182_v7  ;;  %v5301_v7 = vpop.f32.mrf.mxu2 }
 0x4ed   :  { %v9698_v5 = vpop.f32.mrf.mxu3 }
 0x4f5   :  { %v9700_v32 = vpop.f32.mrf.mxu3 }
 0x4fd   :  { %v5248_v57 = vpop.f32.mrf.mxu3 }
 0x4fe   :  { %v5249_v6 = vadd.f32 %v5248_v57, %v5208_v13  ;;  %v5304_v13 = vpop.f32.mrf.mxu2 }
 0x500   :  { %v5290_v43 = vadd.f32 %v5289_v18, %v5249_v6 }
 0x502   :  { %v5313_v40 = vmax.f32 %v5290_v43, 0.0  ;;  %v5226_v43 = vadd.f32 %v9698_v5, %v9691_v48  ;;  %v5229_v5 = vadd.f32 %v9700_v32, %v9693_v52 }
 0x504   :  { %v5329_v14 = vrot.slane %v5313_v40, 1  ;;  %v5369_v45 = vrot.slane %v5313_v40, 3 }
 0x505   :  { %v5251_v12 = vpop.f32.mrf.mxu3 }
 0x506   :  { %v5339_v19 = vmax.f32 %v5313_v40, %v5329_v14  ;;  %v5252_v1 = vadd.f32 %v5251_v12, %v5211_v2 }
 0x508   :  { %v5349_v62 = vrot.slane %v5339_v19, 1  ;;  %v5359_v44 = vrot.slane %v5339_v19, 2  ;;  %v5379_v0 = vsel %vm4440_vm9, %v5313_v40, %v5339_v19  ;;  %v5293_v42 = vadd.f32 %v5292_v31, %v5252_v1  ;;  %v5307_v31 = vpop.f32.mrf.mxu2 }
 0x50a   :  { %v5384_v34 = vsel %vm4449_vm10, %v5379_v0, %v5349_v62  ;;  %v5314_v17 = vmax.f32 %v5293_v42, 0.0 }
 0x50b   :  { %v5389_v51 = vsel %vm4458_vm11, %v5384_v34, %v5359_v44 }
 0x50c   :  { %v5394_v61 = vsel %vm4467_vm12, %v5389_v51, %v5369_v45 }
 0x50d   :  { %v5254_v60 = vpop.f32.mrf.mxu3  ;;  %v5663_v29 = vmul.f32 -1.442695, %v5394_v61 }
 0x50e   :  { %v5255_v41 = vadd.f32 %v5254_v60, %v5214_v54 }
 0x50f   :  { %5691 = vpow2.f32 %v5663_v29 }
 0x510   :  { %v5296_v4 = vadd.f32 %v5295_v24, %v5255_v41  ;;  %v5310_v29 = vpop.f32.mrf.mxu2 }
 0x512   :  { %v5315_v23 = vmax.f32 %v5296_v4, 0.0 }
 0x514   :  { %v5321_v53 = vmax.f32 %v5314_v17, %v5315_v23 }
 0x515   :  { %v5257_v59 = vpop.f32.mrf.mxu3  ;;  %v5692_v10 = vpop.eup %5691 }
 0x516   :  { %v5330_v3 = vrot.slane %v5321_v53, 1  ;;  %v5258_v28 = vadd.f32 %v5257_v59, %v5217_v33  ;;  %v9708_v25 = vadd.f32 1.0, %v5692_v10  ;;  %v5370_v49 = vrot.slane %v5321_v53, 3 }
 0x518   :  { %v5340_v58 = vmax.f32 %v5321_v53, %v5330_v3  ;;  %v5299_v15 = vadd.f32 %v5298_v37, %v5258_v28  ;;  %5693 = vrcp.f32 %v9708_v25  ;;  %v5430_v42 = vand.u32 2147483648, %v9708_v25 }
 0x519   :  { %v5428_v4 = vand.u32 2147483647, %v9708_v25  ;;  %vm5424_vm1 = vweird.f32 %v9708_v25 }
 0x51a   :  { %v5350_v16 = vrot.slane %v5340_v58, 1  ;;  %v5360_v38 = vrot.slane %v5340_v58, 2  ;;  %v5380_v20 = vsel %vm4440_vm9, %v5321_v53, %v5340_v58  ;;  %v5316_v39 = vmax.f32 %v5299_v15, 0.0 }
 0x51b   :  { %vm5429_vm4 = vcmp.eq.f32.partialorder %v5428_v4, 8.507059e+37  ;;  %v5431_v32 = vor.u32 1.1754944e-38, %v5430_v42 }
 0x51c   :  { %v5385_v11 = vsel %vm4449_vm10, %v5380_v20, %v5350_v16 }
 0x51d   :  { %v5390_v9 = vsel %vm4458_vm11, %v5385_v11, %v5360_v38  ;;  %v5260_v8 = vpop.f32.mrf.mxu3 }
 0x51e   :  { %v5395_v46 = vsel %vm4467_vm12, %v5390_v9, %v5370_v49  ;;  %v5261_v56 = vadd.f32 %v5260_v8, %v5220_v26  ;;  %v5694_v2 = vpop.eup %5693 }
 0x51f   :  { %v5664_v55 = vmul.f32 -1.442695, %v5395_v46  ;;  %v5420_v30 = vmul.f32 %v5694_v2, %v9708_v25  ;;  %vm5425_vm0 = vweird.f32 %v5694_v2 }
 0x520   :  { %v5302_v22 = vadd.f32 %v5301_v7, %v5261_v56  ;;  %vm5426_vm3 = vmor %vm5424_vm1, %vm5425_vm0 }
 0x521   :  { %5695 = vpow2.f32 %v5664_v55  ;;  %v5421_v62 = vsub.f32 1.0, %v5420_v30 }
 0x522   :  { %v5317_v63 = vmax.f32 %v5302_v22, 0.0 }
 0x523   :  { %v5422_v51 = vmul.f32 %v5694_v2, %v5421_v62 }
 0x524   :  { %v5322_v35 = vmax.f32 %v5316_v39, %v5317_v63 }
 0x525   :  { %v5263_v50 = vpop.f32.mrf.mxu3  ;;  %v5423_v53 = vadd.f32 %v5694_v2, %v5422_v51 }
 0x526   :  { %v5331_v47 = vrot.slane %v5322_v35, 1  ;;  %v5264_v27 = vadd.f32 %v5263_v50, %v9696_v21  ;;  %v5371_v40 = vrot.slane %v5322_v35, 3 }
 0x527   :  { %v5696_v54 = vpop.eup %5695  ;;  %v5427_v52 = vsel %vm5426_vm3, %v5694_v2, %v5423_v53 }
 0x528   :  { %v9714_v36 = vadd.f32 1.0, %v5696_v54  ;;  %v5341_v33 = vmax.f32 %v5322_v35, %v5331_v47  ;;  %v5305_v21 = vadd.f32 %v5304_v13, %v5264_v27  ;;  %v5432_v25 = vsel %vm5429_vm4, %v5431_v32, %v5427_v52 }
 0x529   :  { %v5494_v39 = vmul.f32 0.8, %v5432_v25 }
 0x52a   :  { %5697 = vrcp.f32 %v9714_v36  ;;  %v5351_v18 = vrot.slane %v5341_v33, 1  ;;  %v5361_v57 = vrot.slane %v5341_v33, 2  ;;  %v5381_v6 = vsel %vm4440_vm9, %v5322_v35, %v5341_v33 }
 0x52b   :  { %v5318_v61 = vmax.f32 %v5305_v21, 0.0  ;;  %v5443_v49 = vand.u32 2147483647, %v9714_v36  ;;  %v5445_v9 = vand.u32 2147483648, %v9714_v36  ;;  %vm5439_vm6 = vweird.f32 %v9714_v36 }
 0x52c   :  { %v5386_v14 = vsel %vm4449_vm10, %v5381_v6, %v5351_v18 }
 0x52d   :  { %v5391_v12 = vsel %vm4458_vm11, %v5386_v14, %v5361_v57  ;;  %v5266_v19 = vpop.f32.mrf.mxu3  ;;  %vm5444_vm8 = vcmp.eq.f32.partialorder %v5443_v49, 8.507059e+37  ;;  %v5446_v13 = vor.u32 1.1754944e-38, %v5445_v9  ;;  %v5499_v57 = vadd.f32 0.1, %v5494_v39 }
 0x52e   :  { %v5396_v44 = vsel %vm4467_vm12, %v5391_v12, %v5371_v40  ;;  %v5267_v0 = vadd.f32 %v5266_v19, %v5226_v43 }
 0x52f   :  { %v5665_v45 = vmul.f32 -1.442695, %v5396_v44  ;;  %5504 = vst [vmem:[#allocation6] sm:$0x1f] %v5499_v57 }
 0x530   :  { %v5698_v34 = vpop.eup %5697  ;;  %v5308_v1 = vadd.f32 %v5307_v31, %v5267_v0 }
 0x531   :  { %5699 = vpow2.f32 %v5665_v45  ;;  %v5435_v48 = vmul.f32 %v5698_v34, %v9714_v36  ;;  %vm5440_vm5 = vweird.f32 %v5698_v34 }
 0x532   :  { %v5319_v24 = vmax.f32 %v5308_v1, 0.0  ;;  %vm5441_vm7 = vmor %vm5439_vm6, %vm5440_vm5 }
 0x533   :  { %v5436_v59 = vsub.f32 1.0, %v5435_v48 }
 0x534   :  { %v5323_v60 = vmax.f32 %v5318_v61, %v5319_v24 }
 0x535   :  { %v5269_v41 = vpop.f32.mrf.mxu3  ;;  %v5437_v7 = vmul.f32 %v5698_v34, %v5436_v59 }
 0x536   :  { %v5332_v17 = vrot.slane %v5323_v60, 1  ;;  %v5270_v23 = vadd.f32 %v5269_v41, %v5229_v5  ;;  %v5372_v28 = vrot.slane %v5323_v60, 3 }
 0x537   :  { %v5700_v37 = vpop.eup %5699  ;;  %v5438_v56 = vadd.f32 %v5698_v34, %v5437_v7 }
 0x538   :  { %v5416_v3 = vadd.f32 1.0, %v5700_v37  ;;  %v5342_v58 = vmax.f32 %v5323_v60, %v5332_v17  ;;  %v5311_v10 = vadd.f32 %v5310_v29, %v5270_v23 }
 0x539   :  { %v5442_v35 = vsel %vm5441_vm7, %v5698_v34, %v5438_v56 }
 0x53a   :  { %5701 = vrcp.f32 %v5416_v3  ;;  %v5352_v16 = vrot.slane %v5342_v58, 1  ;;  %v5362_v38 = vrot.slane %v5342_v58, 2  ;;  %v5382_v20 = vsel %vm4440_vm9, %v5323_v60, %v5342_v58 }
 0x53b   :  { %v5320_v26 = vmax.f32 %v5311_v10, 0.0  ;;  %v5447_v30 = vsel %vm5444_vm8, %v5446_v13, %v5442_v35  ;;  %v5458_v43 = vand.u32 2147483647, %v5416_v3  ;;  %v5460_v40 = vand.u32 2147483648, %v5416_v3 }
 0x53c   :  { %v5387_v11 = vsel %vm4449_vm10, %v5382_v20, %v5352_v16  ;;  %v5495_v36 = vmul.f32 0.8, %v5447_v30 }
 0x53d   :  { %v5392_v8 = vsel %vm4458_vm11, %v5387_v11, %v5362_v38  ;;  %v5333_v46 = vrot.slane %v5320_v26, 1  ;;  %v5373_v54 = vrot.slane %v5320_v26, 3  ;;  %v5461_v0 = vor.u32 1.1754944e-38, %v5460_v40 }
 0x53e   :  { %v5397_v15 = vsel %vm4467_vm12, %v5392_v8, %v5372_v28  ;;  %v5500_v12 = vadd.f32 0.1, %v5495_v36  ;;  %vm5459_vm14 = vcmp.eq.f32.partialorder %v5458_v43, 8.507059e+37 }
 0x53f   :  { %v5666_v55 = vmul.f32 -1.442695, %v5397_v15  ;;  %v5343_v22 = vmax.f32 %v5320_v26, %v5333_v46 }
 0x540   :  { %v5702_v63 = vpop.eup %5701  ;;  %5505 = vst [vmem:[#allocation6 + $0x8] sm:$0x1f] %v5500_v12 }
 0x541   :  { %v5450_v50 = vmul.f32 %v5702_v63, %v5416_v3  ;;  %5703 = vpow2.f32 %v5666_v55  ;;  %v5353_v2 = vrot.slane %v5343_v22, 1  ;;  %v5363_v47 = vrot.slane %v5343_v22, 2 }
 0x542   :  { %v5383_v33 = vsel %vm4440_vm9, %v5320_v26, %v5343_v22  ;;  %vm5455_vm13 = vweird.f32 %v5702_v63  ;;  %vm5454_vm9 = vweird.f32 %v5416_v3 }
 0x543   :  { %v5451_v27 = vsub.f32 1.0, %v5450_v50  ;;  %v5388_v18 = vsel %vm4449_vm10, %v5383_v33, %v5353_v2  ;;  %vm5456_vm10 = vmor %vm5454_vm9, %vm5455_vm13 }
 0x544   :  { %v5393_v6 = vsel %vm4458_vm11, %v5388_v18, %v5363_v47 }
 0x545   :  { %v5398_v14 = vsel %vm4467_vm12, %v5393_v6, %v5373_v54  ;;  %v5452_v31 = vmul.f32 %v5702_v63, %v5451_v27 }
 0x546   :  { %v5667_v19 = vmul.f32 -1.442695, %v5398_v14 }
 0x547   :  { %v5704_v62 = vpop.eup %5703  ;;  %v5453_v44 = vadd.f32 %v5702_v63, %v5452_v31 }
 0x548   :  { %v5417_v21 = vadd.f32 1.0, %v5704_v62  ;;  %5705 = vpow2.f32 %v5667_v19 }
 0x549   :  { %v5457_v45 = vsel %vm5456_vm10, %v5702_v63, %v5453_v44 }
 0x54a   :  { %5707 = vrcp.f32 %v5417_v21  ;;  %v5462_v34 = vsel %vm5459_vm14, %v5461_v0, %v5457_v45  ;;  %v5475_v42 = vand.u32 2147483648, %v5417_v21  ;;  %v5473_v29 = vand.u32 2147483647, %v5417_v21 }
 0x54b   :  { %v5496_v1 = vmul.f32 0.8, %v5462_v34  ;;  %vm5469_vm12 = vweird.f32 %v5417_v21 }
 0x54c   :  { %v5476_v53 = vor.u32 1.1754944e-38, %v5475_v42  ;;  %vm5474_vm2 = vcmp.eq.f32.partialorder %v5473_v29, 8.507059e+37 }
 0x54d   :  { %v5501_v51 = vadd.f32 0.1, %v5496_v1 }
 0x54e   :  { %v5706_v61 = vpop.eup %5705 }
 0x54f   :  { %v5418_v24 = vadd.f32 1.0, %v5706_v61  ;;  %5506 = vst [vmem:[#allocation6 + $0x10] sm:$0x1f] %v5501_v51 }
 0x550   :  { %v5708_v48 = vpop.eup %5707 }
 0x551   :  { %v5465_v5 = vmul.f32 %v5708_v48, %v5417_v21  ;;  %5709 = vrcp.f32 %v5418_v24  ;;  %vm5470_vm11 = vweird.f32 %v5708_v48  ;;  %v5490_v58 = vand.u32 2147483648, %v5418_v24 }
 0x552   :  { %vm5471_vm15 = vmor %vm5469_vm12, %vm5470_vm11  ;;  %v5488_v32 = vand.u32 2147483647, %v5418_v24  ;;  %vm5484_vm1 = vweird.f32 %v5418_v24 }
 0x553   :  { %v5466_v60 = vsub.f32 1.0, %v5465_v5  ;;  %v5491_v20 = vor.u32 1.1754944e-38, %v5490_v58 }
 0x554   :  { %vm5489_vm4 = vcmp.eq.f32.partialorder %v5488_v32, 8.507059e+37 }
 0x555   :  { %v5467_v41 = vmul.f32 %v5708_v48, %v5466_v60 }
 0x557   :  { %v5710_v4 = vpop.eup %5709  ;;  %v5468_v17 = vadd.f32 %v5708_v48, %v5467_v41 }
 0x558   :  { %v5480_v23 = vmul.f32 %v5710_v4, %v5418_v24  ;;  %vm5485_vm0 = vweird.f32 %v5710_v4 }
 0x559   :  { %v5472_v37 = vsel %vm5471_vm15, %v5708_v48, %v5468_v17  ;;  %vm5486_vm3 = vmor %vm5484_vm1, %vm5485_vm0 }
 0x55a   :  { %v5481_v59 = vsub.f32 1.0, %v5480_v23  ;;  %v5477_v3 = vsel %vm5474_vm2, %v5476_v53, %v5472_v37 }
 0x55b   :  { %v5497_v10 = vmul.f32 0.8, %v5477_v3 }
 0x55c   :  { %v5482_v52 = vmul.f32 %v5710_v4, %v5481_v59 }
 0x55d   :  { %v5502_v16 = vadd.f32 0.1, %v5497_v10 }
 0x55e   :  { %v5483_v38 = vadd.f32 %v5710_v4, %v5482_v52 }
 0x55f   :  { %5507 = vst [vmem:[#allocation6 + $0x18] sm:$0x1f] %v5502_v16 }
 0x560   :  { %v5487_v28 = vsel %vm5486_vm3, %v5710_v4, %v5483_v38 }
 0x561   :  { %v5492_v26 = vsel %vm5489_vm4, %v5491_v20, %v5487_v28 }
 0x562   :  { %v5498_v25 = vmul.f32 0.8, %v5492_v26 }
 0x564   :  { %v5503_v49 = vadd.f32 0.1, %v5498_v25 }
 0x566   :  { %5508 = vst [vmem:[#allocation6 + $0x20] sm:$0x1f] %v5503_v49 }
 0x567   :  { %5521 = dma.vmem_to_hbm [thread:$0]  %s5514_s6, 640, %s5516_s1, [#allocation7], %s5760_s26, %s5760_s26, %s5761_s27  }
 0x568   :  { %5753 = dma.done.wait [#allocation7], 640  }
 0x569   :  { %5754 = vsyncadd [#allocation7], 4294966656 }
 0x56a   :  { %5526 = vsyncpa [#allocation7], 1 }

</bundles_post_ra>
